<compile_context>
chip_gen: v6e
topology: v6e:2x2x1
jax: 0.10.0
libtpu: 0.0.40
codegen_flags: <defaults>
</compile_context>

<pallas_src>
import functools

import jax
import jax.numpy as jnp
from jax.experimental import pallas as pl
from jax.experimental.pallas import tpu as pltpu

LANE = 128


def _round_up(x, m):
    return (x + m - 1) // m * m


# ----------------- fused conv3x3 (BN folded) + ReLU (+ 2x2 maxpool) kernel ----------------- #

def _conv_stack_kernel(x_ref, w_ref, b_ref, o_ref, xpad_ref, *, pool):
    # x_ref   : (1, H, W, Cin)       bf16   real (un-padded) channels
    # w_ref   : (9, Cin, Cout)       bf16   BN folded, tap-major (ky*3 + kx)
    # b_ref   : (1, Cout)            f32
    # o_ref   : (1, Ho, Wo, Cout)    bf16
    # xpad_ref: (H+2, W+2, Cin)      bf16   zero-border scratch
    _, H, W, Cin = x_ref.shape
    Cout = w_ref.shape[2]

    # Zero only the 1-pixel border (the interior is fully overwritten every grid step).
    zrow = jnp.zeros((1, W + 2, Cin), jnp.bfloat16)
    zcol = jnp.zeros((H, 1, Cin), jnp.bfloat16)
    xpad_ref[0:1, :, :] = zrow
    xpad_ref[H + 1:H + 2, :, :] = zrow
    xpad_ref[1:H + 1, 0:1, :] = zcol
    xpad_ref[1:H + 1, W + 1:W + 2, :] = zcol
    xpad_ref[1:H + 1, 1:W + 1, :] = x_ref[0]

    # 3x3 conv as 9 accumulating MXU matmuls: M = H*W (whole image), K = real Cin, f32 acc.
    acc = jnp.zeros((H * W, Cout), jnp.float32)
    for t, (dy, dx) in enumerate([(dy, dx) for dy in range(3) for dx in range(3)]):
        tap = xpad_ref[dy:dy + H, dx:dx + W, :].reshape(H * W, Cin)      # tile-preserving
        acc = acc + jnp.dot(tap, w_ref[t], preferred_element_type=jnp.float32)
    acc = jnp.maximum(acc + b_ref[...], 0.0)                             # bias + ReLU (f32)

    if pool:  # fused MaxPool2d(2, 2) epilogue
        Ho, Wo = H // 2, W // 2
        a = acc.reshape(Ho, 2, W, Cout)
        vh = jnp.maximum(a[:, 0], a[:, 1])                               # pool over H (leading dim)
        cols = [jnp.maximum(vh[:, 2 * j:2 * j + 1, :], vh[:, 2 * j + 1:2 * j + 2, :])
                for j in range(Wo)]                                      # pool over W
        o_ref[0] = jnp.concatenate(cols, axis=1).astype(o_ref.dtype)     # single slab store
    else:
        o_ref[0] = acc.reshape(H, W, Cout).astype(o_ref.dtype)           # single slab store


def conv_bn_relu_pool(x, w, b, pool):
    """x: (N,H,W,Cin) bf16, w: (9,Cin,Cout) bf16, b: (1,Cout) f32 -> (N,Ho,Wo,Cout) bf16."""
    N, H, W, Cin = x.shape
    Cout = w.shape[2]
    Ho, Wo = (H // 2, W // 2) if pool else (H, W)
    kernel = functools.partial(_conv_stack_kernel, pool=pool)
    return pl.pallas_call(
        kernel,
        out_shape=jax.ShapeDtypeStruct((N, Ho, Wo, Cout), jnp.bfloat16),
        grid_spec=pltpu.PrefetchScalarGridSpec(
            num_scalar_prefetch=0,
            grid=(N,),
            in_specs=[
                pl.BlockSpec((1, H, W, Cin), lambda n: (n, 0, 0, 0)),
                pl.BlockSpec((9, Cin, Cout), lambda n: (0, 0, 0)),   # resident weights
                pl.BlockSpec((1, Cout), lambda n: (0, 0)),           # resident bias
            ],
            out_specs=pl.BlockSpec((1, Ho, Wo, Cout), lambda n: (n, 0, 0, 0)),
            scratch_shapes=[pltpu.VMEM((H + 2, W + 2, Cin), jnp.bfloat16)],
        ),
        # TODO(synk): add a second "parallel" row-block grid axis + vmem_limit_bytes +
        # pl.Buffered(1) weight buffering when scaling to real VGG sizes on v7x.
        compiler_params=pltpu.CompilerParams(dimension_semantics=("parallel",)),
    )(x, w, b)


# ----------------------------- fused 3-layer classifier kernel ----------------------------- #

def _classifier_kernel(x_ref, w1_ref, b1_ref, w2_ref, b2_ref, w3_ref, b3_ref, o_ref):
    # all three Linear layers fused; hidden activations never leave VMEM/vregs
    h = jnp.dot(x_ref[...], w1_ref[...], preferred_element_type=jnp.float32) + b1_ref[...]
    h = jnp.maximum(h, 0.0).astype(jnp.bfloat16)
    # TODO(synk): nn.Dropout is eval-mode identity here; stochastic dropout not implemented.
    h = jnp.dot(h, w2_ref[...], preferred_element_type=jnp.float32) + b2_ref[...]
    h = jnp.maximum(h, 0.0).astype(jnp.bfloat16)
    o_ref[...] = jnp.dot(h, w3_ref[...], preferred_element_type=jnp.float32) + b3_ref[...]


def classifier_forward(x, cls_params):
    (w1, b1), (w2, b2), (w3, b3) = cls_params
    N = x.shape[0]
    ncls_p = w3.shape[1]
    args = (x, w1, b1, w2, b2, w3, b3)
    in_specs = [pl.BlockSpec(a.shape, lambda i: (0, 0)) for a in args]
    return pl.pallas_call(
        _classifier_kernel,
        out_shape=jax.ShapeDtypeStruct((N, ncls_p), jnp.float32),
        grid_spec=pltpu.PrefetchScalarGridSpec(
            num_scalar_prefetch=0,
            grid=(1,),
            in_specs=in_specs,
            out_specs=pl.BlockSpec((N, ncls_p), lambda i: (0, 0)),
        ),
        compiler_params=pltpu.CompilerParams(dimension_semantics=("arbitrary",)),
    )(*args)


# ---------------------------------------- parameters ---------------------------------------- #

def init_raw_params(key, cfg_list, in_channels, out_channel, num_classes):
    """PyTorch-faithful raw parameters (same init as VGG_Leaf._initialize_weights)."""
    hidden = 512 if out_channel <= 1024 else 4096
    feats = []
    c = in_channels
    for v in cfg_list:
        if v == 'M':
            feats.append(('M', None))
        else:
            key, k1 = jax.random.split(key)
            n = 3 * 3 * v
            w = jax.random.normal(k1, (3, 3, c, v), jnp.float32) * jnp.sqrt(2.0 / n)
            b = jnp.zeros((v,), jnp.float32)
            gamma = jnp.ones((v,), jnp.float32)
            beta = jnp.zeros((v,), jnp.float32)
            mean = jnp.zeros((v,), jnp.float32)
            var = jnp.ones((v,), jnp.float32)
            feats.append(('C', (w, b, gamma, beta, mean, var)))
            c = v
    cls = []
    for din, dout in [(out_channel, hidden), (hidden, hidden), (hidden, num_classes)]:
        key, k1 = jax.random.split(key)
        w = jax.random.normal(k1, (din, dout), jnp.float32) * 0.01
        b = jnp.zeros((dout,), jnp.float32)
        cls.append((w, b))
    return {'features': feats, 'classifier': cls}


def prepare_params(raw, eps=1e-5):
    """Fold BN into the conv weights, reshape them tap-major to (9, Cin, Cout) bf16, fuse each
    trailing MaxPool into its conv stack, and fold the NCHW view(N,-1) flatten permutation into
    the first Linear so the classifier consumes the NHWC feature map directly."""
    # TODO(synk): BatchNorm2d training-mode (batch statistics) not implemented; inference
    # running-stat semantics are folded into the conv weights/bias.
    stacks = []
    feats = raw['features']
    i = 0
    while i < len(feats):
        kind, p = feats[i]
        assert kind == 'C', "MaxPool without a preceding conv is not supported"
        w, b, gamma, beta, mean, var = p
        _, _, cin, cout = w.shape
        scale = gamma / jnp.sqrt(var + eps)
        w_eff = w * scale[None, None, None, :]
        b_eff = (b - mean) * scale + beta
        w9 = w_eff.reshape(9, cin, cout).astype(jnp.bfloat16)        # tap-major, real channels
        b2 = b_eff.reshape(1, cout).astype(jnp.float32)
        pool = (i + 1 < len(feats)) and feats[i + 1][0] == 'M'
        stacks.append({'w': w9, 'b': b2, 'cout': cout, 'pool': pool})
        i += 2 if pool else 1

    (w1, b1), (w2, b2_), (w3, b3) = raw['classifier']
    out_channel, hidden = w1.shape
    num_classes = w3.shape[1]
    c_last = stacks[-1]['cout']
    hw = out_channel // c_last
    assert hw * c_last == out_channel, "out_channel must equal C_last * H_last * W_last"
    hidden_p = _round_up(hidden, LANE)
    ncls_p = _round_up(num_classes, LANE)

    # PyTorch flatten index is c*HW + p (NCHW); our NHWC flatten index is p*C + c.  Permute w1's
    # rows accordingly so no transpose is needed between the features and the classifier.
    w1_perm = jnp.transpose(w1.reshape(c_last, hw, hidden), (1, 0, 2)).reshape(out_channel, hidden)
    w1_p = (jnp.zeros((out_channel, hidden_p), jnp.float32)
            .at[:, :hidden].set(w1_perm).astype(jnp.bfloat16))
    b1_p = jnp.zeros((1, hidden_p), jnp.float32).at[0, :hidden].set(b1)
    w2_p = (jnp.zeros((hidden_p, hidden_p), jnp.float32)
            .at[:hidden, :hidden].set(w2).astype(jnp.bfloat16))
    b2_p = jnp.zeros((1, hidden_p), jnp.float32).at[0, :hidden].set(b2_)
    w3_p = (jnp.zeros((hidden_p, ncls_p), jnp.float32)
            .at[:hidden, :num_classes].set(w3).astype(jnp.bfloat16))
    b3_p = jnp.zeros((1, ncls_p), jnp.float32).at[0, :num_classes].set(b3)

    return {'stacks': stacks,
            'classifier': [(w1_p, b1_p), (w2_p, b2_p), (w3_p, b3_p)],
            'num_classes': num_classes}


# ------------------------------------------- forward ------------------------------------------ #

def vgg_leaf_forward(params, x_nchw):
    # input glue: NCHW -> NHWC with the real channel count (no lane padding), bf16 for the MXU
    x = jnp.transpose(x_nchw, (0, 2, 3, 1)).astype(jnp.bfloat16)

    for st in params['stacks']:
        x = conv_bn_relu_pool(x, st['w'], st['b'], st['pool'])

    # The NCHW view(N,-1) permutation is folded into w1, so this is a plain reshape (no
    # transpose, no padding).
    feats = x.reshape(x.shape[0], -1)
    logits_p = classifier_forward(feats, params['classifier'])
    return logits_p[:, :params['num_classes']]


# --------------------------------------------- main ------------------------------------------- #

if __name__ == "__main__":
    key = jax.random.PRNGKey(0)
    kx, kp = jax.random.split(key)

    # small shapes consistent with the module (convs run at 16x16 so all in-kernel reshapes
    # stay (8,128)/(16,128) tile-preserving; exercises both the pool and no-pool conv paths)
    N, Cin, Hs, Ws = 2, 4, 16, 16
    cfg_list = [8, 16, 'M']                       # small VGG-style feature config
    num_classes = 10
    out_channel = 16 * (Hs // 2) * (Ws // 2)      # flattened feature size = 1024 -> hidden = 512

    x = jax.random.normal(kx, (N, Cin, Hs, Ws), jnp.float32)   # NCHW like PyTorch
    raw = init_raw_params(kp, cfg_list, Cin, out_channel, num_classes)
    params = prepare_params(raw)

    forward = jax.jit(functools.partial(vgg_leaf_forward, params))
    out = jax.block_until_ready(forward(x))

    assert out.shape == (N, num_classes), out.shape
    assert bool(jnp.all(jnp.isfinite(out)))
    print("KERNEL_OK")
</pallas_src>

<mosaic_0001>
module attributes {stable_mosaic.version = 11 : i64} {
  func.func @_conv_stack_kernel(%arg0: i32, %arg1: memref<1x16x16x4xbf16, #tpu.memory_space<vmem>>, %arg2: memref<9x4x8xbf16, #tpu.memory_space<vmem>>, %arg3: memref<1x8xf32, #tpu.memory_space<vmem>>, %arg4: memref<1x16x16x8xbf16, #tpu.memory_space<vmem>>, %arg5: memref<18x18x4xbf16, #tpu.memory_space<vmem>>) attributes {dimension_semantics = [#tpu.dimension_semantics<parallel>], iteration_bounds = array<i64: 2>, scalar_prefetch = 0 : i64, scratch_operands = 1 : i64, tpu.core_type = #tpu.core_type<tc>, window_params = [{transform_indices = @transform_0, window_bounds = array<i64: 1, 16, 16, 4>}, {pipeline_mode = #tpu.pipeline_mode<synchronous>, transform_indices = @transform_1, window_bounds = array<i64: 9, 4, 8>}, {pipeline_mode = #tpu.pipeline_mode<synchronous>, transform_indices = @transform_2, window_bounds = array<i64: 1, 8>}, {transform_indices = @transform_3, window_bounds = array<i64: 1, 16, 16, 8>}]} {
    %cst = arith.constant 0.000000e+00 : bf16
    %0 = vector.broadcast %cst : bf16 to vector<1x18x4xbf16>
    %cst_0 = arith.constant 0.000000e+00 : bf16
    %1 = vector.broadcast %cst_0 : bf16 to vector<16x1x4xbf16>
    %c0 = arith.constant 0 : index
    %c0_1 = arith.constant 0 : index
    %c0_2 = arith.constant 0 : index
    %2 = vector.load %arg5[%c0, %c0_1, %c0_2] : memref<18x18x4xbf16, #tpu.memory_space<vmem>>, vector<1x18x4xbf16>
    tpu.vector_store %arg5[%c0, %c0_1, %c0_2], %0 {strides = array<i32>} : memref<18x18x4xbf16, #tpu.memory_space<vmem>>, vector<1x18x4xbf16>,
    %c17 = arith.constant 17 : index
    %c0_3 = arith.constant 0 : index
    %c0_4 = arith.constant 0 : index
    %3 = vector.load %arg5[%c17, %c0_3, %c0_4] : memref<18x18x4xbf16, #tpu.memory_space<vmem>>, vector<1x18x4xbf16>
    tpu.vector_store %arg5[%c17, %c0_3, %c0_4], %0 {strides = array<i32>} : memref<18x18x4xbf16, #tpu.memory_space<vmem>>, vector<1x18x4xbf16>,
    %c1 = arith.constant 1 : index
    %c0_5 = arith.constant 0 : index
    %c0_6 = arith.constant 0 : index
    %4 = vector.load %arg5[%c1, %c0_5, %c0_6] : memref<18x18x4xbf16, #tpu.memory_space<vmem>>, vector<16x1x4xbf16>
    tpu.vector_store %arg5[%c1, %c0_5, %c0_6], %1 {strides = array<i32>} : memref<18x18x4xbf16, #tpu.memory_space<vmem>>, vector<16x1x4xbf16>,
    %c1_7 = arith.constant 1 : index
    %c17_8 = arith.constant 17 : index
    %c0_9 = arith.constant 0 : index
    %5 = vector.load %arg5[%c1_7, %c17_8, %c0_9] : memref<18x18x4xbf16, #tpu.memory_space<vmem>>, vector<16x1x4xbf16>
    tpu.vector_store %arg5[%c1_7, %c17_8, %c0_9], %1 {strides = array<i32>} : memref<18x18x4xbf16, #tpu.memory_space<vmem>>, vector<16x1x4xbf16>,
    %c0_10 = arith.constant 0 : index
    %c0_11 = arith.constant 0 : index
    %c0_12 = arith.constant 0 : index
    %c0_13 = arith.constant 0 : index
    %6 = vector.load %arg1[%c0_10, %c0_11, %c0_12, %c0_13] : memref<1x16x16x4xbf16, #tpu.memory_space<vmem>>, vector<1x16x16x4xbf16>
    %7 = vector.shape_cast %6 : vector<1x16x16x4xbf16> to vector<16x16x4xbf16>
    %c1_14 = arith.constant 1 : index
    %c1_15 = arith.constant 1 : index
    %c0_16 = arith.constant 0 : index
    %8 = vector.load %arg5[%c1_14, %c1_15, %c0_16] : memref<18x18x4xbf16, #tpu.memory_space<vmem>>, vector<16x16x4xbf16>
    tpu.vector_store %arg5[%c1_14, %c1_15, %c0_16], %7 {strides = array<i32>} : memref<18x18x4xbf16, #tpu.memory_space<vmem>>, vector<16x16x4xbf16>,
    %cst_17 = arith.constant 0.000000e+00 : f32
    %9 = vector.broadcast %cst_17 : f32 to vector<256x8xf32>
    %c0_18 = arith.constant 0 : index
    %c0_19 = arith.constant 0 : index
    %c0_20 = arith.constant 0 : index
    %10 = vector.load %arg5[%c0_18, %c0_19, %c0_20] : memref<18x18x4xbf16, #tpu.memory_space<vmem>>, vector<16x16x4xbf16>
    %11 = vector.shape_cast %10 : vector<16x16x4xbf16> to vector<256x4xbf16>
    %c0_21 = arith.constant 0 : index
    %c0_22 = arith.constant 0 : index
    %c0_23 = arith.constant 0 : index
    %12 = vector.load %arg2[%c0_21, %c0_22, %c0_23] : memref<9x4x8xbf16, #tpu.memory_space<vmem>>, vector<1x4x8xbf16>
    %13 = vector.shape_cast %12 : vector<1x4x8xbf16> to vector<4x8xbf16>
    %cst_24 = arith.constant dense<0.000000e+00> : vector<256x8xf32>
    %14 = tpu.matmul %11, %13, %cst_24 {dimension_numbers = #tpu.dot_dimension_numbers<[1], [0], [0], [1], [0, 0, 1, 1], [], []>} : vector<256x4xbf16>, vector<4x8xbf16>, vector<256x8xf32> -> vector<256x8xf32>
    %15 = arith.addf %9, %14 : vector<256x8xf32>
    %c0_25 = arith.constant 0 : index
    %c1_26 = arith.constant 1 : index
    %c0_27 = arith.constant 0 : index
    %16 = vector.load %arg5[%c0_25, %c1_26, %c0_27] : memref<18x18x4xbf16, #tpu.memory_space<vmem>>, vector<16x16x4xbf16>
    %17 = vector.shape_cast %16 : vector<16x16x4xbf16> to vector<256x4xbf16>
    %c1_28 = arith.constant 1 : index
    %c0_29 = arith.constant 0 : index
    %c0_30 = arith.constant 0 : index
    %18 = vector.load %arg2[%c1_28, %c0_29, %c0_30] : memref<9x4x8xbf16, #tpu.memory_space<vmem>>, vector<1x4x8xbf16>
    %19 = vector.shape_cast %18 : vector<1x4x8xbf16> to vector<4x8xbf16>
    %cst_31 = arith.constant dense<0.000000e+00> : vector<256x8xf32>
    %20 = tpu.matmul %17, %19, %cst_31 {dimension_numbers = #tpu.dot_dimension_numbers<[1], [0], [0], [1], [0, 0, 1, 1], [], []>} : vector<256x4xbf16>, vector<4x8xbf16>, vector<256x8xf32> -> vector<256x8xf32>
    %21 = arith.addf %15, %20 : vector<256x8xf32>
    %c0_32 = arith.constant 0 : index
    %c2 = arith.constant 2 : index
    %c0_33 = arith.constant 0 : index
    %22 = vector.load %arg5[%c0_32, %c2, %c0_33] : memref<18x18x4xbf16, #tpu.memory_space<vmem>>, vector<16x16x4xbf16>
    %23 = vector.shape_cast %22 : vector<16x16x4xbf16> to vector<256x4xbf16>
    %c2_34 = arith.constant 2 : index
    %c0_35 = arith.constant 0 : index
    %c0_36 = arith.constant 0 : index
    %24 = vector.load %arg2[%c2_34, %c0_35, %c0_36] : memref<9x4x8xbf16, #tpu.memory_space<vmem>>, vector<1x4x8xbf16>
    %25 = vector.shape_cast %24 : vector<1x4x8xbf16> to vector<4x8xbf16>
    %cst_37 = arith.constant dense<0.000000e+00> : vector<256x8xf32>
    %26 = tpu.matmul %23, %25, %cst_37 {dimension_numbers = #tpu.dot_dimension_numbers<[1], [0], [0], [1], [0, 0, 1, 1], [], []>} : vector<256x4xbf16>, vector<4x8xbf16>, vector<256x8xf32> -> vector<256x8xf32>
    %27 = arith.addf %21, %26 : vector<256x8xf32>
    %c1_38 = arith.constant 1 : index
    %c0_39 = arith.constant 0 : index
    %c0_40 = arith.constant 0 : index
    %28 = vector.load %arg5[%c1_38, %c0_39, %c0_40] : memref<18x18x4xbf16, #tpu.memory_space<vmem>>, vector<16x16x4xbf16>
    %29 = vector.shape_cast %28 : vector<16x16x4xbf16> to vector<256x4xbf16>
    %c3 = arith.constant 3 : index
    %c0_41 = arith.constant 0 : index
    %c0_42 = arith.constant 0 : index
    %30 = vector.load %arg2[%c3, %c0_41, %c0_42] : memref<9x4x8xbf16, #tpu.memory_space<vmem>>, vector<1x4x8xbf16>
    %31 = vector.shape_cast %30 : vector<1x4x8xbf16> to vector<4x8xbf16>
    %cst_43 = arith.constant dense<0.000000e+00> : vector<256x8xf32>
    %32 = tpu.matmul %29, %31, %cst_43 {dimension_numbers = #tpu.dot_dimension_numbers<[1], [0], [0], [1], [0, 0, 1, 1], [], []>} : vector<256x4xbf16>, vector<4x8xbf16>, vector<256x8xf32> -> vector<256x8xf32>
    %33 = arith.addf %27, %32 : vector<256x8xf32>
    %c1_44 = arith.constant 1 : index
    %c1_45 = arith.constant 1 : index
    %c0_46 = arith.constant 0 : index
    %34 = vector.load %arg5[%c1_44, %c1_45, %c0_46] : memref<18x18x4xbf16, #tpu.memory_space<vmem>>, vector<16x16x4xbf16>
    %35 = vector.shape_cast %34 : vector<16x16x4xbf16> to vector<256x4xbf16>
    %c4 = arith.constant 4 : index
    %c0_47 = arith.constant 0 : index
    %c0_48 = arith.constant 0 : index
    %36 = vector.load %arg2[%c4, %c0_47, %c0_48] : memref<9x4x8xbf16, #tpu.memory_space<vmem>>, vector<1x4x8xbf16>
    %37 = vector.shape_cast %36 : vector<1x4x8xbf16> to vector<4x8xbf16>
    %cst_49 = arith.constant dense<0.000000e+00> : vector<256x8xf32>
    %38 = tpu.matmul %35, %37, %cst_49 {dimension_numbers = #tpu.dot_dimension_numbers<[1], [0], [0], [1], [0, 0, 1, 1], [], []>} : vector<256x4xbf16>, vector<4x8xbf16>, vector<256x8xf32> -> vector<256x8xf32>
    %39 = arith.addf %33, %38 : vector<256x8xf32>
    %c1_50 = arith.constant 1 : index
    %c2_51 = arith.constant 2 : index
    %c0_52 = arith.constant 0 : index
    %40 = vector.load %arg5[%c1_50, %c2_51, %c0_52] : memref<18x18x4xbf16, #tpu.memory_space<vmem>>, vector<16x16x4xbf16>
    %41 = vector.shape_cast %40 : vector<16x16x4xbf16> to vector<256x4xbf16>
    %c5 = arith.constant 5 : index
    %c0_53 = arith.constant 0 : index
    %c0_54 = arith.constant 0 : index
    %42 = vector.load %arg2[%c5, %c0_53, %c0_54] : memref<9x4x8xbf16, #tpu.memory_space<vmem>>, vector<1x4x8xbf16>
    %43 = vector.shape_cast %42 : vector<1x4x8xbf16> to vector<4x8xbf16>
    %cst_55 = arith.constant dense<0.000000e+00> : vector<256x8xf32>
    %44 = tpu.matmul %41, %43, %cst_55 {dimension_numbers = #tpu.dot_dimension_numbers<[1], [0], [0], [1], [0, 0, 1, 1], [], []>} : vector<256x4xbf16>, vector<4x8xbf16>, vector<256x8xf32> -> vector<256x8xf32>
    %45 = arith.addf %39, %44 : vector<256x8xf32>
    %c2_56 = arith.constant 2 : index
    %c0_57 = arith.constant 0 : index
    %c0_58 = arith.constant 0 : index
    %46 = vector.load %arg5[%c2_56, %c0_57, %c0_58] : memref<18x18x4xbf16, #tpu.memory_space<vmem>>, vector<16x16x4xbf16>
    %47 = vector.shape_cast %46 : vector<16x16x4xbf16> to vector<256x4xbf16>
    %c6 = arith.constant 6 : index
    %c0_59 = arith.constant 0 : index
    %c0_60 = arith.constant 0 : index
    %48 = vector.load %arg2[%c6, %c0_59, %c0_60] : memref<9x4x8xbf16, #tpu.memory_space<vmem>>, vector<1x4x8xbf16>
    %49 = vector.shape_cast %48 : vector<1x4x8xbf16> to vector<4x8xbf16>
    %cst_61 = arith.constant dense<0.000000e+00> : vector<256x8xf32>
    %50 = tpu.matmul %47, %49, %cst_61 {dimension_numbers = #tpu.dot_dimension_numbers<[1], [0], [0], [1], [0, 0, 1, 1], [], []>} : vector<256x4xbf16>, vector<4x8xbf16>, vector<256x8xf32> -> vector<256x8xf32>
    %51 = arith.addf %45, %50 : vector<256x8xf32>
    %c2_62 = arith.constant 2 : index
    %c1_63 = arith.constant 1 : index
    %c0_64 = arith.constant 0 : index
    %52 = vector.load %arg5[%c2_62, %c1_63, %c0_64] : memref<18x18x4xbf16, #tpu.memory_space<vmem>>, vector<16x16x4xbf16>
    %53 = vector.shape_cast %52 : vector<16x16x4xbf16> to vector<256x4xbf16>
    %c7 = arith.constant 7 : index
    %c0_65 = arith.constant 0 : index
    %c0_66 = arith.constant 0 : index
    %54 = vector.load %arg2[%c7, %c0_65, %c0_66] : memref<9x4x8xbf16, #tpu.memory_space<vmem>>, vector<1x4x8xbf16>
    %55 = vector.shape_cast %54 : vector<1x4x8xbf16> to vector<4x8xbf16>
    %cst_67 = arith.constant dense<0.000000e+00> : vector<256x8xf32>
    %56 = tpu.matmul %53, %55, %cst_67 {dimension_numbers = #tpu.dot_dimension_numbers<[1], [0], [0], [1], [0, 0, 1, 1], [], []>} : vector<256x4xbf16>, vector<4x8xbf16>, vector<256x8xf32> -> vector<256x8xf32>
    %57 = arith.addf %51, %56 : vector<256x8xf32>
    %c2_68 = arith.constant 2 : index
    %c2_69 = arith.constant 2 : index
    %c0_70 = arith.constant 0 : index
    %58 = vector.load %arg5[%c2_68, %c2_69, %c0_70] : memref<18x18x4xbf16, #tpu.memory_space<vmem>>, vector<16x16x4xbf16>
    %59 = vector.shape_cast %58 : vector<16x16x4xbf16> to vector<256x4xbf16>
    %c8 = arith.constant 8 : index
    %c0_71 = arith.constant 0 : index
    %c0_72 = arith.constant 0 : index
    %60 = vector.load %arg2[%c8, %c0_71, %c0_72] : memref<9x4x8xbf16, #tpu.memory_space<vmem>>, vector<1x4x8xbf16>
    %61 = vector.shape_cast %60 : vector<1x4x8xbf16> to vector<4x8xbf16>
    %cst_73 = arith.constant dense<0.000000e+00> : vector<256x8xf32>
    %62 = tpu.matmul %59, %61, %cst_73 {dimension_numbers = #tpu.dot_dimension_numbers<[1], [0], [0], [1], [0, 0, 1, 1], [], []>} : vector<256x4xbf16>, vector<4x8xbf16>, vector<256x8xf32> -> vector<256x8xf32>
    %63 = arith.addf %57, %62 : vector<256x8xf32>
    %c0_74 = arith.constant 0 : index
    %c0_75 = arith.constant 0 : index
    %64 = vector.load %arg3[%c0_74, %c0_75] : memref<1x8xf32, #tpu.memory_space<vmem>>, vector<1x8xf32>
    %65 = vector.broadcast %64 : vector<1x8xf32> to vector<256x8xf32>
    %66 = arith.addf %63, %65 : vector<256x8xf32>
    %cst_76 = arith.constant 0.000000e+00 : f32
    %67 = vector.broadcast %cst_76 : f32 to vector<256x8xf32>
    %68 = arith.maximumf %66, %67 : vector<256x8xf32>
    %69 = vector.shape_cast %68 : vector<256x8xf32> to vector<16x16x8xf32>
    %70 = arith.truncf %69 : vector<16x16x8xf32> to vector<16x16x8xbf16>
    %c0_77 = arith.constant 0 : index
    %c0_78 = arith.constant 0 : index
    %c0_79 = arith.constant 0 : index
    %c0_80 = arith.constant 0 : index
    %71 = vector.load %arg4[%c0_77, %c0_78, %c0_79, %c0_80] : memref<1x16x16x8xbf16, #tpu.memory_space<vmem>>, vector<1x16x16x8xbf16>
    %72 = vector.shape_cast %71 : vector<1x16x16x8xbf16> to vector<16x16x8xbf16>
    %73 = vector.shape_cast %70 : vector<16x16x8xbf16> to vector<1x16x16x8xbf16>
    tpu.vector_store %arg4[%c0_77, %c0_78, %c0_79, %c0_80], %73 {strides = array<i32>} : memref<1x16x16x8xbf16, #tpu.memory_space<vmem>>, vector<1x16x16x8xbf16>,
    return
  }
  func.func @transform_0(%arg0: i32) -> (i32, i32, i32, i32) {
    %c0_i32 = arith.constant 0 : i32
    %c0_i32_0 = arith.constant 0 : i32
    %c0_i32_1 = arith.constant 0 : i32
    %c0_i32_2 = arith.constant 0 : i32
    return %arg0, %c0_i32, %c0_i32_0, %c0_i32_1 : i32, i32, i32, i32
  }
  func.func @transform_1(%arg0: i32) -> (i32, i32, i32) {
    %c0_i32 = arith.constant 0 : i32
    %c0_i32_0 = arith.constant 0 : i32
    %c0_i32_1 = arith.constant 0 : i32
    %c0_i32_2 = arith.constant 0 : i32
    return %c0_i32, %c0_i32_0, %c0_i32_1 : i32, i32, i32
  }
  func.func @transform_2(%arg0: i32) -> (i32, i32) {
    %c0_i32 = arith.constant 0 : i32
    %c0_i32_0 = arith.constant 0 : i32
    %c0_i32_1 = arith.constant 0 : i32
    return %c0_i32, %c0_i32_0 : i32, i32
  }
  func.func @transform_3(%arg0: i32) -> (i32, i32, i32, i32) {
    %c0_i32 = arith.constant 0 : i32
    %c0_i32_0 = arith.constant 0 : i32
    %c0_i32_1 = arith.constant 0 : i32
    %c0_i32_2 = arith.constant 0 : i32
    return %arg0, %c0_i32, %c0_i32_0, %c0_i32_1 : i32, i32, i32, i32
  }
}

module attributes {stable_mosaic.version = 11 : i64} {
  func.func @_classifier_kernel(%arg0: i32, %arg1: memref<2x1024xbf16, #tpu.memory_space<vmem>>, %arg2: memref<1024x512xbf16, #tpu.memory_space<vmem>>, %arg3: memref<1x512xf32, #tpu.memory_space<vmem>>, %arg4: memref<512x512xbf16, #tpu.memory_space<vmem>>, %arg5: memref<1x512xf32, #tpu.memory_space<vmem>>, %arg6: memref<512x128xbf16, #tpu.memory_space<vmem>>, %arg7: memref<1x128xf32, #tpu.memory_space<vmem>>, %arg8: memref<2x128xf32, #tpu.memory_space<vmem>>) attributes {dimension_semantics = [#tpu.dimension_semantics<arbitrary>], iteration_bounds = array<i64: 1>, scalar_prefetch = 0 : i64, scratch_operands = 0 : i64, tpu.core_type = #tpu.core_type<tc>, window_params = [{pipeline_mode = #tpu.pipeline_mode<synchronous>, transform_indices = @transform_0, window_bounds = array<i64: 2, 1024>}, {pipeline_mode = #tpu.pipeline_mode<synchronous>, transform_indices = @transform_1, window_bounds = array<i64: 1024, 512>}, {pipeline_mode = #tpu.pipeline_mode<synchronous>, transform_indices = @transform_2, window_bounds = array<i64: 1, 512>}, {pipeline_mode = #tpu.pipeline_mode<synchronous>, transform_indices = @transform_3, window_bounds = array<i64: 512, 512>}, {pipeline_mode = #tpu.pipeline_mode<synchronous>, transform_indices = @transform_4, window_bounds = array<i64: 1, 512>}, {pipeline_mode = #tpu.pipeline_mode<synchronous>, transform_indices = @transform_5, window_bounds = array<i64: 512, 128>}, {pipeline_mode = #tpu.pipeline_mode<synchronous>, transform_indices = @transform_6, window_bounds = array<i64: 1, 128>}, {pipeline_mode = #tpu.pipeline_mode<synchronous>, transform_indices = @transform_7, window_bounds = array<i64: 2, 128>}]} {
    %c0 = arith.constant 0 : index
    %c0_0 = arith.constant 0 : index
    %0 = vector.load %arg1[%c0, %c0_0] : memref<2x1024xbf16, #tpu.memory_space<vmem>>, vector<2x1024xbf16>
    %c0_1 = arith.constant 0 : index
    %c0_2 = arith.constant 0 : index
    %1 = vector.load %arg2[%c0_1, %c0_2] : memref<1024x512xbf16, #tpu.memory_space<vmem>>, vector<1024x512xbf16>
    %cst = arith.constant dense<0.000000e+00> : vector<2x512xf32>
    %2 = tpu.matmul %0, %1, %cst {dimension_numbers = #tpu.dot_dimension_numbers<[1], [0], [0], [1], [0, 0, 1, 1], [], []>} : vector<2x1024xbf16>, vector<1024x512xbf16>, vector<2x512xf32> -> vector<2x512xf32>
    %c0_3 = arith.constant 0 : index
    %c0_4 = arith.constant 0 : index
    %3 = vector.load %arg3[%c0_3, %c0_4] : memref<1x512xf32, #tpu.memory_space<vmem>>, vector<1x512xf32>
    %4 = vector.broadcast %3 : vector<1x512xf32> to vector<2x512xf32>
    %5 = arith.addf %2, %4 : vector<2x512xf32>
    %cst_5 = arith.constant 0.000000e+00 : f32
    %6 = vector.broadcast %cst_5 : f32 to vector<2x512xf32>
    %7 = arith.maximumf %5, %6 : vector<2x512xf32>
    %8 = arith.truncf %7 : vector<2x512xf32> to vector<2x512xbf16>
    %c0_6 = arith.constant 0 : index
    %c0_7 = arith.constant 0 : index
    %9 = vector.load %arg4[%c0_6, %c0_7] : memref<512x512xbf16, #tpu.memory_space<vmem>>, vector<512x512xbf16>
    %cst_8 = arith.constant dense<0.000000e+00> : vector<2x512xf32>
    %10 = tpu.matmul %8, %9, %cst_8 {dimension_numbers = #tpu.dot_dimension_numbers<[1], [0], [0], [1], [0, 0, 1, 1], [], []>} : vector<2x512xbf16>, vector<512x512xbf16>, vector<2x512xf32> -> vector<2x512xf32>
    %c0_9 = arith.constant 0 : index
    %c0_10 = arith.constant 0 : index
    %11 = vector.load %arg5[%c0_9, %c0_10] : memref<1x512xf32, #tpu.memory_space<vmem>>, vector<1x512xf32>
    %12 = vector.broadcast %11 : vector<1x512xf32> to vector<2x512xf32>
    %13 = arith.addf %10, %12 : vector<2x512xf32>
    %cst_11 = arith.constant 0.000000e+00 : f32
    %14 = vector.broadcast %cst_11 : f32 to vector<2x512xf32>
    %15 = arith.maximumf %13, %14 : vector<2x512xf32>
    %16 = arith.truncf %15 : vector<2x512xf32> to vector<2x512xbf16>
    %c0_12 = arith.constant 0 : index
    %c0_13 = arith.constant 0 : index
    %17 = vector.load %arg6[%c0_12, %c0_13] : memref<512x128xbf16, #tpu.memory_space<vmem>>, vector<512x128xbf16>
    %cst_14 = arith.constant dense<0.000000e+00> : vector<2x128xf32>
    %18 = tpu.matmul %16, %17, %cst_14 {dimension_numbers = #tpu.dot_dimension_numbers<[1], [0], [0], [1], [0, 0, 1, 1], [], []>} : vector<2x512xbf16>, vector<512x128xbf16>, vector<2x128xf32> -> vector<2x128xf32>
    %c0_15 = arith.constant 0 : index
    %c0_16 = arith.constant 0 : index
    %19 = vector.load %arg7[%c0_15, %c0_16] : memref<1x128xf32, #tpu.memory_space<vmem>>, vector<1x128xf32>
    %20 = vector.broadcast %19 : vector<1x128xf32> to vector<2x128xf32>
    %21 = arith.addf %18, %20 : vector<2x128xf32>
    %c0_17 = arith.constant 0 : index
    %c0_18 = arith.constant 0 : index
    %22 = vector.load %arg8[%c0_17, %c0_18] : memref<2x128xf32, #tpu.memory_space<vmem>>, vector<2x128xf32>
    tpu.vector_store %arg8[%c0_17, %c0_18], %21 {strides = array<i32>} : memref<2x128xf32, #tpu.memory_space<vmem>>, vector<2x128xf32>,
    return
  }
  func.func @transform_0(%arg0: i32) -> (i32, i32) {
    %c0_i32 = arith.constant 0 : i32
    %c0_i32_0 = arith.constant 0 : i32
    %c0_i32_1 = arith.constant 0 : i32
    return %c0_i32, %c0_i32_0 : i32, i32
  }
  func.func @transform_1(%arg0: i32) -> (i32, i32) {
    %c0_i32 = arith.constant 0 : i32
    %c0_i32_0 = arith.constant 0 : i32
    %c0_i32_1 = arith.constant 0 : i32
    return %c0_i32, %c0_i32_0 : i32, i32
  }
  func.func @transform_2(%arg0: i32) -> (i32, i32) {
    %c0_i32 = arith.constant 0 : i32
    %c0_i32_0 = arith.constant 0 : i32
    %c0_i32_1 = arith.constant 0 : i32
    return %c0_i32, %c0_i32_0 : i32, i32
  }
  func.func @transform_3(%arg0: i32) -> (i32, i32) {
    %c0_i32 = arith.constant 0 : i32
    %c0_i32_0 = arith.constant 0 : i32
    %c0_i32_1 = arith.constant 0 : i32
    return %c0_i32, %c0_i32_0 : i32, i32
  }
  func.func @transform_4(%arg0: i32) -> (i32, i32) {
    %c0_i32 = arith.constant 0 : i32
    %c0_i32_0 = arith.constant 0 : i32
    %c0_i32_1 = arith.constant 0 : i32
    return %c0_i32, %c0_i32_0 : i32, i32
  }
  func.func @transform_5(%arg0: i32) -> (i32, i32) {
    %c0_i32 = arith.constant 0 : i32
    %c0_i32_0 = arith.constant 0 : i32
    %c0_i32_1 = arith.constant 0 : i32
    return %c0_i32, %c0_i32_0 : i32, i32
  }
  func.func @transform_6(%arg0: i32) -> (i32, i32) {
    %c0_i32 = arith.constant 0 : i32
    %c0_i32_0 = arith.constant 0 : i32
    %c0_i32_1 = arith.constant 0 : i32
    return %c0_i32, %c0_i32_0 : i32, i32
  }
  func.func @transform_7(%arg0: i32) -> (i32, i32) {
    %c0_i32 = arith.constant 0 : i32
    %c0_i32_0 = arith.constant 0 : i32
    %c0_i32_1 = arith.constant 0 : i32
    return %c0_i32, %c0_i32_0 : i32, i32
  }
}

module attributes {stable_mosaic.version = 11 : i64} {
  func.func @_conv_stack_kernel(%arg0: i32, %arg1: memref<1x16x16x8xbf16, #tpu.memory_space<vmem>>, %arg2: memref<9x8x16xbf16, #tpu.memory_space<vmem>>, %arg3: memref<1x16xf32, #tpu.memory_space<vmem>>, %arg4: memref<1x8x8x16xbf16, #tpu.memory_space<vmem>>, %arg5: memref<18x18x8xbf16, #tpu.memory_space<vmem>>) attributes {dimension_semantics = [#tpu.dimension_semantics<parallel>], iteration_bounds = array<i64: 2>, scalar_prefetch = 0 : i64, scratch_operands = 1 : i64, tpu.core_type = #tpu.core_type<tc>, window_params = [{transform_indices = @transform_0, window_bounds = array<i64: 1, 16, 16, 8>}, {pipeline_mode = #tpu.pipeline_mode<synchronous>, transform_indices = @transform_1, window_bounds = array<i64: 9, 8, 16>}, {pipeline_mode = #tpu.pipeline_mode<synchronous>, transform_indices = @transform_2, window_bounds = array<i64: 1, 16>}, {transform_indices = @transform_3, window_bounds = array<i64: 1, 8, 8, 16>}]} {
    %cst = arith.constant 0.000000e+00 : bf16
    %0 = vector.broadcast %cst : bf16 to vector<1x18x8xbf16>
    %cst_0 = arith.constant 0.000000e+00 : bf16
    %1 = vector.broadcast %cst_0 : bf16 to vector<16x1x8xbf16>
    %c0 = arith.constant 0 : index
    %c0_1 = arith.constant 0 : index
    %c0_2 = arith.constant 0 : index
    %2 = vector.load %arg5[%c0, %c0_1, %c0_2] : memref<18x18x8xbf16, #tpu.memory_space<vmem>>, vector<1x18x8xbf16>
    tpu.vector_store %arg5[%c0, %c0_1, %c0_2], %0 {strides = array<i32>} : memref<18x18x8xbf16, #tpu.memory_space<vmem>>, vector<1x18x8xbf16>,
    %c17 = arith.constant 17 : index
    %c0_3 = arith.constant 0 : index
    %c0_4 = arith.constant 0 : index
    %3 = vector.load %arg5[%c17, %c0_3, %c0_4] : memref<18x18x8xbf16, #tpu.memory_space<vmem>>, vector<1x18x8xbf16>
    tpu.vector_store %arg5[%c17, %c0_3, %c0_4], %0 {strides = array<i32>} : memref<18x18x8xbf16, #tpu.memory_space<vmem>>, vector<1x18x8xbf16>,
    %c1 = arith.constant 1 : index
    %c0_5 = arith.constant 0 : index
    %c0_6 = arith.constant 0 : index
    %4 = vector.load %arg5[%c1, %c0_5, %c0_6] : memref<18x18x8xbf16, #tpu.memory_space<vmem>>, vector<16x1x8xbf16>
    tpu.vector_store %arg5[%c1, %c0_5, %c0_6], %1 {strides = array<i32>} : memref<18x18x8xbf16, #tpu.memory_space<vmem>>, vector<16x1x8xbf16>,
    %c1_7 = arith.constant 1 : index
    %c17_8 = arith.constant 17 : index
    %c0_9 = arith.constant 0 : index
    %5 = vector.load %arg5[%c1_7, %c17_8, %c0_9] : memref<18x18x8xbf16, #tpu.memory_space<vmem>>, vector<16x1x8xbf16>
    tpu.vector_store %arg5[%c1_7, %c17_8, %c0_9], %1 {strides = array<i32>} : memref<18x18x8xbf16, #tpu.memory_space<vmem>>, vector<16x1x8xbf16>,
    %c0_10 = arith.constant 0 : index
    %c0_11 = arith.constant 0 : index
    %c0_12 = arith.constant 0 : index
    %c0_13 = arith.constant 0 : index
    %6 = vector.load %arg1[%c0_10, %c0_11, %c0_12, %c0_13] : memref<1x16x16x8xbf16, #tpu.memory_space<vmem>>, vector<1x16x16x8xbf16>
    %7 = vector.shape_cast %6 : vector<1x16x16x8xbf16> to vector<16x16x8xbf16>
    %c1_14 = arith.constant 1 : index
    %c1_15 = arith.constant 1 : index
    %c0_16 = arith.constant 0 : index
    %8 = vector.load %arg5[%c1_14, %c1_15, %c0_16] : memref<18x18x8xbf16, #tpu.memory_space<vmem>>, vector<16x16x8xbf16>
    tpu.vector_store %arg5[%c1_14, %c1_15, %c0_16], %7 {strides = array<i32>} : memref<18x18x8xbf16, #tpu.memory_space<vmem>>, vector<16x16x8xbf16>,
    %cst_17 = arith.constant 0.000000e+00 : f32
    %9 = vector.broadcast %cst_17 : f32 to vector<256x16xf32>
    %c0_18 = arith.constant 0 : index
    %c0_19 = arith.constant 0 : index
    %c0_20 = arith.constant 0 : index
    %10 = vector.load %arg5[%c0_18, %c0_19, %c0_20] : memref<18x18x8xbf16, #tpu.memory_space<vmem>>, vector<16x16x8xbf16>
    %11 = vector.shape_cast %10 : vector<16x16x8xbf16> to vector<256x8xbf16>
    %c0_21 = arith.constant 0 : index
    %c0_22 = arith.constant 0 : index
    %c0_23 = arith.constant 0 : index
    %12 = vector.load %arg2[%c0_21, %c0_22, %c0_23] : memref<9x8x16xbf16, #tpu.memory_space<vmem>>, vector<1x8x16xbf16>
    %13 = vector.shape_cast %12 : vector<1x8x16xbf16> to vector<8x16xbf16>
    %cst_24 = arith.constant dense<0.000000e+00> : vector<256x16xf32>
    %14 = tpu.matmul %11, %13, %cst_24 {dimension_numbers = #tpu.dot_dimension_numbers<[1], [0], [0], [1], [0, 0, 1, 1], [], []>} : vector<256x8xbf16>, vector<8x16xbf16>, vector<256x16xf32> -> vector<256x16xf32>
    %15 = arith.addf %9, %14 : vector<256x16xf32>
    %c0_25 = arith.constant 0 : index
    %c1_26 = arith.constant 1 : index
    %c0_27 = arith.constant 0 : index
    %16 = vector.load %arg5[%c0_25, %c1_26, %c0_27] : memref<18x18x8xbf16, #tpu.memory_space<vmem>>, vector<16x16x8xbf16>
    %17 = vector.shape_cast %16 : vector<16x16x8xbf16> to vector<256x8xbf16>
    %c1_28 = arith.constant 1 : index
    %c0_29 = arith.constant 0 : index
    %c0_30 = arith.constant 0 : index
    %18 = vector.load %arg2[%c1_28, %c0_29, %c0_30] : memref<9x8x16xbf16, #tpu.memory_space<vmem>>, vector<1x8x16xbf16>
    %19 = vector.shape_cast %18 : vector<1x8x16xbf16> to vector<8x16xbf16>
    %cst_31 = arith.constant dense<0.000000e+00> : vector<256x16xf32>
    %20 = tpu.matmul %17, %19, %cst_31 {dimension_numbers = #tpu.dot_dimension_numbers<[1], [0], [0], [1], [0, 0, 1, 1], [], []>} : vector<256x8xbf16>, vector<8x16xbf16>, vector<256x16xf32> -> vector<256x16xf32>
    %21 = arith.addf %15, %20 : vector<256x16xf32>
    %c0_32 = arith.constant 0 : index
    %c2 = arith.constant 2 : index
    %c0_33 = arith.constant 0 : index
    %22 = vector.load %arg5[%c0_32, %c2, %c0_33] : memref<18x18x8xbf16, #tpu.memory_space<vmem>>, vector<16x16x8xbf16>
    %23 = vector.shape_cast %22 : vector<16x16x8xbf16> to vector<256x8xbf16>
    %c2_34 = arith.constant 2 : index
    %c0_35 = arith.constant 0 : index
    %c0_36 = arith.constant 0 : index
    %24 = vector.load %arg2[%c2_34, %c0_35, %c0_36] : memref<9x8x16xbf16, #tpu.memory_space<vmem>>, vector<1x8x16xbf16>
    %25 = vector.shape_cast %24 : vector<1x8x16xbf16> to vector<8x16xbf16>
    %cst_37 = arith.constant dense<0.000000e+00> : vector<256x16xf32>
    %26 = tpu.matmul %23, %25, %cst_37 {dimension_numbers = #tpu.dot_dimension_numbers<[1], [0], [0], [1], [0, 0, 1, 1], [], []>} : vector<256x8xbf16>, vector<8x16xbf16>, vector<256x16xf32> -> vector<256x16xf32>
    %27 = arith.addf %21, %26 : vector<256x16xf32>
    %c1_38 = arith.constant 1 : index
    %c0_39 = arith.constant 0 : index
    %c0_40 = arith.constant 0 : index
    %28 = vector.load %arg5[%c1_38, %c0_39, %c0_40] : memref<18x18x8xbf16, #tpu.memory_space<vmem>>, vector<16x16x8xbf16>
    %29 = vector.shape_cast %28 : vector<16x16x8xbf16> to vector<256x8xbf16>
    %c3 = arith.constant 3 : index
    %c0_41 = arith.constant 0 : index
    %c0_42 = arith.constant 0 : index
    %30 = vector.load %arg2[%c3, %c0_41, %c0_42] : memref<9x8x16xbf16, #tpu.memory_space<vmem>>, vector<1x8x16xbf16>
    %31 = vector.shape_cast %30 : vector<1x8x16xbf16> to vector<8x16xbf16>
    %cst_43 = arith.constant dense<0.000000e+00> : vector<256x16xf32>
    %32 = tpu.matmul %29, %31, %cst_43 {dimension_numbers = #tpu.dot_dimension_numbers<[1], [0], [0], [1], [0, 0, 1, 1], [], []>} : vector<256x8xbf16>, vector<8x16xbf16>, vector<256x16xf32> -> vector<256x16xf32>
    %33 = arith.addf %27, %32 : vector<256x16xf32>
    %c1_44 = arith.constant 1 : index
    %c1_45 = arith.constant 1 : index
    %c0_46 = arith.constant 0 : index
    %34 = vector.load %arg5[%c1_44, %c1_45, %c0_46] : memref<18x18x8xbf16, #tpu.memory_space<vmem>>, vector<16x16x8xbf16>
    %35 = vector.shape_cast %34 : vector<16x16x8xbf16> to vector<256x8xbf16>
    %c4 = arith.constant 4 : index
    %c0_47 = arith.constant 0 : index
    %c0_48 = arith.constant 0 : index
    %36 = vector.load %arg2[%c4, %c0_47, %c0_48] : memref<9x8x16xbf16, #tpu.memory_space<vmem>>, vector<1x8x16xbf16>
    %37 = vector.shape_cast %36 : vector<1x8x16xbf16> to vector<8x16xbf16>
    %cst_49 = arith.constant dense<0.000000e+00> : vector<256x16xf32>
    %38 = tpu.matmul %35, %37, %cst_49 {dimension_numbers = #tpu.dot_dimension_numbers<[1], [0], [0], [1], [0, 0, 1, 1], [], []>} : vector<256x8xbf16>, vector<8x16xbf16>, vector<256x16xf32> -> vector<256x16xf32>
    %39 = arith.addf %33, %38 : vector<256x16xf32>
    %c1_50 = arith.constant 1 : index
    %c2_51 = arith.constant 2 : index
    %c0_52 = arith.constant 0 : index
    %40 = vector.load %arg5[%c1_50, %c2_51, %c0_52] : memref<18x18x8xbf16, #tpu.memory_space<vmem>>, vector<16x16x8xbf16>
    %41 = vector.shape_cast %40 : vector<16x16x8xbf16> to vector<256x8xbf16>
    %c5 = arith.constant 5 : index
    %c0_53 = arith.constant 0 : index
    %c0_54 = arith.constant 0 : index
    %42 = vector.load %arg2[%c5, %c0_53, %c0_54] : memref<9x8x16xbf16, #tpu.memory_space<vmem>>, vector<1x8x16xbf16>
    %43 = vector.shape_cast %42 : vector<1x8x16xbf16> to vector<8x16xbf16>
    %cst_55 = arith.constant dense<0.000000e+00> : vector<256x16xf32>
    %44 = tpu.matmul %41, %43, %cst_55 {dimension_numbers = #tpu.dot_dimension_numbers<[1], [0], [0], [1], [0, 0, 1, 1], [], []>} : vector<256x8xbf16>, vector<8x16xbf16>, vector<256x16xf32> -> vector<256x16xf32>
    %45 = arith.addf %39, %44 : vector<256x16xf32>
    %c2_56 = arith.constant 2 : index
    %c0_57 = arith.constant 0 : index
    %c0_58 = arith.constant 0 : index
    %46 = vector.load %arg5[%c2_56, %c0_57, %c0_58] : memref<18x18x8xbf16, #tpu.memory_space<vmem>>, vector<16x16x8xbf16>
    %47 = vector.shape_cast %46 : vector<16x16x8xbf16> to vector<256x8xbf16>
    %c6 = arith.constant 6 : index
    %c0_59 = arith.constant 0 : index
    %c0_60 = arith.constant 0 : index
    %48 = vector.load %arg2[%c6, %c0_59, %c0_60] : memref<9x8x16xbf16, #tpu.memory_space<vmem>>, vector<1x8x16xbf16>
    %49 = vector.shape_cast %48 : vector<1x8x16xbf16> to vector<8x16xbf16>
    %cst_61 = arith.constant dense<0.000000e+00> : vector<256x16xf32>
    %50 = tpu.matmul %47, %49, %cst_61 {dimension_numbers = #tpu.dot_dimension_numbers<[1], [0], [0], [1], [0, 0, 1, 1], [], []>} : vector<256x8xbf16>, vector<8x16xbf16>, vector<256x16xf32> -> vector<256x16xf32>
    %51 = arith.addf %45, %50 : vector<256x16xf32>
    %c2_62 = arith.constant 2 : index
    %c1_63 = arith.constant 1 : index
    %c0_64 = arith.constant 0 : index
    %52 = vector.load %arg5[%c2_62, %c1_63, %c0_64] : memref<18x18x8xbf16, #tpu.memory_space<vmem>>, vector<16x16x8xbf16>
    %53 = vector.shape_cast %52 : vector<16x16x8xbf16> to vector<256x8xbf16>
    %c7 = arith.constant 7 : index
    %c0_65 = arith.constant 0 : index
    %c0_66 = arith.constant 0 : index
    %54 = vector.load %arg2[%c7, %c0_65, %c0_66] : memref<9x8x16xbf16, #tpu.memory_space<vmem>>, vector<1x8x16xbf16>
    %55 = vector.shape_cast %54 : vector<1x8x16xbf16> to vector<8x16xbf16>
    %cst_67 = arith.constant dense<0.000000e+00> : vector<256x16xf32>
    %56 = tpu.matmul %53, %55, %cst_67 {dimension_numbers = #tpu.dot_dimension_numbers<[1], [0], [0], [1], [0, 0, 1, 1], [], []>} : vector<256x8xbf16>, vector<8x16xbf16>, vector<256x16xf32> -> vector<256x16xf32>
    %57 = arith.addf %51, %56 : vector<256x16xf32>
    %c2_68 = arith.constant 2 : index
    %c2_69 = arith.constant 2 : index
    %c0_70 = arith.constant 0 : index
    %58 = vector.load %arg5[%c2_68, %c2_69, %c0_70] : memref<18x18x8xbf16, #tpu.memory_space<vmem>>, vector<16x16x8xbf16>
    %59 = vector.shape_cast %58 : vector<16x16x8xbf16> to vector<256x8xbf16>
    %c8 = arith.constant 8 : index
    %c0_71 = arith.constant 0 : index
    %c0_72 = arith.constant 0 : index
    %60 = vector.load %arg2[%c8, %c0_71, %c0_72] : memref<9x8x16xbf16, #tpu.memory_space<vmem>>, vector<1x8x16xbf16>
    %61 = vector.shape_cast %60 : vector<1x8x16xbf16> to vector<8x16xbf16>
    %cst_73 = arith.constant dense<0.000000e+00> : vector<256x16xf32>
    %62 = tpu.matmul %59, %61, %cst_73 {dimension_numbers = #tpu.dot_dimension_numbers<[1], [0], [0], [1], [0, 0, 1, 1], [], []>} : vector<256x8xbf16>, vector<8x16xbf16>, vector<256x16xf32> -> vector<256x16xf32>
    %63 = arith.addf %57, %62 : vector<256x16xf32>
    %c0_74 = arith.constant 0 : index
    %c0_75 = arith.constant 0 : index
    %64 = vector.load %arg3[%c0_74, %c0_75] : memref<1x16xf32, #tpu.memory_space<vmem>>, vector<1x16xf32>
    %65 = vector.broadcast %64 : vector<1x16xf32> to vector<256x16xf32>
    %66 = arith.addf %63, %65 : vector<256x16xf32>
    %cst_76 = arith.constant 0.000000e+00 : f32
    %67 = vector.broadcast %cst_76 : f32 to vector<256x16xf32>
    %68 = arith.maximumf %66, %67 : vector<256x16xf32>
    %69 = vector.shape_cast %68 : vector<256x16xf32> to vector<8x2x16x16xf32>
    %70 = vector.extract_strided_slice %69 {offsets = [0, 0, 0, 0], sizes = [8, 1, 16, 16], strides = [1, 1, 1, 1]} : vector<8x2x16x16xf32> to vector<8x1x16x16xf32>
    %71 = vector.shape_cast %70 : vector<8x1x16x16xf32> to vector<8x16x16xf32>
    %72 = vector.extract_strided_slice %69 {offsets = [0, 1, 0, 0], sizes = [8, 1, 16, 16], strides = [1, 1, 1, 1]} : vector<8x2x16x16xf32> to vector<8x1x16x16xf32>
    %73 = vector.shape_cast %72 : vector<8x1x16x16xf32> to vector<8x16x16xf32>
    %74 = arith.maximumf %71, %73 : vector<8x16x16xf32>
    %75 = vector.extract_strided_slice %74 {offsets = [0, 0, 0], sizes = [8, 1, 16], strides = [1, 1, 1]} : vector<8x16x16xf32> to vector<8x1x16xf32>
    %76 = vector.extract_strided_slice %74 {offsets = [0, 1, 0], sizes = [8, 1, 16], strides = [1, 1, 1]} : vector<8x16x16xf32> to vector<8x1x16xf32>
    %77 = arith.maximumf %75, %76 : vector<8x1x16xf32>
    %78 = vector.extract_strided_slice %74 {offsets = [0, 2, 0], sizes = [8, 1, 16], strides = [1, 1, 1]} : vector<8x16x16xf32> to vector<8x1x16xf32>
    %79 = vector.extract_strided_slice %74 {offsets = [0, 3, 0], sizes = [8, 1, 16], strides = [1, 1, 1]} : vector<8x16x16xf32> to vector<8x1x16xf32>
    %80 = arith.maximumf %78, %79 : vector<8x1x16xf32>
    %81 = vector.extract_strided_slice %74 {offsets = [0, 4, 0], sizes = [8, 1, 16], strides = [1, 1, 1]} : vector<8x16x16xf32> to vector<8x1x16xf32>
    %82 = vector.extract_strided_slice %74 {offsets = [0, 5, 0], sizes = [8, 1, 16], strides = [1, 1, 1]} : vector<8x16x16xf32> to vector<8x1x16xf32>
    %83 = arith.maximumf %81, %82 : vector<8x1x16xf32>
    %84 = vector.extract_strided_slice %74 {offsets = [0, 6, 0], sizes = [8, 1, 16], strides = [1, 1, 1]} : vector<8x16x16xf32> to vector<8x1x16xf32>
    %85 = vector.extract_strided_slice %74 {offsets = [0, 7, 0], sizes = [8, 1, 16], strides = [1, 1, 1]} : vector<8x16x16xf32> to vector<8x1x16xf32>
    %86 = arith.maximumf %84, %85 : vector<8x1x16xf32>
    %87 = vector.extract_strided_slice %74 {offsets = [0, 8, 0], sizes = [8, 1, 16], strides = [1, 1, 1]} : vector<8x16x16xf32> to vector<8x1x16xf32>
    %88 = vector.extract_strided_slice %74 {offsets = [0, 9, 0], sizes = [8, 1, 16], strides = [1, 1, 1]} : vector<8x16x16xf32> to vector<8x1x16xf32>
    %89 = arith.maximumf %87, %88 : vector<8x1x16xf32>
    %90 = vector.extract_strided_slice %74 {offsets = [0, 10, 0], sizes = [8, 1, 16], strides = [1, 1, 1]} : vector<8x16x16xf32> to vector<8x1x16xf32>
    %91 = vector.extract_strided_slice %74 {offsets = [0, 11, 0], sizes = [8, 1, 16], strides = [1, 1, 1]} : vector<8x16x16xf32> to vector<8x1x16xf32>
    %92 = arith.maximumf %90, %91 : vector<8x1x16xf32>
    %93 = vector.extract_strided_slice %74 {offsets = [0, 12, 0], sizes = [8, 1, 16], strides = [1, 1, 1]} : vector<8x16x16xf32> to vector<8x1x16xf32>
    %94 = vector.extract_strided_slice %74 {offsets = [0, 13, 0], sizes = [8, 1, 16], strides = [1, 1, 1]} : vector<8x16x16xf32> to vector<8x1x16xf32>
    %95 = arith.maximumf %93, %94 : vector<8x1x16xf32>
    %96 = vector.extract_strided_slice %74 {offsets = [0, 14, 0], sizes = [8, 1, 16], strides = [1, 1, 1]} : vector<8x16x16xf32> to vector<8x1x16xf32>
    %97 = vector.extract_strided_slice %74 {offsets = [0, 15, 0], sizes = [8, 1, 16], strides = [1, 1, 1]} : vector<8x16x16xf32> to vector<8x1x16xf32>
    %98 = arith.maximumf %96, %97 : vector<8x1x16xf32>
    %99 = tpu.concatenate %77, %80, %83, %86, %89, %92, %95, %98 in 1 : vector<8x1x16xf32>, vector<8x1x16xf32>, vector<8x1x16xf32>, vector<8x1x16xf32>, vector<8x1x16xf32>, vector<8x1x16xf32>, vector<8x1x16xf32>, vector<8x1x16xf32> -> vector<8x8x16xf32>
    %100 = arith.truncf %99 : vector<8x8x16xf32> to vector<8x8x16xbf16>
    %c0_77 = arith.constant 0 : index
    %c0_78 = arith.constant 0 : index
    %c0_79 = arith.constant 0 : index
    %c0_80 = arith.constant 0 : index
    %101 = vector.load %arg4[%c0_77, %c0_78, %c0_79, %c0_80] : memref<1x8x8x16xbf16, #tpu.memory_space<vmem>>, vector<1x8x8x16xbf16>
    %102 = vector.shape_cast %101 : vector<1x8x8x16xbf16> to vector<8x8x16xbf16>
    %103 = vector.shape_cast %100 : vector<8x8x16xbf16> to vector<1x8x8x16xbf16>
    tpu.vector_store %arg4[%c0_77, %c0_78, %c0_79, %c0_80], %103 {strides = array<i32>} : memref<1x8x8x16xbf16, #tpu.memory_space<vmem>>, vector<1x8x8x16xbf16>,
    return
  }
  func.func @transform_0(%arg0: i32) -> (i32, i32, i32, i32) {
    %c0_i32 = arith.constant 0 : i32
    %c0_i32_0 = arith.constant 0 : i32
    %c0_i32_1 = arith.constant 0 : i32
    %c0_i32_2 = arith.constant 0 : i32
    return %arg0, %c0_i32, %c0_i32_0, %c0_i32_1 : i32, i32, i32, i32
  }
  func.func @transform_1(%arg0: i32) -> (i32, i32, i32) {
    %c0_i32 = arith.constant 0 : i32
    %c0_i32_0 = arith.constant 0 : i32
    %c0_i32_1 = arith.constant 0 : i32
    %c0_i32_2 = arith.constant 0 : i32
    return %c0_i32, %c0_i32_0, %c0_i32_1 : i32, i32, i32
  }
  func.func @transform_2(%arg0: i32) -> (i32, i32) {
    %c0_i32 = arith.constant 0 : i32
    %c0_i32_0 = arith.constant 0 : i32
    %c0_i32_1 = arith.constant 0 : i32
    return %c0_i32, %c0_i32_0 : i32, i32
  }
  func.func @transform_3(%arg0: i32) -> (i32, i32, i32, i32) {
    %c0_i32 = arith.constant 0 : i32
    %c0_i32_0 = arith.constant 0 : i32
    %c0_i32_1 = arith.constant 0 : i32
    %c0_i32_2 = arith.constant 0 : i32
    return %arg0, %c0_i32, %c0_i32_0, %c0_i32_1 : i32, i32, i32, i32
  }
}

</mosaic_0001>

<bundles_post_ra>
// kernel: vgg_leaf_forward.5
= control target key start
LH: loop header
LB: loop body
LE: loop exit
PB: predicated region body
PF: predicated region fallthrough
CT: control target
= control target key end

     0   :  { %12 = vsyncpa [#allocation3], 0  ;;  %s5067_s0 = inlined_call_operand.vmem [shape: bf16[2,1024], index: 0, kind: input, shape index: {}]   ;;  %s5068_s1 = inlined_call_operand.hbm [shape: bf16[1024,512], index: 1, kind: input, shape index: {}]   ;;  %s5069_s2 = inlined_call_operand.vmem [shape: f32[1,512], index: 2, kind: input, shape index: {}, may-alias: {2,4}]   ;;  %s5070_s3 = inlined_call_operand.vmem [shape: bf16[512,512], index: 3, kind: input, shape index: {}]   ;;  %s5071_s4 = inlined_call_operand.vmem [shape: f32[1,512], index: 4, kind: input, shape index: {}, may-alias: {2,4}]   ;;  %s5072_s5 = inlined_call_operand.vmem [shape: bf16[512,128], index: 5, kind: input, shape index: {}]   ;;  %s5073_s6 = inlined_call_operand.vmem [shape: f32[1,128], index: 6, kind: input, shape index: {}]   ;;  %s5074_s7 = inlined_call_operand.hbm [shape: f32[2,128], index: 7, kind: output, shape index: {}]  }
   0x1   :  { %13 = vsyncpa [#allocation4], 0  ;;  %s4435_s24 = smov [#allocation2]  }
   0x2   :  { %s21_s25 = sshll.u32 %s4435_s24, 4  ;;  %s22_s25 = int_to_ptr.vmem [resolvable:$true] %s21_s25 }
   0x3   :  { %s4399_s26 = scalar_lea.vmem %s22_s25, 32768  ;;  %p4404_p1 = scmp.lt.s32.totalorder %s22_s25, %s22_s25 }
   0x4   :  { %p4400_p0 = scmp.ne.s32.totalorder %s22_s25, %s4399_s26  ;;  %p4405_p2 = scmp.lt.s32.totalorder %s4399_s26, %s4399_s26 }
   0x6   :  { %p4406_p3 = por %p4405_p2, %p4404_p1 }
   0x8   :  { %p4407_p4 = pnand %p4406_p3, %p4400_p0 }
   0xa   :  { %4410 = shalt.err (!%p4407_p4)
}
   0xb   :  { %s4436_s27 = smov 256   ;;  %s4437_s28 = smov 16  }
   0xc   :  { %27 = dma.hbm_to_vmem [thread:$0]  %s5068_s1, 32768, %s22_s25, [#allocation3], %s4436_s27, %s4436_s27, %s4437_s28  }
   0xd   :  { %4431 = dma.done.wait [#allocation3], 32768  }
   0xe   :  { %4432 = vsyncadd [#allocation3], 4294934528  ;;  %v3782_v0 = vld [vmem:[#allocation2 + $0xe4] ss:$16 sps:$4 sm:$0xff]   ;;  %v3786_v2 = vld [vmem:[#allocation2 + $0xe0] ss:$16 sps:$4 sm:$0xff]   ;;  %v301_v36 = vlaneseq }
   0xf   :  { %v3784_v1 = vld [vmem:[#allocation2 + $0x2e4] ss:$16 sps:$4 sm:$0xff]   ;;  %1659 = vmatprep.subr.bf16.mxu0 %v3782_v0  ;;  %v3787_v3 = vld [vmem:[#allocation2 + $0x2e0] ss:$16 sps:$4 sm:$0xff]   ;;  %v4438_v37 = vmov 1966171168  }
  0x10   :  { %1700 = vmatprep.subr.bf16.mxu1 %v3784_v1  ;;  %v3788_v4 = vld [vmem:[#allocation2 + $0xc4] ss:$16 sps:$4 sm:$0xff]   ;;  %1660 = vmatpush1.bf16.msra.mxu0 %v3786_v2  ;;  %v3792_v6 = vld [vmem:[#allocation2 + $0xc0] ss:$16 sps:$4 sm:$0xff]   ;;  %v324_v38 = vunpack.c.l.s4 %v4438_v37  ;;  %v4483_v42 = vshrl.u32 %v301_v36, 7  ;;  %s4439_s21 = smov [#allocation5]  }
  0x11   :  { %1701 = vmatpush1.bf16.msra.mxu1 %v3787_v3  ;;  %v3790_v5 = vld [vmem:[#allocation2 + $0x2c4] ss:$16 sps:$4 sm:$0xff]   ;;  %1661 = vmatprep.subr.bf16.mxu0 %v3788_v4  ;;  %v3793_v7 = vld [vmem:[#allocation2 + $0x2c0] ss:$16 sps:$4 sm:$0xff]   ;;  %s3307_s22 = sshll.u32 %s4439_s21, 4  ;;  %s3308_s22 = int_to_ptr.vmem [resolvable:$true] %s3307_s22 }
  0x12   :  { %1702 = vmatprep.subr.bf16.mxu1 %v3790_v5  ;;  %v3794_v8 = vld [vmem:[#allocation2 + $0xa4] ss:$16 sps:$4 sm:$0xff]   ;;  %v3798_v10 = vld [vmem:[#allocation2 + $0xa0] ss:$16 sps:$4 sm:$0xff]   ;;  %v325_v43 = vunpack.c.0.s8 %v324_v38  ;;  %s4411_s23 = scalar_lea.vmem %s3308_s22, 32  ;;  %p4416_p6 = scmp.lt.s32.totalorder %s3308_s22, %s3308_s22 }
  0x13   :  { %v3796_v9 = vld [vmem:[#allocation2 + $0x2a4] ss:$16 sps:$4 sm:$0xff]   ;;  %v3799_v11 = vld [vmem:[#allocation2 + $0x2a0] ss:$16 sps:$4 sm:$0xff]   ;;  %p4412_p5 = scmp.ne.s32.totalorder %s3308_s22, %s4411_s23  ;;  %p4417_p7 = scmp.lt.s32.totalorder %s4411_s23, %s4411_s23 }
  0x14   :  { %1662 = vmatpush1.bf16.msra.mxu0 %v3792_v6  ;;  %v3800_v12 = vld [vmem:[#allocation2 + $0x84] ss:$16 sps:$4 sm:$0xff]   ;;  %v3804_v14 = vld [vmem:[#allocation2 + $0x80] ss:$16 sps:$4 sm:$0xff]   ;;  %v328_v49 = vsub.s32 %v325_v43, %v4483_v42 }
  0x15   :  { %1703 = vmatpush1.bf16.msra.mxu1 %v3793_v7  ;;  %1663 = vmatprep.subr.bf16.mxu0 %v3794_v8  ;;  %v3802_v13 = vld [vmem:[#allocation2 + $0x284] ss:$16 sps:$4 sm:$0xff]   ;;  %v3805_v15 = vld [vmem:[#allocation2 + $0x280] ss:$16 sps:$4 sm:$0xff]   ;;  %p4418_p8 = por %p4417_p7, %p4416_p6 }
  0x16   :  { %1704 = vmatprep.subr.bf16.mxu1 %v3796_v9  ;;  %v3806_v16 = vld [vmem:[#allocation2 + $0x64] ss:$16 sps:$4 sm:$0xff]   ;;  %v3810_v18 = vld [vmem:[#allocation2 + $0x60] ss:$16 sps:$4 sm:$0xff]  }
  0x17   :  { %v3808_v17 = vld [vmem:[#allocation2 + $0x264] ss:$16 sps:$4 sm:$0xff]   ;;  %v3811_v19 = vld [vmem:[#allocation2 + $0x260] ss:$16 sps:$4 sm:$0xff]   ;;  %p4419_p9 = pnand %p4418_p8, %p4412_p5 }
  0x18   :  { %1664 = vmatpush1.bf16.msra.mxu0 %v3798_v10  ;;  %v3812_v20 = vld [vmem:[#allocation2 + $0x44] ss:$16 sps:$4 sm:$0xff]   ;;  %v3816_v22 = vld [vmem:[#allocation2 + $0x40] ss:$16 sps:$4 sm:$0xff]  }
  0x19   :  { %1705 = vmatpush1.bf16.msra.mxu1 %v3799_v11  ;;  %1665 = vmatprep.subr.bf16.mxu0 %v3800_v12  ;;  %v3814_v21 = vld [vmem:[#allocation2 + $0x244] ss:$16 sps:$4 sm:$0xff]   ;;  %v3817_v23 = vld [vmem:[#allocation2 + $0x240] ss:$16 sps:$4 sm:$0xff]  }
  0x1a   :  { %1706 = vmatprep.subr.bf16.mxu1 %v3802_v13  ;;  %v3818_v24 = vld [vmem:[#allocation2 + $0x24] ss:$16 sps:$4 sm:$0xff]   ;;  %v3822_v26 = vld [vmem:[#allocation2 + $0x20] ss:$16 sps:$4 sm:$0xff]  }
  0x1b   :  { %v3820_v25 = vld [vmem:[#allocation2 + $0x224] ss:$16 sps:$4 sm:$0xff]   ;;  %v3823_v27 = vld [vmem:[#allocation2 + $0x220] ss:$16 sps:$4 sm:$0xff]  }
  0x1c   :  { %1666 = vmatpush1.bf16.msra.mxu0 %v3804_v14  ;;  %v3824_v28 = vld [vmem:[#allocation2 + $0x4] ss:$16 sps:$4 sm:$0xff]   ;;  %v3828_v30 = vld [vmem:[#allocation2] ss:$16 sps:$4 sm:$0xff]  }
  0x1d   :  { %1707 = vmatpush1.bf16.msra.mxu1 %v3805_v15  ;;  %1667 = vmatprep.subr.bf16.mxu0 %v3806_v16  ;;  %v3826_v29 = vld [vmem:[#allocation2 + $0x204] ss:$16 sps:$4 sm:$0xff]   ;;  %v3829_v31 = vld [vmem:[#allocation2 + $0x200] ss:$16 sps:$4 sm:$0xff]  }
  0x1e   :  { %1708 = vmatprep.subr.bf16.mxu1 %v3808_v17  ;;  %v3830_v32 = vld [vmem:[#allocation2 + $0x1e4] ss:$16 sps:$4 sm:$0xff]   ;;  %v3834_v34 = vld [vmem:[#allocation2 + $0x1e0] ss:$16 sps:$4 sm:$0xff]  }
  0x1f   :  { %v3832_v33 = vld [vmem:[#allocation2 + $0x3e4] ss:$16 sps:$4 sm:$0xff]   ;;  %v3835_v35 = vld [vmem:[#allocation2 + $0x3e0] ss:$16 sps:$4 sm:$0xff]  }
  0x20   :  { %1668 = vmatpush1.bf16.msra.mxu0 %v3810_v18  ;;  %v3836_v39 = vld [vmem:[#allocation2 + $0x1c4] ss:$16 sps:$4 sm:$0xff]   ;;  %v3840_v41 = vld [vmem:[#allocation2 + $0x1c0] ss:$16 sps:$4 sm:$0xff]  }
  0x21   :  { %1709 = vmatpush1.bf16.msra.mxu1 %v3811_v19  ;;  %1669 = vmatprep.subr.bf16.mxu0 %v3812_v20  ;;  %v3838_v40 = vld [vmem:[#allocation2 + $0x3c4] ss:$16 sps:$4 sm:$0xff]   ;;  %v3841_v44 = vld [vmem:[#allocation2 + $0x3c0] ss:$16 sps:$4 sm:$0xff]  }
  0x22   :  { %1710 = vmatprep.subr.bf16.mxu1 %v3814_v21  ;;  %v3842_v45 = vld [vmem:[#allocation2 + $0x1a4] ss:$16 sps:$4 sm:$0xff]   ;;  %v3846_v47 = vld [vmem:[#allocation2 + $0x1a0] ss:$16 sps:$4 sm:$0xff]  }
  0x23   :  { %v3844_v46 = vld [vmem:[#allocation2 + $0x3a4] ss:$16 sps:$4 sm:$0xff]   ;;  %v3847_v48 = vld [vmem:[#allocation2 + $0x3a0] ss:$16 sps:$4 sm:$0xff]  }
  0x24   :  { %1670 = vmatpush1.bf16.msra.mxu0 %v3816_v22  ;;  %v3848_v50 = vld [vmem:[#allocation2 + $0x184] ss:$16 sps:$4 sm:$0xff]   ;;  %v3852_v53 = vld [vmem:[#allocation2 + $0x180] ss:$16 sps:$4 sm:$0xff]  }
  0x25   :  { %1711 = vmatpush1.bf16.msra.mxu1 %v3817_v23  ;;  %1671 = vmatprep.subr.bf16.mxu0 %v3818_v24  ;;  %v3850_v51 = vld [vmem:[#allocation2 + $0x384] ss:$16 sps:$4 sm:$0xff]   ;;  %v3853_v56 = vld [vmem:[#allocation2 + $0x380] ss:$16 sps:$4 sm:$0xff]  }
  0x26   :  { %1712 = vmatprep.subr.bf16.mxu1 %v3820_v25  ;;  %v42_v52 = vld [vmem:[%s5067_s0] sm:$0xff] }
  0x27   :  { %v329_v54 = vrot.slane %v42_v52, %v328_v49  ;;  %v322_v55 = vcombine.high %v42_v52, %v42_v52  ;;  %v3854_v57 = vld [vmem:[#allocation2 + $0x164] ss:$16 sps:$4 sm:$0xff]   ;;  %v3858_v61 = vld [vmem:[#allocation2 + $0x160] ss:$16 sps:$4 sm:$0xff]  }
  0x28   :  { %1672 = vmatpush1.bf16.msra.mxu0 %v3822_v26  ;;  %v3856_v58 = vld [vmem:[#allocation2 + $0x364] ss:$16 sps:$4 sm:$0xff]   ;;  %v3859_v0 = vld [vmem:[#allocation2 + $0x360] ss:$16 sps:$4 sm:$0xff]  }
  0x29   :  { %1713 = vmatpush1.bf16.msra.mxu1 %v3823_v27  ;;  %1673 = vmatprep.subr.bf16.mxu0 %v3824_v28  ;;  %v337_v59 = vcombine.high %v329_v54, %v329_v54  ;;  %v336_v60 = vrot.slane %v322_v55, %v328_v49  ;;  %v3860_v1 = vld [vmem:[#allocation2 + $0x144] ss:$16 sps:$4 sm:$0xff]   ;;  %v3864_v4 = vld [vmem:[#allocation2 + $0x140] ss:$16 sps:$4 sm:$0xff]   ;;  %v4499_v14 = vrot.slane %v329_v54, %v328_v49 }
  0x2a   :  { %1714 = vmatprep.subr.bf16.mxu1 %v3826_v29  ;;  %v3862_v2 = vld [vmem:[#allocation2 + $0x344] ss:$16 sps:$4 sm:$0xff]   ;;  %v3865_v5 = vld [vmem:[#allocation2 + $0x340] ss:$16 sps:$4 sm:$0xff]  }
  0x2b   :  { %v4489_v62 = vrot.slane %v337_v59, %v328_v49  ;;  %v4491_v63 = vrot.slane %v336_v60, %v328_v49  ;;  %v3866_v6 = vld [vmem:[#allocation2 + $0x124] ss:$16 sps:$4 sm:$0xff]   ;;  %v3870_v8 = vld [vmem:[#allocation2 + $0x120] ss:$16 sps:$4 sm:$0xff]   ;;  %v338_v12 = vcombine.high %v336_v60, %v336_v60  ;;  %v4505_v19 = vcombine.high %v4499_v14, %v4499_v14 }
  0x2c   :  { %1674 = vmatpush1.bf16.msra.mxu0 %v3828_v30  ;;  %v3868_v7 = vld [vmem:[#allocation2 + $0x324] ss:$16 sps:$4 sm:$0xff]   ;;  %v3871_v9 = vld [vmem:[#allocation2 + $0x320] ss:$16 sps:$4 sm:$0xff]  }
  0x2d   :  { %1715 = vmatpush1.bf16.msra.mxu1 %v3829_v31  ;;  %1675 = vmatprep.subr.bf16.mxu0 %v3830_v32  ;;  %v4495_v3 = vcombine.high %v4489_v62, %v4489_v62  ;;  %v3872_v10 = vld [vmem:[#allocation2 + $0x104] ss:$16 sps:$4 sm:$0xff]   ;;  %v3876_v13 = vld [vmem:[#allocation2 + $0x100] ss:$16 sps:$4 sm:$0xff]   ;;  %v4501_v18 = vrot.slane %v338_v12, %v328_v49 }
  0x2e   :  { %1716 = vmatprep.subr.bf16.mxu1 %v3832_v33  ;;  %1691 = vmatprep.mubr.bf16.mxu0 %v4489_v62  ;;  %v3874_v11 = vld [vmem:[#allocation2 + $0x304] ss:$16 sps:$4 sm:$0xff]   ;;  %v3877_v15 = vld [vmem:[#allocation2 + $0x300] ss:$16 sps:$4 sm:$0xff]  }
  0x2f   :  { %1732 = vmatprep.mubr.bf16.mxu1 %v4495_v3  ;;  %v3880_v16 = vld [vmem:[#allocation2 + $0x4e4] ss:$16 sps:$4 sm:$0xff]   ;;  %v3878_v20 = vld [vmem:[#allocation2 + $0x4e0] ss:$16 sps:$4 sm:$0xff]   ;;  %v4509_v24 = vcombine.high %v4501_v18, %v4501_v18 }
  0x30   :  { %1676 = vmatpush2.bf16.msra.mxu0 %v3834_v34  ;;  %v3883_v17 = vld [vmem:[#allocation2 + $0x6e4] ss:$16 sps:$4 sm:$0xff]   ;;  %v3881_v21 = vld [vmem:[#allocation2 + $0x6e0] ss:$16 sps:$4 sm:$0xff]  }
  0x31   :  { %1717 = vmatpush2.bf16.msra.mxu1 %v3835_v35  ;;  %1677 = vmatprep.subr.bf16.mxu0 %v3836_v39  ;;  %v3886_v22 = vld [vmem:[#allocation2 + $0x4c4] ss:$16 sps:$4 sm:$0xff]   ;;  %v3884_v25 = vld [vmem:[#allocation2 + $0x4c0] ss:$16 sps:$4 sm:$0xff]  }
  0x32   :  { %1718 = vmatprep.subr.bf16.mxu1 %v3838_v40  ;;  %v3889_v23 = vld [vmem:[#allocation2 + $0x6c4] ss:$16 sps:$4 sm:$0xff]   ;;  %v3887_v26 = vld [vmem:[#allocation2 + $0x6c0] ss:$16 sps:$4 sm:$0xff]  }
  0x33   :  { %v3892_v27 = vld [vmem:[#allocation2 + $0x4a4] ss:$16 sps:$4 sm:$0xff]   ;;  %v3890_v29 = vld [vmem:[#allocation2 + $0x4a0] ss:$16 sps:$4 sm:$0xff]  }
  0x34   :  { %1678 = vmatpush2.bf16.msra.mxu0 %v3840_v41  ;;  %v3895_v28 = vld [vmem:[#allocation2 + $0x6a4] ss:$16 sps:$4 sm:$0xff]   ;;  %v3893_v30 = vld [vmem:[#allocation2 + $0x6a0] ss:$16 sps:$4 sm:$0xff]  }
  0x35   :  { %1719 = vmatpush2.bf16.msra.mxu1 %v3841_v44  ;;  %1679 = vmatprep.subr.bf16.mxu0 %v3842_v45  ;;  %v3898_v31 = vld [vmem:[#allocation2 + $0x484] ss:$16 sps:$4 sm:$0xff]   ;;  %v3896_v33 = vld [vmem:[#allocation2 + $0x480] ss:$16 sps:$4 sm:$0xff]  }
  0x36   :  { %1720 = vmatprep.subr.bf16.mxu1 %v3844_v46  ;;  %v3901_v32 = vld [vmem:[#allocation2 + $0x684] ss:$16 sps:$4 sm:$0xff]   ;;  %v3899_v34 = vld [vmem:[#allocation2 + $0x680] ss:$16 sps:$4 sm:$0xff]  }
  0x37   :  { %v3904_v35 = vld [vmem:[#allocation2 + $0x464] ss:$16 sps:$4 sm:$0xff]   ;;  %v3902_v37 = vld [vmem:[#allocation2 + $0x460] ss:$16 sps:$4 sm:$0xff]  }
  0x38   :  { %1680 = vmatpush2.bf16.msra.mxu0 %v3846_v47  ;;  %v3907_v36 = vld [vmem:[#allocation2 + $0x664] ss:$16 sps:$4 sm:$0xff]   ;;  %v3905_v38 = vld [vmem:[#allocation2 + $0x660] ss:$16 sps:$4 sm:$0xff]  }
  0x39   :  { %1721 = vmatpush2.bf16.msra.mxu1 %v3847_v48  ;;  %1681 = vmatprep.subr.bf16.mxu0 %v3848_v50  ;;  %v3910_v39 = vld [vmem:[#allocation2 + $0x444] ss:$16 sps:$4 sm:$0xff]   ;;  %v3908_v41 = vld [vmem:[#allocation2 + $0x440] ss:$16 sps:$4 sm:$0xff]  }
  0x3a   :  { %1722 = vmatprep.subr.bf16.mxu1 %v3850_v51  ;;  %v3913_v40 = vld [vmem:[#allocation2 + $0x644] ss:$16 sps:$4 sm:$0xff]   ;;  %v3911_v43 = vld [vmem:[#allocation2 + $0x640] ss:$16 sps:$4 sm:$0xff]  }
  0x3b   :  { %v3916_v44 = vld [vmem:[#allocation2 + $0x424] ss:$16 sps:$4 sm:$0xff]   ;;  %v3914_v46 = vld [vmem:[#allocation2 + $0x420] ss:$16 sps:$4 sm:$0xff]  }
  0x3c   :  { %1682 = vmatpush2.bf16.msra.mxu0 %v3852_v53  ;;  %v3919_v45 = vld [vmem:[#allocation2 + $0x624] ss:$16 sps:$4 sm:$0xff]   ;;  %v3917_v47 = vld [vmem:[#allocation2 + $0x620] ss:$16 sps:$4 sm:$0xff]  }
  0x3d   :  { %1723 = vmatpush2.bf16.msra.mxu1 %v3853_v56  ;;  %1683 = vmatprep.subr.bf16.mxu0 %v3854_v57  ;;  %v3922_v48 = vld [vmem:[#allocation2 + $0x404] ss:$16 sps:$4 sm:$0xff]   ;;  %v3920_v50 = vld [vmem:[#allocation2 + $0x400] ss:$16 sps:$4 sm:$0xff]  }
  0x3e   :  { %1724 = vmatprep.subr.bf16.mxu1 %v3856_v58  ;;  %v3925_v49 = vld [vmem:[#allocation2 + $0x604] ss:$16 sps:$4 sm:$0xff]   ;;  %v3923_v51 = vld [vmem:[#allocation2 + $0x600] ss:$16 sps:$4 sm:$0xff]  }
  0x3f   :  { %v3928_v52 = vld [vmem:[#allocation2 + $0x5e4] ss:$16 sps:$4 sm:$0xff]   ;;  %v3926_v54 = vld [vmem:[#allocation2 + $0x5e0] ss:$16 sps:$4 sm:$0xff]  }
  0x40   :  { %1684 = vmatpush2.bf16.msra.mxu0 %v3858_v61  ;;  %v3931_v53 = vld [vmem:[#allocation2 + $0x7e4] ss:$16 sps:$4 sm:$0xff]   ;;  %v3929_v55 = vld [vmem:[#allocation2 + $0x7e0] ss:$16 sps:$4 sm:$0xff]  }
  0x41   :  { %1725 = vmatpush2.bf16.msra.mxu1 %v3859_v0  ;;  %1685 = vmatprep.subr.bf16.mxu0 %v3860_v1  ;;  %v3934_v56 = vld [vmem:[#allocation2 + $0x5c4] ss:$16 sps:$4 sm:$0xff]   ;;  %v3932_v58 = vld [vmem:[#allocation2 + $0x5c0] ss:$16 sps:$4 sm:$0xff]  }
  0x42   :  { %1726 = vmatprep.subr.bf16.mxu1 %v3862_v2  ;;  %v3937_v57 = vld [vmem:[#allocation2 + $0x7c4] ss:$16 sps:$4 sm:$0xff]   ;;  %v3935_v59 = vld [vmem:[#allocation2 + $0x7c0] ss:$16 sps:$4 sm:$0xff]  }
  0x43   :  { %v3940_v60 = vld [vmem:[#allocation2 + $0x5a4] ss:$16 sps:$4 sm:$0xff]   ;;  %v3938_v0 = vld [vmem:[#allocation2 + $0x5a0] ss:$16 sps:$4 sm:$0xff]  }
  0x44   :  { %1686 = vmatpush2.bf16.msra.mxu0 %v3864_v4  ;;  %v3943_v61 = vld [vmem:[#allocation2 + $0x7a4] ss:$16 sps:$4 sm:$0xff]   ;;  %v3941_v1 = vld [vmem:[#allocation2 + $0x7a0] ss:$16 sps:$4 sm:$0xff]  }
  0x45   :  { %1727 = vmatpush2.bf16.msra.mxu1 %v3865_v5  ;;  %1687 = vmatprep.subr.bf16.mxu0 %v3866_v6  ;;  %v3946_v2 = vld [vmem:[#allocation2 + $0x584] ss:$16 sps:$4 sm:$0xff]   ;;  %v3944_v5 = vld [vmem:[#allocation2 + $0x580] ss:$16 sps:$4 sm:$0xff]  }
  0x46   :  { %1728 = vmatprep.subr.bf16.mxu1 %v3868_v7  ;;  %v3949_v4 = vld [vmem:[#allocation2 + $0x784] ss:$16 sps:$4 sm:$0xff]   ;;  %v3947_v6 = vld [vmem:[#allocation2 + $0x780] ss:$16 sps:$4 sm:$0xff]  }
  0x47   :  { %v3952_v7 = vld [vmem:[#allocation2 + $0x564] ss:$16 sps:$4 sm:$0xff]  }
  0x48   :  { %1688 = vmatpush2.bf16.msra.mxu0 %v3870_v8  ;;  %v3955_v8 = vld [vmem:[#allocation2 + $0x764] ss:$16 sps:$4 sm:$0xff]  }
  0x49   :  { %1729 = vmatpush2.bf16.msra.mxu1 %v3871_v9  ;;  %1689 = vmatprep.subr.bf16.mxu0 %v3872_v10  ;;  %v3950_v9 = vld [vmem:[#allocation2 + $0x560] ss:$16 sps:$4 sm:$0xff]   ;;  %v3961_v12 = vld [vmem:[#allocation2 + $0x744] ss:$16 sps:$4 sm:$0xff]  }
  0x4a   :  { %1730 = vmatprep.subr.bf16.mxu1 %v3874_v11  ;;  %v3953_v10 = vld [vmem:[#allocation2 + $0x760] ss:$16 sps:$4 sm:$0xff]   ;;  %v3958_v11 = vld [vmem:[#allocation2 + $0x544] ss:$16 sps:$4 sm:$0xff]  }
  0x4c   :  { %1690 = vmatpush2.bf16.msra.mxu0 %v3876_v13  ;;  %v3956_v13 = vld [vmem:[#allocation2 + $0x540] ss:$16 sps:$4 sm:$0xff]  }
  0x4d   :  { %1731 = vmatpush2.bf16.msra.mxu1 %v3877_v15  ;;  %1741 = vmatprep.subr.bf16.mxu0 %v3880_v16  ;;  %v3959_v15 = vld [vmem:[#allocation2 + $0x740] ss:$16 sps:$4 sm:$0xff]   ;;  %v3964_v16 = vld [vmem:[#allocation2 + $0x524] ss:$16 sps:$4 sm:$0xff]  }
  0x4e   :  { %1782 = vmatprep.subr.bf16.mxu1 %v3883_v17  ;;  %v3967_v17 = vld [vmem:[#allocation2 + $0x724] ss:$16 sps:$4 sm:$0xff]  }
  0x4f   :  { %1692 = vmatmul.mubr.bf16.vlgmr.msra.gmra.mxu0 %v4499_v14 }
  0x50   :  { %1733 = vmatmul.mubr.bf16.vlgmr.msra.gmra.mxu1 %v4505_v19  ;;  %1742 = vmatpush1.bf16.msra.mxu0 %v3878_v20  ;;  %v3962_v20 = vld [vmem:[#allocation2 + $0x520] ss:$16 sps:$4 sm:$0xff]  }
  0x51   :  { %1783 = vmatpush1.bf16.msra.mxu1 %v3881_v21  ;;  %1743 = vmatprep.subr.bf16.mxu0 %v3886_v22  ;;  %v3965_v21 = vld [vmem:[#allocation2 + $0x720] ss:$16 sps:$4 sm:$0xff]   ;;  %v3970_v22 = vld [vmem:[#allocation2 + $0x504] ss:$16 sps:$4 sm:$0xff]  }
  0x52   :  { %1784 = vmatprep.subr.bf16.mxu1 %v3889_v23  ;;  %1773 = vmatprep.mubr.bf16.mxu0 %v4501_v18  ;;  %v3973_v23 = vld [vmem:[#allocation2 + $0x704] ss:$16 sps:$4 sm:$0xff]  }
  0x53   :  { %1814 = vmatprep.mubr.bf16.mxu1 %v4509_v24 }
  0x54   :  { %1744 = vmatpush1.bf16.msra.mxu0 %v3884_v25  ;;  %v3968_v25 = vld [vmem:[#allocation2 + $0x500] ss:$16 sps:$4 sm:$0xff]  }
  0x55   :  { %1785 = vmatpush1.bf16.msra.mxu1 %v3887_v26  ;;  %1745 = vmatprep.subr.bf16.mxu0 %v3892_v27  ;;  %v3971_v26 = vld [vmem:[#allocation2 + $0x700] ss:$16 sps:$4 sm:$0xff]   ;;  %v3977_v27 = vld [vmem:[#allocation2 + $0xec] ss:$16 sps:$4 sm:$0xff]  }
  0x56   :  { %1786 = vmatprep.subr.bf16.mxu1 %v3895_v28  ;;  %v3980_v28 = vld [vmem:[#allocation2 + $0x2ec] ss:$16 sps:$4 sm:$0xff]  }
  0x58   :  { %1746 = vmatpush1.bf16.msra.mxu0 %v3890_v29  ;;  %v4517_v29 = vcombine.high %v4491_v63, %v4491_v63 }
  0x59   :  { %1787 = vmatpush1.bf16.msra.mxu1 %v3893_v30  ;;  %1747 = vmatprep.subr.bf16.mxu0 %v3898_v31  ;;  %v3975_v30 = vld [vmem:[#allocation2 + $0xe8] ss:$16 sps:$4 sm:$0xff]  }
  0x5a   :  { %1788 = vmatprep.subr.bf16.mxu1 %v3901_v32  ;;  %v3978_v31 = vld [vmem:[#allocation2 + $0x2e8] ss:$16 sps:$4 sm:$0xff]   ;;  %v3983_v32 = vld [vmem:[#allocation2 + $0xcc] ss:$16 sps:$4 sm:$0xff]  }
  0x5c   :  { %1748 = vmatpush1.bf16.msra.mxu0 %v3896_v33  ;;  %v3986_v33 = vld [vmem:[#allocation2 + $0x2cc] ss:$16 sps:$4 sm:$0xff]  }
  0x5d   :  { %1789 = vmatpush1.bf16.msra.mxu1 %v3899_v34  ;;  %1749 = vmatprep.subr.bf16.mxu0 %v3904_v35  ;;  %v3981_v34 = vld [vmem:[#allocation2 + $0xc8] ss:$16 sps:$4 sm:$0xff]  }
  0x5e   :  { %1790 = vmatprep.subr.bf16.mxu1 %v3907_v36  ;;  %v3984_v35 = vld [vmem:[#allocation2 + $0x2c8] ss:$16 sps:$4 sm:$0xff]   ;;  %v3989_v36 = vld [vmem:[#allocation2 + $0xac] ss:$16 sps:$4 sm:$0xff]  }
  0x60   :  { %1750 = vmatpush1.bf16.msra.mxu0 %v3902_v37  ;;  %v3992_v37 = vld [vmem:[#allocation2 + $0x2ac] ss:$16 sps:$4 sm:$0xff]  }
  0x61   :  { %1791 = vmatpush1.bf16.msra.mxu1 %v3905_v38  ;;  %1751 = vmatprep.subr.bf16.mxu0 %v3910_v39  ;;  %v3987_v38 = vld [vmem:[#allocation2 + $0xa8] ss:$16 sps:$4 sm:$0xff]  }
  0x62   :  { %1792 = vmatprep.subr.bf16.mxu1 %v3913_v40  ;;  %v3990_v39 = vld [vmem:[#allocation2 + $0x2a8] ss:$16 sps:$4 sm:$0xff]   ;;  %v3995_v40 = vld [vmem:[#allocation2 + $0x8c] ss:$16 sps:$4 sm:$0xff]  }
  0x64   :  { %1752 = vmatpush1.bf16.msra.mxu0 %v3908_v41  ;;  %v3998_v41 = vld [vmem:[#allocation2 + $0x28c] ss:$16 sps:$4 sm:$0xff]  }
  0x65   :  { %1793 = vmatpush1.bf16.msra.mxu1 %v3911_v43  ;;  %1753 = vmatprep.subr.bf16.mxu0 %v3916_v44  ;;  %v3993_v43 = vld [vmem:[#allocation2 + $0x88] ss:$16 sps:$4 sm:$0xff]  }
  0x66   :  { %1794 = vmatprep.subr.bf16.mxu1 %v3919_v45  ;;  %v3996_v44 = vld [vmem:[#allocation2 + $0x288] ss:$16 sps:$4 sm:$0xff]   ;;  %v4001_v45 = vld [vmem:[#allocation2 + $0x6c] ss:$16 sps:$4 sm:$0xff]  }
  0x68   :  { %1754 = vmatpush1.bf16.msra.mxu0 %v3914_v46  ;;  %v4004_v46 = vld [vmem:[#allocation2 + $0x26c] ss:$16 sps:$4 sm:$0xff]  }
  0x69   :  { %1795 = vmatpush1.bf16.msra.mxu1 %v3917_v47  ;;  %1755 = vmatprep.subr.bf16.mxu0 %v3922_v48  ;;  %v3999_v47 = vld [vmem:[#allocation2 + $0x68] ss:$16 sps:$4 sm:$0xff]   ;;  %v4010_v48 = vld [vmem:[#allocation2 + $0x24c] ss:$16 sps:$4 sm:$0xff]  }
  0x6a   :  { %1796 = vmatprep.subr.bf16.mxu1 %v3925_v49  ;;  %v4005_v49 = vld [vmem:[#allocation2 + $0x48] ss:$16 sps:$4 sm:$0xff]  }
  0x6c   :  { %1756 = vmatpush1.bf16.msra.mxu0 %v3920_v50  ;;  %v4008_v50 = vld [vmem:[#allocation2 + $0x248] ss:$16 sps:$4 sm:$0xff]  }
  0x6d   :  { %1797 = vmatpush1.bf16.msra.mxu1 %v3923_v51  ;;  %1757 = vmatprep.subr.bf16.mxu0 %v3928_v52  ;;  %v4013_v51 = vld [vmem:[#allocation2 + $0x2c] ss:$16 sps:$4 sm:$0xff]  }
  0x6e   :  { %1798 = vmatprep.subr.bf16.mxu1 %v3931_v53  ;;  %v4016_v52 = vld [vmem:[#allocation2 + $0x22c] ss:$16 sps:$4 sm:$0xff]   ;;  %v4011_v53 = vld [vmem:[#allocation2 + $0x28] ss:$16 sps:$4 sm:$0xff]  }
  0x70   :  { %1758 = vmatpush2.bf16.msra.mxu0 %v3926_v54  ;;  %v4014_v54 = vld [vmem:[#allocation2 + $0x228] ss:$16 sps:$4 sm:$0xff]  }
  0x71   :  { %1799 = vmatpush2.bf16.msra.mxu1 %v3929_v55  ;;  %1759 = vmatprep.subr.bf16.mxu0 %v3934_v56  ;;  %v4019_v55 = vld [vmem:[#allocation2 + $0xc] ss:$16 sps:$4 sm:$0xff]  }
  0x72   :  { %1800 = vmatprep.subr.bf16.mxu1 %v3937_v57  ;;  %v4022_v56 = vld [vmem:[#allocation2 + $0x20c] ss:$16 sps:$4 sm:$0xff]   ;;  %v4017_v57 = vld [vmem:[#allocation2 + $0x8] ss:$16 sps:$4 sm:$0xff]  }
  0x74   :  { %1760 = vmatpush2.bf16.msra.mxu0 %v3932_v58  ;;  %v4020_v58 = vld [vmem:[#allocation2 + $0x208] ss:$16 sps:$4 sm:$0xff]  }
  0x75   :  { %1801 = vmatpush2.bf16.msra.mxu1 %v3935_v59  ;;  %1761 = vmatprep.subr.bf16.mxu0 %v3940_v60  ;;  %v4025_v59 = vld [vmem:[#allocation2 + $0x1ec] ss:$16 sps:$4 sm:$0xff]  }
  0x76   :  { %1802 = vmatprep.subr.bf16.mxu1 %v3943_v61  ;;  %v4028_v60 = vld [vmem:[#allocation2 + $0x3ec] ss:$16 sps:$4 sm:$0xff]   ;;  %v4023_v61 = vld [vmem:[#allocation2 + $0x1e8] ss:$16 sps:$4 sm:$0xff]  }
  0x78   :  { %1762 = vmatpush2.bf16.msra.mxu0 %v3938_v0  ;;  %v4026_v0 = vld [vmem:[#allocation2 + $0x3e8] ss:$16 sps:$4 sm:$0xff]  }
  0x79   :  { %1803 = vmatpush2.bf16.msra.mxu1 %v3941_v1  ;;  %1763 = vmatprep.subr.bf16.mxu0 %v3946_v2  ;;  %v4031_v1 = vld [vmem:[#allocation2 + $0x1cc] ss:$16 sps:$4 sm:$0xff]  }
  0x7a   :  { %1804 = vmatprep.subr.bf16.mxu1 %v3949_v4  ;;  %v4034_v2 = vld [vmem:[#allocation2 + $0x3cc] ss:$16 sps:$4 sm:$0xff]   ;;  %v4029_v4 = vld [vmem:[#allocation2 + $0x1c8] ss:$16 sps:$4 sm:$0xff]  }
  0x7c   :  { %1764 = vmatpush2.bf16.msra.mxu0 %v3944_v5  ;;  %v4032_v5 = vld [vmem:[#allocation2 + $0x3c8] ss:$16 sps:$4 sm:$0xff]  }
  0x7d   :  { %1805 = vmatpush2.bf16.msra.mxu1 %v3947_v6  ;;  %1765 = vmatprep.subr.bf16.mxu0 %v3952_v7  ;;  %v4037_v6 = vld [vmem:[#allocation2 + $0x1ac] ss:$16 sps:$4 sm:$0xff]  }
  0x7e   :  { %1806 = vmatprep.subr.bf16.mxu1 %v3955_v8  ;;  %v4040_v7 = vld [vmem:[#allocation2 + $0x3ac] ss:$16 sps:$4 sm:$0xff]   ;;  %v4035_v8 = vld [vmem:[#allocation2 + $0x1a8] ss:$16 sps:$4 sm:$0xff]  }
  0x80   :  { %1766 = vmatpush2.bf16.msra.mxu0 %v3950_v9  ;;  %v4038_v9 = vld [vmem:[#allocation2 + $0x3a8] ss:$16 sps:$4 sm:$0xff]  }
  0x81   :  { %1807 = vmatpush2.bf16.msra.mxu1 %v3953_v10  ;;  %1767 = vmatprep.subr.bf16.mxu0 %v3958_v11  ;;  %v4043_v10 = vld [vmem:[#allocation2 + $0x18c] ss:$16 sps:$4 sm:$0xff]  }
  0x82   :  { %1808 = vmatprep.subr.bf16.mxu1 %v3961_v12  ;;  %v4046_v11 = vld [vmem:[#allocation2 + $0x38c] ss:$16 sps:$4 sm:$0xff]   ;;  %v4041_v12 = vld [vmem:[#allocation2 + $0x188] ss:$16 sps:$4 sm:$0xff]  }
  0x84   :  { %1768 = vmatpush2.bf16.msra.mxu0 %v3956_v13  ;;  %v4044_v13 = vld [vmem:[#allocation2 + $0x388] ss:$16 sps:$4 sm:$0xff]  }
  0x85   :  { %1809 = vmatpush2.bf16.msra.mxu1 %v3959_v15  ;;  %1769 = vmatprep.subr.bf16.mxu0 %v3964_v16  ;;  %v4049_v15 = vld [vmem:[#allocation2 + $0x16c] ss:$16 sps:$4 sm:$0xff]  }
  0x86   :  { %1810 = vmatprep.subr.bf16.mxu1 %v3967_v17  ;;  %v4052_v16 = vld [vmem:[#allocation2 + $0x36c] ss:$16 sps:$4 sm:$0xff]   ;;  %v4047_v17 = vld [vmem:[#allocation2 + $0x168] ss:$16 sps:$4 sm:$0xff]  }
  0x88   :  { %1770 = vmatpush2.bf16.msra.mxu0 %v3962_v20  ;;  %v4050_v20 = vld [vmem:[#allocation2 + $0x368] ss:$16 sps:$4 sm:$0xff]  }
  0x89   :  { %1811 = vmatpush2.bf16.msra.mxu1 %v3965_v21  ;;  %1771 = vmatprep.subr.bf16.mxu0 %v3970_v22  ;;  %v4055_v21 = vld [vmem:[#allocation2 + $0x14c] ss:$16 sps:$4 sm:$0xff]  }
  0x8a   :  { %1812 = vmatprep.subr.bf16.mxu1 %v3973_v23  ;;  %v4058_v22 = vld [vmem:[#allocation2 + $0x34c] ss:$16 sps:$4 sm:$0xff]   ;;  %v4053_v23 = vld [vmem:[#allocation2 + $0x148] ss:$16 sps:$4 sm:$0xff]  }
  0x8c   :  { %1772 = vmatpush2.bf16.msra.mxu0 %v3968_v25  ;;  %v4056_v25 = vld [vmem:[#allocation2 + $0x348] ss:$16 sps:$4 sm:$0xff]  }
  0x8d   :  { %1813 = vmatpush2.bf16.msra.mxu1 %v3971_v26  ;;  %1823 = vmatprep.subr.bf16.mxu0 %v3977_v27  ;;  %v4061_v26 = vld [vmem:[#allocation2 + $0x12c] ss:$16 sps:$4 sm:$0xff]  }
  0x8e   :  { %1864 = vmatprep.subr.bf16.mxu1 %v3980_v28  ;;  %v4064_v27 = vld [vmem:[#allocation2 + $0x32c] ss:$16 sps:$4 sm:$0xff]   ;;  %v4059_v28 = vld [vmem:[#allocation2 + $0x128] ss:$16 sps:$4 sm:$0xff]  }
  0x8f   :  { %1774 = vmatmul.mubr.bf16.vlgmr.msra.gmra.mxu0 %v4491_v63 }
  0x90   :  { %1815 = vmatmul.mubr.bf16.vlgmr.msra.gmra.mxu1 %v4517_v29  ;;  %1824 = vmatpush1.bf16.msra.mxu0 %v3975_v30  ;;  %v4062_v30 = vld [vmem:[#allocation2 + $0x328] ss:$16 sps:$4 sm:$0xff]  }
  0x91   :  { %1865 = vmatpush1.bf16.msra.mxu1 %v3978_v31  ;;  %1825 = vmatprep.subr.bf16.mxu0 %v3983_v32  ;;  %v4067_v31 = vld [vmem:[#allocation2 + $0x10c] ss:$16 sps:$4 sm:$0xff]  }
  0x92   :  { %1866 = vmatprep.subr.bf16.mxu1 %v3986_v33  ;;  %1855 = vmatprep.mubr.bf16.mxu0 %v4489_v62  ;;  %v4002_v62 = vld [vmem:[#allocation2 + $0x268] ss:$16 sps:$4 sm:$0xff]   ;;  %v4070_v32 = vld [vmem:[#allocation2 + $0x30c] ss:$16 sps:$4 sm:$0xff]  }
  0x93   :  { %1896 = vmatprep.mubr.bf16.mxu1 %v4495_v3  ;;  %v4007_v3 = vld [vmem:[#allocation2 + $0x4c] ss:$16 sps:$4 sm:$0xff]   ;;  %v4065_v33 = vld [vmem:[#allocation2 + $0x108] ss:$16 sps:$4 sm:$0xff]  }
  0x94   :  { %1826 = vmatpush1.bf16.msra.mxu0 %v3981_v34  ;;  %v4068_v34 = vld [vmem:[#allocation2 + $0x308] ss:$16 sps:$4 sm:$0xff]  }
  0x95   :  { %1867 = vmatpush1.bf16.msra.mxu1 %v3984_v35  ;;  %1827 = vmatprep.subr.bf16.mxu0 %v3989_v36  ;;  %v4073_v35 = vld [vmem:[#allocation2 + $0x4ec] ss:$16 sps:$4 sm:$0xff]  }
  0x96   :  { %1868 = vmatprep.subr.bf16.mxu1 %v3992_v37  ;;  %v4076_v36 = vld [vmem:[#allocation2 + $0x6ec] ss:$16 sps:$4 sm:$0xff]   ;;  %v4071_v37 = vld [vmem:[#allocation2 + $0x4e8] ss:$16 sps:$4 sm:$0xff]  }
  0x98   :  { %1828 = vmatpush1.bf16.msra.mxu0 %v3987_v38  ;;  %v4074_v38 = vld [vmem:[#allocation2 + $0x6e8] ss:$16 sps:$4 sm:$0xff]  }
  0x99   :  { %1869 = vmatpush1.bf16.msra.mxu1 %v3990_v39  ;;  %1829 = vmatprep.subr.bf16.mxu0 %v3995_v40  ;;  %v4079_v39 = vld [vmem:[#allocation2 + $0x4cc] ss:$16 sps:$4 sm:$0xff]  }
  0x9a   :  { %1870 = vmatprep.subr.bf16.mxu1 %v3998_v41  ;;  %v4082_v40 = vld [vmem:[#allocation2 + $0x6cc] ss:$16 sps:$4 sm:$0xff]   ;;  %v4077_v41 = vld [vmem:[#allocation2 + $0x4c8] ss:$16 sps:$4 sm:$0xff]  }
  0x9c   :  { %1830 = vmatpush1.bf16.msra.mxu0 %v3993_v43  ;;  %v4080_v43 = vld [vmem:[#allocation2 + $0x6c8] ss:$16 sps:$4 sm:$0xff]  }
  0x9d   :  { %1871 = vmatpush1.bf16.msra.mxu1 %v3996_v44  ;;  %1831 = vmatprep.subr.bf16.mxu0 %v4001_v45  ;;  %v4085_v44 = vld [vmem:[#allocation2 + $0x4ac] ss:$16 sps:$4 sm:$0xff]  }
  0x9e   :  { %1872 = vmatprep.subr.bf16.mxu1 %v4004_v46  ;;  %v4088_v45 = vld [vmem:[#allocation2 + $0x6ac] ss:$16 sps:$4 sm:$0xff]   ;;  %v4083_v46 = vld [vmem:[#allocation2 + $0x4a8] ss:$16 sps:$4 sm:$0xff]  }
  0xa0   :  { %1832 = vmatpush1.bf16.msra.mxu0 %v3999_v47  ;;  %v4086_v47 = vld [vmem:[#allocation2 + $0x6a8] ss:$16 sps:$4 sm:$0xff]  }
  0xa1   :  { %1873 = vmatpush1.bf16.msra.mxu1 %v4002_v62  ;;  %1833 = vmatprep.subr.bf16.mxu0 %v4007_v3  ;;  %v4091_v62 = vld [vmem:[#allocation2 + $0x48c] ss:$16 sps:$4 sm:$0xff]   ;;  %v4089_v3 = vld [vmem:[#allocation2 + $0x488] ss:$16 sps:$4 sm:$0xff]  }
  0xa2   :  { %1874 = vmatprep.subr.bf16.mxu1 %v4010_v48  ;;  %v4097_v48 = vld [vmem:[#allocation2 + $0x46c] ss:$16 sps:$4 sm:$0xff]  }
  0xa4   :  { %1834 = vmatpush1.bf16.msra.mxu0 %v4005_v49  ;;  %v4100_v49 = vld [vmem:[#allocation2 + $0x66c] ss:$16 sps:$4 sm:$0xff]  }
  0xa5   :  { %1875 = vmatpush1.bf16.msra.mxu1 %v4008_v50  ;;  %1835 = vmatprep.subr.bf16.mxu0 %v4013_v51  ;;  %v4095_v50 = vld [vmem:[#allocation2 + $0x468] ss:$16 sps:$4 sm:$0xff]  }
  0xa6   :  { %1876 = vmatprep.subr.bf16.mxu1 %v4016_v52  ;;  %v4098_v51 = vld [vmem:[#allocation2 + $0x668] ss:$16 sps:$4 sm:$0xff]  }
  0xa7   :  { %v4101_v52 = vld [vmem:[#allocation2 + $0x448] ss:$16 sps:$4 sm:$0xff]  }
  0xa8   :  { %1836 = vmatpush1.bf16.msra.mxu0 %v4011_v53  ;;  %v4104_v53 = vld [vmem:[#allocation2 + $0x648] ss:$16 sps:$4 sm:$0xff]  }
  0xa9   :  { %1877 = vmatpush1.bf16.msra.mxu1 %v4014_v54  ;;  %1837 = vmatprep.subr.bf16.mxu0 %v4019_v55  ;;  %v4109_v54 = vld [vmem:[#allocation2 + $0x42c] ss:$16 sps:$4 sm:$0xff]  }
  0xaa   :  { %1878 = vmatprep.subr.bf16.mxu1 %v4022_v56  ;;  %v4112_v55 = vld [vmem:[#allocation2 + $0x62c] ss:$16 sps:$4 sm:$0xff]   ;;  %v4107_v56 = vld [vmem:[#allocation2 + $0x428] ss:$16 sps:$4 sm:$0xff]  }
  0xac   :  { %1838 = vmatpush1.bf16.msra.mxu0 %v4017_v57  ;;  %v4110_v57 = vld [vmem:[#allocation2 + $0x628] ss:$16 sps:$4 sm:$0xff]  }
  0xad   :  { %1879 = vmatpush1.bf16.msra.mxu1 %v4020_v58  ;;  %1839 = vmatprep.subr.bf16.mxu0 %v4025_v59  ;;  %v4115_v58 = vld [vmem:[#allocation2 + $0x40c] ss:$16 sps:$4 sm:$0xff]  }
  0xae   :  { %1880 = vmatprep.subr.bf16.mxu1 %v4028_v60  ;;  %v4118_v59 = vld [vmem:[#allocation2 + $0x60c] ss:$16 sps:$4 sm:$0xff]   ;;  %v4113_v60 = vld [vmem:[#allocation2 + $0x408] ss:$16 sps:$4 sm:$0xff]  }
  0xb0   :  { %1840 = vmatpush2.bf16.msra.mxu0 %v4023_v61  ;;  %v4116_v61 = vld [vmem:[#allocation2 + $0x608] ss:$16 sps:$4 sm:$0xff]  }
  0xb1   :  { %1881 = vmatpush2.bf16.msra.mxu1 %v4026_v0  ;;  %1841 = vmatprep.subr.bf16.mxu0 %v4031_v1  ;;  %v4121_v0 = vld [vmem:[#allocation2 + $0x5ec] ss:$16 sps:$4 sm:$0xff]  }
  0xb2   :  { %1882 = vmatprep.subr.bf16.mxu1 %v4034_v2  ;;  %v4124_v1 = vld [vmem:[#allocation2 + $0x7ec] ss:$16 sps:$4 sm:$0xff]   ;;  %v4119_v2 = vld [vmem:[#allocation2 + $0x5e8] ss:$16 sps:$4 sm:$0xff]  }
  0xb4   :  { %1842 = vmatpush2.bf16.msra.mxu0 %v4029_v4  ;;  %v4122_v4 = vld [vmem:[#allocation2 + $0x7e8] ss:$16 sps:$4 sm:$0xff]  }
  0xb5   :  { %1883 = vmatpush2.bf16.msra.mxu1 %v4032_v5  ;;  %1843 = vmatprep.subr.bf16.mxu0 %v4037_v6  ;;  %v4127_v5 = vld [vmem:[#allocation2 + $0x5cc] ss:$16 sps:$4 sm:$0xff]  }
  0xb6   :  { %1884 = vmatprep.subr.bf16.mxu1 %v4040_v7  ;;  %v4130_v6 = vld [vmem:[#allocation2 + $0x7cc] ss:$16 sps:$4 sm:$0xff]   ;;  %v4125_v7 = vld [vmem:[#allocation2 + $0x5c8] ss:$16 sps:$4 sm:$0xff]  }
  0xb8   :  { %1844 = vmatpush2.bf16.msra.mxu0 %v4035_v8  ;;  %v4128_v8 = vld [vmem:[#allocation2 + $0x7c8] ss:$16 sps:$4 sm:$0xff]  }
  0xb9   :  { %1885 = vmatpush2.bf16.msra.mxu1 %v4038_v9  ;;  %1845 = vmatprep.subr.bf16.mxu0 %v4043_v10  ;;  %v4133_v9 = vld [vmem:[#allocation2 + $0x5ac] ss:$16 sps:$4 sm:$0xff]  }
  0xba   :  { %1886 = vmatprep.subr.bf16.mxu1 %v4046_v11  ;;  %v4136_v10 = vld [vmem:[#allocation2 + $0x7ac] ss:$16 sps:$4 sm:$0xff]   ;;  %v4131_v11 = vld [vmem:[#allocation2 + $0x5a8] ss:$16 sps:$4 sm:$0xff]  }
  0xbc   :  { %1846 = vmatpush2.bf16.msra.mxu0 %v4041_v12  ;;  %v4134_v12 = vld [vmem:[#allocation2 + $0x7a8] ss:$16 sps:$4 sm:$0xff]  }
  0xbd   :  { %1887 = vmatpush2.bf16.msra.mxu1 %v4044_v13  ;;  %1847 = vmatprep.subr.bf16.mxu0 %v4049_v15  ;;  %v4139_v13 = vld [vmem:[#allocation2 + $0x58c] ss:$16 sps:$4 sm:$0xff]  }
  0xbe   :  { %1888 = vmatprep.subr.bf16.mxu1 %v4052_v16  ;;  %v4142_v15 = vld [vmem:[#allocation2 + $0x78c] ss:$16 sps:$4 sm:$0xff]   ;;  %v4137_v16 = vld [vmem:[#allocation2 + $0x588] ss:$16 sps:$4 sm:$0xff]  }
  0xc0   :  { %1848 = vmatpush2.bf16.msra.mxu0 %v4047_v17  ;;  %v4140_v17 = vld [vmem:[#allocation2 + $0x788] ss:$16 sps:$4 sm:$0xff]  }
  0xc1   :  { %1889 = vmatpush2.bf16.msra.mxu1 %v4050_v20  ;;  %1849 = vmatprep.subr.bf16.mxu0 %v4055_v21  ;;  %v4145_v20 = vld [vmem:[#allocation2 + $0x56c] ss:$16 sps:$4 sm:$0xff]  }
  0xc2   :  { %1890 = vmatprep.subr.bf16.mxu1 %v4058_v22  ;;  %v4148_v21 = vld [vmem:[#allocation2 + $0x76c] ss:$16 sps:$4 sm:$0xff]   ;;  %v4143_v22 = vld [vmem:[#allocation2 + $0x568] ss:$16 sps:$4 sm:$0xff]  }
  0xc4   :  { %1850 = vmatpush2.bf16.msra.mxu0 %v4053_v23  ;;  %v4146_v23 = vld [vmem:[#allocation2 + $0x768] ss:$16 sps:$4 sm:$0xff]  }
  0xc5   :  { %1891 = vmatpush2.bf16.msra.mxu1 %v4056_v25  ;;  %1851 = vmatprep.subr.bf16.mxu0 %v4061_v26  ;;  %v4151_v25 = vld [vmem:[#allocation2 + $0x54c] ss:$16 sps:$4 sm:$0xff]  }
  0xc6   :  { %1892 = vmatprep.subr.bf16.mxu1 %v4064_v27  ;;  %v4154_v26 = vld [vmem:[#allocation2 + $0x74c] ss:$16 sps:$4 sm:$0xff]   ;;  %v4149_v27 = vld [vmem:[#allocation2 + $0x548] ss:$16 sps:$4 sm:$0xff]  }
  0xc8   :  { %1852 = vmatpush2.bf16.msra.mxu0 %v4059_v28  ;;  %v4152_v28 = vld [vmem:[#allocation2 + $0x748] ss:$16 sps:$4 sm:$0xff]  }
  0xc9   :  { %1893 = vmatpush2.bf16.msra.mxu1 %v4062_v30  ;;  %1853 = vmatprep.subr.bf16.mxu0 %v4067_v31  ;;  %v4157_v30 = vld [vmem:[#allocation2 + $0x52c] ss:$16 sps:$4 sm:$0xff]  }
  0xca   :  { %1894 = vmatprep.subr.bf16.mxu1 %v4070_v32  ;;  %v4160_v31 = vld [vmem:[#allocation2 + $0x72c] ss:$16 sps:$4 sm:$0xff]   ;;  %v4155_v32 = vld [vmem:[#allocation2 + $0x528] ss:$16 sps:$4 sm:$0xff]  }
  0xcc   :  { %1854 = vmatpush2.bf16.msra.mxu0 %v4065_v33  ;;  %v4158_v33 = vld [vmem:[#allocation2 + $0x728] ss:$16 sps:$4 sm:$0xff]  }
  0xcd   :  { %1895 = vmatpush2.bf16.msra.mxu1 %v4068_v34  ;;  %1905 = vmatprep.subr.bf16.mxu0 %v4073_v35  ;;  %v4163_v34 = vld [vmem:[#allocation2 + $0x50c] ss:$16 sps:$4 sm:$0xff]  }
  0xce   :  { %1946 = vmatprep.subr.bf16.mxu1 %v4076_v36  ;;  %v4166_v35 = vld [vmem:[#allocation2 + $0x70c] ss:$16 sps:$4 sm:$0xff]   ;;  %v4161_v36 = vld [vmem:[#allocation2 + $0x508] ss:$16 sps:$4 sm:$0xff]  }
  0xcf   :  { %1856 = vmatmul.mubr.bf16.vlgmr.msra.gmra.mxu0 %v4499_v14  ;;  %v4094_v14 = vld [vmem:[#allocation2 + $0x68c] ss:$16 sps:$4 sm:$0xff]  }
  0xd0   :  { %1897 = vmatmul.mubr.bf16.vlgmr.msra.gmra.mxu1 %v4505_v19  ;;  %1906 = vmatpush1.bf16.msra.mxu0 %v4071_v37  ;;  %v4092_v19 = vld [vmem:[#allocation2 + $0x688] ss:$16 sps:$4 sm:$0xff]  }
  0xd1   :  { %1947 = vmatpush1.bf16.msra.mxu1 %v4074_v38  ;;  %1907 = vmatprep.subr.bf16.mxu0 %v4079_v39  ;;  %v4164_v37 = vld [vmem:[#allocation2 + $0x708] ss:$16 sps:$4 sm:$0xff]   ;;  %v4169_v38 = vld [vmem:[%s5070_s3 + $0xe4] ss:$16 sps:$4 sm:$0xff]   ;;  %v4167_v39 = vld [vmem:[%s5070_s3 + $0xe0] ss:$16 sps:$4 sm:$0xff]  }
  0xd2   :  { %1948 = vmatprep.subr.bf16.mxu1 %v4082_v40  ;;  %1937 = vmatprep.mubr.bf16.mxu0 %v4501_v18  ;;  %v4103_v18 = vld [vmem:[#allocation2 + $0x44c] ss:$16 sps:$4 sm:$0xff]   ;;  %v4172_v40 = vld [vmem:[%s5070_s3 + $0xc4] ss:$16 sps:$4 sm:$0xff]  }
  0xd3   :  { %1978 = vmatprep.mubr.bf16.mxu1 %v4509_v24  ;;  %v4106_v24 = vld [vmem:[#allocation2 + $0x64c] ss:$16 sps:$4 sm:$0xff]  }
  0xd4   :  { %1908 = vmatpush1.bf16.msra.mxu0 %v4077_v41 }
  0xd5   :  { %1949 = vmatpush1.bf16.msra.mxu1 %v4080_v43  ;;  %1909 = vmatprep.subr.bf16.mxu0 %v4085_v44  ;;  %v4170_v44 = vld [vmem:[%s5070_s3 + $0xc0] ss:$16 sps:$4 sm:$0xff]  }
  0xd6   :  { %1950 = vmatprep.subr.bf16.mxu1 %v4088_v45 }
  0xd8   :  { %1910 = vmatpush1.bf16.msra.mxu0 %v4083_v46 }
  0xd9   :  { %1951 = vmatpush1.bf16.msra.mxu1 %v4086_v47  ;;  %1911 = vmatprep.subr.bf16.mxu0 %v4091_v62  ;;  %v4175_v47 = vld [vmem:[%s5070_s3 + $0xa4] ss:$16 sps:$4 sm:$0xff]  }
  0xda   :  { %1952 = vmatprep.subr.bf16.mxu1 %v4094_v14 }
  0xdc   :  { %1912 = vmatpush1.bf16.msra.mxu0 %v4089_v3 }
  0xdd   :  { %1953 = vmatpush1.bf16.msra.mxu1 %v4092_v19  ;;  %1913 = vmatprep.subr.bf16.mxu0 %v4097_v48  ;;  %v4178_v19 = vld [vmem:[%s5070_s3 + $0x84] ss:$16 sps:$4 sm:$0xff]   ;;  %v4176_v48 = vld [vmem:[%s5070_s3 + $0x80] ss:$16 sps:$4 sm:$0xff]  }
  0xde   :  { %1954 = vmatprep.subr.bf16.mxu1 %v4100_v49  ;;  %v4263_v49 = vld [vmem:[%s5070_s3 + $0x2e0] ss:$16 sps:$4 sm:$0xff]  }
  0xe0   :  { %1914 = vmatpush1.bf16.msra.mxu0 %v4095_v50  ;;  %v4265_v50 = vld [vmem:[%s5070_s3 + $0x2e4] ss:$16 sps:$4 sm:$0xff]  }
  0xe1   :  { %1955 = vmatpush1.bf16.msra.mxu1 %v4098_v51  ;;  %1915 = vmatprep.subr.bf16.mxu0 %v4103_v18  ;;  %v4181_v51 = vld [vmem:[%s5070_s3 + $0x64] ss:$16 sps:$4 sm:$0xff]   ;;  %v4266_v18 = vld [vmem:[%s5070_s3 + $0x2c0] ss:$16 sps:$4 sm:$0xff]  }
  0xe2   :  { %1956 = vmatprep.subr.bf16.mxu1 %v4106_v24  ;;  %v4268_v24 = vld [vmem:[%s5070_s3 + $0x2c4] ss:$16 sps:$4 sm:$0xff]  }
  0xe4   :  { %1916 = vmatpush1.bf16.msra.mxu0 %v4101_v52  ;;  %v4179_v52 = vld [vmem:[%s5070_s3 + $0x60] ss:$16 sps:$4 sm:$0xff]  }
  0xe5   :  { %1957 = vmatpush1.bf16.msra.mxu1 %v4104_v53  ;;  %1917 = vmatprep.subr.bf16.mxu0 %v4109_v54  ;;  %v4271_v53 = vld [vmem:[%s5070_s3 + $0x2a4] ss:$16 sps:$4 sm:$0xff]  }
  0xe6   :  { %1958 = vmatprep.subr.bf16.mxu1 %v4112_v55  ;;  %v4184_v54 = vld [vmem:[%s5070_s3 + $0x44] ss:$16 sps:$4 sm:$0xff]   ;;  %v4269_v55 = vld [vmem:[%s5070_s3 + $0x2a0] ss:$16 sps:$4 sm:$0xff]  }
  0xe8   :  { %1918 = vmatpush1.bf16.msra.mxu0 %v4107_v56  ;;  %v4182_v56 = vld [vmem:[%s5070_s3 + $0x40] ss:$16 sps:$4 sm:$0xff]  }
  0xe9   :  { %1959 = vmatpush1.bf16.msra.mxu1 %v4110_v57  ;;  %1919 = vmatprep.subr.bf16.mxu0 %v4115_v58  ;;  %v4274_v57 = vld [vmem:[%s5070_s3 + $0x284] ss:$16 sps:$4 sm:$0xff]  }
  0xea   :  { %1960 = vmatprep.subr.bf16.mxu1 %v4118_v59  ;;  %v4187_v58 = vld [vmem:[%s5070_s3 + $0x24] ss:$16 sps:$4 sm:$0xff]   ;;  %v4272_v59 = vld [vmem:[%s5070_s3 + $0x280] ss:$16 sps:$4 sm:$0xff]  }
  0xec   :  { %1920 = vmatpush1.bf16.msra.mxu0 %v4113_v60  ;;  %v4185_v60 = vld [vmem:[%s5070_s3 + $0x20] ss:$16 sps:$4 sm:$0xff]  }
  0xed   :  { %1961 = vmatpush1.bf16.msra.mxu1 %v4116_v61  ;;  %1921 = vmatprep.subr.bf16.mxu0 %v4121_v0  ;;  %v4277_v61 = vld [vmem:[%s5070_s3 + $0x264] ss:$16 sps:$4 sm:$0xff]  }
  0xee   :  { %1962 = vmatprep.subr.bf16.mxu1 %v4124_v1  ;;  %v4190_v0 = vld [vmem:[%s5070_s3 + $0x4] ss:$16 sps:$4 sm:$0xff]   ;;  %v4275_v1 = vld [vmem:[%s5070_s3 + $0x260] ss:$16 sps:$4 sm:$0xff]  }
  0xf0   :  { %1922 = vmatpush2.bf16.msra.mxu0 %v4119_v2  ;;  %v4188_v2 = vld [vmem:[%s5070_s3] ss:$16 sps:$4 sm:$0xff]  }
  0xf1   :  { %1963 = vmatpush2.bf16.msra.mxu1 %v4122_v4  ;;  %1923 = vmatprep.subr.bf16.mxu0 %v4127_v5  ;;  %v4280_v4 = vld [vmem:[%s5070_s3 + $0x244] ss:$16 sps:$4 sm:$0xff]  }
  0xf2   :  { %1964 = vmatprep.subr.bf16.mxu1 %v4130_v6  ;;  %v4193_v5 = vld [vmem:[%s5070_s3 + $0x1e4] ss:$16 sps:$4 sm:$0xff]   ;;  %v4278_v6 = vld [vmem:[%s5070_s3 + $0x240] ss:$16 sps:$4 sm:$0xff]  }
  0xf4   :  { %1924 = vmatpush2.bf16.msra.mxu0 %v4125_v7  ;;  %v4191_v7 = vld [vmem:[%s5070_s3 + $0x1e0] ss:$16 sps:$4 sm:$0xff]  }
  0xf5   :  { %1965 = vmatpush2.bf16.msra.mxu1 %v4128_v8  ;;  %1925 = vmatprep.subr.bf16.mxu0 %v4133_v9  ;;  %v4283_v8 = vld [vmem:[%s5070_s3 + $0x224] ss:$16 sps:$4 sm:$0xff]  }
  0xf6   :  { %1966 = vmatprep.subr.bf16.mxu1 %v4136_v10  ;;  %v4196_v9 = vld [vmem:[%s5070_s3 + $0x1c4] ss:$16 sps:$4 sm:$0xff]   ;;  %v4281_v10 = vld [vmem:[%s5070_s3 + $0x220] ss:$16 sps:$4 sm:$0xff]  }
  0xf8   :  { %1926 = vmatpush2.bf16.msra.mxu0 %v4131_v11  ;;  %v4194_v11 = vld [vmem:[%s5070_s3 + $0x1c0] ss:$16 sps:$4 sm:$0xff]  }
  0xf9   :  { %1967 = vmatpush2.bf16.msra.mxu1 %v4134_v12  ;;  %1927 = vmatprep.subr.bf16.mxu0 %v4139_v13  ;;  %v4286_v12 = vld [vmem:[%s5070_s3 + $0x204] ss:$16 sps:$4 sm:$0xff]  }
  0xfa   :  { %1968 = vmatprep.subr.bf16.mxu1 %v4142_v15  ;;  %v4199_v13 = vld [vmem:[%s5070_s3 + $0x1a4] ss:$16 sps:$4 sm:$0xff]   ;;  %v4284_v15 = vld [vmem:[%s5070_s3 + $0x200] ss:$16 sps:$4 sm:$0xff]  }
  0xfc   :  { %1928 = vmatpush2.bf16.msra.mxu0 %v4137_v16  ;;  %v4197_v16 = vld [vmem:[%s5070_s3 + $0x1a0] ss:$16 sps:$4 sm:$0xff]  }
  0xfd   :  { %1969 = vmatpush2.bf16.msra.mxu1 %v4140_v17  ;;  %1929 = vmatprep.subr.bf16.mxu0 %v4145_v20  ;;  %v4289_v17 = vld [vmem:[%s5070_s3 + $0x3e4] ss:$16 sps:$4 sm:$0xff]  }
  0xfe   :  { %1970 = vmatprep.subr.bf16.mxu1 %v4148_v21  ;;  %v4202_v20 = vld [vmem:[%s5070_s3 + $0x184] ss:$16 sps:$4 sm:$0xff]   ;;  %v4287_v21 = vld [vmem:[%s5070_s3 + $0x3e0] ss:$16 sps:$4 sm:$0xff]  }
 0x100   :  { %1930 = vmatpush2.bf16.msra.mxu0 %v4143_v22  ;;  %v4200_v22 = vld [vmem:[%s5070_s3 + $0x180] ss:$16 sps:$4 sm:$0xff]  }
 0x101   :  { %1971 = vmatpush2.bf16.msra.mxu1 %v4146_v23  ;;  %1931 = vmatprep.subr.bf16.mxu0 %v4151_v25  ;;  %v4292_v23 = vld [vmem:[%s5070_s3 + $0x3c4] ss:$16 sps:$4 sm:$0xff]  }
 0x102   :  { %1972 = vmatprep.subr.bf16.mxu1 %v4154_v26  ;;  %v4205_v25 = vld [vmem:[%s5070_s3 + $0x164] ss:$16 sps:$4 sm:$0xff]   ;;  %v4290_v26 = vld [vmem:[%s5070_s3 + $0x3c0] ss:$16 sps:$4 sm:$0xff]  }
 0x104   :  { %1932 = vmatpush2.bf16.msra.mxu0 %v4149_v27  ;;  %v4203_v27 = vld [vmem:[%s5070_s3 + $0x160] ss:$16 sps:$4 sm:$0xff]  }
 0x105   :  { %1973 = vmatpush2.bf16.msra.mxu1 %v4152_v28  ;;  %1933 = vmatprep.subr.bf16.mxu0 %v4157_v30  ;;  %v4295_v28 = vld [vmem:[%s5070_s3 + $0x3a4] ss:$16 sps:$4 sm:$0xff]  }
 0x106   :  { %1974 = vmatprep.subr.bf16.mxu1 %v4160_v31  ;;  %v4208_v30 = vld [vmem:[%s5070_s3 + $0x144] ss:$16 sps:$4 sm:$0xff]   ;;  %v4293_v31 = vld [vmem:[%s5070_s3 + $0x3a0] ss:$16 sps:$4 sm:$0xff]  }
 0x108   :  { %1934 = vmatpush2.bf16.msra.mxu0 %v4155_v32  ;;  %v4206_v32 = vld [vmem:[%s5070_s3 + $0x140] ss:$16 sps:$4 sm:$0xff]  }
 0x109   :  { %1975 = vmatpush2.bf16.msra.mxu1 %v4158_v33  ;;  %1935 = vmatprep.subr.bf16.mxu0 %v4163_v34  ;;  %v4298_v33 = vld [vmem:[%s5070_s3 + $0x384] ss:$16 sps:$4 sm:$0xff]  }
 0x10a   :  { %1976 = vmatprep.subr.bf16.mxu1 %v4166_v35  ;;  %v4211_v34 = vld [vmem:[%s5070_s3 + $0x124] ss:$16 sps:$4 sm:$0xff]   ;;  %v303_v35 = vsub.s32 0, %v4483_v42 }
 0x10c   :  { %1936 = vmatpush2.bf16.msra.mxu0 %v4161_v36  ;;  %v4697_v36 = vld [vmem:[%s5069_s2] sm:$0xf] }
 0x10d   :  { %1977 = vmatpush2.bf16.msra.mxu1 %v4164_v37  ;;  %2785 = vmatprep.subr.bf16.mxu0 %v4169_v38  ;;  %v4296_v37 = vld [vmem:[%s5070_s3 + $0x380] ss:$16 sps:$4 sm:$0xff]   ;;  %v307_v38 = vsub.s32 1, %v4483_v42 }
 0x10e   :  { %2826 = vmatprep.subr.bf16.mxu1 %v4265_v50 }
 0x10f   :  { %v4536_v41 = vpop.f32.mrf.mxu0  ;;  %1938 = vmatmul.mubr.bf16.vlgmr.msra.gmra.mxu0 %v4491_v63  ;;  %v4173_v63 = vld [vmem:[%s5070_s3 + $0xa0] ss:$16 sps:$4 sm:$0xff]  }
 0x110   :  { %v4538_v43 = vpop.f32.mrf.mxu1  ;;  %1979 = vmatmul.mubr.bf16.vlgmr.msra.gmra.mxu1 %v4517_v29  ;;  %2786 = vmatpush1.bf16.msra.mxu0 %v4167_v39  ;;  %v4209_v39 = vld [vmem:[%s5070_s3 + $0x120] ss:$16 sps:$4 sm:$0xff]  }
 0x111   :  { %v4545_v45 = vpop.f32.mrf.mxu0  ;;  %2787 = vmatprep.subr.bf16.mxu0 %v4172_v40  ;;  %2827 = vmatpush1.bf16.msra.mxu1 %v4263_v49  ;;  %v4301_v40 = vld [vmem:[%s5070_s3 + $0x364] ss:$16 sps:$4 sm:$0xff]  }
 0x112   :  { %v4547_v46 = vpop.f32.mrf.mxu1  ;;  %2828 = vmatprep.subr.bf16.mxu1 %v4268_v24 }
 0x113   :  { %v1697_v62 = vpop.f32.mrf.mxu0 }
 0x114   :  { %v1738_v14 = vpop.f32.mrf.mxu1  ;;  %2788 = vmatpush1.bf16.msra.mxu0 %v4170_v44  ;;  %v4214_v44 = vld [vmem:[%s5070_s3 + $0x104] ss:$16 sps:$4 sm:$0xff]   ;;  %v4299_v62 = vld [vmem:[%s5070_s3 + $0x360] ss:$16 sps:$4 sm:$0xff]  }
 0x115   :  { %v1698_v29 = vpop.f32.mrf.mxu0  ;;  %2789 = vmatprep.subr.bf16.mxu0 %v4175_v47  ;;  %2829 = vmatpush1.bf16.msra.mxu1 %v4266_v18  ;;  %v304_v47 = vrot.slane %v4697_v36, %v303_v35  ;;  %v308_v14 = vrot.slane %v4697_v36, %v307_v38 }
 0x116   :  { %v1739_v3 = vpop.f32.mrf.mxu1  ;;  %2830 = vmatprep.subr.bf16.mxu1 %v4271_v53  ;;  %v4304_v29 = vld [vmem:[%s5070_s3 + $0x344] ss:$16 sps:$4 sm:$0xff]  }
 0x117   :  { %v4217_v3 = vld [vmem:[%s5070_s3 + $0xec] ss:$16 sps:$4 sm:$0xff]   ;;  %v1696_v49 = vadd.f32 %v4545_v45, %v308_v14  ;;  %v4305_v45 = vld [vmem:[%s5070_s3 + $0x320] ss:$16 sps:$4 sm:$0xff]   ;;  %v4257_v14 = vld [vmem:[%s5070_s3 + $0x128] ss:$16 sps:$4 sm:$0xff]  }
 0x118   :  { %2790 = vmatpush1.bf16.msra.mxu0 %v4173_v63  ;;  %v4212_v63 = vld [vmem:[%s5070_s3 + $0x100] ss:$16 sps:$4 sm:$0xff]  }
 0x119   :  { %2791 = vmatprep.subr.bf16.mxu0 %v4178_v19  ;;  %2831 = vmatpush1.bf16.msra.mxu1 %v4269_v55  ;;  %v1694_v19 = vadd.f32 %v4536_v41, %v304_v47  ;;  %v1737_v24 = vadd.f32 %v4547_v46, %v1696_v49  ;;  %v4260_v49 = vld [vmem:[%s5070_s3 + $0x108] ss:$16 sps:$4 sm:$0xff]  }
 0x11a   :  { %2832 = vmatprep.subr.bf16.mxu1 %v4274_v57 }
 0x11b   :  { %v1735_v50 = vadd.f32 %v4538_v43, %v1694_v19 }
 0x11c   :  { %2792 = vmatpush1.bf16.msra.mxu0 %v4176_v48  ;;  %v4302_v48 = vld [vmem:[%s5070_s3 + $0x340] ss:$16 sps:$4 sm:$0xff]  }
 0x11d   :  { %2793 = vmatprep.subr.bf16.mxu0 %v4181_v51  ;;  %2833 = vmatpush1.bf16.msra.mxu1 %v4272_v59 }
 0x11e   :  { %2834 = vmatprep.subr.bf16.mxu1 %v4277_v61  ;;  %v4310_v61 = vld [vmem:[%s5070_s3 + $0x304] ss:$16 sps:$4 sm:$0xff]  }
 0x120   :  { %2794 = vmatpush1.bf16.msra.mxu0 %v4179_v52 }
 0x121   :  { %2795 = vmatprep.subr.bf16.mxu0 %v4184_v54  ;;  %2835 = vmatpush1.bf16.msra.mxu1 %v4275_v1  ;;  %v4307_v54 = vld [vmem:[%s5070_s3 + $0x324] ss:$16 sps:$4 sm:$0xff]   ;;  %v4308_v1 = vld [vmem:[%s5070_s3 + $0x300] ss:$16 sps:$4 sm:$0xff]  }
 0x122   :  { %2836 = vmatprep.subr.bf16.mxu1 %v4280_v4  ;;  %v4215_v4 = vld [vmem:[%s5070_s3 + $0xe8] ss:$16 sps:$4 sm:$0xff]  }
 0x124   :  { %2796 = vmatpush1.bf16.msra.mxu0 %v4182_v56 }
 0x125   :  { %2797 = vmatprep.subr.bf16.mxu0 %v4187_v58  ;;  %2837 = vmatpush1.bf16.msra.mxu1 %v4278_v6  ;;  %v4220_v6 = vld [vmem:[%s5070_s3 + $0xcc] ss:$16 sps:$4 sm:$0xff]  }
 0x126   :  { %2838 = vmatprep.subr.bf16.mxu1 %v4283_v8  ;;  %v4218_v8 = vld [vmem:[%s5070_s3 + $0xc8] ss:$16 sps:$4 sm:$0xff]  }
 0x128   :  { %2798 = vmatpush1.bf16.msra.mxu0 %v4185_v60 }
 0x129   :  { %2799 = vmatprep.subr.bf16.mxu0 %v4190_v0  ;;  %2839 = vmatpush1.bf16.msra.mxu1 %v4281_v10  ;;  %v4221_v10 = vld [vmem:[%s5070_s3 + $0xa8] ss:$16 sps:$4 sm:$0xff]  }
 0x12a   :  { %2840 = vmatprep.subr.bf16.mxu1 %v4286_v12  ;;  %v4224_v12 = vld [vmem:[%s5070_s3 + $0x88] ss:$16 sps:$4 sm:$0xff]  }
 0x12c   :  { %2800 = vmatpush1.bf16.msra.mxu0 %v4188_v2 }
 0x12d   :  { %2801 = vmatprep.subr.bf16.mxu0 %v4193_v5  ;;  %2841 = vmatpush1.bf16.msra.mxu1 %v4284_v15  ;;  %v4227_v15 = vld [vmem:[%s5070_s3 + $0x68] ss:$16 sps:$4 sm:$0xff]  }
 0x12e   :  { %2842 = vmatprep.subr.bf16.mxu1 %v4289_v17  ;;  %v4230_v17 = vld [vmem:[%s5070_s3 + $0x48] ss:$16 sps:$4 sm:$0xff]  }
 0x130   :  { %2802 = vmatpush2.bf16.msra.mxu0 %v4191_v7  ;;  %v4313_v7 = vld [vmem:[%s5070_s3 + $0x2ec] ss:$16 sps:$4 sm:$0xff]  }
 0x131   :  { %2803 = vmatprep.subr.bf16.mxu0 %v4196_v9  ;;  %2843 = vmatpush2.bf16.msra.mxu1 %v4287_v21  ;;  %v4223_v9 = vld [vmem:[%s5070_s3 + $0xac] ss:$16 sps:$4 sm:$0xff]   ;;  %v4233_v21 = vld [vmem:[%s5070_s3 + $0x28] ss:$16 sps:$4 sm:$0xff]  }
 0x132   :  { %2844 = vmatprep.subr.bf16.mxu1 %v4292_v23  ;;  %v4236_v23 = vld [vmem:[%s5070_s3 + $0x8] ss:$16 sps:$4 sm:$0xff]  }
 0x134   :  { %2804 = vmatpush2.bf16.msra.mxu0 %v4194_v11  ;;  %v4226_v11 = vld [vmem:[%s5070_s3 + $0x8c] ss:$16 sps:$4 sm:$0xff]  }
 0x135   :  { %2805 = vmatprep.subr.bf16.mxu0 %v4199_v13  ;;  %2845 = vmatpush2.bf16.msra.mxu1 %v4290_v26  ;;  %v4229_v13 = vld [vmem:[%s5070_s3 + $0x6c] ss:$16 sps:$4 sm:$0xff]   ;;  %v4239_v26 = vld [vmem:[%s5070_s3 + $0x1e8] ss:$16 sps:$4 sm:$0xff]  }
 0x136   :  { %2846 = vmatprep.subr.bf16.mxu1 %v4295_v28  ;;  %v4242_v28 = vld [vmem:[%s5070_s3 + $0x1c8] ss:$16 sps:$4 sm:$0xff]  }
 0x138   :  { %2806 = vmatpush2.bf16.msra.mxu0 %v4197_v16  ;;  %v4232_v16 = vld [vmem:[%s5070_s3 + $0x4c] ss:$16 sps:$4 sm:$0xff]  }
 0x139   :  { %2807 = vmatprep.subr.bf16.mxu0 %v4202_v20  ;;  %2847 = vmatpush2.bf16.msra.mxu1 %v4293_v31  ;;  %v4235_v20 = vld [vmem:[%s5070_s3 + $0x2c] ss:$16 sps:$4 sm:$0xff]   ;;  %v4245_v31 = vld [vmem:[%s5070_s3 + $0x1a8] ss:$16 sps:$4 sm:$0xff]  }
 0x13a   :  { %2848 = vmatprep.subr.bf16.mxu1 %v4298_v33  ;;  %v4248_v33 = vld [vmem:[%s5070_s3 + $0x188] ss:$16 sps:$4 sm:$0xff]  }
 0x13c   :  { %2808 = vmatpush2.bf16.msra.mxu0 %v4200_v22  ;;  %v4238_v22 = vld [vmem:[%s5070_s3 + $0xc] ss:$16 sps:$4 sm:$0xff]  }
 0x13d   :  { %2809 = vmatprep.subr.bf16.mxu0 %v4205_v25  ;;  %2849 = vmatpush2.bf16.msra.mxu1 %v4296_v37  ;;  %v4241_v25 = vld [vmem:[%s5070_s3 + $0x1ec] ss:$16 sps:$4 sm:$0xff]   ;;  %v4251_v37 = vld [vmem:[%s5070_s3 + $0x168] ss:$16 sps:$4 sm:$0xff]  }
 0x13e   :  { %2850 = vmatprep.subr.bf16.mxu1 %v4301_v40  ;;  %v4254_v40 = vld [vmem:[%s5070_s3 + $0x148] ss:$16 sps:$4 sm:$0xff]  }
 0x140   :  { %2810 = vmatpush2.bf16.msra.mxu0 %v4203_v27  ;;  %v4244_v27 = vld [vmem:[%s5070_s3 + $0x1cc] ss:$16 sps:$4 sm:$0xff]  }
 0x141   :  { %2811 = vmatprep.subr.bf16.mxu0 %v4208_v30  ;;  %2851 = vmatpush2.bf16.msra.mxu1 %v4299_v62  ;;  %v4247_v30 = vld [vmem:[%s5070_s3 + $0x1ac] ss:$16 sps:$4 sm:$0xff]  }
 0x142   :  { %2852 = vmatprep.subr.bf16.mxu1 %v4304_v29 }
 0x144   :  { %2812 = vmatpush2.bf16.msra.mxu0 %v4206_v32  ;;  %v4250_v32 = vld [vmem:[%s5070_s3 + $0x18c] ss:$16 sps:$4 sm:$0xff]  }
 0x145   :  { %2813 = vmatprep.subr.bf16.mxu0 %v4211_v34  ;;  %2853 = vmatpush2.bf16.msra.mxu1 %v4302_v48  ;;  %v4253_v34 = vld [vmem:[%s5070_s3 + $0x16c] ss:$16 sps:$4 sm:$0xff]  }
 0x146   :  { %2854 = vmatprep.subr.bf16.mxu1 %v4307_v54 }
 0x148   :  { %2814 = vmatpush2.bf16.msra.mxu0 %v4209_v39  ;;  %v4256_v39 = vld [vmem:[%s5070_s3 + $0x14c] ss:$16 sps:$4 sm:$0xff]  }
 0x149   :  { %2815 = vmatprep.subr.bf16.mxu0 %v4214_v44  ;;  %2855 = vmatpush2.bf16.msra.mxu1 %v4305_v45  ;;  %v4259_v44 = vld [vmem:[%s5070_s3 + $0x12c] ss:$16 sps:$4 sm:$0xff]  }
 0x14a   :  { %2856 = vmatprep.subr.bf16.mxu1 %v4310_v61 }
 0x14c   :  { %2816 = vmatpush2.bf16.msra.mxu0 %v4212_v63 }
 0x14d   :  { %2867 = vmatprep.subr.bf16.mxu0 %v4217_v3  ;;  %2857 = vmatpush2.bf16.msra.mxu1 %v4308_v1  ;;  %v4262_v3 = vld [vmem:[%s5070_s3 + $0x10c] ss:$16 sps:$4 sm:$0xff]  }
 0x14e   :  { %2908 = vmatprep.subr.bf16.mxu1 %v4313_v7 }
 0x14f   :  { %v1775_v51 = vpop.f32.mrf.mxu0 }
 0x150   :  { %v1816_v18 = vpop.f32.mrf.mxu1  ;;  %v1776_v52 = vadd.f32 %v1775_v51, %v1735_v50 }
 0x151   :  { %v1777_v53 = vpop.f32.mrf.mxu0 }
 0x152   :  { %v1818_v41 = vpop.f32.mrf.mxu1  ;;  %v1817_v55 = vadd.f32 %v1816_v18, %v1776_v52  ;;  %v1778_v56 = vadd.f32 %v1777_v53, %v1737_v24  ;;  %v311_v18 = vsub.s32 2, %v4483_v42  ;;  %v315_v24 = vsub.s32 3, %v4483_v42 }
 0x153   :  { %v1779_v57 = vpop.f32.mrf.mxu0 }
 0x154   :  { %v1820_v43 = vpop.f32.mrf.mxu1  ;;  %v1819_v58 = vadd.f32 %v1818_v41, %v1778_v56  ;;  %v1987_v59 = vmax.f32 %v1817_v55, 0.0  ;;  %v312_v52 = vrot.slane %v4697_v36, %v311_v18  ;;  %v316_v53 = vrot.slane %v4697_v36, %v315_v24  ;;  %v4311_v36 = vld [vmem:[%s5070_s3 + $0x2e8] ss:$16 sps:$4 sm:$0xff]  }
 0x155   :  { %v1780_v46 = vpop.f32.mrf.mxu0 }
 0x156   :  { %v1821_v60 = vpop.f32.mrf.mxu1  ;;  %v1988_v0 = vmax.f32 %v1819_v58, 0.0  ;;  %v4752_v5 = vpack.c.bf16 %v1987_v59, %v1987_v59 }
 0x158   :  { %v1992_v2 = vpack.c.bf16 %v1988_v0, %v1988_v0 }
 0x15a   :  { %2817 = vmatprep.mubr.bf16.mxu0 %v1992_v2 }
 0x15b   :  { %2818 = vmatmul.mubr.bf16.vlgmr.msra.gmra.mxu0 %v4752_v5 }
 0x15c   :  { %2868 = vmatpush1.bf16.msra.mxu0 %v4215_v4  ;;  %2899 = vmatprep.mubr.bf16.mxu0 %v1992_v2 }
 0x15d   :  { %2869 = vmatprep.subr.bf16.mxu0 %v4220_v6 }
 0x160   :  { %2870 = vmatpush1.bf16.msra.mxu0 %v4218_v8 }
 0x161   :  { %2871 = vmatprep.subr.bf16.mxu0 %v4223_v9  ;;  %v4316_v9 = vld [vmem:[%s5070_s3 + $0x2cc] ss:$16 sps:$4 sm:$0xff]  }
 0x164   :  { %2872 = vmatpush1.bf16.msra.mxu0 %v4221_v10  ;;  %v4314_v10 = vld [vmem:[%s5070_s3 + $0x2c8] ss:$16 sps:$4 sm:$0xff]  }
 0x165   :  { %2873 = vmatprep.subr.bf16.mxu0 %v4226_v11  ;;  %v4319_v11 = vld [vmem:[%s5070_s3 + $0x2ac] ss:$16 sps:$4 sm:$0xff]  }
 0x168   :  { %2874 = vmatpush1.bf16.msra.mxu0 %v4224_v12  ;;  %v4317_v12 = vld [vmem:[%s5070_s3 + $0x2a8] ss:$16 sps:$4 sm:$0xff]  }
 0x169   :  { %2875 = vmatprep.subr.bf16.mxu0 %v4229_v13  ;;  %v4322_v13 = vld [vmem:[%s5070_s3 + $0x28c] ss:$16 sps:$4 sm:$0xff]  }
 0x16c   :  { %2876 = vmatpush1.bf16.msra.mxu0 %v4227_v15  ;;  %v4359_v15 = vld [vmem:[%s5072_s5 + $0x78] sm:$0xff]  }
 0x16d   :  { %2877 = vmatprep.subr.bf16.mxu0 %v4232_v16  ;;  %v4360_v16 = vld [vmem:[%s5072_s5 + $0x38] sm:$0xff]  }
 0x170   :  { %2878 = vmatpush1.bf16.msra.mxu0 %v4230_v17  ;;  %v4361_v17 = vld [vmem:[%s5072_s5 + $0x70] sm:$0xff]  }
 0x171   :  { %2879 = vmatprep.subr.bf16.mxu0 %v4235_v20  ;;  %v4320_v20 = vld [vmem:[%s5070_s3 + $0x288] ss:$16 sps:$4 sm:$0xff]  }
 0x174   :  { %2880 = vmatpush1.bf16.msra.mxu0 %v4233_v21  ;;  %v4362_v21 = vld [vmem:[%s5072_s5 + $0x30] sm:$0xff]  }
 0x175   :  { %2881 = vmatprep.subr.bf16.mxu0 %v4238_v22  ;;  %v4325_v22 = vld [vmem:[%s5070_s3 + $0x26c] ss:$16 sps:$4 sm:$0xff]  }
 0x178   :  { %2882 = vmatpush1.bf16.msra.mxu0 %v4236_v23  ;;  %v4363_v23 = vld [vmem:[%s5072_s5 + $0x68] sm:$0xff]  }
 0x179   :  { %2883 = vmatprep.subr.bf16.mxu0 %v4241_v25  ;;  %v4323_v25 = vld [vmem:[%s5070_s3 + $0x268] ss:$16 sps:$4 sm:$0xff]  }
 0x17c   :  { %2884 = vmatpush2.bf16.msra.mxu0 %v4239_v26  ;;  %v4364_v26 = vld [vmem:[%s5072_s5 + $0x28] sm:$0xff]  }
 0x17d   :  { %2885 = vmatprep.subr.bf16.mxu0 %v4244_v27  ;;  %v4328_v27 = vld [vmem:[%s5070_s3 + $0x24c] ss:$16 sps:$4 sm:$0xff]  }
 0x180   :  { %2886 = vmatpush2.bf16.msra.mxu0 %v4242_v28  ;;  %v4365_v28 = vld [vmem:[%s5072_s5 + $0x60] sm:$0xff]  }
 0x181   :  { %2887 = vmatprep.subr.bf16.mxu0 %v4247_v30  ;;  %v4326_v30 = vld [vmem:[%s5070_s3 + $0x248] ss:$16 sps:$4 sm:$0xff]  }
 0x184   :  { %2888 = vmatpush2.bf16.msra.mxu0 %v4245_v31  ;;  %v4366_v31 = vld [vmem:[%s5072_s5 + $0x20] sm:$0xff]  }
 0x185   :  { %2889 = vmatprep.subr.bf16.mxu0 %v4250_v32  ;;  %v4331_v32 = vld [vmem:[%s5070_s3 + $0x22c] ss:$16 sps:$4 sm:$0xff]  }
 0x188   :  { %2890 = vmatpush2.bf16.msra.mxu0 %v4248_v33  ;;  %v4367_v33 = vld [vmem:[%s5072_s5 + $0x58] sm:$0xff]  }
 0x189   :  { %2891 = vmatprep.subr.bf16.mxu0 %v4253_v34  ;;  %v4329_v34 = vld [vmem:[%s5070_s3 + $0x228] ss:$16 sps:$4 sm:$0xff]  }
 0x18c   :  { %2892 = vmatpush2.bf16.msra.mxu0 %v4251_v37  ;;  %v4368_v37 = vld [vmem:[%s5072_s5 + $0x18] sm:$0xff]  }
 0x18d   :  { %2893 = vmatprep.subr.bf16.mxu0 %v4256_v39  ;;  %v4334_v39 = vld [vmem:[%s5070_s3 + $0x20c] ss:$16 sps:$4 sm:$0xff]  }
 0x18f   :  { %v1857_v47 = vpop.f32.mrf.mxu0 }
 0x190   :  { %v1898_v62 = vpop.f32.mrf.mxu1  ;;  %2894 = vmatpush2.bf16.msra.mxu0 %v4254_v40  ;;  %v1858_v41 = vadd.f32 %v1857_v47, %v312_v52  ;;  %v4369_v40 = vld [vmem:[%s5072_s5 + $0x50] sm:$0xff]   ;;  %v4352_v52 = vld [vmem:[%s5070_s3 + $0x34c] ss:$16 sps:$4 sm:$0xff]  }
 0x191   :  { %v1859_v63 = vpop.f32.mrf.mxu0  ;;  %2895 = vmatprep.subr.bf16.mxu0 %v4259_v44  ;;  %v4332_v44 = vld [vmem:[%s5070_s3 + $0x208] ss:$16 sps:$4 sm:$0xff]   ;;  %v4370_v47 = vld [vmem:[%s5072_s5 + $0x10] sm:$0xff]  }
 0x192   :  { %v1900_v29 = vpop.f32.mrf.mxu1  ;;  %v1860_v54 = vadd.f32 %v1859_v63, %v316_v53  ;;  %v1899_v55 = vadd.f32 %v1898_v62, %v1858_v41  ;;  %v4337_v62 = vld [vmem:[%s5070_s3 + $0x3ec] ss:$16 sps:$4 sm:$0xff]   ;;  %v4350_v53 = vld [vmem:[%s5070_s3 + $0x348] ss:$16 sps:$4 sm:$0xff]  }
 0x193   :  { %v1861_v19 = vpop.f32.mrf.mxu0  ;;  %v4340_v63 = vld [vmem:[%s5070_s3 + $0x3cc] ss:$16 sps:$4 sm:$0xff]  }
 0x194   :  { %v1902_v48 = vpop.f32.mrf.mxu1  ;;  %2896 = vmatpush2.bf16.msra.mxu0 %v4257_v14  ;;  %v1901_v57 = vadd.f32 %v1900_v29, %v1860_v54  ;;  %v4335_v14 = vld [vmem:[%s5070_s3 + $0x3e8] ss:$16 sps:$4 sm:$0xff]   ;;  %v4355_v41 = vld [vmem:[%s5070_s3 + $0x32c] ss:$16 sps:$4 sm:$0xff]  }
 0x195   :  { %v1862_v50 = vpop.f32.mrf.mxu0  ;;  %2897 = vmatprep.subr.bf16.mxu0 %v4262_v3  ;;  %v4338_v29 = vld [vmem:[%s5070_s3 + $0x3c8] ss:$16 sps:$4 sm:$0xff]   ;;  %v4343_v3 = vld [vmem:[%s5070_s3 + $0x3ac] ss:$16 sps:$4 sm:$0xff]  }
 0x196   :  { %v1903_v51 = vpop.f32.mrf.mxu1  ;;  %v4341_v19 = vld [vmem:[%s5070_s3 + $0x3a8] ss:$16 sps:$4 sm:$0xff]   ;;  %v4346_v48 = vld [vmem:[%s5070_s3 + $0x38c] ss:$16 sps:$4 sm:$0xff]  }
 0x197   :  { %v4349_v50 = vld [vmem:[%s5070_s3 + $0x36c] ss:$16 sps:$4 sm:$0xff]   ;;  %v4347_v51 = vld [vmem:[%s5070_s3 + $0x368] ss:$16 sps:$4 sm:$0xff]  }
 0x198   :  { %2898 = vmatpush2.bf16.msra.mxu0 %v4260_v49  ;;  %v4344_v49 = vld [vmem:[%s5070_s3 + $0x388] ss:$16 sps:$4 sm:$0xff]  }
 0x199   :  { %3733 = vmatprep.subr.bf16.mxu0 %v4359_v15  ;;  %v4353_v54 = vld [vmem:[%s5070_s3 + $0x328] ss:$16 sps:$4 sm:$0xff]  }
 0x19a   :  { %v4388_v15 = vld [vmem:[%s5072_s5 + $0x88] sm:$0xff]  }
 0x19b   :  { %2900 = vmatmul.mubr.bf16.vlgmr.msra.gmra.mxu0 %v4752_v5 }
 0x19c   :  { %3734 = vmatpush3.bf16.msra.mxu0 %v4360_v16 }
 0x19d   :  { %3735 = vmatprep.subr.bf16.mxu0 %v4361_v17 }
 0x1a0   :  { %3736 = vmatpush3.bf16.msra.mxu0 %v4362_v21  ;;  %v4390_v21 = vld [vmem:[%s5072_s5 + $0x80] sm:$0xff]  }
 0x1a1   :  { %3737 = vmatprep.subr.bf16.mxu0 %v4363_v23  ;;  %v2123_v23 = vld [vmem:[%s5071_s4] sm:$0xf] }
 0x1a4   :  { %3738 = vmatpush3.bf16.msra.mxu0 %v4364_v26  ;;  %v2132_v26 = vrot.slane %v2123_v23, %v307_v38  ;;  %v2140_v38 = vrot.slane %v2123_v23, %v315_v24  ;;  %v3700_v24 = vld [vmem:[%s5073_s6] ss:$0 sm:$0xff] }
 0x1a5   :  { %3739 = vmatprep.subr.bf16.mxu0 %v4365_v28 }
 0x1a8   :  { %3740 = vmatpush3.bf16.msra.mxu0 %v4366_v31 }
 0x1a9   :  { %3741 = vmatprep.subr.bf16.mxu0 %v4367_v33 }
 0x1ac   :  { %3742 = vmatpush3.bf16.msra.mxu0 %v4368_v37 }
 0x1ad   :  { %3743 = vmatprep.subr.bf16.mxu0 %v4369_v40 }
 0x1b0   :  { %3744 = vmatpush3.bf16.msra.mxu0 %v4370_v47 }
 0x1cf   :  { %v1939_v56 = vpop.f32.mrf.mxu0 }
 0x1d0   :  { %v1980_v45 = vpop.f32.mrf.mxu1  ;;  %v1940_v43 = vadd.f32 %v1939_v56, %v1899_v55  ;;  %v4358_v55 = vld [vmem:[%s5070_s3 + $0x30c] ss:$16 sps:$4 sm:$0xff]   ;;  %v4356_v56 = vld [vmem:[%s5070_s3 + $0x308] ss:$16 sps:$4 sm:$0xff]  }
 0x1d1   :  { %v1941_v58 = vpop.f32.mrf.mxu0 }
 0x1d2   :  { %v1982_v59 = vpop.f32.mrf.mxu1  ;;  %v1981_v46 = vadd.f32 %v1980_v45, %v1940_v43  ;;  %v1942_v60 = vadd.f32 %v1941_v58, %v1901_v57  ;;  %v4371_v57 = vld [vmem:[%s5072_s5 + $0x48] sm:$0xff]  }
 0x1d3   :  { %v1943_v61 = vpop.f32.mrf.mxu0  ;;  %v4372_v58 = vld [vmem:[%s5072_s5 + $0x8] sm:$0xff]   ;;  %3745 = vmatprep.subr.bf16.mxu0 %v4371_v57 }
 0x1d4   :  { %v1984_v0 = vpop.f32.mrf.mxu1  ;;  %v1983_v1 = vadd.f32 %v1982_v59, %v1942_v60  ;;  %v1989_v2 = vmax.f32 %v1981_v46, 0.0  ;;  %3746 = vmatpush3.bf16.msra.mxu0 %v4372_v58  ;;  %v4373_v46 = vld [vmem:[%s5072_s5 + $0x40] sm:$0xff]  }
 0x1d5   :  { %v1944_v4 = vpop.f32.mrf.mxu0  ;;  %v4374_v61 = vld [vmem:[%s5072_s5] sm:$0xff]   ;;  %3747 = vmatprep.subr.bf16.mxu0 %v4373_v46  ;;  %v4375_v0 = vld [vmem:[%s5072_s5 + $0xf8] sm:$0xff]  }
 0x1d6   :  { %v1985_v5 = vpop.f32.mrf.mxu1  ;;  %v1990_v6 = vmax.f32 %v1983_v1, 0.0  ;;  %v4860_v8 = vpack.c.bf16 %v1989_v2, %v1989_v2  ;;  %v4376_v1 = vld [vmem:[%s5072_s5 + $0xb8] sm:$0xff]   ;;  %v4377_v2 = vld [vmem:[%s5072_s5 + $0xf0] sm:$0xff]  }
 0x1d7   :  { %v4378_v4 = vld [vmem:[%s5072_s5 + $0xb0] sm:$0xff]   ;;  %v4379_v5 = vld [vmem:[%s5072_s5 + $0xe8] sm:$0xff]  }
 0x1d8   :  { %v1994_v7 = vpack.c.bf16 %v1990_v6, %v1990_v6  ;;  %3748 = vmatpush3.bf16.msra.mxu0 %v4374_v61  ;;  %v4380_v6 = vld [vmem:[%s5072_s5 + $0xa8] sm:$0xff]  }
 0x1da   :  { %2858 = vmatprep.mubr.bf16.mxu1 %v1994_v7 }
 0x1db   :  { %2859 = vmatmul.mubr.bf16.vlgmr.msra.gmra.mxu1 %v4860_v8 }
 0x1dc   :  { %2909 = vmatpush1.bf16.msra.mxu1 %v4311_v36  ;;  %2940 = vmatprep.mubr.bf16.mxu1 %v1994_v7  ;;  %v4381_v7 = vld [vmem:[%s5072_s5 + $0xe0] sm:$0xff]  }
 0x1dd   :  { %2910 = vmatprep.subr.bf16.mxu1 %v4316_v9  ;;  %v4382_v36 = vld [vmem:[%s5072_s5 + $0xa0] sm:$0xff]   ;;  %v4384_v9 = vld [vmem:[%s5072_s5 + $0x98] sm:$0xff]  }
 0x1e0   :  { %2911 = vmatpush1.bf16.msra.mxu1 %v4314_v10  ;;  %v4385_v10 = vld [vmem:[%s5072_s5 + $0xd0] sm:$0xff]  }
 0x1e1   :  { %2912 = vmatprep.subr.bf16.mxu1 %v4319_v11  ;;  %v4386_v11 = vld [vmem:[%s5072_s5 + $0x90] sm:$0xff]  }
 0x1e4   :  { %2913 = vmatpush1.bf16.msra.mxu1 %v4317_v12 }
 0x1e5   :  { %2914 = vmatprep.subr.bf16.mxu1 %v4322_v13  ;;  %v4387_v13 = vld [vmem:[%s5072_s5 + $0xc8] sm:$0xff]  }
 0x1e8   :  { %2915 = vmatpush1.bf16.msra.mxu1 %v4320_v20  ;;  %v4389_v20 = vld [vmem:[%s5072_s5 + $0xc0] sm:$0xff]  }
 0x1e9   :  { %2916 = vmatprep.subr.bf16.mxu1 %v4325_v22 }
 0x1ec   :  { %2917 = vmatpush1.bf16.msra.mxu1 %v4323_v25  ;;  %v2128_v25 = vrot.slane %v2123_v23, %v303_v35  ;;  %v2136_v35 = vrot.slane %v2123_v23, %v311_v18 }
 0x1ed   :  { %2918 = vmatprep.subr.bf16.mxu1 %v4328_v27 }
 0x1f0   :  { %2919 = vmatpush1.bf16.msra.mxu1 %v4326_v30 }
 0x1f1   :  { %2920 = vmatprep.subr.bf16.mxu1 %v4331_v32 }
 0x1f4   :  { %2921 = vmatpush1.bf16.msra.mxu1 %v4329_v34 }
 0x1f5   :  { %2922 = vmatprep.subr.bf16.mxu1 %v4334_v39 }
 0x1f8   :  { %2923 = vmatpush1.bf16.msra.mxu1 %v4332_v44 }
 0x1f9   :  { %2924 = vmatprep.subr.bf16.mxu1 %v4337_v62 }
 0x1fc   :  { %2925 = vmatpush2.bf16.msra.mxu1 %v4335_v14 }
 0x1fd   :  { %2926 = vmatprep.subr.bf16.mxu1 %v4340_v63 }
 0x200   :  { %2927 = vmatpush2.bf16.msra.mxu1 %v4338_v29 }
 0x201   :  { %2928 = vmatprep.subr.bf16.mxu1 %v4343_v3 }
 0x204   :  { %2929 = vmatpush2.bf16.msra.mxu1 %v4341_v19 }
 0x205   :  { %2930 = vmatprep.subr.bf16.mxu1 %v4346_v48 }
 0x208   :  { %2931 = vmatpush2.bf16.msra.mxu1 %v4344_v49 }
 0x209   :  { %2932 = vmatprep.subr.bf16.mxu1 %v4349_v50 }
 0x20c   :  { %2933 = vmatpush2.bf16.msra.mxu1 %v4347_v51 }
 0x20d   :  { %2934 = vmatprep.subr.bf16.mxu1 %v4352_v52 }
 0x210   :  { %2935 = vmatpush2.bf16.msra.mxu1 %v4350_v53 }
 0x211   :  { %2936 = vmatprep.subr.bf16.mxu1 %v4355_v41 }
 0x214   :  { %2937 = vmatpush2.bf16.msra.mxu1 %v4353_v54 }
 0x215   :  { %2938 = vmatprep.subr.bf16.mxu1 %v4358_v55 }
 0x218   :  { %2939 = vmatpush2.bf16.msra.mxu1 %v4356_v56 }
 0x219   :  { %3755 = vmatprep.subr.bf16.mxu1 %v4375_v0 }
 0x21b   :  { %2941 = vmatmul.mubr.bf16.vlgmr.msra.gmra.mxu1 %v4860_v8  ;;  %v2819_v45 = vpop.f32.mrf.mxu0  ;;  %v4383_v8 = vld [vmem:[%s5072_s5 + $0xd8] sm:$0xff]  }
 0x21c   :  { %3756 = vmatpush3.bf16.msra.mxu1 %v4376_v1  ;;  %v2820_v27 = vadd.f32 %v2819_v45, %v2128_v25 }
 0x21d   :  { %v2821_v43 = vpop.f32.mrf.mxu0  ;;  %3757 = vmatprep.subr.bf16.mxu1 %v4377_v2 }
 0x21e   :  { %v2822_v30 = vadd.f32 %v2821_v43, %v2132_v26 }
 0x21f   :  { %v2823_v59 = vpop.f32.mrf.mxu0 }
 0x220   :  { %3758 = vmatpush3.bf16.msra.mxu1 %v4378_v4 }
 0x221   :  { %v2824_v60 = vpop.f32.mrf.mxu0  ;;  %3759 = vmatprep.subr.bf16.mxu1 %v4379_v5 }
 0x224   :  { %3760 = vmatpush3.bf16.msra.mxu1 %v4380_v6 }
 0x225   :  { %3761 = vmatprep.subr.bf16.mxu1 %v4381_v7 }
 0x228   :  { %3762 = vmatpush3.bf16.msra.mxu1 %v4382_v36 }
 0x229   :  { %3763 = vmatprep.subr.bf16.mxu1 %v4383_v8 }
 0x22c   :  { %3764 = vmatpush3.bf16.msra.mxu1 %v4384_v9 }
 0x22d   :  { %3765 = vmatprep.subr.bf16.mxu1 %v4385_v10 }
 0x230   :  { %3766 = vmatpush3.bf16.msra.mxu1 %v4386_v11 }
 0x231   :  { %3767 = vmatprep.subr.bf16.mxu1 %v4387_v13 }
 0x234   :  { %3768 = vmatpush3.bf16.msra.mxu1 %v4388_v15 }
 0x235   :  { %3769 = vmatprep.subr.bf16.mxu1 %v4389_v20 }
 0x238   :  { %3770 = vmatpush3.bf16.msra.mxu1 %v4390_v21 }
 0x25b   :  { %v2901_v12 = vpop.f32.mrf.mxu0 }
 0x25c   :  { %v2902_v62 = vadd.f32 %v2901_v12, %v2136_v35 }
 0x25d   :  { %v2903_v16 = vpop.f32.mrf.mxu0 }
 0x25e   :  { %v2904_v63 = vadd.f32 %v2903_v16, %v2140_v38 }
 0x25f   :  { %v2905_v17 = vpop.f32.mrf.mxu0 }
 0x261   :  { %v2906_v22 = vpop.f32.mrf.mxu0 }
 0x29b   :  { %v2860_v28 = vpop.f32.mrf.mxu1 }
 0x29c   :  { %v2861_v31 = vadd.f32 %v2860_v28, %v2820_v27 }
 0x29d   :  { %v2862_v32 = vpop.f32.mrf.mxu1 }
 0x29e   :  { %v2863_v33 = vadd.f32 %v2862_v32, %v2822_v30  ;;  %v2949_v34 = vmax.f32 %v2861_v31, 0.0 }
 0x29f   :  { %v2864_v37 = vpop.f32.mrf.mxu1 }
 0x2a0   :  { %v2950_v39 = vmax.f32 %v2863_v33, 0.0  ;;  %v2953_v47 = vpack.c.bf16 %v2949_v34, %v2949_v34 }
 0x2a1   :  { %v2865_v40 = vpop.f32.mrf.mxu1 }
 0x2a2   :  { %v2954_v44 = vpack.c.bf16 %v2950_v39, %v2950_v39 }
 0x2a4   :  { %3252 = vmatprep.mubr.bf16.mxu0 %v2954_v44 }
 0x2a5   :  { %3253 = vmatmul.mubr.bf16.vlgmr.msra.gmra.mxu0 %v2953_v47 }
 0x2db   :  { %v2942_v14 = vpop.f32.mrf.mxu1 }
 0x2dc   :  { %v2943_v29 = vadd.f32 %v2942_v14, %v2902_v62 }
 0x2dd   :  { %v2944_v3 = vpop.f32.mrf.mxu1 }
 0x2de   :  { %v2945_v19 = vadd.f32 %v2944_v3, %v2904_v63  ;;  %v2951_v48 = vmax.f32 %v2943_v29, 0.0 }
 0x2df   :  { %v2946_v49 = vpop.f32.mrf.mxu1 }
 0x2e0   :  { %v2952_v50 = vmax.f32 %v2945_v19, 0.0  ;;  %v2955_v53 = vpack.c.bf16 %v2951_v48, %v2951_v48 }
 0x2e1   :  { %v2947_v51 = vpop.f32.mrf.mxu1 }
 0x2e2   :  { %v2956_v52 = vpack.c.bf16 %v2952_v50, %v2952_v50 }
 0x2e4   :  { %3292 = vmatprep.mubr.bf16.mxu1 %v2956_v52 }
 0x2e5   :  { %3293 = vmatmul.mubr.bf16.vlgmr.msra.gmra.mxu1 %v2955_v53 }
 0x365   :  { %v3749_v41 = vpop.f32.mrf.mxu0 }
 0x367   :  { %v3750_v54 = vpop.f32.mrf.mxu0 }
 0x368   :  { %v3751_v42 = vadd.f32 %v3750_v54, %v3749_v41 }
 0x369   :  { %v3752_v18 = vpop.f32.mrf.mxu0 }
 0x36a   :  { %v3255_v57 = vadd.f32 %v3751_v42, %v3700_v24 }
 0x36b   :  { %v3753_v55 = vpop.f32.mrf.mxu0 }
 0x3a5   :  { %v3771_v56 = vpop.f32.mrf.mxu1 }
 0x3a7   :  { %v3772_v45 = vpop.f32.mrf.mxu1 }
 0x3a8   :  { %v3773_v43 = vadd.f32 %v3772_v45, %v3771_v56 }
 0x3a9   :  { %v3774_v58 = vpop.f32.mrf.mxu1 }
 0x3aa   :  { %v3295_v59 = vadd.f32 %v3773_v43, %v3255_v57 }
 0x3ab   :  { %v3775_v46 = vpop.f32.mrf.mxu1 }
 0x3ac   :  { %3300 = vst [vmem:[#allocation5] sm:$0x3] %v3295_v59 }
 0x3ad   :  { %4422 = shalt.err (!%p4419_p9)
}
 0x3ae   :  { %3310 = dma.vmem_to_hbm [thread:$0]  %s3308_s22, 32, %s5074_s7, [#allocation4]  }
 0x3af   :  { %4433 = dma.done.wait [#allocation4], 32  }
 0x3b0   :  { %4434 = vsyncadd [#allocation4], 4294967264 }
 0x3b1   :  { %3314 = vsyncpa [#allocation3], 1 }
 0x3b2   :  { %3315 = vsyncpa [#allocation4], 1 }

// kernel: vgg_leaf_forward.4
= control target key start
LH: loop header
LB: loop body
LE: loop exit
PB: predicated region body
PF: predicated region fallthrough
CT: control target
= control target key end

     0   :  { %8 = vsyncpa [#allocation4], 0  ;;  %s6710_s12 = smov 0   ;;  %s9326_s0 = inlined_call_operand.vmem [shape: bf16[2,16,16,8], index: 0, kind: input, shape index: {}]   ;;  %s9327_s1 = inlined_call_operand.hbm [shape: bf16[9,8,16], index: 1, kind: input, shape index: {}]   ;;  %s9328_s2 = inlined_call_operand.vmem [shape: f32[1,16], index: 2, kind: input, shape index: {}]   ;;  %s9329_s3 = inlined_call_operand.vmem [shape: bf16[2,8,8,16], index: 3, kind: output, shape index: {}]  }
   0x1 LB: > { %s6716_s13 = sadd.s32 4294967295, %s6684_s12   ;;  %p5751_p0 = scmp.ge.s32.totalorder %s6684_s12, 1  ;;  %s6684_s12 = sphi %s6710_s12, %s14_s12  }
   0x2   : > { %p113_p1 = scmp.lt.s32.totalorder %s6684_s12, 3  ;;  %s6686_s14 = smov [#allocation3]  }
   0x3   : > { %s125_s15 = sshll.u32 %s6686_s14, 4  ;;  %p6580_p3 = scmp.eq.s32.totalorder %s6716_s13, 0  ;;  %s126_s15 = int_to_ptr.vmem [resolvable:$true] %s125_s15 }
   0x4   : > { %p6720_p2 = pnand %p5751_p0, %p113_p1  ;;  %s6659_s17 = scalar_lea.vmem %s126_s15, 576 }
   0x5   : > { %p6660_p7 = scmp.ne.s32.totalorder %s126_s15, %s6659_s17  ;;  %p6667_p10 = scmp.lt.s32.totalorder %s126_s15, %s126_s15 }
   0x6   : > { %p6576_p4 = pneg %p6720_p2  ;;  %p6668_p11 = scmp.lt.s32.totalorder %s6659_s17, %s6659_s17 }
   0x8   : > { %p6577_p5 = pnand %p6580_p3, %p6576_p4  ;;  %p6669_p12 = por %p6668_p11, %p6667_p10 }
   0xa   : > { %p6650_p6 = pneg %p6577_p5 }
   0xc   : > { %p6662_p8 = pnand %p6660_p7, %p6650_p6 }
   0xe   : > { %p6663_p9 = pneg %p6662_p8 }
  0x10   : > { %p6670_p13 = pnand %p6669_p12, %p6663_p9 }
  0x12   : > { %6673 = shalt.err (!%p6670_p13)
}
  0x13   : > { %s6687_s18 = smov 64   ;;  %s6688_s19 = smov 4  }
  0x14   : > { %6579 = dma.hbm_to_vmem [thread:$0]  (!%p6577_p5), %s9327_s1, 576, %s126_s15, [#allocation4], %s6687_s18, %s6687_s18, %s6688_s19  }
  0x15   : > { %152 = sbr.rel (%p6720_p2) target bundleno = 673 (0x2a1), region = 32 }
  0x1a   : > { %6679 = dma.done.wait (%p6580_p3), [#allocation4], 576  }
  0x1b   : > { %6681 = vsyncadd (%p6580_p3), [#allocation4], 4294966720  ;;  %vm187_vm0 = vcmask 60416   ;;  %vm190_vm1 = vcmask 57344   ;;  %v6689_v0 = vmov 0   ;;  %p176_p0 = scmp.lt.s32.totalorder %s6716_s13, 1 }
  0x1c   : > { %188 = vst.msk [vmem:[#allocation2] sm:$0xf] %vm187_vm0, %v6689_v0  ;;  %189 = vst.msk [vmem:[#allocation2 + $0x4] sm:$0xf] %vm187_vm0, %v6689_v0  ;;  %vm198_vm2 = vsmask.f32 256 }
  0x1d   : > { %191 = vst.msk [vmem:[#allocation2 + $0x8] sm:$0x1] %vm190_vm1, %v6689_v0  ;;  %195 = vst.msk [vmem:[#allocation2 + $0xd4] sm:$0x1] %vm190_vm1, %v6689_v0  ;;  %vm248_vm3 = vsmask.f32 7938 }
  0x1e   : > { %193 = vst.msk [vmem:[#allocation2 + $0xcc] sm:$0xf] %vm187_vm0, %v6689_v0  ;;  %194 = vst.msk [vmem:[#allocation2 + $0xd0] sm:$0xf] %vm187_vm0, %v6689_v0  ;;  %s9515_s13 = smov (!%p176_p0, %s6716_s13), 1  ;;  %vm1301_vm4 = vcmask 1043456  }
  0x1f   : > { %vm6747_vm5 = vmand %vm190_vm1, %vm198_vm2  ;;  %v9344_v2 = vmov 0  ;;  %vm815_vm7 = vsmask.f32 3328  ;;  %vm816_vm8 = vsmask.f32 7440  ;;  %s6099_s22 = sshll.u32 %s9515_s13, 7 }
  0x20   : > { %vm6752_vm6 = vmand %vm190_vm1, %vm248_vm3  ;;  %v1203_v3 = vld [vmem:[#allocation3 + $0x4] sm:$0xf]  ;;  %s6760_s25 = scalar_lea.vmem %s9326_s0, %s6099_s22  ;;  %v200_v4 = vld [vmem:[#allocation2 + $0xc] sm:$0x1]  ;;  %vm1252_vm9 = vcmask 64512   ;;  %v9347_v28 = vmov 0 }
  0x21   : > { %v9345_v2 = vsel %vm6752_vm6, 4294967295, %v9344_v2  ;;  %v250_v5 = vld [vmem:[#allocation2 + $0x14] sm:$0x1]  ;;  %6562 = vmatprep.subr.msk.bf16.mxu0 %vm1301_vm4, %v1203_v3  ;;  %6563 = vmatprep.subr.msk.bf16.mxu1 %vm1301_vm4, %v1203_v3  ;;  %v1303_v6 = vsel %vm1301_vm4, %v1203_v3, 0  ;;  %v201_v9 = vsel %vm6747_vm5, 0, %v200_v4  ;;  %vm6784_vm11 = vmand %vm187_vm0, %vm248_vm3  ;;  %v9352_v43 = vmov 0 }
  0x22   : > { %9346 = vst [vmem:[#allocation6_spill] sm:$0xff] %v9345_v2  ;;  %6255 = vmatpush3.bf16.msra.mxu0 %v1303_v6  ;;  %6561 = vmatpush3.bf16.msra.mxu1 %v1303_v6  ;;  %202 = vst [vmem:[#allocation2 + $0xc] sm:$0x1] %v201_v9  ;;  %v251_v16 = vsel %vm6752_vm6, 0, %v250_v5  ;;  %v298_v17 = vld [vmem:[%s6760_s25] sm:$0xf] }
  0x23   : > { %v6765_v7 = vld [vmem:[#allocation2] sm:$0xf]  ;;  %v6767_v8 = vld [vmem:[#allocation2 + $0x4] sm:$0xf]  ;;  %vm330_vm10 = vsmask.f32 4368  ;;  %vm6793_vm12 = vmor %vm815_vm7, %vm816_vm8 }
  0x24   : > { %v6771_v10 = vld [vmem:[#allocation2 + $0x8] sm:$0x1]  ;;  %v819_v11 = vshrl.u32 %v6765_v7, 16  ;;  %v822_v12 = vshll.u32 %v6765_v7, 16  ;;  %v828_v13 = vshll.u32 %v6767_v8, 16  ;;  %v832_v14 = vshrl.u32 %v6767_v8, 16  ;;  %vm6802_vm13 = vmor %vm198_vm2, %vm330_vm10 }
  0x25   : > { %v838_v15 = vshll.u32 %v6771_v10, 16  ;;  %252 = vst [vmem:[#allocation2 + $0x14] sm:$0x1] %v251_v16  ;;  %v299_v22 = vld [vmem:[%s6760_s25 + $0x4] sm:$0xf]  ;;  %v333_v24 = vshrl.u32 %v298_v17, 16 }
  0x26   : > { %v821_v18 = vrot.slane %v819_v11, 4  ;;  %v824_v19 = vrot.slane %v822_v12, 5  ;;  %v830_v20 = vrot.slane %v828_v13, 5  ;;  %v834_v21 = vrot.slane %v832_v14, 4  ;;  %v221_v27 = vld [vmem:[#allocation2 + $0x60] sm:$0x1] }
  0x27   : > { %v840_v23 = vrot.slane %v838_v15, 5  ;;  %v336_v25 = vshll.u32 %v298_v17, 16  ;;  %v341_v26 = vshrl.u32 %v299_v22, 16  ;;  %v9348_v28 = vsel %vm6784_vm11, 4294967295, %v9347_v28  ;;  %v271_v33 = vld [vmem:[#allocation2 + $0x68] sm:$0x1] }
  0x28   : > { %9349 = vst [vmem:[#allocation7_spill] sm:$0xff] %v9348_v28  ;;  %v825_v29 = vor.u32 %v824_v19, %v821_v18  ;;  %v835_v30 = vor.u32 %v834_v21, %v830_v20  ;;  %v344_v31 = vshll.u32 %v299_v22, 16  ;;  %v222_v32 = vsel %vm6747_vm5, 0, %v221_v27  ;;  %v312_v34 = vld [vmem:[%s6760_s25 + $0x38] sm:$0xf]  ;;  %s6100_s28 = sshll.u32 %s9515_s13, 5 }
  0x29   : > { %v335_v36 = vrot.slane %v333_v24, 7  ;;  %v343_v37 = vrot.slane %v341_v26, 7  ;;  %223 = vst [vmem:[#allocation2 + $0x60] sm:$0x1] %v222_v32  ;;  %v272_v38 = vsel %vm6752_vm6, 0, %v271_v33  ;;  %v452_v40 = vshrl.u32 %v312_v34, 16  ;;  %s9193_s4 = scalar_lea.vmem %s9329_s3, %s6100_s28 }
  0x2a   : > { %v313_v39 = vld [vmem:[%s6760_s25 + $0x3c] sm:$0xf]  ;;  %v826_v41 = vrot.slane %v825_v29, 4  ;;  %v836_v42 = vrot.slane %v835_v30, 4  ;;  %v9353_v43 = vsel %vm6802_vm13, 4294967295, %v9352_v43  ;;  %v455_v44 = vshll.u32 %v312_v34, 16 }
  0x2b   : > { %9354 = vst [vmem:[#allocation8_spill] sm:$0xff] %v9353_v43  ;;  %273 = vst [vmem:[#allocation2 + $0x68] sm:$0x1] %v272_v38  ;;  %v460_v45 = vshrl.u32 %v313_v39, 16  ;;  %v798_v46 = vld [vmem:[#allocation3] sm:$0xf]  ;;  %v338_v47 = vor.u32 %v336_v25, %v335_v36  ;;  %v346_v49 = vor.u32 %v344_v31, %v343_v37 }
  0x2c   : > { %v339_v48 = vrot.slane %v335_v36, 4  ;;  %v348_v50 = vrot.slane %v343_v37, 4  ;;  %v654_v51 = vld [vmem:[#allocation2 + $0xc] sm:$0xf]  ;;  %6564 = vmatprep.subr.msk.bf16.mxu1 %vm1301_vm4, %v798_v46  ;;  %v831_v53 = vsel %vm6793_vm12, %v826_v41, %v830_v20  ;;  %v841_v54 = vsel %vm6793_vm12, %v836_v42, %v840_v23  ;;  %v274_v57 = vld [vmem:[#allocation2 + $0x74] sm:$0x1] }
  0x2d   : > { %v224_v52 = vld [vmem:[#allocation2 + $0x6c] sm:$0x1]  ;;  %v454_v55 = vrot.slane %v452_v40, 7  ;;  %v462_v56 = vrot.slane %v460_v45, 7  ;;  %v314_v58 = vld [vmem:[%s6760_s25 + $0x40] sm:$0xf]  ;;  %v5760_v59 = vcombine.low %v831_v53, %v841_v54  ;;  %v655_v61 = vsel %vm6784_vm11, %v338_v47, %v654_v51 }
  0x2e   : > { %v347_v60 = vsel %vm6802_vm13, %v339_v48, %v346_v49  ;;  %v658_v62 = vld [vmem:[#allocation2 + $0x14] sm:$0x1]  ;;  %v463_v63 = vshll.u32 %v313_v39, 16  ;;  %v315_v0 = vld [vmem:[%s6760_s25 + $0x44] sm:$0xf]  ;;  %v225_v13 = vsel %vm6747_vm5, 0, %v224_v52 }
  0x2f   : > { %656 = vst [vmem:[#allocation2 + $0xc] sm:$0xf] %v655_v61  ;;  %657 = vst.msk [vmem:[#allocation2 + $0x10] sm:$0xf] %vm187_vm0, %v347_v60  ;;  %v659_v3 = vsel %vm6747_vm5, %v348_v50, %v658_v62  ;;  %v457_v4 = vor.u32 %v455_v44, %v454_v55  ;;  %v458_v5 = vrot.slane %v454_v55, 4  ;;  %v467_v6 = vrot.slane %v462_v56, 4  ;;  %6256 = vmatprep.mubr.msk.bf16.mxu0 %vm1252_vm9, %v5760_v59 }
  0x30   : > { %v1922_v9 = vld [vmem:[#allocation3 + $0x8] sm:$0xf]  ;;  %v203_v11 = vld [vmem:[#allocation2 + $0x18] sm:$0x1]  ;;  %660 = vst [vmem:[#allocation2 + $0x14] sm:$0x1] %v659_v3  ;;  %v465_v12 = vor.u32 %v463_v63, %v462_v56 }
  0x31   : > { %v275_v14 = vsel %vm6752_vm6, 0, %v274_v57  ;;  %v469_v15 = vshrl.u32 %v314_v58, 16  ;;  %6565 = vmatprep.subr.msk.bf16.mxu0 %vm1301_vm4, %v1922_v9  ;;  %v253_v16 = vld [vmem:[#allocation2 + $0x20] sm:$0x1]  ;;  %226 = vst [vmem:[#allocation2 + $0x6c] sm:$0x1] %v225_v13 }
  0x32   : > { %v703_v17 = vld [vmem:[#allocation2 + $0x60] sm:$0xf]  ;;  %276 = vst [vmem:[#allocation2 + $0x74] sm:$0x1] %v275_v14  ;;  %v477_v18 = vshrl.u32 %v315_v0, 16  ;;  %v480_v19 = vshll.u32 %v315_v0, 16  ;;  %v466_v20 = vsel %vm6802_vm13, %v458_v5, %v465_v12 }
  0x33   : > { %v704_v21 = vsel %vm6784_vm11, %v457_v4, %v703_v17  ;;  %v707_v22 = vld [vmem:[#allocation2 + $0x68] sm:$0x1]  ;;  %v471_v23 = vrot.slane %v469_v15, 7  ;;  %v472_v24 = vshll.u32 %v314_v58, 16  ;;  %706 = vst.msk [vmem:[#allocation2 + $0x64] sm:$0xf] %vm187_vm0, %v466_v20 }
  0x34   : > { %v300_v25 = vld [vmem:[%s6760_s25 + $0x8] sm:$0xf]  ;;  %705 = vst [vmem:[#allocation2 + $0x60] sm:$0xf] %v704_v21  ;;  %v708_v26 = vsel %vm6747_vm5, %v467_v6, %v707_v22  ;;  %v479_v27 = vrot.slane %v477_v18, 7  ;;  %v204_v29 = vsel %vm6747_vm5, 0, %v203_v11 }
  0x35   : > { %v254_v30 = vsel %vm6752_vm6, 0, %v253_v16  ;;  %v1814_v31 = vrot.slane %v6771_v10, 5  ;;  %709 = vst [vmem:[#allocation2 + $0x68] sm:$0x1] %v708_v26  ;;  %v475_v32 = vrot.slane %v471_v23, 4  ;;  %v350_v33 = vshrl.u32 %v300_v25, 16 }
  0x36   : > { %205 = vst [vmem:[#allocation2 + $0x18] sm:$0x1] %v204_v29  ;;  %255 = vst [vmem:[#allocation2 + $0x20] sm:$0x1] %v254_v30  ;;  %v206_v34 = vld [vmem:[#allocation2 + $0x24] sm:$0x1]  ;;  %v482_v36 = vor.u32 %v480_v19, %v479_v27  ;;  %v474_v44 = vor.u32 %v472_v24, %v471_v23 }
  0x37   : > { %v6840_v37 = vsel %vm1301_vm4, %v798_v46, 0  ;;  %v6843_v38 = vsel %vm1301_vm4, %v1922_v9, 0  ;;  %v6846_v39 = vld [vmem:[%s6760_s25 + $0xc] sm:$0xf]  ;;  %v353_v40 = vshll.u32 %v300_v25, 16  ;;  %v484_v45 = vrot.slane %v479_v27, 4 }
  0x38   : > { %v6848_v41 = vld [vmem:[#allocation2 + $0xc] sm:$0xf]  ;;  %v6850_v42 = vld [vmem:[#allocation2 + $0x10] sm:$0xf]  ;;  %v207_v47 = vsel %vm6747_vm5, 0, %v206_v34  ;;  %v483_v53 = vsel %vm6802_vm13, %v475_v32, %v482_v36  ;;  %v6860_v55 = vrot.slane %v350_v33, 7 }
  0x39   : > { %v800_v48 = vld [vmem:[#allocation2 + $0x14] sm:$0x1]  ;;  %v843_v49 = vshrl.u32 %v6848_v41, 16  ;;  %v846_v46 = vshll.u32 %v6848_v41, 16  ;;  %v852_v50 = vshll.u32 %v6850_v42, 16  ;;  %v856_v51 = vshrl.u32 %v6850_v42, 16 }
  0x3a   : > { %208 = vst [vmem:[#allocation2 + $0x24] sm:$0x1] %v207_v47  ;;  %v862_v52 = vshll.u32 %v800_v48, 16  ;;  %v710_v54 = vld [vmem:[#allocation2 + $0x6c] sm:$0xf]  ;;  %v358_v56 = vshrl.u32 %v6846_v39, 16  ;;  %v355_v17 = vor.u32 %v353_v40, %v6860_v55 }
  0x3b   : > { %v845_v57 = vrot.slane %v843_v49, 4  ;;  %v848_v58 = vrot.slane %v846_v46, 5  ;;  %v854_v59 = vrot.slane %v852_v50, 5  ;;  %v858_v60 = vrot.slane %v856_v51, 4  ;;  %713 = vst.msk [vmem:[#allocation2 + $0x70] sm:$0xf] %vm187_vm0, %v483_v53 }
  0x3c   : > { %v714_v61 = vld [vmem:[#allocation2 + $0x74] sm:$0x1]  ;;  %v864_v62 = vrot.slane %v862_v52, 5  ;;  %v782_v63 = vld [vmem:[#allocation2 + $0x60] sm:$0xf]  ;;  %v711_v3 = vsel %vm6784_vm11, %v474_v44, %v710_v54  ;;  %v361_v5 = vshll.u32 %v6846_v39, 16 }
  0x3d   : > { %v783_v0 = vld [vmem:[#allocation2 + $0x64] sm:$0xf]  ;;  %v715_v4 = vsel %vm6747_vm5, %v484_v45, %v714_v61  ;;  %v849_v6 = vor.u32 %v848_v58, %v845_v57  ;;  %v859_v9 = vor.u32 %v858_v60, %v854_v59  ;;  %v807_v11 = vld [vmem:[#allocation2 + $0x68] sm:$0x1]  ;;  %v1011_v12 = vshrl.u32 %v782_v63, 16 }
  0x3e   : > { %v1014_v13 = vshll.u32 %v782_v63, 16  ;;  %712 = vst [vmem:[#allocation2 + $0x6c] sm:$0xf] %v711_v3  ;;  %716 = vst [vmem:[#allocation2 + $0x74] sm:$0x1] %v715_v4  ;;  %v1020_v14 = vshll.u32 %v783_v0, 16 }
  0x3f   : > { %v1024_v15 = vshrl.u32 %v783_v0, 16  ;;  %v1030_v16 = vshll.u32 %v807_v11, 16  ;;  %v256_v18 = vld [vmem:[#allocation2 + $0x2c] sm:$0x1]  ;;  %v850_v19 = vrot.slane %v849_v6, 4  ;;  %v860_v20 = vrot.slane %v859_v9, 4 }
  0x40   : > { %v1013_v21 = vrot.slane %v1011_v12, 4  ;;  %v1016_v22 = vrot.slane %v1014_v13, 5  ;;  %v661_v23 = vld [vmem:[#allocation2 + $0x18] sm:$0xf]  ;;  %v1022_v24 = vrot.slane %v1020_v14, 5  ;;  %v356_v27 = vrot.slane %v6860_v55, 4 }
  0x41   : > { %v1026_v25 = vrot.slane %v1024_v15, 4  ;;  %v1032_v26 = vrot.slane %v1030_v16, 5  ;;  %v855_v29 = vsel %vm6793_vm12, %v850_v19, %v854_v59  ;;  %v865_v30 = vsel %vm6793_vm12, %v860_v20, %v864_v62  ;;  %v665_v46 = vld [vmem:[#allocation2 + $0x20] sm:$0x1]  ;;  %v302_v59 = vld [vmem:[%s6760_s25 + $0x10] sm:$0xf] }
  0x42   : > { %v1017_v32 = vor.u32 %v1016_v22, %v1013_v21  ;;  %v360_v33 = vrot.slane %v358_v56, 7  ;;  %v5761_v34 = vcombine.low %v855_v29, %v865_v30  ;;  %v785_v39 = vld [vmem:[#allocation2 + $0x70] sm:$0xf]  ;;  %v662_v40 = vsel %vm6784_vm11, %v355_v17, %v661_v23  ;;  %v303_v0 = vld [vmem:[%s6760_s25 + $0x14] sm:$0xf] }
  0x43   : > { %v1027_v36 = vor.u32 %v1026_v25, %v1022_v24  ;;  %v257_v44 = vsel %vm6752_vm6, 0, %v256_v18  ;;  %v1044_v47 = vshll.u32 %v785_v39, 16  ;;  %v1048_v48 = vshrl.u32 %v785_v39, 16  ;;  %663 = vst [vmem:[#allocation2 + $0x18] sm:$0xf] %v662_v40 }
  0x44   : > { %v1018_v45 = vrot.slane %v1017_v32, 4  ;;  %v363_v49 = vor.u32 %v361_v5, %v360_v33  ;;  %258 = vst [vmem:[#allocation2 + $0x2c] sm:$0x1] %v257_v44  ;;  %6257 = vmatmul.mubr.msk.bf16.vlgmr.msra.gmra.mxu0 %vm1252_vm9, %v5761_v34  ;;  %v365_v53 = vrot.slane %v360_v33, 4  ;;  %v227_v3 = vld [vmem:[#allocation2 + $0x78] sm:$0x1] }
  0x45   : > { %v1028_v50 = vrot.slane %v1027_v36, 4  ;;  %v784_v51 = vld [vmem:[#allocation2 + $0x6c] sm:$0xf]  ;;  %v808_v52 = vld [vmem:[#allocation2 + $0x74] sm:$0x1]  ;;  %v1046_v58 = vrot.slane %v1044_v47, 5  ;;  %6323 = vmatpush3.bf16.msra.mxu0 %v6843_v38 }
  0x46   : > { %v1023_v55 = vsel %vm6793_vm12, %v1018_v45, %v1022_v24  ;;  %v1035_v56 = vshrl.u32 %v784_v51, 16  ;;  %v1038_v57 = vshll.u32 %v784_v51, 16  ;;  %v1050_v61 = vrot.slane %v1048_v48, 4  ;;  %v277_v18 = vld [vmem:[#allocation2 + $0x80] sm:$0x1] }
  0x47   : > { %v1033_v60 = vsel %vm6793_vm12, %v1028_v50, %v1032_v26  ;;  %v1054_v62 = vshll.u32 %v808_v52, 16  ;;  %v364_v63 = vsel %vm6802_vm13, %v356_v27, %v363_v49  ;;  %v666_v9 = vsel %vm6747_vm5, %v365_v53, %v665_v46  ;;  %v668_v22 = vld [vmem:[#allocation2 + $0x24] sm:$0xf]  ;;  %v316_v27 = vld [vmem:[%s6760_s25 + $0x48] sm:$0xf] }
  0x48   : > { %v5768_v4 = vcombine.low %v1023_v55, %v1033_v60  ;;  %v1037_v5 = vrot.slane %v1035_v56, 4  ;;  %v1040_v6 = vrot.slane %v1038_v57, 5  ;;  %664 = vst.msk [vmem:[#allocation2 + $0x1c] sm:$0xf] %vm187_vm0, %v364_v63  ;;  %v1051_v38 = vor.u32 %v1050_v61, %v1046_v58  ;;  %667 = vst [vmem:[#allocation2 + $0x20] sm:$0x1] %v666_v9 }
  0x49   : > { %v1056_v11 = vrot.slane %v1054_v62, 5  ;;  %v367_v12 = vshrl.u32 %v302_v59, 16  ;;  %v370_v13 = vshll.u32 %v302_v59, 16  ;;  %v375_v15 = vshrl.u32 %v303_v0, 16  ;;  %v317_v45 = vld [vmem:[%s6760_s25 + $0x4c] sm:$0xf] }
  0x4a   : > { %6272 = vmatprep.mubr.msk.bf16.mxu1 %vm1252_vm9, %v5768_v4  ;;  %v1041_v14 = vor.u32 %v1040_v6, %v1037_v5  ;;  %v378_v16 = vshll.u32 %v303_v0, 16  ;;  %v228_v17 = vsel %vm6747_vm5, 0, %v227_v3  ;;  %v1052_v19 = vrot.slane %v1051_v38, 4  ;;  %v770_v20 = vld [vmem:[#allocation2 + $0x18] sm:$0xf] }
  0x4b   : > { %v369_v21 = vrot.slane %v367_v12, 7  ;;  %229 = vst [vmem:[#allocation2 + $0x78] sm:$0x1] %v228_v17  ;;  %v867_v24 = vshrl.u32 %v770_v20, 16  ;;  %v870_v25 = vshll.u32 %v770_v20, 16  ;;  %v377_v26 = vrot.slane %v375_v15, 7 }
  0x4c   : > { %v1042_v23 = vrot.slane %v1041_v14, 4  ;;  %v1057_v29 = vsel %vm6793_vm12, %v1052_v19, %v1056_v11  ;;  %v278_v33 = vsel %vm6752_vm6, 0, %v277_v18  ;;  %v672_v44 = vld [vmem:[#allocation2 + $0x2c] sm:$0x1]  ;;  %v486_v50 = vshrl.u32 %v316_v27, 16 }
  0x4d   : > { %v372_v30 = vor.u32 %v370_v13, %v369_v21  ;;  %v373_v32 = vrot.slane %v369_v21, 4  ;;  %v869_v36 = vrot.slane %v867_v24, 4  ;;  %v872_v39 = vrot.slane %v870_v25, 5  ;;  %279 = vst [vmem:[#allocation2 + $0x80] sm:$0x1] %v278_v33 }
  0x4e   : > { %v1047_v34 = vsel %vm6793_vm12, %v1042_v23, %v1046_v58  ;;  %v380_v40 = vor.u32 %v378_v16, %v377_v26  ;;  %v382_v49 = vrot.slane %v377_v26, 4  ;;  %v230_v51 = vld [vmem:[#allocation2 + $0x84] sm:$0x1]  ;;  %v280_v58 = vld [vmem:[#allocation2 + $0x8c] sm:$0x1]  ;;  %v488_v61 = vrot.slane %v486_v50, 7 }
  0x4f   : > { %v5769_v47 = vcombine.low %v1047_v34, %v1057_v29  ;;  %v771_v48 = vld [vmem:[#allocation2 + $0x1c] sm:$0xf]  ;;  %v669_v46 = vsel %vm6784_vm11, %v372_v30, %v668_v22  ;;  %v801_v52 = vld [vmem:[#allocation2 + $0x20] sm:$0x1]  ;;  %v873_v53 = vor.u32 %v872_v39, %v869_v36  ;;  %v489_v62 = vshll.u32 %v316_v27, 16 }
  0x50   : > { %v876_v55 = vshll.u32 %v771_v48, 16  ;;  %v880_v56 = vshrl.u32 %v771_v48, 16  ;;  %v381_v57 = vsel %vm6802_vm13, %v373_v32, %v380_v40  ;;  %670 = vst [vmem:[#allocation2 + $0x24] sm:$0xf] %v669_v46  ;;  %v886_v59 = vshll.u32 %v801_v52, 16 }
  0x51   : > { %6273 = vmatmul.mubr.msk.bf16.vlgmr.msra.gmra.mxu1 %vm1252_vm9, %v5769_v47  ;;  %671 = vst.msk [vmem:[#allocation2 + $0x28] sm:$0xf] %vm187_vm0, %v381_v57  ;;  %v673_v60 = vsel %vm6747_vm5, %v382_v49, %v672_v44  ;;  %v318_v63 = vld [vmem:[%s6760_s25 + $0x50] sm:$0xf]  ;;  %v874_v0 = vrot.slane %v873_v53, 4  ;;  %v494_v5 = vshrl.u32 %v317_v45, 16  ;;  %v491_v38 = vor.u32 %v489_v62, %v488_v61 }
  0x52   : > { %6289 = vmatpush3.bf16.msra.mxu1 %v6840_v37  ;;  %v878_v3 = vrot.slane %v876_v55, 5  ;;  %v882_v4 = vrot.slane %v880_v56, 4  ;;  %674 = vst [vmem:[#allocation2 + $0x2c] sm:$0x1] %v673_v60  ;;  %v717_v6 = vld [vmem:[#allocation2 + $0x78] sm:$0xf] }
  0x53   : > { %v888_v9 = vrot.slane %v886_v59, 5  ;;  %v492_v11 = vrot.slane %v488_v61, 4  ;;  %v497_v12 = vshll.u32 %v317_v45, 16  ;;  %v319_v13 = vld [vmem:[%s6760_s25 + $0x54] sm:$0xf]  ;;  %v496_v16 = vrot.slane %v494_v5, 7 }
  0x54   : > { %v879_v14 = vsel %vm6793_vm12, %v874_v0, %v878_v3  ;;  %v883_v15 = vor.u32 %v882_v4, %v878_v3  ;;  %v231_v17 = vsel %vm6747_vm5, 0, %v230_v51  ;;  %v209_v37 = vld [vmem:[#allocation2 + $0x30] sm:$0x1]  ;;  %v259_v18 = vld [vmem:[#allocation2 + $0x38] sm:$0x1]  ;;  %v718_v19 = vsel %vm6784_vm11, %v491_v38, %v717_v6 }
  0x55   : > { %232 = vst [vmem:[#allocation2 + $0x84] sm:$0x1] %v231_v17  ;;  %v281_v20 = vsel %vm6752_vm6, 0, %v280_v58  ;;  %v503_v21 = vshrl.u32 %v318_v63, 16  ;;  %v506_v22 = vshll.u32 %v318_v63, 16  ;;  %v499_v24 = vor.u32 %v497_v12, %v496_v16 }
  0x56   : > { %v884_v23 = vrot.slane %v883_v15, 4  ;;  %v501_v25 = vrot.slane %v496_v16, 4  ;;  %719 = vst [vmem:[#allocation2 + $0x78] sm:$0xf] %v718_v19  ;;  %v721_v26 = vld [vmem:[#allocation2 + $0x80] sm:$0x1] }
  0x57   : > { %282 = vst [vmem:[#allocation2 + $0x8c] sm:$0x1] %v281_v20  ;;  %v511_v27 = vshrl.u32 %v319_v13, 16  ;;  %v772_v29 = vld [vmem:[#allocation2 + $0x24] sm:$0xf]  ;;  %v505_v30 = vrot.slane %v503_v21, 7  ;;  %v500_v45 = vsel %vm6802_vm13, %v492_v11, %v499_v24 }
  0x58   : > { %v514_v32 = vshll.u32 %v319_v13, 16  ;;  %v210_v33 = vsel %vm6747_vm5, 0, %v209_v37  ;;  %v260_v34 = vsel %vm6752_vm6, 0, %v259_v18  ;;  %v889_v36 = vsel %vm6793_vm12, %v884_v23, %v888_v9  ;;  %v6930_v39 = vld [vmem:[#allocation2 + $0x28] sm:$0xf] }
  0x59   : > { %v891_v40 = vshrl.u32 %v772_v29, 16  ;;  %v894_v44 = vshll.u32 %v772_v29, 16  ;;  %211 = vst [vmem:[#allocation2 + $0x30] sm:$0x1] %v210_v33  ;;  %261 = vst [vmem:[#allocation2 + $0x38] sm:$0x1] %v260_v34  ;;  %v5762_v47 = vcombine.low %v879_v14, %v889_v36  ;;  %v722_v50 = vsel %vm6747_vm5, %v501_v25, %v721_v26 }
  0x5a   : > { %v6934_v48 = vld [vmem:[#allocation2 + $0x2c] sm:$0x1]  ;;  %v900_v49 = vshll.u32 %v6930_v39, 16  ;;  %v904_v46 = vshrl.u32 %v6930_v39, 16  ;;  %720 = vst.msk [vmem:[#allocation2 + $0x7c] sm:$0xf] %vm187_vm0, %v500_v45  ;;  %v508_v56 = vor.u32 %v506_v22, %v505_v30 }
  0x5b   : > { %v304_v51 = vld [vmem:[%s6760_s25 + $0x18] sm:$0xf]  ;;  %v893_v52 = vrot.slane %v891_v40, 4  ;;  %v896_v53 = vrot.slane %v894_v44, 5  ;;  %v910_v55 = vshll.u32 %v6934_v48, 16  ;;  %6260 = vmatprep.mubr.msk.bf16.mxu0 %vm1252_vm9, %v5762_v47  ;;  %v509_v59 = vrot.slane %v505_v30, 4 }
  0x5c   : > { %723 = vst [vmem:[#allocation2 + $0x80] sm:$0x1] %v722_v50  ;;  %v902_v57 = vrot.slane %v900_v49, 5  ;;  %v906_v58 = vrot.slane %v904_v46, 4  ;;  %v513_v60 = vrot.slane %v511_v27, 7  ;;  %v384_v3 = vshrl.u32 %v304_v51, 16 }
  0x5d   : > { %v305_v61 = vld [vmem:[%s6760_s25 + $0x1c] sm:$0xf]  ;;  %v897_v62 = vor.u32 %v896_v53, %v893_v52  ;;  %v912_v63 = vrot.slane %v910_v55, 5  ;;  %v724_v0 = vld [vmem:[#allocation2 + $0x84] sm:$0xf]  ;;  %v387_v4 = vshll.u32 %v304_v51, 16 }
  0x5e   : > { %v907_v5 = vor.u32 %v906_v58, %v902_v57  ;;  %v786_v6 = vld [vmem:[#allocation2 + $0x78] sm:$0xf]  ;;  %v516_v9 = vor.u32 %v514_v32, %v513_v60  ;;  %v518_v38 = vrot.slane %v513_v60, 4  ;;  %v725_v11 = vsel %vm6784_vm11, %v508_v56, %v724_v0  ;;  %v728_v12 = vld [vmem:[#allocation2 + $0x8c] sm:$0x1] }
  0x5f   : > { %v898_v13 = vrot.slane %v897_v62, 4  ;;  %v1059_v14 = vshrl.u32 %v786_v6, 16  ;;  %v1062_v15 = vshll.u32 %v786_v6, 16  ;;  %726 = vst [vmem:[#allocation2 + $0x84] sm:$0xf] %v725_v11  ;;  %v386_v16 = vrot.slane %v384_v3, 7 }
  0x60   : > { %v908_v17 = vrot.slane %v907_v5, 4  ;;  %v517_v37 = vsel %vm6802_vm13, %v509_v59, %v516_v9  ;;  %v729_v18 = vsel %vm6747_vm5, %v518_v38, %v728_v12  ;;  %v392_v19 = vshrl.u32 %v305_v61, 16  ;;  %v212_v20 = vld [vmem:[#allocation2 + $0x3c] sm:$0x1]  ;;  %v675_v26 = vld [vmem:[#allocation2 + $0x30] sm:$0xf] }
  0x61   : > { %v903_v21 = vsel %vm6793_vm12, %v898_v13, %v902_v57  ;;  %v787_v22 = vld [vmem:[#allocation2 + $0x7c] sm:$0xf]  ;;  %v1061_v23 = vrot.slane %v1059_v14, 4  ;;  %v1064_v24 = vrot.slane %v1062_v15, 5  ;;  %727 = vst.msk [vmem:[#allocation2 + $0x88] sm:$0xf] %vm187_vm0, %v517_v37  ;;  %v389_v25 = vor.u32 %v387_v4, %v386_v16 }
  0x62   : > { %730 = vst [vmem:[#allocation2 + $0x8c] sm:$0x1] %v729_v18  ;;  %v913_v27 = vsel %vm6793_vm12, %v908_v17, %v912_v63  ;;  %v1068_v30 = vshll.u32 %v787_v22, 16  ;;  %v1072_v32 = vshrl.u32 %v787_v22, 16  ;;  %v390_v33 = vrot.slane %v386_v16, 4 }
  0x63   : > { %v809_v29 = vld [vmem:[#allocation2 + $0x80] sm:$0x1]  ;;  %v5763_v34 = vcombine.low %v903_v21, %v913_v27  ;;  %v1065_v36 = vor.u32 %v1064_v24, %v1061_v23  ;;  %v394_v44 = vrot.slane %v392_v19, 7  ;;  %v262_v45 = vld [vmem:[#allocation2 + $0x44] sm:$0x1]  ;;  %v395_v50 = vshll.u32 %v305_v61, 16 }
  0x64   : > { %v1078_v40 = vshll.u32 %v809_v29, 16  ;;  %v306_v47 = vld [vmem:[%s6760_s25 + $0x20] sm:$0xf]  ;;  %v1070_v49 = vrot.slane %v1068_v30, 5  ;;  %v1074_v46 = vrot.slane %v1072_v32, 4  ;;  %v676_v51 = vsel %vm6784_vm11, %v389_v25, %v675_v26 }
  0x65   : > { %v679_v52 = vld [vmem:[#allocation2 + $0x38] sm:$0x1]  ;;  %6261 = vmatmul.mubr.msk.bf16.gmra.mxu0 %vm1252_vm9, %v5763_v34  ;;  %v1066_v53 = vrot.slane %v1065_v36, 4  ;;  %v399_v56 = vrot.slane %v394_v44, 4  ;;  %677 = vst [vmem:[#allocation2 + $0x30] sm:$0xf] %v676_v51  ;;  %v397_v60 = vor.u32 %v395_v50, %v394_v44 }
  0x66   : > { %v1080_v55 = vrot.slane %v1078_v40, 5  ;;  %v213_v57 = vsel %vm6747_vm5, 0, %v212_v20  ;;  %v1075_v58 = vor.u32 %v1074_v46, %v1070_v49  ;;  %v788_v59 = vld [vmem:[#allocation2 + $0x84] sm:$0xf]  ;;  %v263_v61 = vsel %vm6752_vm6, 0, %v262_v45 }
  0x67   : > { %214 = vst [vmem:[#allocation2 + $0x3c] sm:$0x1] %v213_v57  ;;  %v401_v62 = vshrl.u32 %v306_v47, 16  ;;  %v1818_v63 = vrot.slane %v6850_v42, 5  ;;  %v1083_v0 = vshrl.u32 %v788_v59, 16  ;;  %v1086_v3 = vshll.u32 %v788_v59, 16 }
  0x68   : > { %v680_v4 = vsel %vm6747_vm5, %v399_v56, %v679_v52  ;;  %264 = vst [vmem:[#allocation2 + $0x44] sm:$0x1] %v263_v61  ;;  %v1071_v5 = vsel %vm6793_vm12, %v1066_v53, %v1070_v49  ;;  %v1076_v6 = vrot.slane %v1075_v58, 4  ;;  %v6969_v9 = vld [vmem:[#allocation2 + $0x88] sm:$0xf]  ;;  %v398_v11 = vsel %vm6802_vm13, %v390_v33, %v397_v60 }
  0x69   : > { %v810_v38 = vld [vmem:[#allocation2 + $0x8c] sm:$0x1]  ;;  %681 = vst [vmem:[#allocation2 + $0x38] sm:$0x1] %v680_v4  ;;  %v403_v12 = vrot.slane %v401_v62, 7  ;;  %v1085_v13 = vrot.slane %v1083_v0, 4 }
  0x6a   : > { %v1088_v14 = vrot.slane %v1086_v3, 5  ;;  %v1092_v15 = vshll.u32 %v6969_v9, 16  ;;  %v1096_v16 = vshrl.u32 %v6969_v9, 16  ;;  %678 = vst.msk [vmem:[#allocation2 + $0x34] sm:$0xf] %vm187_vm0, %v398_v11  ;;  %v1081_v37 = vsel %vm6793_vm12, %v1076_v6, %v1080_v55 }
  0x6b   : > { %v307_v17 = vld [vmem:[%s6760_s25 + $0x24] sm:$0xf]  ;;  %v1102_v18 = vshll.u32 %v810_v38, 16  ;;  %v404_v19 = vshll.u32 %v306_v47, 16  ;;  %v407_v20 = vrot.slane %v403_v12, 4  ;;  %v5770_v22 = vcombine.low %v1071_v5, %v1081_v37 }
  0x6c   : > { %v233_v21 = vld [vmem:[#allocation2 + $0x90] sm:$0x1]  ;;  %v1089_v23 = vor.u32 %v1088_v14, %v1085_v13  ;;  %v1094_v24 = vrot.slane %v1092_v15, 5  ;;  %v1098_v25 = vrot.slane %v1096_v16, 4  ;;  %v283_v26 = vld [vmem:[#allocation2 + $0x98] sm:$0x1] }
  0x6d   : > { %v6980_v27 = vld [vmem:[%s6760_s25 + $0x58] sm:$0xf]  ;;  %v1104_v29 = vrot.slane %v1102_v18, 5  ;;  %v6982_v30 = vld [vmem:[#allocation2 + $0x30] sm:$0xf]  ;;  %v406_v32 = vor.u32 %v404_v19, %v403_v12  ;;  %v409_v33 = vshrl.u32 %v307_v17, 16  ;;  %6276 = vmatprep.mubr.msk.bf16.mxu1 %vm1252_vm9, %v5770_v22 }
  0x6e   : > { %v412_v34 = vshll.u32 %v307_v17, 16  ;;  %v1090_v36 = vrot.slane %v1089_v23, 4  ;;  %v1099_v40 = vor.u32 %v1098_v25, %v1094_v24  ;;  %v915_v44 = vshrl.u32 %v6982_v30, 16  ;;  %v682_v47 = vld [vmem:[#allocation2 + $0x3c] sm:$0xf] }
  0x6f   : > { %v918_v45 = vshll.u32 %v6982_v30, 16  ;;  %v411_v49 = vrot.slane %v409_v33, 7  ;;  %v683_v46 = vsel %vm6784_vm11, %v406_v32, %v682_v47  ;;  %v686_v50 = vld [vmem:[#allocation2 + $0x44] sm:$0x1]  ;;  %v234_v51 = vsel %vm6747_vm5, 0, %v233_v21 }
  0x70   : > { %v284_v52 = vsel %vm6752_vm6, 0, %v283_v26  ;;  %v1095_v53 = vsel %vm6793_vm12, %v1090_v36, %v1094_v24  ;;  %v1100_v55 = vrot.slane %v1099_v40, 4  ;;  %v6995_v56 = vld [vmem:[#allocation2 + $0x38] sm:$0x1]  ;;  %v917_v57 = vrot.slane %v915_v44, 4 }
  0x71   : > { %v920_v58 = vrot.slane %v918_v45, 5  ;;  %684 = vst [vmem:[#allocation2 + $0x3c] sm:$0xf] %v683_v46  ;;  %235 = vst [vmem:[#allocation2 + $0x90] sm:$0x1] %v234_v51  ;;  %v934_v60 = vshll.u32 %v6995_v56, 16  ;;  %v414_v61 = vor.u32 %v412_v34, %v411_v49 }
  0x72   : > { %285 = vst [vmem:[#allocation2 + $0x98] sm:$0x1] %v284_v52  ;;  %v6997_v59 = vld [vmem:[#allocation2 + $0x34] sm:$0xf]  ;;  %v416_v62 = vrot.slane %v411_v49, 4  ;;  %v520_v0 = vshrl.u32 %v6980_v27, 16  ;;  %v1105_v3 = vsel %vm6793_vm12, %v1100_v55, %v1104_v29 }
  0x73   : > { %v921_v4 = vor.u32 %v920_v58, %v917_v57  ;;  %v924_v5 = vshll.u32 %v6997_v59, 16  ;;  %v928_v6 = vshrl.u32 %v6997_v59, 16  ;;  %v321_v38 = vld [vmem:[%s6760_s25 + $0x5c] sm:$0xf]  ;;  %v5771_v12 = vcombine.low %v1095_v53, %v1105_v3  ;;  %v286_v15 = vld [vmem:[#allocation2 + $0xa4] sm:$0x1] }
  0x74   : > { %v236_v11 = vld [vmem:[#allocation2 + $0x9c] sm:$0x1]  ;;  %v415_v13 = vsel %vm6802_vm13, %v407_v20, %v414_v61  ;;  %v687_v14 = vsel %vm6747_vm5, %v416_v62, %v686_v50  ;;  %v322_v16 = vld [vmem:[%s6760_s25 + $0x60] sm:$0xf]  ;;  %v7013_v37 = vld [vmem:[#allocation3 + $0xc] sm:$0xf] }
  0x75   : > { %v922_v18 = vrot.slane %v921_v4, 4  ;;  %v926_v19 = vrot.slane %v924_v5, 5  ;;  %v930_v21 = vrot.slane %v928_v6, 4  ;;  %685 = vst.msk [vmem:[#allocation2 + $0x40] sm:$0xf] %vm187_vm0, %v415_v13  ;;  %v522_v22 = vrot.slane %v520_v0, 7  ;;  %6566 = vmatprep.subr.msk.bf16.mxu1 %vm1301_vm4, %v7013_v37  ;;  %6277 = vmatmul.mubr.msk.bf16.gmra.mxu1 %vm1252_vm9, %v5771_v12 }
  0x76   : > { %688 = vst [vmem:[#allocation2 + $0x44] sm:$0x1] %v687_v14  ;;  %v7018_v20 = vld [vmem:[#allocation3 + $0x10] sm:$0xf]  ;;  %v523_v23 = vshll.u32 %v6980_v27, 16  ;;  %v528_v24 = vshrl.u32 %v321_v38, 16 }
  0x77   : > { %v531_v25 = vshll.u32 %v321_v38, 16  ;;  %v237_v26 = vsel %vm6747_vm5, 0, %v236_v11  ;;  %6567 = vmatprep.subr.msk.bf16.mxu0 %vm1301_vm4, %v7018_v20  ;;  %v931_v29 = vor.u32 %v930_v21, %v926_v19  ;;  %v936_v32 = vrot.slane %v934_v60, 5  ;;  %v323_v36 = vld [vmem:[%s6760_s25 + $0x64] sm:$0xf] }
  0x78   : > { %v526_v33 = vrot.slane %v522_v22, 4  ;;  %238 = vst [vmem:[#allocation2 + $0x9c] sm:$0x1] %v237_v26  ;;  %v287_v34 = vsel %vm6752_vm6, 0, %v286_v15  ;;  %v927_v40 = vsel %vm6793_vm12, %v922_v18, %v926_v19  ;;  %v7031_v27 = vld [vmem:[#allocation2 + $0x3c] sm:$0xf]  ;;  %v525_v44 = vor.u32 %v523_v23, %v522_v22 }
  0x79   : > { %v530_v45 = vrot.slane %v528_v24, 7  ;;  %v731_v47 = vld [vmem:[#allocation2 + $0x90] sm:$0xf]  ;;  %288 = vst [vmem:[#allocation2 + $0xa4] sm:$0x1] %v287_v34  ;;  %v537_v49 = vshrl.u32 %v322_v16, 16 }
  0x7a   : > { %v932_v46 = vrot.slane %v931_v29, 4  ;;  %v939_v50 = vshrl.u32 %v7031_v27, 16  ;;  %v942_v51 = vshll.u32 %v7031_v27, 16  ;;  %v735_v52 = vld [vmem:[#allocation2 + $0x98] sm:$0x1]  ;;  %v540_v53 = vshll.u32 %v322_v16, 16 }
  0x7b   : > { %v533_v55 = vor.u32 %v531_v25, %v530_v45  ;;  %v535_v57 = vrot.slane %v530_v45, 4  ;;  %v732_v58 = vsel %vm6784_vm11, %v525_v44, %v731_v47  ;;  %v539_v60 = vrot.slane %v537_v49, 7  ;;  %v215_v61 = vld [vmem:[#allocation2 + $0x48] sm:$0x1]  ;;  %v265_v5 = vld [vmem:[#allocation2 + $0x50] sm:$0x1] }
  0x7c   : > { %v937_v62 = vsel %vm6793_vm12, %v932_v46, %v936_v32  ;;  %v941_v0 = vrot.slane %v939_v50, 4  ;;  %v944_v3 = vrot.slane %v942_v51, 5  ;;  %733 = vst [vmem:[#allocation2 + $0x90] sm:$0xf] %v732_v58  ;;  %v545_v4 = vshrl.u32 %v323_v36, 16 }
  0x7d   : > { %v5764_v6 = vcombine.low %v927_v40, %v937_v62  ;;  %v7039_v38 = vld [vmem:[#allocation2 + $0x40] sm:$0xf]  ;;  %v7041_v11 = vld [vmem:[#allocation2 + $0x44] sm:$0x1]  ;;  %v534_v12 = vsel %vm6802_vm13, %v526_v33, %v533_v55  ;;  %v736_v13 = vsel %vm6747_vm5, %v535_v57, %v735_v52  ;;  %v542_v14 = vor.u32 %v540_v53, %v539_v60  ;;  %v308_v15 = vld [vmem:[%s6760_s25 + $0x28] sm:$0xf] }
  0x7e   : > { %v945_v16 = vor.u32 %v944_v3, %v941_v0  ;;  %v948_v18 = vshll.u32 %v7039_v38, 16  ;;  %v952_v19 = vshrl.u32 %v7039_v38, 16  ;;  %v958_v21 = vshll.u32 %v7041_v11, 16  ;;  %734 = vst.msk [vmem:[#allocation2 + $0x94] sm:$0xf] %vm187_vm0, %v534_v12 }
  0x7f   : > { %737 = vst [vmem:[#allocation2 + $0x98] sm:$0x1] %v736_v13  ;;  %v309_v22 = vld [vmem:[%s6760_s25 + $0x2c] sm:$0xf]  ;;  %6264 = vmatprep.mubr.msk.bf16.mxu0 %vm1252_vm9, %v5764_v6  ;;  %v543_v23 = vrot.slane %v539_v60, 4  ;;  %v547_v24 = vrot.slane %v545_v4, 7 }
  0x80   : > { %v548_v25 = vshll.u32 %v323_v36, 16  ;;  %v738_v26 = vld [vmem:[#allocation2 + $0x9c] sm:$0xf]  ;;  %v216_v29 = vsel %vm6747_vm5, 0, %v215_v61  ;;  %v946_v32 = vrot.slane %v945_v16, 4  ;;  %v950_v33 = vrot.slane %v948_v18, 5 }
  0x81   : > { %v954_v34 = vrot.slane %v952_v19, 4  ;;  %v960_v40 = vrot.slane %v958_v21, 5  ;;  %v742_v44 = vld [vmem:[#allocation2 + $0xa4] sm:$0x1]  ;;  %217 = vst [vmem:[#allocation2 + $0x48] sm:$0x1] %v216_v29  ;;  %v739_v49 = vsel %vm6784_vm11, %v542_v14, %v738_v26 }
  0x82   : > { %v550_v45 = vor.u32 %v548_v25, %v547_v24  ;;  %v552_v47 = vrot.slane %v547_v24, 4  ;;  %v266_v46 = vsel %vm6752_vm6, 0, %v265_v5  ;;  %v951_v36 = vsel %vm6793_vm12, %v946_v32, %v950_v33  ;;  %740 = vst [vmem:[#allocation2 + $0x9c] sm:$0xf] %v739_v49  ;;  %v218_v53 = vld [vmem:[#allocation2 + $0x54] sm:$0x1] }
  0x83   : > { %v955_v50 = vor.u32 %v954_v34, %v950_v33  ;;  %267 = vst [vmem:[#allocation2 + $0x50] sm:$0x1] %v266_v46  ;;  %v418_v51 = vshrl.u32 %v308_v15, 16  ;;  %v421_v52 = vshll.u32 %v308_v15, 16  ;;  %v7062_v55 = vld [vmem:[#allocation2 + $0x90] sm:$0xf] }
  0x84   : > { %v551_v57 = vsel %vm6802_vm13, %v543_v23, %v550_v45  ;;  %v743_v58 = vsel %vm6747_vm5, %v552_v47, %v742_v44  ;;  %v426_v60 = vshrl.u32 %v309_v22, 16  ;;  %v429_v61 = vshll.u32 %v309_v22, 16  ;;  %v268_v44 = vld [vmem:[#allocation2 + $0x5c] sm:$0x1]  ;;  %v310_v45 = vld [vmem:[%s6760_s25 + $0x30] sm:$0xf] }
  0x85   : > { %v956_v62 = vrot.slane %v955_v50, 4  ;;  %v1107_v0 = vshrl.u32 %v7062_v55, 16  ;;  %v1110_v3 = vshll.u32 %v7062_v55, 16  ;;  %741 = vst.msk [vmem:[#allocation2 + $0xa0] sm:$0xf] %vm187_vm0, %v551_v57  ;;  %v420_v4 = vrot.slane %v418_v51, 7 }
  0x86   : > { %744 = vst [vmem:[#allocation2 + $0xa4] sm:$0x1] %v743_v58  ;;  %v7071_v5 = vld [vmem:[#allocation2 + $0x94] sm:$0xf]  ;;  %v7073_v6 = vld [vmem:[#allocation2 + $0x98] sm:$0x1] }
  0x87   : > { %v428_v12 = vrot.slane %v426_v60, 7  ;;  %v219_v13 = vsel %vm6747_vm5, 0, %v218_v53  ;;  %v961_v16 = vsel %vm6793_vm12, %v956_v62, %v960_v40  ;;  %v1109_v18 = vrot.slane %v1107_v0, 4  ;;  %v311_v50 = vld [vmem:[%s6760_s25 + $0x34] sm:$0xf] }
  0x88   : > { %v1112_v19 = vrot.slane %v1110_v3, 5  ;;  %v1116_v21 = vshll.u32 %v7071_v5, 16  ;;  %220 = vst [vmem:[#allocation2 + $0x54] sm:$0x1] %v219_v13  ;;  %v5765_v22 = vcombine.low %v951_v36, %v961_v16  ;;  %v1120_v23 = vshrl.u32 %v7071_v5, 16 }
  0x89   : > { %v1126_v24 = vshll.u32 %v7073_v6, 16  ;;  %v423_v25 = vor.u32 %v421_v52, %v420_v4  ;;  %v689_v26 = vld [vmem:[#allocation2 + $0x48] sm:$0xf]  ;;  %v424_v33 = vrot.slane %v420_v4, 4  ;;  %v431_v34 = vor.u32 %v429_v61, %v428_v12  ;;  %v7088_v49 = vld [vmem:[#allocation2 + $0x9c] sm:$0xf] }
  0x8a   : > { %v1113_v29 = vor.u32 %v1112_v19, %v1109_v18  ;;  %v1118_v32 = vrot.slane %v1116_v21, 5  ;;  %6265 = vmatmul.mubr.msk.bf16.gmra.mxu0 %vm1252_vm9, %v5765_v22  ;;  %v1122_v40 = vrot.slane %v1120_v23, 4  ;;  %v433_v46 = vrot.slane %v428_v12, 4  ;;  %v693_v58 = vld [vmem:[#allocation2 + $0x50] sm:$0x1] }
  0x8b   : > { %v1128_v47 = vrot.slane %v1126_v24, 5  ;;  %v690_v36 = vsel %vm6784_vm11, %v423_v25, %v689_v26  ;;  %v1131_v52 = vshrl.u32 %v7088_v49, 16  ;;  %v1134_v53 = vshll.u32 %v7088_v49, 16  ;;  %v239_v19 = vld [vmem:[#allocation2 + $0xa8] sm:$0x1] }
  0x8c   : > { %v1114_v51 = vrot.slane %v1113_v29, 4  ;;  %v432_v57 = vsel %vm6802_vm13, %v424_v33, %v431_v34  ;;  %691 = vst [vmem:[#allocation2 + $0x48] sm:$0xf] %v690_v36  ;;  %v1123_v60 = vor.u32 %v1122_v40, %v1118_v32  ;;  %v7097_v61 = vld [vmem:[#allocation2 + $0xa0] sm:$0xf]  ;;  %v694_v0 = vsel %vm6747_vm5, %v433_v46, %v693_v58 }
  0x8d   : > { %v7099_v62 = vld [vmem:[#allocation2 + $0xa4] sm:$0x1]  ;;  %692 = vst.msk [vmem:[#allocation2 + $0x4c] sm:$0xf] %vm187_vm0, %v432_v57  ;;  %v269_v3 = vsel %vm6752_vm6, 0, %v268_v44  ;;  %v435_v4 = vshrl.u32 %v310_v45, 16 }
  0x8e   : > { %v1119_v12 = vsel %vm6793_vm12, %v1114_v51, %v1118_v32  ;;  %v1133_v13 = vrot.slane %v1131_v52, 4  ;;  %v1136_v16 = vrot.slane %v1134_v53, 5  ;;  %v1140_v18 = vshll.u32 %v7097_v61, 16  ;;  %695 = vst [vmem:[#allocation2 + $0x50] sm:$0x1] %v694_v0 }
  0x8f   : > { %270 = vst [vmem:[#allocation2 + $0x5c] sm:$0x1] %v269_v3  ;;  %v1124_v21 = vrot.slane %v1123_v60, 4  ;;  %v1144_v22 = vshrl.u32 %v7097_v61, 16  ;;  %v1150_v23 = vshll.u32 %v7099_v62, 16  ;;  %v437_v24 = vrot.slane %v435_v4, 7 }
  0x90   : > { %v289_v25 = vld [vmem:[#allocation2 + $0xb0] sm:$0x1]  ;;  %v1137_v26 = vor.u32 %v1136_v16, %v1133_v13  ;;  %v1142_v29 = vrot.slane %v1140_v18, 5  ;;  %v438_v33 = vshll.u32 %v310_v45, 16  ;;  %v443_v34 = vshrl.u32 %v311_v50, 16 }
  0x91   : > { %v1129_v32 = vsel %vm6793_vm12, %v1124_v21, %v1128_v47  ;;  %v1146_v44 = vrot.slane %v1144_v22, 4  ;;  %v1152_v40 = vrot.slane %v1150_v23, 5  ;;  %v441_v46 = vrot.slane %v437_v24, 4  ;;  %v696_v57 = vld [vmem:[#allocation2 + $0x54] sm:$0xf] }
  0x92   : > { %v5772_v36 = vcombine.low %v1119_v12, %v1129_v32  ;;  %v1138_v51 = vrot.slane %v1137_v26, 4  ;;  %v440_v52 = vor.u32 %v438_v33, %v437_v24  ;;  %v445_v53 = vrot.slane %v443_v34, 7  ;;  %v325_v18 = vld [vmem:[%s6760_s25 + $0x6c] sm:$0xf]  ;;  %v6630_v28 = vld [vmem:[#allocation2 + $0x20] sm:$0x1] }
  0x93   : > { %v1147_v58 = vor.u32 %v1146_v44, %v1142_v29  ;;  %v7113_v60 = vld [vmem:[#allocation2 + $0x48] sm:$0xf]  ;;  %v446_v0 = vshll.u32 %v311_v50, 16  ;;  %v240_v45 = vsel %vm6747_vm5, 0, %v239_v19  ;;  %v290_v47 = vsel %vm6752_vm6, 0, %v289_v25 }
  0x94   : > { %6280 = vmatprep.mubr.msk.bf16.mxu1 %vm1252_vm9, %v5772_v36  ;;  %v1143_v3 = vsel %vm6793_vm12, %v1138_v51, %v1142_v29  ;;  %v7122_v4 = vld [vmem:[#allocation2 + $0x4c] sm:$0xf]  ;;  %v963_v12 = vshrl.u32 %v7113_v60, 16  ;;  %v966_v13 = vshll.u32 %v7113_v60, 16  ;;  %v450_v16 = vrot.slane %v445_v53, 4 }
  0x95   : > { %241 = vst [vmem:[#allocation2 + $0xa8] sm:$0x1] %v240_v45  ;;  %291 = vst [vmem:[#allocation2 + $0xb0] sm:$0x1] %v290_v47  ;;  %v324_v50 = vld [vmem:[%s6760_s25 + $0x68] sm:$0xf]  ;;  %v448_v24 = vor.u32 %v446_v0, %v445_v53  ;;  %v697_v34 = vsel %vm6784_vm11, %v440_v52, %v696_v57 }
  0x96   : > { %v1148_v19 = vrot.slane %v1147_v58, 4  ;;  %v7128_v21 = vld [vmem:[#allocation2 + $0x50] sm:$0x1]  ;;  %v972_v22 = vshll.u32 %v7122_v4, 16  ;;  %v976_v23 = vshrl.u32 %v7122_v4, 16  ;;  %v965_v26 = vrot.slane %v963_v12, 4 }
  0x97   : > { %v242_v25 = vld [vmem:[#allocation2 + $0xb4] sm:$0x1]  ;;  %v968_v29 = vrot.slane %v966_v13, 5  ;;  %v982_v33 = vshll.u32 %v7128_v21, 16  ;;  %v700_v32 = vld [vmem:[#allocation2 + $0x5c] sm:$0x1]  ;;  %v449_v58 = vsel %vm6802_vm13, %v441_v46, %v448_v24 }
  0x98   : > { %v1153_v44 = vsel %vm6793_vm12, %v1148_v19, %v1152_v40  ;;  %v974_v36 = vrot.slane %v972_v22, 5  ;;  %v978_v51 = vrot.slane %v976_v23, 4  ;;  %698 = vst [vmem:[#allocation2 + $0x54] sm:$0xf] %v697_v34  ;;  %v292_v53 = vld [vmem:[#allocation2 + $0xbc] sm:$0x1]  ;;  %v701_v52 = vsel %vm6747_vm5, %v450_v16, %v700_v32 }
  0x99   : > { %v326_v0 = vld [vmem:[%s6760_s25 + $0x70] sm:$0xf]  ;;  %v5773_v45 = vcombine.low %v1143_v3, %v1153_v44  ;;  %v969_v47 = vor.u32 %v968_v29, %v965_v26  ;;  %v984_v12 = vrot.slane %v982_v33, 5  ;;  %699 = vst.msk [vmem:[#allocation2 + $0x58] sm:$0xf] %vm187_vm0, %v449_v58  ;;  %v554_v40 = vshrl.u32 %v324_v50, 16 }
  0x9a   : > { %v327_v57 = vld [vmem:[%s6760_s25 + $0x74] sm:$0xf]  ;;  %v979_v13 = vor.u32 %v978_v51, %v974_v36  ;;  %702 = vst [vmem:[#allocation2 + $0x5c] sm:$0x1] %v701_v52  ;;  %v557_v19 = vshll.u32 %v324_v50, 16  ;;  %v562_v22 = vshrl.u32 %v325_v18, 16 }
  0x9b   : > { %6281 = vmatmul.mubr.msk.bf16.gmra.mxu1 %vm1252_vm9, %v5773_v45  ;;  %v970_v46 = vrot.slane %v969_v47, 4  ;;  %v565_v23 = vshll.u32 %v325_v18, 16  ;;  %v243_v3 = vsel %vm6747_vm5, 0, %v242_v25  ;;  %v293_v24 = vsel %vm6752_vm6, 0, %v292_v53 }
  0x9c   : > { %v980_v26 = vrot.slane %v979_v13, 4  ;;  %v556_v29 = vrot.slane %v554_v40, 7  ;;  %v564_v33 = vrot.slane %v562_v22, 7  ;;  %244 = vst [vmem:[#allocation2 + $0xb4] sm:$0x1] %v243_v3  ;;  %v571_v16 = vshrl.u32 %v326_v0, 16 }
  0x9d   : > { %294 = vst [vmem:[#allocation2 + $0xbc] sm:$0x1] %v293_v24  ;;  %v975_v50 = vsel %vm6793_vm12, %v970_v46, %v974_v36  ;;  %v745_v34 = vld [vmem:[#allocation2 + $0xa8] sm:$0xf]  ;;  %v574_v32 = vshll.u32 %v326_v0, 16  ;;  %v579_v44 = vshrl.u32 %v327_v57, 16 }
  0x9e   : > { %v582_v51 = vshll.u32 %v327_v57, 16  ;;  %v985_v18 = vsel %vm6793_vm12, %v980_v26, %v984_v12  ;;  %v559_v25 = vor.u32 %v557_v19, %v556_v29  ;;  %v560_v58 = vrot.slane %v556_v29, 4  ;;  %v749_v53 = vld [vmem:[#allocation2 + $0xb0] sm:$0x1]  ;;  %v1758_v29 = vld [vmem:[#allocation2] sm:$0xe] }
  0x9f   : > { %v567_v45 = vor.u32 %v565_v23, %v564_v33  ;;  %v5766_v47 = vcombine.low %v975_v50, %v985_v18  ;;  %v7153_v52 = vld [vmem:[#allocation2 + $0x54] sm:$0xf]  ;;  %v569_v13 = vrot.slane %v564_v33, 4  ;;  %v573_v40 = vrot.slane %v571_v16, 7  ;;  %v1759_v33 = vld [vmem:[#allocation2 + $0xc] sm:$0xe] }
  0xa0   : > { %v581_v22 = vrot.slane %v579_v44, 7  ;;  %v7155_v3 = vld [vmem:[#allocation2 + $0x58] sm:$0xf]  ;;  %v987_v36 = vshrl.u32 %v7153_v52, 16  ;;  %v990_v0 = vshll.u32 %v7153_v52, 16  ;;  %v746_v12 = vsel %vm6784_vm11, %v559_v25, %v745_v34 }
  0xa1   : > { %v568_v57 = vsel %vm6802_vm13, %v560_v58, %v567_v45  ;;  %6268 = vmatprep.mubr.msk.bf16.mxu0 %vm1252_vm9, %v5766_v47  ;;  %v7164_v19 = vld [vmem:[#allocation2 + $0x5c] sm:$0x1]  ;;  %v996_v46 = vshll.u32 %v7155_v3, 16  ;;  %v1000_v23 = vshrl.u32 %v7155_v3, 16  ;;  %747 = vst [vmem:[#allocation2 + $0xa8] sm:$0xf] %v746_v12  ;;  %v750_v24 = vsel %vm6747_vm5, %v569_v13, %v749_v53 }
  0xa2   : > { %748 = vst.msk [vmem:[#allocation2 + $0xac] sm:$0xf] %vm187_vm0, %v568_v57  ;;  %v576_v26 = vor.u32 %v574_v32, %v573_v40  ;;  %v989_v16 = vrot.slane %v987_v36, 4  ;;  %v992_v50 = vrot.slane %v990_v0, 5  ;;  %v1006_v34 = vshll.u32 %v7164_v19, 16 }
  0xa3   : > { %751 = vst [vmem:[#allocation2 + $0xb0] sm:$0x1] %v750_v24  ;;  %v577_v44 = vrot.slane %v573_v40, 4  ;;  %v998_v18 = vrot.slane %v996_v46, 5  ;;  %v1002_v25 = vrot.slane %v1000_v23, 4  ;;  %v584_v58 = vor.u32 %v582_v51, %v581_v22 }
  0xa4   : > { %v586_v45 = vrot.slane %v581_v22, 4  ;;  %v752_v47 = vld [vmem:[#allocation2 + $0xb4] sm:$0xf]  ;;  %v993_v12 = vor.u32 %v992_v50, %v989_v16  ;;  %v1008_v15 = vrot.slane %v1006_v34, 5  ;;  %v756_v53 = vld [vmem:[#allocation2 + $0xbc] sm:$0x1] }
  0xa5   : > { %v753_v57 = vsel %vm6784_vm11, %v576_v26, %v752_v47  ;;  %vm1806_vm14 = vcmask 1042432   ;;  %v1003_v32 = vor.u32 %v1002_v25, %v998_v18  ;;  %v585_v13 = vsel %vm6802_vm13, %v577_v44, %v584_v58  ;;  %v6627_v0 = vld [vmem:[#allocation2 + $0x4] sm:$0xf]  ;;  %v6628_v24 = vld [vmem:[#allocation2 + $0x14] sm:$0x1] }
  0xa6   : > { %754 = vst [vmem:[#allocation2 + $0xb4] sm:$0xf] %v753_v57  ;;  %v757_v40 = vsel %vm6747_vm5, %v586_v45, %v756_v53  ;;  %vm1807_vm15 = vcmask 1046532   ;;  %v994_v36 = vrot.slane %v993_v12, 4  ;;  %755 = vst.msk [vmem:[#allocation2 + $0xb8] sm:$0xf] %vm187_vm0, %v585_v13 }
  0xa7   : > { %758 = vst [vmem:[#allocation2 + $0xbc] sm:$0x1] %v757_v40  ;;  %vm7180_vm1 = vmor %vm1806_vm14, %vm1807_vm15  ;;  %v9355_v51 = vmov 0  ;;  %v5824_v22 = vrot.slane %v1758_v29, 9  ;;  %v1811_v46 = vrot.slane %v6627_v0, 5  ;;  %v5825_v23 = vrot.slane %v1759_v33, 9 }
  0xa8   : > { %v9356_v51 = vsel %vm7180_vm1, 4294967295, %v9355_v51  ;;  %v1821_v26 = vrot.slane %v6628_v24, 5  ;;  %v1004_v16 = vrot.slane %v1003_v32, 4  ;;  %v1820_v50 = vrot.slane %v1818_v63, 4  ;;  %v1760_v44 = vld [vmem:[#allocation2 + $0x18] sm:$0xe] }
  0xa9   : > { %9357 = vst [vmem:[#allocation9_spill] sm:$0xff] %v9356_v51  ;;  %v7188_v34 = vsel %vm1301_vm4, %v7018_v20, 0  ;;  %v999_v25 = vsel %vm6793_vm12, %v994_v36, %v998_v18  ;;  %v7192_v58 = vld [vmem:[#allocation2 + $0xa8] sm:$0xf]  ;;  %v7194_v29 = vld [vmem:[#allocation2 + $0xac] sm:$0xf]  ;;  %v1812_v33 = vsel %vm7180_vm1, %v5824_v22, %v1811_v46  ;;  %v1819_v47 = vsel %vm7180_vm1, %v5825_v23, %v1818_v63 }
  0xaa   : > { %v1813_v45 = vrot.slane %v1811_v46, 4  ;;  %v1009_v20 = vsel %vm6793_vm12, %v1004_v16, %v1008_v15  ;;  %v7204_v12 = vld [vmem:[#allocation2 + $0xb0] sm:$0x1]  ;;  %v1155_v18 = vshrl.u32 %v7192_v58, 16  ;;  %v1158_v57 = vshll.u32 %v7192_v58, 16 }
  0xab   : > { %v1164_v53 = vshll.u32 %v7194_v29, 16  ;;  %v5767_v32 = vcombine.low %v999_v25, %v1009_v20  ;;  %v1168_v13 = vshrl.u32 %v7194_v29, 16  ;;  %v1174_v40 = vshll.u32 %v7204_v12, 16  ;;  %v7509_v51 = vld [vmem:[#allocation2 + $0x44] sm:$0x1] }
  0xac   : > { %v1815_v63 = vsel %vm7180_vm1, %v1813_v45, %v1814_v31  ;;  %v1157_v36 = vrot.slane %v1155_v18, 4  ;;  %v1160_v15 = vrot.slane %v1158_v57, 5  ;;  %v1822_v16 = vsel %vm7180_vm1, %v1820_v50, %v1821_v26 }
  0xad   : > { %v1166_v22 = vrot.slane %v1164_v53, 5  ;;  %v5840_v0 = vcombine.low %v1812_v33, %v1815_v63  ;;  %6269 = vmatmul.mubr.msk.bf16.gmra.mxu0 %vm1252_vm9, %v5767_v32  ;;  %v1170_v46 = vrot.slane %v1168_v13, 4  ;;  %v1176_v23 = vrot.slane %v1174_v40, 5  ;;  %v7216_v24 = vld [vmem:[#allocation2 + $0xb4] sm:$0xf] }
  0xae   : > { %v5826_v25 = vrot.slane %v1760_v44, 9  ;;  %v1161_v20 = vor.u32 %v1160_v15, %v1157_v36  ;;  %v7220_v14 = vld [vmem:[#allocation2 + $0xb8] sm:$0xf]  ;;  %v7222_v10 = vld [vmem:[#allocation2 + $0xbc] sm:$0x1]  ;;  %v1179_v31 = vshrl.u32 %v7216_v24, 16  ;;  %v5841_v33 = vcombine.low %v1819_v47, %v1822_v16 }
  0xaf   : > { %v1182_v45 = vshll.u32 %v7216_v24, 16  ;;  %6324 = vmatprep.mubr.msk.bf16.mxu0 %vm1252_vm9, %v5840_v0  ;;  %v1171_v18 = vor.u32 %v1170_v46, %v1166_v22  ;;  %v1188_v57 = vshll.u32 %v7220_v14, 16  ;;  %v1192_v53 = vshrl.u32 %v7220_v14, 16  ;;  %v7230_v13 = vld [vmem:[#allocation2 + $0x1c] sm:$0xf] }
  0xb0   : > { %v1198_v26 = vshll.u32 %v7222_v10, 16  ;;  %v1162_v50 = vrot.slane %v1161_v20, 4  ;;  %v1181_v44 = vrot.slane %v1179_v31, 4  ;;  %v1825_v40 = vrot.slane %v7230_v13, 5  ;;  %v1761_v63 = vld [vmem:[#allocation2 + $0x24] sm:$0xe] }
  0xb1   : > { %v1184_v32 = vrot.slane %v1182_v45, 5  ;;  %v1172_v36 = vrot.slane %v1171_v18, 4  ;;  %v1190_v15 = vrot.slane %v1188_v57, 5  ;;  %v1194_v54 = vrot.slane %v1192_v53, 4  ;;  %v1762_v20 = vld [vmem:[#allocation2 + $0x30] sm:$0xe] }
  0xb2   : > { %v1200_v0 = vrot.slane %v1198_v26, 5  ;;  %v1167_v47 = vsel %vm6793_vm12, %v1162_v50, %v1166_v22  ;;  %v1826_v16 = vsel %vm7180_vm1, %v5826_v25, %v1825_v40  ;;  %v1827_v17 = vrot.slane %v1825_v40, 4  ;;  %v7239_v18 = vld [vmem:[#allocation3 + $0x18] sm:$0xf] }
  0xb3   : > { %v1185_v46 = vor.u32 %v1184_v32, %v1181_v44  ;;  %v1177_v31 = vsel %vm6793_vm12, %v1172_v36, %v1176_v23  ;;  %v1195_v45 = vor.u32 %v1194_v54, %v1190_v15  ;;  %v1828_v43 = vrot.slane %v6630_v28, 5  ;;  %v1763_v32 = vld [vmem:[#allocation2 + $0x3c] sm:$0xe]  ;;  %v1764_v36 = vld [vmem:[#allocation2 + $0x48] sm:$0xe] }
  0xb4   : > { %v5827_v2 = vrot.slane %v1761_v63, 9  ;;  %v5774_v57 = vcombine.low %v1167_v47, %v1177_v31  ;;  %v1832_v26 = vrot.slane %v6930_v39, 5  ;;  %v1835_v22 = vrot.slane %v6934_v48, 5 }
  0xb5   : > { %v1186_v53 = vrot.slane %v1185_v46, 4  ;;  %v1196_v50 = vrot.slane %v1195_v45, 4  ;;  %6325 = vmatmul.mubr.msk.bf16.vlgmr.msra.gmra.mxu0 %vm1252_vm9, %v5841_v33  ;;  %v1829_v25 = vsel %vm7180_vm1, %v1827_v17, %v1828_v43  ;;  %v5828_v44 = vrot.slane %v1762_v20, 9 }
  0xb6   : > { %v1839_v54 = vrot.slane %v6997_v59, 5  ;;  %6284 = vmatprep.mubr.msk.bf16.mxu1 %vm1252_vm9, %v5774_v57  ;;  %6391 = vmatpush3.bf16.msra.mxu0 %v7188_v34  ;;  %v5842_v23 = vcombine.low %v1826_v16, %v1829_v25  ;;  %v1833_v39 = vsel %vm7180_vm1, %v5827_v2, %v1832_v26  ;;  %v1834_v48 = vrot.slane %v1832_v26, 4 }
  0xb7   : > { %v1191_v28 = vsel %vm6793_vm12, %v1186_v53, %v1190_v15  ;;  %v1201_v33 = vsel %vm6793_vm12, %v1196_v50, %v1200_v0  ;;  %v1842_v40 = vrot.slane %v6995_v56, 5  ;;  %6569 = vmatprep.subr.msk.bf16.mxu0 %vm1301_vm4, %v7239_v18  ;;  %v1846_v34 = vrot.slane %v7039_v38, 5  ;;  %v1765_v56 = vld [vmem:[#allocation2 + $0x54] sm:$0xe] }
  0xb8   : > { %v1840_v43 = vsel %vm7180_vm1, %v5828_v44, %v1839_v54  ;;  %v1841_v17 = vrot.slane %v1839_v54, 4  ;;  %v5775_v63 = vcombine.low %v1191_v28, %v1201_v33  ;;  %6328 = vmatprep.mubr.msk.bf16.mxu0 %vm1252_vm9, %v5842_v23  ;;  %v1836_v2 = vsel %vm7180_vm1, %v1834_v48, %v1835_v22  ;;  %v1766_v22 = vld [vmem:[#allocation2 + $0x60] sm:$0xe]  ;;  %v1767_v44 = vld [vmem:[#allocation2 + $0x6c] sm:$0xe] }
  0xb9   : > { %v5843_v15 = vcombine.low %v1833_v39, %v1836_v2  ;;  %v5829_v47 = vrot.slane %v1763_v32, 9  ;;  %v1849_v46 = vrot.slane %v7041_v11, 5  ;;  %v1848_v20 = vrot.slane %v1846_v34, 4  ;;  %v6631_v54 = vld [vmem:[#allocation2 + $0x68] sm:$0x1] }
  0xba   : > { %v1843_v0 = vsel %vm7180_vm1, %v1841_v17, %v1842_v40  ;;  %6285 = vmatmul.mubr.msk.bf16.gmra.mxu1 %vm1252_vm9, %v5775_v63  ;;  %v1853_v31 = vrot.slane %v7122_v4, 5  ;;  %v9358_v45 = vcombine.low %v6765_v7, %v6767_v8  ;;  %v5830_v57 = vrot.slane %v1764_v36, 9  ;;  %v6632_v8 = vld [vmem:[#allocation2 + $0x18] sm:$0xf]  ;;  %v7300_v63 = vld [vmem:[#allocation2 + $0x70] sm:$0xf] }
  0xbb   : > { %v5844_v16 = vcombine.low %v1840_v43, %v1843_v0  ;;  %v1856_v53 = vrot.slane %v7128_v21, 5  ;;  %v1860_v26 = vrot.slane %v7155_v3, 5  ;;  %v5831_v11 = vrot.slane %v1765_v56, 9  ;;  %v7289_v43 = vld [vmem:[#allocation2 + $0x64] sm:$0xf] }
  0xbc   : > { %6290 = vmatprep.mubr.msk.bf16.mxu1 %vm1252_vm9, %v9358_v45  ;;  %v1855_v50 = vrot.slane %v1853_v31, 4  ;;  %v1863_v25 = vrot.slane %v7164_v19, 5  ;;  %v1870_v28 = vrot.slane %v6631_v54, 5  ;;  %v2378_v7 = vsel %vm1301_vm4, %v7013_v37, 0  ;;  %v6635_v36 = vld [vmem:[#allocation2 + $0x24] sm:$0xf] }
  0xbd   : > { %6329 = vmatmul.mubr.msk.bf16.gmra.mxu0 %vm1252_vm9, %v5843_v15  ;;  %v1862_v23 = vrot.slane %v1860_v26, 4  ;;  %v5794_v39 = vcombine.low %v6632_v8, %v7230_v13  ;;  %v1847_v21 = vsel %vm7180_vm1, %v5829_v47, %v1846_v34  ;;  %v1850_v19 = vsel %vm7180_vm1, %v1848_v20, %v1849_v46  ;;  %v7303_v34 = vld [vmem:[#allocation2 + $0x78] sm:$0xe]  ;;  %v6636_v15 = vld [vmem:[#allocation2 + $0x28] sm:$0xf] }
  0xbe   : > { %6332 = vmatprep.mubr.msk.bf16.mxu0 %vm1252_vm9, %v5844_v16  ;;  %v1854_v48 = vsel %vm7180_vm1, %v5830_v57, %v1853_v31  ;;  %v1857_v32 = vsel %vm7180_vm1, %v1855_v50, %v1856_v53  ;;  %v5832_v33 = vrot.slane %v1766_v22, 9  ;;  %v1867_v37 = vrot.slane %v7289_v43, 5  ;;  %v7305_v46 = vld [vmem:[#allocation2 + $0x84] sm:$0xe]  ;;  %v1770_v56 = vld [vmem:[#allocation2 + $0x90] sm:$0xe] }
  0xbf   : > { %v7294_v13 = vsel %vm7180_vm1, %v5831_v11, %v1860_v26  ;;  %v7298_v17 = vsel %vm7180_vm1, %v1862_v23, %v1863_v25  ;;  %v5833_v40 = vrot.slane %v1767_v44, 9  ;;  %v1874_v2 = vrot.slane %v7300_v63, 5  ;;  %v7307_v16 = vld [vmem:[#allocation3 + $0x14] sm:$0xf]  ;;  %v7317_v53 = vld [vmem:[#allocation2 + $0x7c] sm:$0xf] }
  0xc0   : > { %v5795_v0 = vcombine.low %v6635_v36, %v6636_v15  ;;  %v5845_v47 = vcombine.low %v1847_v21, %v1850_v19  ;;  %v9359_v20 = vcombine.low %v6848_v41, %v6850_v42  ;;  %v5846_v31 = vcombine.low %v1854_v48, %v1857_v32  ;;  %v7327_v50 = vld [vmem:[#allocation2 + $0x60] sm:$0xf]  ;;  %v1771_v25 = vld [vmem:[#allocation2 + $0x9c] sm:$0xe]  ;;  %v6639_v23 = vld [vmem:[#allocation2 + $0x74] sm:$0x1] }
  0xc1   : > { %v5798_v45 = vcombine.low %v7113_v60, %v7122_v4  ;;  %v5799_v57 = vcombine.low %v7153_v52, %v7155_v3  ;;  %v1881_v26 = vrot.slane %v7317_v53, 5  ;;  %v5847_v22 = vcombine.low %v7294_v13, %v7298_v17  ;;  %v6642_v15 = vld [vmem:[#allocation2 + $0x8c] sm:$0x1]  ;;  %v7447_v60 = vld [vmem:[#allocation2 + $0x28] sm:$0xf] }
  0xc2   : > { %6291 = vmatmul.mubr.msk.bf16.vlgmr.msra.gmra.mxu1 %vm1252_vm9, %v9359_v20  ;;  %v7325_v41 = vsel %vm7180_vm1, %v5832_v33, %v1867_v37  ;;  %v1869_v42 = vrot.slane %v1867_v37, 4  ;;  %v7333_v44 = vsel %vm7180_vm1, %v5833_v40, %v1874_v2  ;;  %v1876_v54 = vrot.slane %v1874_v2, 4  ;;  %v7348_v2 = vld [vmem:[#allocation2 + $0x6c] sm:$0xf] }
  0xc3   : > { %6357 = vmatpush3.bf16.msra.mxu1 %v2378_v7  ;;  %6294 = vmatprep.mubr.msk.bf16.mxu1 %vm1252_vm9, %v5794_v39  ;;  %v1877_v7 = vrot.slane %v6639_v23, 5  ;;  %v5834_v8 = vrot.slane %v7303_v34, 9  ;;  %v6640_v39 = vld [vmem:[#allocation2 + $0x80] sm:$0x1]  ;;  %v5835_v19 = vrot.slane %v7305_v46, 9  ;;  %v1888_v48 = vrot.slane %v6969_v9, 5 }
  0xc4   : > { %6568 = vmatprep.subr.msk.bf16.mxu1 %vm1301_vm4, %v7307_v16  ;;  %v1884_v21 = vrot.slane %v6640_v39, 5  ;;  %v5836_v32 = vrot.slane %v1770_v56, 9  ;;  %v1883_v33 = vrot.slane %v1881_v26, 4  ;;  %v1895_v37 = vrot.slane %v7071_v5, 5  ;;  %v1772_v39 = vld [vmem:[#allocation2 + $0xa8] sm:$0xe] }
  0xc5   : > { %6333 = vmatmul.mubr.msk.bf16.gmra.mxu0 %vm1252_vm9, %v5845_v47  ;;  %v1898_v13 = vrot.slane %v7073_v6, 5  ;;  %v1871_v40 = vsel %vm7180_vm1, %v1869_v42, %v1870_v28  ;;  %v5837_v9 = vrot.slane %v1771_v25, 9  ;;  %v1902_v36 = vrot.slane %v7097_v61, 5 }
  0xc6   : > { %6336 = vmatprep.mubr.msk.bf16.mxu0 %vm1252_vm9, %v5846_v31  ;;  %v1891_v47 = vrot.slane %v6642_v15, 5  ;;  %v7355_v46 = vsel %vm7180_vm1, %v5836_v32, %v1895_v37  ;;  %v1897_v6 = vrot.slane %v1895_v37, 4  ;;  %v1905_v56 = vrot.slane %v7099_v62, 5  ;;  %v2573_v37 = vld [vmem:[#allocation2 + $0xc] sm:$0xf] }
  0xc7   : > { %v1890_v20 = vrot.slane %v1888_v48, 4  ;;  %v7360_v28 = vsel %vm7180_vm1, %v5837_v9, %v1902_v36  ;;  %v1904_v31 = vrot.slane %v1902_v36, 4  ;;  %v5848_v25 = vcombine.low %v7325_v41, %v1871_v40  ;;  %v1773_v15 = vld [vmem:[#allocation2 + $0xb4] sm:$0xe] }
  0xc8   : > { %v7368_v23 = vsel %vm7180_vm1, %v1876_v54, %v1877_v7  ;;  %v7372_v62 = vsel %vm7180_vm1, %v1897_v6, %v1898_v13  ;;  %v9360_v9 = vcombine.low %v6982_v30, %v6997_v59  ;;  %v1909_v54 = vrot.slane %v7194_v29, 5  ;;  %v7388_v13 = vld [vmem:[#allocation2 + $0x10] sm:$0xf]  ;;  %v7400_v6 = vld [vmem:[#allocation2 + $0x14] sm:$0x1] }
  0xc9   : > { %v7384_v41 = vsel %vm7180_vm1, %v1904_v31, %v1905_v56  ;;  %v1916_v7 = vrot.slane %v7220_v14, 5  ;;  %v1882_v40 = vsel %vm7180_vm1, %v5834_v8, %v1881_v26  ;;  %v1885_v30 = vsel %vm7180_vm1, %v1883_v33, %v1884_v21  ;;  %v2576_v56 = vld [vmem:[#allocation2 + $0x18] sm:$0xf] }
  0xca   : > { %6295 = vmatmul.mubr.msk.bf16.gmra.mxu1 %vm1252_vm9, %v5795_v0  ;;  %v7396_v59 = vsel %vm7180_vm1, %v5835_v19, %v1888_v48  ;;  %v7405_v31 = vsel %vm7180_vm1, %v1890_v20, %v1891_v47  ;;  %v5838_v26 = vrot.slane %v1772_v39, 9  ;;  %v2622_v21 = vshrl.u32 %v2573_v37, 16  ;;  %v2577_v19 = vld [vmem:[#allocation2 + $0x1c] sm:$0xf]  ;;  %v2579_v0 = vld [vmem:[#allocation2 + $0x24] sm:$0xf] }
  0xcb   : > { %6298 = vmatprep.mubr.msk.bf16.mxu1 %vm1252_vm9, %v9360_v9  ;;  %v1912_v48 = vrot.slane %v7204_v12, 5  ;;  %v2625_v33 = vshll.u32 %v2573_v37, 16  ;;  %v2631_v9 = vshll.u32 %v7388_v13, 16  ;;  %v2635_v32 = vshrl.u32 %v7388_v13, 16 }
  0xcc   : > { %v5839_v42 = vrot.slane %v1773_v15, 9  ;;  %v1918_v17 = vrot.slane %v1916_v7, 4  ;;  %v1919_v47 = vrot.slane %v7222_v10, 5  ;;  %v2624_v20 = vrot.slane %v2622_v21, 4  ;;  %v7423_v10 = vld [vmem:[#allocation2 + $0x78] sm:$0xf] }
  0xcd   : > { %6337 = vmatmul.mubr.msk.bf16.gmra.mxu0 %vm1252_vm9, %v5847_v22  ;;  %v1911_v22 = vrot.slane %v1909_v54, 4  ;;  %v2627_v39 = vrot.slane %v2625_v33, 5  ;;  %v7414_v36 = vrot.slane %v2631_v9, 5  ;;  %v2637_v8 = vrot.slane %v2635_v32, 4 }
  0xce   : > { %6340 = vmatprep.mubr.msk.bf16.mxu0 %vm1252_vm9, %v5848_v25  ;;  %v5849_v25 = vcombine.low %v7333_v44, %v7368_v23  ;;  %v2641_v12 = vshll.u32 %v7400_v6, 16  ;;  %v2646_v37 = vshrl.u32 %v2576_v56, 16  ;;  %v2649_v34 = vshll.u32 %v2576_v56, 16  ;;  %v7433_v23 = vld [vmem:[#allocation2 + $0x84] sm:$0xf] }
  0xcf   : > { %v9361_v11 = vcombine.low %v7031_v27, %v7039_v38  ;;  %v5850_v15 = vcombine.low %v1882_v40, %v1885_v30  ;;  %v2655_v32 = vshll.u32 %v2577_v19, 16  ;;  %v2659_v33 = vshrl.u32 %v2577_v19, 16  ;;  %v7435_v27 = vld [vmem:[#allocation2 + $0x88] sm:$0xf]  ;;  %v2578_v56 = vld [vmem:[#allocation2 + $0x20] sm:$0x1] }
  0xd0   : > { %v5851_v44 = vcombine.low %v7396_v59, %v7405_v31  ;;  %v7445_v40 = vsel %vm7180_vm1, %v5839_v42, %v1916_v7  ;;  %v7451_v4 = vsel %vm7180_vm1, %v1911_v22, %v1912_v48  ;;  %v2628_v30 = vor.u32 %v2627_v39, %v2624_v20  ;;  %v7461_v19 = vld [vmem:[#allocation2 + $0x34] sm:$0xf]  ;;  %v7488_v38 = vld [vmem:[#allocation2 + $0x40] sm:$0xf] }
  0xd1   : > { %v2638_v59 = vor.u32 %v2637_v8, %v7414_v36  ;;  %v7459_v31 = vrot.slane %v2641_v12, 5  ;;  %v2648_v42 = vrot.slane %v2646_v37, 4  ;;  %v2670_v7 = vshrl.u32 %v2579_v0, 16  ;;  %9363 = vst [vmem:[#allocation11_spill] sm:$0xff] %v7488_v38 }
  0xd2   : > { %6299 = vmatmul.mubr.msk.bf16.gmra.mxu1 %vm1252_vm9, %v9361_v11  ;;  %v7441_v11 = vsel %vm7180_vm1, %v5838_v26, %v1909_v54  ;;  %v2582_v54 = vld [vmem:[#allocation2 + $0x30] sm:$0xf]  ;;  %v2673_v26 = vshll.u32 %v2579_v0, 16  ;;  %v2651_v48 = vrot.slane %v2649_v34, 5  ;;  %v7464_v9 = vrot.slane %v2655_v32, 5 }
  0xd3   : > { %6302 = vmatprep.mubr.msk.bf16.mxu1 %vm1252_vm9, %v5798_v45  ;;  %v7455_v45 = vsel %vm7180_vm1, %v1918_v17, %v1919_v47  ;;  %v2661_v17 = vrot.slane %v2659_v33, 4  ;;  %v2679_v22 = vshll.u32 %v7447_v60, 16  ;;  %v2665_v8 = vshll.u32 %v2578_v56, 16  ;;  %v7471_v0 = vld [vmem:[#allocation2 + $0x2c] sm:$0x1] }
  0xd4   : > { %v7469_v47 = vsel %vm1301_vm4, %v7307_v16, 0  ;;  %v2672_v20 = vrot.slane %v2670_v7, 4  ;;  %v2675_v39 = vrot.slane %v2673_v26, 5  ;;  %v2639_v12 = vrot.slane %v2638_v59, 4  ;;  %v7480_v33 = vld [vmem:[#allocation2 + $0x38] sm:$0x1] }
  0xd5   : > { %6341 = vmatmul.mubr.msk.bf16.gmra.mxu0 %vm1252_vm9, %v5849_v25  ;;  %v2629_v25 = vrot.slane %v2628_v30, 4  ;;  %v7473_v37 = vrot.slane %v2679_v22, 5  ;;  %v2683_v34 = vshrl.u32 %v7447_v60, 16  ;;  %9362 = vst [vmem:[#allocation10_spill] sm:$0xff] %v7480_v33  ;;  %v2694_v16 = vshrl.u32 %v2582_v54, 16 }
  0xd6   : > { %6344 = vmatprep.mubr.msk.bf16.mxu0 %vm1252_vm9, %v5850_v15  ;;  %v2697_v56 = vshll.u32 %v2582_v54, 16  ;;  %v2652_v30 = vor.u32 %v2651_v48, %v2648_v42  ;;  %v2662_v59 = vor.u32 %v2661_v17, %v7464_v9  ;;  %v2703_v26 = vshll.u32 %v7461_v19, 16  ;;  %v2585_v22 = vld [vmem:[#allocation2 + $0x3c] sm:$0xf] }
  0xd7   : > { %v2685_v7 = vrot.slane %v2683_v34, 4  ;;  %v9364_v32 = vcombine.low %v7327_v50, %v7289_v43  ;;  %v2676_v54 = vor.u32 %v2675_v39, %v2672_v20  ;;  %v2689_v15 = vshll.u32 %v7471_v0, 16  ;;  %v2588_v39 = vld [vmem:[#allocation2 + $0x48] sm:$0xf] }
  0xd8   : > { %v2696_v52 = vrot.slane %v2694_v16, 4  ;;  %v2699_v3 = vrot.slane %v2697_v56, 5  ;;  %v7496_v48 = vrot.slane %v2703_v26, 5  ;;  %v2707_v17 = vshrl.u32 %v7461_v19, 16 }
  0xd9   : > { %v2686_v42 = vor.u32 %v2685_v7, %v7473_v37  ;;  %v2634_v43 = vsel %vm6793_vm12, %v2629_v25, %v7414_v36  ;;  %v2718_v34 = vshrl.u32 %v2585_v22, 16  ;;  %v2721_v20 = vshll.u32 %v2585_v22, 16  ;;  %v7512_v25 = vld [vmem:[#allocation2 + $0x4c] sm:$0xf] }
  0xda   : > { %6303 = vmatmul.mubr.msk.bf16.gmra.mxu1 %vm1252_vm9, %v5799_v57  ;;  %v2667_v57 = vrot.slane %v2665_v8, 5  ;;  %v2700_v50 = vor.u32 %v2699_v3, %v2696_v52  ;;  %v2653_v8 = vrot.slane %v2652_v30, 4  ;;  %v2709_v16 = vrot.slane %v2707_v17, 4 }
  0xdb   : > { %6306 = vmatprep.mubr.msk.bf16.mxu1 %vm1252_vm9, %v9364_v32  ;;  %v9365_v32 = vcombine.low %v7355_v46, %v7372_v62  ;;  %v2713_v56 = vshll.u32 %v7480_v33, 16  ;;  %v2727_v7 = vshll.u32 %v7488_v38, 16  ;;  %v2677_v26 = vrot.slane %v2676_v54, 4 }
  0xdc   : > { %v2691_v21 = vrot.slane %v2689_v15, 5  ;;  %v2731_v36 = vshrl.u32 %v7488_v38, 16  ;;  %v2644_v46 = vsel %vm6793_vm12, %v2639_v12, %v7459_v31  ;;  %v2687_v62 = vrot.slane %v2686_v42, 4 }
  0xdd   : > { %6345 = vmatmul.mubr.msk.bf16.gmra.mxu0 %vm1252_vm9, %v5851_v44  ;;  %v2663_v44 = vrot.slane %v2662_v59, 4  ;;  %v2701_v30 = vrot.slane %v2700_v50, 4  ;;  %v2710_v22 = vor.u32 %v2709_v16, %v7496_v48  ;;  %v2720_v52 = vrot.slane %v2718_v34, 4  ;;  %v2594_v16 = vld [vmem:[#allocation2 + $0x60] sm:$0xf] }
  0xde   : > { %6348 = vmatprep.mubr.msk.bf16.mxu0 %vm1252_vm9, %v9365_v32  ;;  %v2723_v3 = vrot.slane %v2721_v20, 5  ;;  %v7518_v17 = vrot.slane %v2727_v7, 5  ;;  %v2733_v59 = vrot.slane %v2731_v36, 4  ;;  %v9366_v15 = vcombine.low %v7348_v2, %v7300_v63  ;;  %v2591_v2 = vld [vmem:[#allocation2 + $0x54] sm:$0xf] }
  0xdf   : > { %v2711_v54 = vrot.slane %v2710_v22, 4  ;;  %v2715_v32 = vrot.slane %v2713_v56, 5  ;;  %v2742_v38 = vshrl.u32 %v2588_v39, 16  ;;  %v2745_v33 = vshll.u32 %v2588_v39, 16 }
  0xe0   : > { %v9367_v31 = vcombine.low %v7423_v10, %v7317_v53  ;;  %v5904_v12 = vcombine.low %v2634_v43, %v2644_v46  ;;  %v7530_v42 = vsel %vm1301_vm4, %v7239_v18, 0  ;;  %v2751_v50 = vshll.u32 %v7512_v25, 16  ;;  %v7543_v18 = vld [vmem:[#allocation2 + $0x58] sm:$0xf] }
  0xe1   : > { %v2755_v63 = vshrl.u32 %v7512_v25, 16  ;;  %v2658_v34 = vsel %vm6793_vm12, %v2653_v8, %v7464_v9  ;;  %v2668_v20 = vsel %vm6793_vm12, %v2663_v44, %v2667_v57  ;;  %v2682_v53 = vsel %vm6793_vm12, %v2677_v26, %v7473_v37  ;;  %v7555_v37 = vld [vmem:[#allocation2 + $0x50] sm:$0x1] }
  0xe2   : > { %6307 = vmatmul.mubr.msk.bf16.gmra.mxu1 %vm1252_vm9, %v9366_v15  ;;  %v2737_v10 = vshll.u32 %v7509_v51, 16  ;;  %v9368_v43 = vcombine.low %v7360_v28, %v7384_v41  ;;  %v2692_v39 = vsel %vm6793_vm12, %v2687_v62, %v2691_v21  ;;  %v2706_v9 = vsel %vm6793_vm12, %v2701_v30, %v7496_v48 }
  0xe3   : > { %6310 = vmatprep.mubr.msk.bf16.mxu1 %vm1252_vm9, %v9367_v31  ;;  %v2724_v57 = vor.u32 %v2723_v3, %v2720_v52  ;;  %v2734_v8 = vor.u32 %v2733_v59, %v7518_v17  ;;  %v9369_v56 = vcombine.low %v7441_v11, %v7451_v4  ;;  %v2716_v28 = vsel %vm6793_vm12, %v2711_v54, %v2715_v32  ;;  %v7573_v4 = vld [vmem:[#allocation2 + $0x64] sm:$0xf]  ;;  %v7582_v3 = vld [vmem:[#allocation2 + $0x5c] sm:$0x1] }
  0xe4   : > { %v2744_v41 = vrot.slane %v2742_v38, 4  ;;  %v2747_v21 = vrot.slane %v2745_v33, 5  ;;  %v2766_v7 = vshrl.u32 %v2591_v2, 16  ;;  %v7563_v44 = vrot.slane %v2751_v50, 5  ;;  %v2597_v50 = vld [vmem:[#allocation2 + $0x6c] sm:$0xf] }
  0xe5   : > { %6349 = vmatmul.mubr.msk.bf16.gmra.mxu0 %vm1252_vm9, %v9368_v43  ;;  %v2757_v48 = vrot.slane %v2755_v63, 4  ;;  %v2769_v26 = vshll.u32 %v2591_v2, 16  ;;  %v2775_v36 = vshll.u32 %v7543_v18, 16  ;;  %v7566_v46 = vcombine.low %v2658_v34, %v2668_v20 }
  0xe6   : > { %6352 = vmatprep.mubr.msk.bf16.mxu0 %vm1252_vm9, %v9369_v56  ;;  %v7568_v62 = vcombine.low %v2682_v53, %v2692_v39  ;;  %v7570_v30 = vrot.slane %v2737_v10, 5  ;;  %v2779_v11 = vshrl.u32 %v7543_v18, 16  ;;  %v7575_v22 = vcombine.low %v2706_v9, %v2716_v28  ;;  %v7595_v53 = vld [vmem:[#allocation2 + $0x68] sm:$0x1]  ;;  %v7599_v9 = vld [vmem:[#allocation2 + $0x70] sm:$0xf] }
  0xe7   : > { %v7577_v38 = vrot.slane %v2724_v57, 4  ;;  %v7579_v33 = vrot.slane %v2734_v8, 4  ;;  %v2761_v52 = vshll.u32 %v7555_v37, 16  ;;  %v9370_v59 = vcombine.low %v7433_v23, %v7435_v27  ;;  %v7617_v56 = vld [vmem:[#allocation2 + $0x74] sm:$0x1] }
  0xe8   : > { %v2768_v15 = vrot.slane %v2766_v7, 4  ;;  %v2771_v54 = vrot.slane %v2769_v26, 5  ;;  %v2790_v32 = vshrl.u32 %v2594_v16, 16  ;;  %v2793_v31 = vshll.u32 %v2594_v16, 16  ;;  %v2600_v26 = vld [vmem:[#allocation2 + $0x78] sm:$0xf] }
  0xe9   : > { %v9371_v63 = vcombine.low %v7062_v55, %v7071_v5  ;;  %v2748_v2 = vor.u32 %v2747_v21, %v2744_v41  ;;  %v2758_v34 = vor.u32 %v2757_v48, %v7563_v44  ;;  %v7593_v20 = vrot.slane %v2775_v36, 5 }
  0xea   : > { %6311 = vmatmul.mubr.msk.bf16.gmra.mxu1 %vm1252_vm9, %v9370_v59  ;;  %v2799_v23 = vshll.u32 %v7573_v4, 16  ;;  %v2781_v27 = vrot.slane %v2779_v11, 4  ;;  %v2792_v10 = vrot.slane %v2790_v32, 4  ;;  %v2795_v43 = vrot.slane %v2793_v31, 5 }
  0xeb   : > { %6314 = vmatprep.mubr.msk.bf16.mxu1 %vm1252_vm9, %v9371_v63  ;;  %v2803_v39 = vshrl.u32 %v7573_v4, 16  ;;  %v9372_v55 = vcombine.low %v7445_v40, %v7455_v45  ;;  %v2730_v5 = vsel %vm6793_vm12, %v7577_v38, %v7518_v17  ;;  %v2740_v57 = vsel %vm6793_vm12, %v7579_v33, %v7570_v30  ;;  %v7629_v38 = vld [vmem:[#allocation2 + $0x7c] sm:$0xf]  ;;  %v7643_v63 = vld [vmem:[#allocation2 + $0x80] sm:$0x1] }
  0xec   : > { %v7613_v8 = vrot.slane %v2761_v52, 5  ;;  %v7615_v16 = vrot.slane %v2799_v23, 5  ;;  %v2772_v40 = vor.u32 %v2771_v54, %v2768_v15  ;;  %v2785_v45 = vshll.u32 %v7582_v3, 16 }
  0xed   : > { %6353 = vmatmul.mubr.msk.bf16.gmra.mxu0 %vm1252_vm9, %v9372_v55  ;;  %v2805_v28 = vrot.slane %v2803_v39, 4  ;;  %v2814_v41 = vshrl.u32 %v2597_v50, 16  ;;  %v7621_v21 = vrot.slane %v2748_v2, 4  ;;  %v7623_v17 = vrot.slane %v2758_v34, 4 }
  0xee   : > { %6392 = vmatprep.mubr.msk.bf16.mxu0 %vm1252_vm9, %v5904_v12  ;;  %v2817_v7 = vshll.u32 %v2597_v50, 16  ;;  %v2823_v48 = vshll.u32 %v7599_v9, 16  ;;  %v2782_v36 = vor.u32 %v2781_v27, %v7593_v20  ;;  %v2796_v30 = vor.u32 %v2795_v43, %v2792_v10 }
  0xef   : > { %v2806_v11 = vor.u32 %v2805_v28, %v7615_v16  ;;  %v2809_v12 = vshll.u32 %v7595_v53, 16  ;;  %v2816_v33 = vrot.slane %v2814_v41, 4  ;;  %v2827_v15 = vshrl.u32 %v7599_v9, 16 }
  0xf0   : > { %v2819_v52 = vrot.slane %v2817_v7, 5  ;;  %v7631_v59 = vrot.slane %v2823_v48, 5  ;;  %v9373_v54 = vcombine.low %v7088_v49, %v7097_v61  ;;  %v7638_v32 = vrot.slane %v2772_v40, 4  ;;  %v2603_v61 = vld [vmem:[#allocation2 + $0x84] sm:$0xf] }
  0xf1   : > { %v7640_v31 = vrot.slane %v2785_v45, 5  ;;  %v2833_v50 = vshll.u32 %v7617_v56, 16  ;;  %v2838_v2 = vshrl.u32 %v2600_v26, 16  ;;  %v9374_v34 = vcombine.low %v7192_v58, %v7194_v29  ;;  %v7651_v45 = vld [vmem:[#allocation3 + $0x20] sm:$0xf] }
  0xf2   : > { %6315 = vmatmul.mubr.msk.bf16.gmra.mxu1 %vm1252_vm9, %v9373_v54  ;;  %v2820_v23 = vor.u32 %v2819_v52, %v2816_v33  ;;  %v2829_v27 = vrot.slane %v2827_v15, 4  ;;  %v2841_v10 = vshll.u32 %v2600_v26, 16  ;;  %v2847_v49 = vshll.u32 %v7629_v38, 16  ;;  %9375 = vst [vmem:[#allocation12_spill] sm:$0xff] %v7651_v45  ;;  %v7656_v7 = vld [vmem:[#allocation2 + $0x88] sm:$0xf] }
  0xf3   : > { %6318 = vmatprep.mubr.msk.bf16.mxu1 %vm1252_vm9, %v9374_v34  ;;  %v2783_v43 = vrot.slane %v2782_v36, 4  ;;  %v2797_v39 = vrot.slane %v2796_v30, 4  ;;  %v2840_v55 = vrot.slane %v2838_v2, 4  ;;  %v2851_v40 = vshrl.u32 %v7629_v38, 16  ;;  %v6595_v33 = vld [vmem:[#allocation2 + $0xc] sm:$0xff]  }
  0xf4   : > { %v2807_v28 = vrot.slane %v2806_v11, 4  ;;  %v2811_v58 = vrot.slane %v2809_v12, 5  ;;  %v2830_v29 = vor.u32 %v2829_v27, %v7631_v59  ;;  %v2843_v41 = vrot.slane %v2841_v10, 5 }
  0xf5   : > { %6393 = vmatmul.mubr.msk.bf16.vlgmr.msra.gmra.mxu0 %vm1252_vm9, %v7566_v46  ;;  %v2835_v48 = vrot.slane %v2833_v50, 5  ;;  %v7661_v26 = vrot.slane %v2847_v49, 5  ;;  %v2853_v36 = vrot.slane %v2851_v40, 4  ;;  %v2862_v30 = vshrl.u32 %v2603_v61, 16 }
  0xf6   : > { %6459 = vmatpush3.bf16.msra.mxu0 %v7530_v42  ;;  %6396 = vmatprep.mubr.msk.bf16.mxu0 %vm1252_vm9, %v7568_v62  ;;  %v2821_v52 = vrot.slane %v2820_v23, 4  ;;  %v2831_v46 = vrot.slane %v2830_v29, 4  ;;  %v2857_v11 = vshll.u32 %v7643_v63, 16  ;;  %v2865_v12 = vshll.u32 %v2603_v61, 16 }
  0xf7   : > { %6571 = vmatprep.subr.msk.bf16.mxu0 %vm1301_vm4, %v7651_v45  ;;  %v5908_v15 = vcombine.low %v2730_v5, %v2740_v57  ;;  %v2844_v54 = vor.u32 %v2843_v41, %v2840_v55  ;;  %v2854_v42 = vor.u32 %v2853_v36, %v7661_v26  ;;  %v2871_v62 = vshll.u32 %v7656_v7, 16 }
  0xf8   : > { %v2754_v50 = vsel %vm6793_vm12, %v7621_v21, %v7563_v44  ;;  %v2864_v2 = vrot.slane %v2862_v30, 4  ;;  %v2867_v34 = vrot.slane %v2865_v12, 5  ;;  %v2875_v23 = vshrl.u32 %v7656_v7, 16  ;;  %v6597_v30 = vld [vmem:[#allocation2 + $0x24] sm:$0xff]  }
  0xf9   : > { %v9376_v27 = vcombine.low %v7216_v24, %v7220_v14  ;;  %v2764_v5 = vsel %vm6793_vm12, %v7623_v17, %v7613_v8  ;;  %v2778_v57 = vsel %vm6793_vm12, %v7638_v32, %v7593_v20  ;;  %v2788_v44 = vsel %vm6793_vm12, %v2783_v43, %v7640_v31  ;;  %v2606_v24 = vld [vmem:[#allocation2 + $0x90] sm:$0xf]  ;;  %v7699_v32 = vld [vmem:[#allocation2 + $0x8c] sm:$0x1]  ;;  %v7701_v31 = vld [vmem:[#allocation2 + $0x94] sm:$0xf] }
  0xfa   : > { %v2802_v14 = vsel %vm6793_vm12, %v2797_v39, %v7615_v16  ;;  %v2812_v21 = vsel %vm6793_vm12, %v2807_v28, %v2811_v58  ;;  %v2826_v8 = vsel %vm6793_vm12, %v2821_v52, %v7631_v59  ;;  %v2836_v20 = vsel %vm6793_vm12, %v2831_v46, %v2835_v48  ;;  %v2609_v43 = vld [vmem:[#allocation2 + $0x9c] sm:$0xf]  ;;  %v7707_v28 = vld [vmem:[#allocation2 + $0xa0] sm:$0xf]  ;;  %v7717_v52 = vld [vmem:[#allocation2 + $0x98] sm:$0x1] }
  0xfb   : > { %6319 = vmatmul.mubr.msk.bf16.gmra.mxu1 %vm1252_vm9, %v9376_v27  ;;  %v2859_v17 = vrot.slane %v2857_v11, 5  ;;  %v2845_v10 = vrot.slane %v2844_v54, 4  ;;  %v2855_v16 = vrot.slane %v2854_v42, 4  ;;  %v7703_v49 = vrot.slane %v2871_v62, 5  ;;  %v6596_v58 = vld [vmem:[#allocation2 + $0x18] sm:$0xff]  }
  0xfc   : > { %6358 = vmatprep.mubr.msk.bf16.mxu1 %vm1252_vm9, %v6595_v33  ;;  %v2877_v61 = vrot.slane %v2875_v23, 4  ;;  %v5909_v39 = vcombine.low %v2754_v50, %v2764_v5  ;;  %v2868_v55 = vor.u32 %v2867_v34, %v2864_v2  ;;  %v2886_v59 = vshrl.u32 %v2606_v24, 16  ;;  %v2612_v62 = vld [vmem:[#allocation2 + $0xa8] sm:$0xf]  ;;  %v7726_v50 = vld [vmem:[#allocation2 + $0xac] sm:$0xf] }
  0xfd   : > { %6397 = vmatmul.mubr.msk.bf16.gmra.mxu0 %vm1252_vm9, %v7575_v22  ;;  %v2889_v40 = vshll.u32 %v2606_v24, 16  ;;  %v5910_v29 = vcombine.low %v2778_v57, %v2788_v44  ;;  %v7710_v41 = vcombine.low %v2802_v14, %v2812_v21  ;;  %v2895_v48 = vshll.u32 %v7701_v31, 16  ;;  %v7731_v5 = vld [vmem:[#allocation3 + $0x1c] sm:$0xf] }
  0xfe   : > { %6400 = vmatprep.mubr.msk.bf16.mxu0 %vm1252_vm9, %v5908_v15  ;;  %v2899_v36 = vshrl.u32 %v7701_v31, 16  ;;  %v7714_v33 = vcombine.low %v2826_v8, %v2836_v20  ;;  %v2881_v22 = vshll.u32 %v7699_v32, 16  ;;  %v2910_v46 = vshrl.u32 %v2609_v43, 16  ;;  %9377 = vst [vmem:[#allocation13_spill] sm:$0xff] %v7731_v5 }
  0xff   : > { %v2913_v11 = vshll.u32 %v2609_v43, 16  ;;  %v2850_v12 = vsel %vm6793_vm12, %v2845_v10, %v7661_v26  ;;  %v2860_v15 = vsel %vm6793_vm12, %v2855_v16, %v2859_v17  ;;  %v2878_v54 = vor.u32 %v2877_v61, %v7703_v49  ;;  %v7745_v16 = vld [vmem:[#allocation2 + $0xa4] sm:$0x1] }
 0x100   : > { %v2919_v42 = vshll.u32 %v7707_v28, 16  ;;  %v7728_v2 = vrot.slane %v2868_v55, 4  ;;  %v2888_v34 = vrot.slane %v2886_v59, 4  ;;  %v2891_v23 = vrot.slane %v2889_v40, 5  ;;  %v7757_v40 = vld [vmem:[#allocation2 + $0xb0] sm:$0x1] }
 0x101   : > { %v2923_v27 = vshrl.u32 %v7707_v28, 16  ;;  %v7734_v26 = vrot.slane %v2895_v48, 5  ;;  %v2901_v57 = vrot.slane %v2899_v36, 4  ;;  %v2905_v44 = vshll.u32 %v7717_v52, 16  ;;  %9378 = vst [vmem:[#allocation14_spill] sm:$0xff] %v7757_v40  ;;  %v6598_v36 = vld [vmem:[#allocation2 + $0x30] sm:$0xff]  }
 0x102   : > { %v2912_v14 = vrot.slane %v2910_v46, 4  ;;  %v2915_v24 = vrot.slane %v2913_v11, 5  ;;  %v7739_v21 = vrot.slane %v2919_v42, 5  ;;  %v2934_v20 = vshrl.u32 %v2612_v62, 16  ;;  %v2615_v48 = vld [vmem:[#allocation2 + $0xb4] sm:$0xf] }
 0x103   : > { %6359 = vmatmul.mubr.msk.bf16.vlgmr.msra.gmra.mxu1 %vm1252_vm9, %v6596_v58  ;;  %v2925_v8 = vrot.slane %v2923_v27, 4  ;;  %v7741_v17 = vrot.slane %v2878_v54, 4  ;;  %v7743_v10 = vrot.slane %v2881_v22, 5  ;;  %v2937_v61 = vshll.u32 %v2612_v62, 16  ;;  %v7764_v11 = vld [vmem:[#allocation2 + $0xb8] sm:$0xf] }
 0x104   : > { %6425 = vmatpush3.bf16.msra.mxu1 %v7469_v47  ;;  %6362 = vmatprep.mubr.msk.bf16.mxu1 %vm1252_vm9, %v6597_v30  ;;  %v2943_v43 = vshll.u32 %v7726_v50, 16  ;;  %v7751_v47 = vcombine.low %v2850_v12, %v2860_v15  ;;  %v2892_v59 = vor.u32 %v2891_v23, %v2888_v34  ;;  %v2936_v58 = vrot.slane %v2934_v20, 4  ;;  %9379 = vst [vmem:[#allocation15_spill] sm:$0xff] %v7764_v11  ;;  %v6599_v12 = vld [vmem:[#allocation2 + $0x3c] sm:$0xff]  }
 0x105   : > { %6570 = vmatprep.subr.msk.bf16.mxu1 %vm1301_vm4, %v7731_v5  ;;  %6401 = vmatmul.mubr.msk.bf16.gmra.mxu0 %vm1252_vm9, %v5909_v39  ;;  %v2902_v30 = vor.u32 %v2901_v57, %v7734_v26  ;;  %v2939_v22 = vrot.slane %v2937_v61, 5  ;;  %v2947_v39 = vshrl.u32 %v7726_v50, 16  ;;  %v7766_v15 = vrot.slane %v2905_v44, 5  ;;  %v245_v57 = vld [vmem:[#allocation2 + $0xc0] sm:$0x1] }
 0x106   : > { %6404 = vmatprep.mubr.msk.bf16.mxu0 %vm1252_vm9, %v5910_v29  ;;  %v7761_v46 = vrot.slane %v2943_v43, 5  ;;  %v2916_v54 = vor.u32 %v2915_v24, %v2912_v14  ;;  %v2926_v42 = vor.u32 %v2925_v8, %v7739_v21  ;;  %v2929_v62 = vshll.u32 %v7745_v16, 16  ;;  %v295_v8 = vld [vmem:[#allocation2 + $0xc8] sm:$0x1]  ;;  %v329_v5 = vld [vmem:[%s6760_s25 + $0x7c] sm:$0xf] }
 0x107   : > { %v2884_v29 = vsel %vm6793_vm12, %v7741_v17, %v7743_v10  ;;  %v2949_v34 = vrot.slane %v2947_v39, 4  ;;  %v2958_v23 = vshrl.u32 %v2615_v48, 16  ;;  %v2961_v27 = vshll.u32 %v2615_v48, 16  ;;  %v328_v10 = vld [vmem:[%s6760_s25 + $0x78] sm:$0xf] }
 0x108   : > { %v2940_v20 = vor.u32 %v2939_v22, %v2936_v58  ;;  %v2953_v44 = vshll.u32 %v7757_v40, 16  ;;  %v2967_v14 = vshll.u32 %v7764_v11, 16  ;;  %v2971_v24 = vshrl.u32 %v7764_v11, 16 }
 0x109   : > { %v2893_v61 = vrot.slane %v2892_v59, 4  ;;  %v2903_v43 = vrot.slane %v2902_v30, 4  ;;  %v2950_v55 = vor.u32 %v2949_v34, %v7761_v46  ;;  %v2960_v17 = vrot.slane %v2958_v23, 4 }
 0x10a   : > { %v2917_v48 = vrot.slane %v2916_v54, 4  ;;  %v2927_v58 = vrot.slane %v2926_v42, 4  ;;  %v2931_v22 = vrot.slane %v2929_v62, 5  ;;  %v2963_v39 = vrot.slane %v2961_v27, 5  ;;  %v7790_v54 = vld [vmem:[#allocation2 + $0xbc] sm:$0x1] }
 0x10b   : > { %6363 = vmatmul.mubr.msk.bf16.gmra.mxu1 %vm1252_vm9, %v6598_v36  ;;  %v7782_v45 = vrot.slane %v2967_v14, 5  ;;  %v2973_v40 = vrot.slane %v2971_v24, 4  ;;  %v246_v11 = vsel %vm6747_vm5, 0, %v245_v57  ;;  %v296_v59 = vsel %vm6752_vm6, 0, %v295_v8  ;;  %v6600_v62 = vld [vmem:[#allocation2 + $0x48] sm:$0xff]   ;;  %v6601_v24 = vld [vmem:[#allocation2 + $0x54] sm:$0xff]  }
 0x10c   : > { %6366 = vmatprep.mubr.msk.bf16.mxu1 %vm1252_vm9, %v6599_v12  ;;  %v2941_v30 = vrot.slane %v2940_v20, 4  ;;  %v2951_v34 = vrot.slane %v2950_v55, 4  ;;  %v2955_v12 = vrot.slane %v2953_v44, 5  ;;  %247 = vst [vmem:[#allocation2 + $0xc0] sm:$0x1] %v246_v11  ;;  %v588_v42 = vshrl.u32 %v328_v10, 16 }
 0x10d   : > { %6405 = vmatmul.mubr.msk.bf16.gmra.mxu0 %vm1252_vm9, %v7710_v41  ;;  %297 = vst [vmem:[#allocation2 + $0xc8] sm:$0x1] %v296_v59  ;;  %v2964_v23 = vor.u32 %v2963_v39, %v2960_v17  ;;  %v591_v27 = vshll.u32 %v328_v10, 16  ;;  %v596_v57 = vshrl.u32 %v329_v5, 16  ;;  %v599_v14 = vshll.u32 %v329_v5, 16 }
 0x10e   : > { %6408 = vmatprep.mubr.msk.bf16.mxu0 %vm1252_vm9, %v7714_v33  ;;  %v2898_v41 = vsel %vm6793_vm12, %v2893_v61, %v7734_v26  ;;  %v2908_v55 = vsel %vm6793_vm12, %v2903_v43, %v7766_v15  ;;  %v2922_v11 = vsel %vm6793_vm12, %v2917_v48, %v7739_v21  ;;  %v590_v20 = vrot.slane %v588_v42, 7  ;;  %v3301_v39 = vld [vmem:[#allocation2 + $0x24] sm:$0xe]  ;;  %v3302_v36 = vld [vmem:[#allocation2 + $0x30] sm:$0xe] }
 0x10f   : > { %v2932_v33 = vsel %vm6793_vm12, %v2927_v58, %v2931_v22  ;;  %v2974_v44 = vor.u32 %v2973_v40, %v7782_v45  ;;  %v2977_v5 = vshll.u32 %v7790_v54, 16  ;;  %v598_v8 = vrot.slane %v596_v57, 7  ;;  %v7818_v58 = vld [vmem:[#allocation2 + $0xc] sm:$0xe] }
 0x110   : > { %v2946_v26 = vsel %vm6793_vm12, %v2941_v30, %v7761_v46  ;;  %v2956_v15 = vsel %vm6793_vm12, %v2951_v34, %v2955_v12  ;;  %v593_v61 = vor.u32 %v591_v27, %v590_v20  ;;  %v594_v43 = vrot.slane %v590_v20, 4 }
 0x111   : > { %v9381_v21 = vsel %vm6793_vm12, %v7728_v2, %v7703_v49  ;;  %v2965_v17 = vrot.slane %v2964_v23, 4  ;;  %v601_v10 = vor.u32 %v599_v14, %v598_v8  ;;  %v603_v48 = vrot.slane %v598_v8, 4  ;;  %v3303_v14 = vld [vmem:[#allocation2 + $0x3c] sm:$0xe] }
 0x112   : > { %v5914_v40 = vcombine.low %v9381_v21, %v2884_v29  ;;  %v5915_v46 = vcombine.low %v2898_v41, %v2908_v55  ;;  %v7821_v22 = vcombine.low %v2922_v11, %v2932_v33  ;;  %v7823_v59 = vcombine.low %v2946_v26, %v2956_v15  ;;  %v6603_v41 = vld [vmem:[#allocation2 + $0x6c] sm:$0xff]   ;;  %v3304_v26 = vld [vmem:[#allocation2 + $0x48] sm:$0xe] }
 0x113   : > { %6367 = vmatmul.mubr.msk.bf16.gmra.mxu1 %vm1252_vm9, %v6600_v62  ;;  %v2975_v30 = vrot.slane %v2974_v44, 4  ;;  %v2979_v34 = vrot.slane %v2977_v5, 5  ;;  %v602_v49 = vsel %vm6802_vm13, %v594_v43, %v601_v10  ;;  %v759_v2 = vld [vmem:[#allocation2 + $0xc0] sm:$0xf]  ;;  %v5936_v27 = vrot.slane %v7818_v58, 9 }
 0x114   : > { %6370 = vmatprep.mubr.msk.bf16.mxu1 %vm1252_vm9, %v6601_v24  ;;  %v763_v29 = vld [vmem:[#allocation2 + $0xc8] sm:$0x1]  ;;  %v760_v62 = vsel %vm6784_vm11, %v593_v61, %v759_v2  ;;  %762 = vst.msk [vmem:[#allocation2 + $0xc4] sm:$0xf] %vm187_vm0, %v602_v49  ;;  %v3365_v57 = vrot.slane %v7388_v13, 5  ;;  %v6602_v24 = vld [vmem:[#allocation2 + $0x60] sm:$0xff]  }
 0x115   : > { %6409 = vmatmul.mubr.msk.bf16.gmra.mxu0 %vm1252_vm9, %v7751_v47  ;;  %v764_v23 = vsel %vm6747_vm5, %v603_v48, %v763_v29  ;;  %v2970_v47 = vsel %vm6793_vm12, %v2965_v17, %v7782_v45  ;;  %761 = vst [vmem:[#allocation2 + $0xc0] sm:$0xf] %v760_v62  ;;  %v3368_v55 = vrot.slane %v7400_v6, 5  ;;  %v5938_v11 = vrot.slane %v3301_v39, 9  ;;  %v9384_v5 = vld [vmem:[#allocation10_spill] sm:$0xff] }
 0x116   : > { %6412 = vmatprep.mubr.msk.bf16.mxu0 %vm1252_vm9, %v5914_v40  ;;  %765 = vst [vmem:[#allocation2 + $0xc8] sm:$0x1] %v764_v23  ;;  %v3379_v1 = vrot.slane %v7447_v60, 5  ;;  %v3382_v20 = vrot.slane %v7471_v0, 5  ;;  %v5939_v33 = vrot.slane %v3302_v36, 9  ;;  %v3386_v44 = vrot.slane %v7461_v19, 5 }
 0x117   : > { %v3389_v8 = vrot.slane %v9384_v5, 5  ;;  %v2980_v15 = vsel %vm6793_vm12, %v2975_v30, %v2979_v34  ;;  %v5940_v21 = vrot.slane %v3303_v14, 9  ;;  %v7853_v60 = vrot.slane %v3365_v57, 4  ;;  %v9386_v40 = vld [vmem:[#allocation11_spill] sm:$0xff]  ;;  %v3305_v2 = vld [vmem:[#allocation2 + $0x54] sm:$0xe] }
 0x118   : > { %v7849_v45 = vsel %vm7180_vm1, %v5938_v11, %v3379_v1  ;;  %v3381_v43 = vrot.slane %v3379_v1, 4  ;;  %v7857_v0 = vsel %vm7180_vm1, %v5939_v33, %v3386_v44  ;;  %v3388_v19 = vrot.slane %v3386_v44, 4  ;;  %v3306_v23 = vld [vmem:[#allocation2 + $0x60] sm:$0xe] }
 0x119   : > { %v3393_v17 = vrot.slane %v9386_v40, 5  ;;  %v3396_v48 = vrot.slane %v7509_v51, 5  ;;  %v5941_v39 = vrot.slane %v3304_v26, 9  ;;  %v3400_v36 = vrot.slane %v7512_v25, 5 }
 0x11a   : > { %v7863_v10 = vsel %vm7180_vm1, %v3381_v43, %v3382_v20  ;;  %v7872_v34 = vsel %vm7180_vm1, %v3388_v19, %v3389_v8  ;;  %v5918_v29 = vcombine.low %v2970_v47, %v2980_v15  ;;  %v3403_v62 = vrot.slane %v7555_v37, 5  ;;  %v3307_v20 = vld [vmem:[#allocation2 + $0x6c] sm:$0xe]  ;;  %v6604_v37 = vld [vmem:[#allocation2 + $0x78] sm:$0xff]   ;;  %v6605_v8 = vld [vmem:[#allocation2 + $0x84] sm:$0xff]  }
 0x11b   : > { %6371 = vmatmul.mubr.msk.bf16.gmra.mxu1 %vm1252_vm9, %v6602_v24  ;;  %v5954_v30 = vcombine.low %v7849_v45, %v7863_v10  ;;  %v7876_v12 = vsel %vm7180_vm1, %v5940_v21, %v3393_v17  ;;  %v3395_v49 = vrot.slane %v3393_v17, 4  ;;  %v7878_v51 = vld [vmem:[#allocation2 + $0xc4] sm:$0xf]  ;;  %v5955_v25 = vcombine.low %v7857_v0, %v7872_v34 }
 0x11c   : > { %6374 = vmatprep.mubr.msk.bf16.mxu1 %vm1252_vm9, %v6603_v41  ;;  %v3402_v42 = vrot.slane %v3400_v36, 4  ;;  %v2618_v14 = vld [vmem:[#allocation2 + $0xc0] sm:$0xf]  ;;  %v2991_v41 = vshll.u32 %v7878_v51, 16  ;;  %v2995_v11 = vshrl.u32 %v7878_v51, 16  ;;  %v7894_v1 = vsel %vm7180_vm1, %v5941_v39, %v3400_v36 }
 0x11d   : > { %6413 = vmatmul.mubr.msk.bf16.gmra.mxu0 %vm1252_vm9, %v5915_v46  ;;  %v7884_v24 = vld [vmem:[#allocation2 + $0xc8] sm:$0x1]  ;;  %v7890_v47 = vsel %vm7180_vm1, %v3395_v49, %v3396_v48  ;;  %v2982_v46 = vshrl.u32 %v2618_v14, 16  ;;  %v2985_v33 = vshll.u32 %v2618_v14, 16  ;;  %v5942_v21 = vrot.slane %v3305_v2, 9  ;;  %v6610_v58 = vld [vmem:[#allocation2 + $0xc0] sm:$0xff]  }
 0x11e   : > { %6416 = vmatprep.mubr.msk.bf16.mxu0 %vm1252_vm9, %v7821_v22  ;;  %v3001_v44 = vshll.u32 %v7884_v24, 16  ;;  %v5956_v5 = vcombine.low %v7876_v12, %v7890_v47  ;;  %v2993_v26 = vrot.slane %v2991_v41, 5  ;;  %v2997_v15 = vrot.slane %v2995_v11, 4 }
 0x11f   : > { %v7903_v43 = vsel %vm7180_vm1, %v3402_v42, %v3403_v62  ;;  %v2984_v19 = vrot.slane %v2982_v46, 4  ;;  %v2987_v40 = vrot.slane %v2985_v33, 5  ;;  %v3407_v39 = vrot.slane %v7543_v18, 5 }
 0x120   : > { %v3003_v17 = vrot.slane %v3001_v44, 5  ;;  %v2998_v48 = vor.u32 %v2997_v15, %v2993_v26  ;;  %v3410_v36 = vrot.slane %v7582_v3, 5  ;;  %v5943_v49 = vrot.slane %v3306_v23, 9  ;;  %v3308_v3 = vld [vmem:[#allocation2 + $0x78] sm:$0xe]  ;;  %v6606_v15 = vld [vmem:[#allocation2 + $0x90] sm:$0xff]  }
 0x121   : > { %v2988_v14 = vor.u32 %v2987_v40, %v2984_v19  ;;  %v3414_v41 = vrot.slane %v7573_v4, 5  ;;  %v3417_v42 = vrot.slane %v7595_v53, 5  ;;  %v5944_v2 = vrot.slane %v3307_v20, 9  ;;  %v3310_v40 = vld [vmem:[#allocation2 + $0x90] sm:$0xe] }
 0x122   : > { %v2999_v62 = vrot.slane %v2998_v48, 4  ;;  %v7915_v11 = vsel %vm7180_vm1, %v5942_v21, %v3407_v39  ;;  %v3409_v46 = vrot.slane %v3407_v39, 4  ;;  %v3421_v18 = vrot.slane %v7599_v9, 5 }
 0x123   : > { %6375 = vmatmul.mubr.msk.bf16.gmra.mxu1 %vm1252_vm9, %v6604_v37  ;;  %v2989_v23 = vrot.slane %v2988_v14, 4  ;;  %v7920_v37 = vsel %vm7180_vm1, %v5943_v49, %v3414_v41  ;;  %v3416_v4 = vrot.slane %v3414_v41, 4  ;;  %v3424_v53 = vrot.slane %v7617_v56, 5 }
 0x124   : > { %6378 = vmatprep.mubr.msk.bf16.mxu1 %vm1252_vm9, %v6605_v8  ;;  %v3004_v20 = vsel %vm6793_vm12, %v2999_v62, %v3003_v17  ;;  %v7929_v33 = vsel %vm7180_vm1, %v3409_v46, %v3410_v36  ;;  %v7933_v9 = vsel %vm7180_vm1, %v5944_v2, %v3421_v18  ;;  %v3423_v44 = vrot.slane %v3421_v18, 4  ;;  %v3309_v8 = vld [vmem:[#allocation2 + $0x84] sm:$0xe]  ;;  %v6607_v17 = vld [vmem:[#allocation2 + $0x9c] sm:$0xff]  }
 0x125   : > { %6417 = vmatmul.mubr.msk.bf16.gmra.mxu0 %vm1252_vm9, %v7823_v59  ;;  %v2994_v56 = vsel %vm6793_vm12, %v2989_v23, %v2993_v26  ;;  %v7942_v21 = vsel %vm7180_vm1, %v3416_v4, %v3417_v42  ;;  %v5945_v19 = vrot.slane %v3308_v3, 9  ;;  %v3428_v26 = vrot.slane %v7629_v38, 5  ;;  %v3311_v42 = vld [vmem:[#allocation2 + $0x9c] sm:$0xe]  ;;  %v3312_v4 = vld [vmem:[#allocation2 + $0xa8] sm:$0xe] }
 0x126   : > { %6420 = vmatprep.mubr.msk.bf16.mxu0 %vm1252_vm9, %v5918_v29  ;;  %v5919_v48 = vcombine.low %v2994_v56, %v3004_v20  ;;  %v7948_v29 = vsel %vm7180_vm1, %v3423_v44, %v3424_v53  ;;  %v3431_v49 = vrot.slane %v7643_v63, 5  ;;  %v5946_v14 = vrot.slane %v3309_v8, 9  ;;  %v6611_v38 = vld [vmem:[#allocation2 + $0x18] sm:$0xff]   ;;  %v3313_v8 = vld [vmem:[#allocation2 + $0xb4] sm:$0xe]  ;;  %v6618_v59 = vld [vmem:[#allocation2 + $0x6c] sm:$0xff]  }
 0x127   : > { %v3435_v41 = vrot.slane %v7656_v7, 5  ;;  %v7957_v2 = vsel %vm7180_vm1, %v5945_v19, %v3428_v26  ;;  %v3430_v62 = vrot.slane %v3428_v26, 4  ;;  %v3438_v46 = vrot.slane %v7699_v32, 5  ;;  %v6608_v26 = vld [vmem:[#allocation2 + $0xa8] sm:$0xff]  }
 0x128   : > { %v5947_v18 = vrot.slane %v3310_v40, 9  ;;  %v3442_v23 = vrot.slane %v7701_v31, 5  ;;  %v3445_v7 = vrot.slane %v7717_v52, 5  ;;  %v5948_v32 = vrot.slane %v3311_v42, 9 }
 0x129   : > { %v7963_v3 = vsel %vm7180_vm1, %v5946_v14, %v3435_v41  ;;  %v3437_v63 = vrot.slane %v3435_v41, 4  ;;  %v7970_v53 = vsel %vm7180_vm1, %v3430_v62, %v3431_v49  ;;  %v3449_v20 = vrot.slane %v7707_v28, 5  ;;  %v6609_v62 = vld [vmem:[#allocation2 + $0xb4] sm:$0xff]  }
 0x12a   : > { %v3452_v44 = vrot.slane %v7745_v16, 5  ;;  %v7982_v52 = vsel %vm7180_vm1, %v5947_v18, %v3442_v23  ;;  %v3444_v56 = vrot.slane %v3442_v23, 4  ;;  %v5949_v40 = vrot.slane %v3312_v4, 9 }
 0x12b   : > { %6379 = vmatmul.mubr.msk.bf16.gmra.mxu1 %vm1252_vm9, %v6606_v15  ;;  %v7978_v31 = vsel %vm7180_vm1, %v3437_v63, %v3438_v46  ;;  %v7989_v16 = vsel %vm7180_vm1, %v5948_v32, %v3449_v20  ;;  %v3451_v19 = vrot.slane %v3449_v20, 4  ;;  %v3456_v14 = vrot.slane %v7726_v50, 5  ;;  %v9388_v63 = vld [vmem:[#allocation15_spill] sm:$0xff]  ;;  %v4133_v46 = vld [vmem:[#allocation2 + $0x2c] sm:$0x1] }
 0x12c   : > { %6382 = vmatprep.mubr.msk.bf16.mxu1 %vm1252_vm9, %v6607_v17  ;;  %v3314_v17 = vld [vmem:[#allocation2 + $0xc0] sm:$0xe]  ;;  %v7994_v49 = vsel %vm7180_vm1, %v3444_v56, %v3445_v7  ;;  %v5950_v42 = vrot.slane %v3313_v8, 9  ;;  %v3463_v23 = vrot.slane %v9388_v63, 5  ;;  %v6612_v20 = vld [vmem:[#allocation2 + $0x24] sm:$0xff]   ;;  %v3470_v56 = vrot.slane %v7878_v51, 5 }
 0x12d   : > { %6421 = vmatmul.mubr.msk.bf16.gmra.mxu0 %vm1252_vm9, %v5919_v48  ;;  %v9387_v48 = vld [vmem:[#allocation14_spill] sm:$0xff]  ;;  %v8002_v18 = vsel %vm7180_vm1, %v3451_v19, %v3452_v44  ;;  %v8010_v50 = vsel %vm7180_vm1, %v5949_v40, %v3456_v14  ;;  %v3458_v4 = vrot.slane %v3456_v14, 4  ;;  %v5951_v32 = vrot.slane %v3314_v17, 9  ;;  %v9389_v63 = vld [vmem:[#allocation12_spill] sm:$0xff] }
 0x12e   : > { %6460 = vmatprep.mubr.msk.bf16.mxu0 %vm1252_vm9, %v6611_v38  ;;  %v3459_v41 = vrot.slane %v9387_v48, 5  ;;  %v3466_v38 = vrot.slane %v7790_v54, 5  ;;  %v8014_v8 = vsel %vm7180_vm1, %v5950_v42, %v3463_v23  ;;  %v3465_v44 = vrot.slane %v3463_v23, 4  ;;  %v6646_v54 = vld [vmem:[#allocation2 + $0x1c] sm:$0xf]  ;;  %v6613_v7 = vld [vmem:[#allocation2 + $0x30] sm:$0xff]  }
 0x12f   : > { %v3473_v19 = vrot.slane %v7884_v24, 5  ;;  %v3372_v48 = vrot.slane %v6646_v54, 5  ;;  %v5129_v40 = vsel %vm1301_vm4, %v9389_v63, 0  ;;  %v8034_v24 = vsel %vm7180_vm1, %v5951_v32, %v3470_v56  ;;  %v8057_v32 = vld [vmem:[#allocation2 + $0x1c] sm:$0xf] }
 0x130   : > { %v8023_v17 = vsel %vm7180_vm1, %v3458_v4, %v3459_v41  ;;  %v8030_v51 = vsel %vm7180_vm1, %v3465_v44, %v3466_v38  ;;  %v3366_v41 = vsel %vm7180_vm1, %v5936_v27, %v3365_v57  ;;  %v3369_v42 = vsel %vm7180_vm1, %v7853_v60, %v3368_v55  ;;  %v6647_v60 = vld [vmem:[#allocation2 + $0x20] sm:$0x1]  ;;  %v6615_v44 = vld [vmem:[#allocation2 + $0x48] sm:$0xff]  }
 0x131   : > { %v5952_v27 = vcombine.low %v3366_v41, %v3369_v42  ;;  %v3374_v55 = vrot.slane %v3372_v48, 4  ;;  %v3375_v38 = vrot.slane %v6647_v60, 5  ;;  %v6614_v4 = vld [vmem:[#allocation2 + $0x3c] sm:$0xff]   ;;  %v4186_v63 = vshll.u32 %v8057_v32, 16  ;;  %v9391_v42 = vld [vmem:[#allocation13_spill] sm:$0xff] }
 0x132   : > { %v4220_v22 = vshll.u32 %v4133_v46, 16  ;;  %vm5603_vm0 = vcmask 1040384   ;;  %vm5612_vm2 = vcmask 1041408   ;;  %vm5638_vm3 = vcmask 1044480  }
 0x133   : > { %6383 = vmatmul.mubr.msk.bf16.gmra.mxu1 %vm1252_vm9, %v6608_v26  ;;  %v3472_v26 = vrot.slane %v3470_v56, 4  ;;  %v3376_v56 = vsel %vm7180_vm1, %v3374_v55, %v3375_v38  ;;  %v8073_v55 = vrot.slane %v4186_v63, 5  ;;  %v6616_v38 = vld [vmem:[#allocation2 + $0x54] sm:$0xff]   ;;  %vm5647_vm5 = vcmask 1045504  }
 0x134   : > { %6386 = vmatprep.mubr.msk.bf16.mxu1 %vm1252_vm9, %v6609_v62  ;;  %v3300_v62 = vld [vmem:[#allocation2 + $0x18] sm:$0xe]  ;;  %vm5656_vm6 = vcmask 1046528   ;;  %vm5673_vm7 = vcmask 125952  }
 0x135   : > { %6461 = vmatmul.mubr.msk.bf16.vlgmr.msra.gmra.mxu0 %vm1252_vm9, %v6612_v20  ;;  %v8052_v13 = vsel %vm7180_vm1, %v3472_v26, %v3473_v19  ;;  %v5937_v57 = vrot.slane %v3300_v62, 9  ;;  %v4128_v20 = vld [vmem:[#allocation2 + $0x18] sm:$0xf]  ;;  %v8068_v26 = vpop.f32.mrf.mxu0  ;;  %v4659_v62 = vsel %vm1301_vm4, %v9391_v42, 0 }
 0x136   : > { %6527 = vmatpush3.bf16.msra.mxu0 %v5129_v40  ;;  %6464 = vmatprep.mubr.msk.bf16.mxu0 %vm1252_vm9, %v6613_v7  ;;  %v4177_v19 = vshrl.u32 %v4128_v20, 16  ;;  %v4180_v54 = vshll.u32 %v4128_v20, 16  ;;  %v4190_v40 = vshrl.u32 %v8057_v32, 16  ;;  %9390 = vst [vmem:[#allocation6_spill] sm:$0xff] %v8068_v26  ;;  %v6617_v20 = vld [vmem:[#allocation2 + $0x60] sm:$0xff]  }
 0x137   : > { %v3373_v7 = vsel %vm7180_vm1, %v5937_v57, %v3372_v48  ;;  %v4132_v48 = vld [vmem:[#allocation2 + $0x28] sm:$0xf]  ;;  %v8075_v6 = vpop.f32.mrf.mxu0 }
 0x138   : > { %v5953_v41 = vcombine.low %v3373_v7, %v3376_v56  ;;  %v4182_v57 = vrot.slane %v4180_v54, 5  ;;  %v4192_v60 = vrot.slane %v4190_v40, 4  ;;  %9392 = vst [vmem:[#allocation8_spill] sm:$0xff] %v8075_v6  ;;  %v4854_v7 = vld [vmem:[#allocation2 + $0x18] sm:$0xe]  ;;  %v4210_v23 = vshll.u32 %v4132_v48, 16 }
 0x139   : > { %v4214_v14 = vshrl.u32 %v4132_v48, 16  ;;  %v4927_v54 = vrot.slane %v4132_v48, 5  ;;  %v6048_v28 = vrot.slane %v4854_v7, 9  ;;  %v4134_v7 = vld [vmem:[#allocation2 + $0x30] sm:$0xf] }
 0x13a   : > { %v4193_v40 = vor.u32 %v4192_v60, %v8073_v55  ;;  %v4930_v60 = vrot.slane %v4133_v46, 5  ;;  %v4859_v6 = vld [vmem:[#allocation2 + $0x54] sm:$0xe] }
 0x13b   : > { %6387 = vmatmul.mubr.msk.bf16.gmra.mxu1 %vm1252_vm9, %v6610_v58  ;;  %v4131_v58 = vld [vmem:[#allocation2 + $0x24] sm:$0xf] }
 0x13c   : > { %6426 = vmatprep.mubr.msk.bf16.mxu1 %vm1252_vm9, %v5952_v27  ;;  %v4179_v27 = vrot.slane %v4177_v19, 4  ;;  %v4201_v56 = vshrl.u32 %v4131_v58, 16  ;;  %v4920_v19 = vrot.slane %v8057_v32, 5  ;;  %v4216_v32 = vrot.slane %v4214_v14, 4 }
 0x13d   : > { %6465 = vmatmul.mubr.msk.bf16.gmra.mxu0 %vm1252_vm9, %v6614_v4  ;;  %v4130_v4 = vld [vmem:[#allocation2 + $0x20] sm:$0x1]  ;;  %v4194_v36 = vrot.slane %v4193_v40, 4  ;;  %v4856_v40 = vld [vmem:[#allocation2 + $0x30] sm:$0xe] }
 0x13e   : > { %6468 = vmatprep.mubr.msk.bf16.mxu0 %vm1252_vm9, %v6615_v44  ;;  %v4204_v44 = vshll.u32 %v4131_v58, 16  ;;  %v4183_v63 = vor.u32 %v4182_v57, %v4179_v27  ;;  %v4196_v42 = vshll.u32 %v4130_v4, 16  ;;  %v8085_v58 = vpop.f32.mrf.mxu0  ;;  %v4203_v45 = vrot.slane %v4201_v56, 4  ;;  %v4135_v56 = vld [vmem:[#allocation2 + $0x34] sm:$0xf] }
 0x13f   : > { %9393 = vst [vmem:[#allocation7_spill] sm:$0xff] %v8085_v58  ;;  %v4922_v48 = vrot.slane %v4920_v19, 4  ;;  %v4929_v57 = vrot.slane %v4927_v54, 4  ;;  %v8105_v46 = vsel %vm7180_vm1, %v6048_v28, %v4920_v19  ;;  %v4228_v28 = vshll.u32 %v4134_v7, 16  ;;  %v8124_v19 = vld [vmem:[#allocation2 + $0x40] sm:$0xf] }
 0x140   : > { %v4206_v10 = vrot.slane %v4204_v44, 5  ;;  %v4184_v15 = vrot.slane %v4183_v63, 4  ;;  %v4198_v39 = vrot.slane %v4196_v42, 5  ;;  %v4137_v44 = vld [vmem:[#allocation2 + $0x3c] sm:$0xf]  ;;  %v4222_v63 = vrot.slane %v4220_v22, 5 }
 0x141   : > { %v4934_v42 = vrot.slane %v4135_v56, 5  ;;  %v8147_v22 = vld [vmem:[#allocation2 + $0x4c] sm:$0xf] }
 0x142   : > { %v4207_v14 = vor.u32 %v4206_v10, %v4203_v45  ;;  %v4189_v12 = vsel %vm6793_vm12, %v4184_v15, %v8073_v55  ;;  %v4199_v47 = vsel %vm6793_vm12, %v4194_v36, %v4198_v39  ;;  %v8132_v39 = vld [vmem:[#allocation2 + $0x38] sm:$0x1]  ;;  %v4249_v36 = vshrl.u32 %v4137_v44, 16 }
 0x143   : > { %6427 = vmatmul.mubr.msk.bf16.vlgmr.msra.gmra.mxu1 %vm1252_vm9, %v5953_v41  ;;  %v4855_v41 = vld [vmem:[#allocation2 + $0x24] sm:$0xe]  ;;  %v4252_v10 = vshll.u32 %v4137_v44, 16  ;;  %v4937_v44 = vrot.slane %v8132_v39, 5 }
 0x144   : > { %6493 = vmatpush3.bf16.msra.mxu1 %v4659_v62  ;;  %6430 = vmatprep.mubr.msk.bf16.mxu1 %vm1252_vm9, %v5954_v30  ;;  %v4923_v62 = vrot.slane %v4130_v4, 5  ;;  %v8088_v30 = vrot.slane %v4210_v23, 5  ;;  %v6049_v27 = vrot.slane %v4855_v41, 9  ;;  %v6619_v23 = vld [vmem:[#allocation2 + $0x78] sm:$0xff]   ;;  %v4234_v41 = vshll.u32 %v4135_v56, 16 }
 0x145   : > { %6469 = vmatmul.mubr.msk.bf16.gmra.mxu0 %vm1252_vm9, %v6616_v38  ;;  %v8090_v38 = vpop.f32.mrf.mxu0  ;;  %v4208_v15 = vrot.slane %v4207_v14, 4  ;;  %v4140_v14 = vld [vmem:[#allocation2 + $0x48] sm:$0xf] }
 0x146   : > { %6472 = vmatprep.mubr.msk.bf16.mxu0 %vm1252_vm9, %v6617_v20  ;;  %9394 = vst [vmem:[#allocation10_spill] sm:$0xff] %v8090_v38  ;;  %v8096_v20 = vpop.f32.mrf.mxu1  ;;  %v4217_v4 = vor.u32 %v4216_v32, %v8088_v30  ;;  %v8109_v0 = vsel %vm7180_vm1, %v4922_v48, %v4923_v62  ;;  %v8113_v34 = vsel %vm7180_vm1, %v6049_v27, %v4927_v54  ;;  %v4238_v62 = vshrl.u32 %v4135_v56, 16  ;;  %v6620_v27 = vld [vmem:[#allocation2 + $0x84] sm:$0xff]  }
 0x147   : > { %9395 = vst [vmem:[#allocation9_spill] sm:$0xff] %v8096_v20  ;;  %v8127_v54 = vpop.f32.mrf.mxu0  ;;  %v4258_v32 = vshll.u32 %v8124_v19, 16  ;;  %v4262_v48 = vshrl.u32 %v8124_v19, 16  ;;  %v4936_v56 = vrot.slane %v4934_v42, 4  ;;  %v9399_v20 = vcombine.low %v7894_v1, %v7903_v43  ;;  %v4857_v1 = vld [vmem:[#allocation2 + $0x3c] sm:$0xe] }
 0x148   : > { %9396 = vst [vmem:[#allocation11_spill] sm:$0xff] %v8127_v54  ;;  %v8130_v45 = vpop.f32.mrf.mxu1  ;;  %v4218_v55 = vrot.slane %v4217_v4, 4 }
 0x149   : > { %9397 = vst [vmem:[#allocation14_spill] sm:$0xff] %v8130_v45  ;;  %v8142_v4 = vpop.f32.mrf.mxu0  ;;  %v4240_v45 = vrot.slane %v4238_v62, 4  ;;  %v9401_v62 = vcombine.low %v7915_v11, %v7929_v33  ;;  %v8164_v43 = vrot.slane %v4258_v32, 5  ;;  %v8177_v33 = vsel %vm7180_vm1, %v4936_v56, %v4937_v44  ;;  %v4858_v44 = vld [vmem:[#allocation2 + $0x48] sm:$0xe] }
 0x14a   : > { %9398 = vst [vmem:[#allocation15_spill] sm:$0xff] %v8142_v4  ;;  %v4276_v4 = vshll.u32 %v4140_v14, 16 }
 0x14b   : > { %6431 = vmatmul.mubr.msk.bf16.gmra.mxu1 %vm1252_vm9, %v5955_v25  ;;  %v8117_v25 = vsel %vm7180_vm1, %v4929_v57, %v4930_v60  ;;  %v8140_v57 = vcombine.low %v4189_v12, %v4199_v47  ;;  %v6050_v60 = vrot.slane %v4856_v40, 9  ;;  %v8153_v12 = vpop.f32.mrf.mxu1  ;;  %v6621_v47 = vld [vmem:[#allocation2 + $0x90] sm:$0xff]   ;;  %v4251_v40 = vrot.slane %v4249_v36, 4  ;;  %v8173_v11 = vpop.f32.mrf.mxu0 }
 0x14c   : > { %6434 = vmatprep.mubr.msk.bf16.mxu1 %vm1252_vm9, %v5956_v5  ;;  %v4225_v5 = vshrl.u32 %v4134_v7, 16  ;;  %9400 = vst [vmem:[#allocation12_spill] sm:$0xff] %v8153_v12  ;;  %v4273_v12 = vshrl.u32 %v4140_v14, 16  ;;  %9402 = vst [vmem:[#allocation13_spill] sm:$0xff] %v8173_v11  ;;  %v6623_v11 = vld [vmem:[#allocation2 + $0xa8] sm:$0xff]  }
 0x14d   : > { %6473 = vmatmul.mubr.msk.bf16.gmra.mxu0 %vm1252_vm9, %v6618_v59  ;;  %v8145_v59 = vrot.slane %v4234_v41, 5  ;;  %v4254_v41 = vrot.slane %v4252_v10, 5  ;;  %v8168_v54 = vsel %vm7180_vm1, %v6050_v60, %v4934_v42  ;;  %v4244_v10 = vshll.u32 %v8132_v39, 16  ;;  %v8182_v32 = vpop.f32.mrf.mxu1  ;;  %v6622_v39 = vld [vmem:[#allocation2 + $0x9c] sm:$0xff]  }
 0x14e   : > { %6476 = vmatprep.mubr.msk.bf16.mxu0 %vm1252_vm9, %v6619_v23  ;;  %v4227_v7 = vrot.slane %v4225_v5, 4  ;;  %v4230_v23 = vrot.slane %v4228_v28, 5  ;;  %v4213_v5 = vsel %vm6793_vm12, %v4208_v15, %v8088_v30  ;;  %v4223_v28 = vsel %vm6793_vm12, %v4218_v55, %v4222_v63  ;;  %v4139_v15 = vld [vmem:[#allocation2 + $0x44] sm:$0x1]  ;;  %9403 = vst [vmem:[#allocation16_spill] sm:$0xff] %v8182_v32 }
 0x14f   : > { %v4282_v63 = vshll.u32 %v8147_v22, 16  ;;  %v4286_v55 = vshrl.u32 %v8147_v22, 16  ;;  %v4241_v36 = vor.u32 %v4240_v45, %v8145_v59  ;;  %v4941_v42 = vrot.slane %v8124_v19, 5 }
 0x150   : > { %v4231_v30 = vor.u32 %v4230_v23, %v4227_v7  ;;  %v6051_v60 = vrot.slane %v4857_v1, 9  ;;  %v4142_v7 = vld [vmem:[#allocation2 + $0x50] sm:$0x1]  ;;  %v4948_v23 = vrot.slane %v8147_v22, 5  ;;  %v4268_v56 = vshll.u32 %v4139_v15, 16 }
 0x151   : > { %v4275_v45 = vrot.slane %v4273_v12, 4  ;;  %v4943_v22 = vrot.slane %v4941_v42, 4  ;;  %v4944_v1 = vrot.slane %v4139_v15, 5  ;;  %v8201_v12 = vpop.f32.mrf.mxu1  ;;  %v4951_v38 = vrot.slane %v4142_v7, 5 }
 0x152   : > { %v4232_v32 = vrot.slane %v4231_v30, 4  ;;  %9406 = vst [vmem:[#allocation18_spill] sm:$0xff] %v8201_v12  ;;  %v6052_v30 = vrot.slane %v4858_v44, 9  ;;  %v4292_v58 = vshll.u32 %v4142_v7, 16  ;;  %v8215_v44 = vld [vmem:[#allocation2 + $0x5c] sm:$0x1] }
 0x153   : > { %6435 = vmatmul.mubr.msk.bf16.gmra.mxu1 %vm1252_vm9, %v9399_v20  ;;  %v4264_v20 = vrot.slane %v4262_v48, 4  ;;  %v8185_v48 = vcombine.low %v4213_v5, %v4223_v28  ;;  %v4288_v5 = vrot.slane %v4286_v55, 4  ;;  %v8193_v28 = vpop.f32.mrf.mxu0  ;;  %v4143_v55 = vld [vmem:[#allocation2 + $0x54] sm:$0xf] }
 0x154   : > { %6438 = vmatprep.mubr.msk.bf16.mxu1 %vm1252_vm9, %v9401_v62  ;;  %v4278_v62 = vrot.slane %v4276_v4, 5  ;;  %9404 = vst [vmem:[#allocation17_spill] sm:$0xff] %v8193_v28  ;;  %v9405_v4 = vcombine.low %v7920_v37, %v7942_v21  ;;  %v4237_v37 = vsel %vm6793_vm12, %v4232_v32, %v8145_v59  ;;  %v8212_v21 = vsel %vm7180_vm1, %v6051_v60, %v4941_v42  ;;  %v8227_v60 = vpop.f32.mrf.mxu1 }
 0x155   : > { %6477 = vmatmul.mubr.msk.bf16.gmra.mxu0 %vm1252_vm9, %v6620_v27  ;;  %v4255_v27 = vor.u32 %v4254_v41, %v4251_v40  ;;  %v4265_v14 = vor.u32 %v4264_v20, %v8164_v43  ;;  %v4242_v40 = vrot.slane %v4241_v36, 4  ;;  %v4246_v41 = vrot.slane %v4244_v10, 5  ;;  %v8195_v20 = vld [vmem:[#allocation2 + $0x58] sm:$0xf]  ;;  %9409 = vst [vmem:[#allocation20_spill] sm:$0xff] %v8227_v60 }
 0x156   : > { %6480 = vmatprep.mubr.msk.bf16.mxu0 %vm1252_vm9, %v6621_v47  ;;  %v8191_v47 = vrot.slane %v4282_v63, 5  ;;  %v4950_v63 = vrot.slane %v4948_v23, 4  ;;  %v9407_v36 = vcombine.low %v7933_v9, %v7948_v29  ;;  %v4270_v10 = vrot.slane %v4268_v56, 5  ;;  %v8219_v29 = vpop.f32.mrf.mxu0 }
 0x157   : > { %v4256_v19 = vrot.slane %v4255_v27, 4  ;;  %v4266_v15 = vrot.slane %v4265_v14, 4  ;;  %v4279_v28 = vor.u32 %v4278_v62, %v4275_v45  ;;  %v4955_v9 = vrot.slane %v8195_v20, 5  ;;  %9408 = vst [vmem:[#allocation19_spill] sm:$0xff] %v8219_v29 }
 0x158   : > { %v4289_v27 = vor.u32 %v4288_v5, %v8191_v47  ;;  %v4247_v7 = vsel %vm6793_vm12, %v4242_v40, %v4246_v41  ;;  %v8225_v59 = vsel %vm7180_vm1, %v4943_v22, %v4944_v1  ;;  %v4297_v32 = vshrl.u32 %v4143_v55, 16  ;;  %v8244_v22 = vld [vmem:[#allocation2 + $0x64] sm:$0xf] }
 0x159   : > { %v4300_v42 = vshll.u32 %v4143_v55, 16  ;;  %v4261_v14 = vsel %vm6793_vm12, %v4256_v19, %v8164_v43  ;;  %v8235_v56 = vsel %vm7180_vm1, %v6052_v30, %v4948_v23  ;;  %v8239_v45 = vsel %vm7180_vm1, %v4950_v63, %v4951_v38  ;;  %v8248_v38 = vpop.f32.mrf.mxu0 }
 0x15a   : > { %v6053_v62 = vrot.slane %v4859_v6, 9  ;;  %v4271_v5 = vsel %vm6793_vm12, %v4266_v15, %v4270_v10  ;;  %v4280_v40 = vrot.slane %v4279_v28, 4  ;;  %v4294_v41 = vrot.slane %v4292_v58, 5  ;;  %9410 = vst [vmem:[#allocation21_spill] sm:$0xff] %v8248_v38  ;;  %v8254_v28 = vpop.f32.mrf.mxu1 }
 0x15b   : > { %6439 = vmatmul.mubr.msk.bf16.gmra.mxu1 %vm1252_vm9, %v9405_v4  ;;  %v4290_v43 = vrot.slane %v4289_v27, 4  ;;  %v4957_v19 = vrot.slane %v4955_v9, 4  ;;  %v4306_v23 = vshll.u32 %v8195_v20, 16  ;;  %v4310_v1 = vshrl.u32 %v8195_v20, 16  ;;  %v6624_v4 = vld [vmem:[#allocation2 + $0xb4] sm:$0xff]   ;;  %9412 = vst [vmem:[#allocation22_spill] sm:$0xff] %v8254_v28 }
 0x15c   : > { %6442 = vmatprep.mubr.msk.bf16.mxu1 %vm1252_vm9, %v9407_v36  ;;  %v4299_v6 = vrot.slane %v4297_v32, 4  ;;  %v4302_v30 = vrot.slane %v4300_v42, 5  ;;  %v9411_v58 = vcombine.low %v7957_v2, %v7970_v53  ;;  %v6625_v36 = vld [vmem:[#allocation2 + $0xc0] sm:$0xff]   ;;  %v8256_v15 = vcombine.low %v4237_v37, %v4247_v7  ;;  %v8277_v42 = vld [vmem:[#allocation2 + $0x70] sm:$0xf]  ;;  %v8291_v53 = vpop.f32.mrf.mxu1 }
 0x15d   : > { %6481 = vmatmul.mubr.msk.bf16.gmra.mxu0 %vm1252_vm9, %v6622_v39  ;;  %v4146_v39 = vld [vmem:[#allocation2 + $0x60] sm:$0xf]  ;;  %v4330_v10 = vshll.u32 %v8244_v22, 16  ;;  %v4334_v27 = vshrl.u32 %v8244_v22, 16  ;;  %v9413_v32 = vcombine.low %v7963_v3, %v7978_v31  ;;  %v8266_v2 = vcombine.low %v4261_v14, %v4271_v5  ;;  %9415 = vst [vmem:[#allocation24_spill] sm:$0xff] %v8291_v53 }
 0x15e   : > { %6484 = vmatprep.mubr.msk.bf16.mxu0 %vm1252_vm9, %v6623_v11  ;;  %v4958_v11 = vrot.slane %v8215_v44, 5  ;;  %v4321_v63 = vshrl.u32 %v4146_v39, 16  ;;  %v4324_v55 = vshll.u32 %v4146_v39, 16  ;;  %v4285_v37 = vsel %vm6793_vm12, %v4280_v40, %v8191_v47  ;;  %v4149_v39 = vld [vmem:[#allocation2 + $0x6c] sm:$0xf]  ;;  %v8287_v47 = vpop.f32.mrf.mxu0 }
 0x15f   : > { %v8275_v7 = vsel %vm7180_vm1, %v6053_v62, %v4955_v9  ;;  %v8283_v31 = vrot.slane %v4306_v23, 5  ;;  %v4312_v14 = vrot.slane %v4310_v1, 4  ;;  %v4316_v5 = vshll.u32 %v8215_v44, 16  ;;  %9414 = vst [vmem:[#allocation23_spill] sm:$0xff] %v8287_v47 }
 0x160   : > { %v8281_v3 = vsel %vm7180_vm1, %v4957_v19, %v4958_v11  ;;  %v4295_v9 = vsel %vm6793_vm12, %v4290_v43, %v4294_v41  ;;  %v4303_v62 = vor.u32 %v4302_v30, %v4299_v6  ;;  %v4323_v40 = vrot.slane %v4321_v63, 4  ;;  %v8294_v11 = vld [vmem:[#allocation2 + $0x68] sm:$0x1]  ;;  %v4861_v6 = vld [vmem:[#allocation2 + $0x6c] sm:$0xe] }
 0x161   : > { %v8296_v19 = vrot.slane %v4330_v10, 5  ;;  %v4336_v44 = vrot.slane %v4334_v27, 4  ;;  %v4345_v23 = vshrl.u32 %v4149_v39, 16  ;;  %v4348_v1 = vshll.u32 %v4149_v39, 16  ;;  %v6626_v10 = vld [vmem:[#allocation2 + $0xcc] sm:$0xff]  }
 0x162   : > { %v4962_v20 = vrot.slane %v8244_v22, 5  ;;  %v4354_v28 = vshll.u32 %v8277_v42, 16  ;;  %v4358_v41 = vshrl.u32 %v8277_v42, 16  ;;  %v8301_v43 = vcombine.low %v4285_v37, %v4295_v9 }
 0x163   : > { %6443 = vmatmul.mubr.msk.bf16.gmra.mxu1 %vm1252_vm9, %v9411_v58  ;;  %v4860_v58 = vld [vmem:[#allocation2 + $0x60] sm:$0xe]  ;;  %v4313_v30 = vor.u32 %v4312_v14, %v8283_v31  ;;  %v8306_v63 = vrot.slane %v4316_v5, 5  ;;  %v8312_v27 = vrot.slane %v4303_v62, 4  ;;  %v4965_v22 = vrot.slane %v8294_v11, 5  ;;  %v8320_v14 = vpop.f32.mrf.mxu1 }
 0x164   : > { %6446 = vmatprep.mubr.msk.bf16.mxu1 %vm1252_vm9, %v9413_v32  ;;  %v4326_v32 = vrot.slane %v4324_v55, 5  ;;  %9416 = vst [vmem:[#allocation25_spill] sm:$0xff] %v8301_v43  ;;  %v8308_v55 = vld [vmem:[#allocation2 + $0x74] sm:$0x1]  ;;  %v4340_v37 = vshll.u32 %v8294_v11, 16  ;;  %v9418_v9 = vcombine.low %v7982_v52, %v7994_v49  ;;  %9419 = vst [vmem:[#allocation27_spill] sm:$0xff] %v8320_v14  ;;  %v4337_v5 = vor.u32 %v4336_v44, %v8296_v19 }
 0x165   : > { %6485 = vmatmul.mubr.msk.bf16.gmra.mxu0 %vm1252_vm9, %v6624_v4  ;;  %v6054_v4 = vrot.slane %v4860_v58, 9  ;;  %v4152_v58 = vld [vmem:[#allocation2 + $0x78] sm:$0xf]  ;;  %v4969_v53 = vrot.slane %v8277_v42, 5  ;;  %v4347_v62 = vrot.slane %v4345_v23, 4  ;;  %v4350_v60 = vrot.slane %v4348_v1, 5 }
 0x166   : > { %6488 = vmatprep.mubr.msk.bf16.mxu0 %vm1252_vm9, %v6625_v36  ;;  %v8310_v36 = vpop.f32.mrf.mxu0  ;;  %v4327_v39 = vor.u32 %v4326_v32, %v4323_v40  ;;  %v9420_v40 = vcombine.low %v7989_v16, %v8002_v18  ;;  %v4964_v52 = vrot.slane %v4962_v20, 4  ;;  %v8332_v49 = vrot.slane %v4354_v28, 5  ;;  %v4862_v14 = vld [vmem:[#allocation2 + $0x78] sm:$0xe] }
 0x167   : > { %9417 = vst [vmem:[#allocation26_spill] sm:$0xff] %v8310_v36  ;;  %v8330_v32 = vsel %vm7180_vm1, %v6054_v4, %v4962_v20  ;;  %v4360_v11 = vrot.slane %v4358_v41, 4  ;;  %v4314_v44 = vrot.slane %v4313_v30, 4  ;;  %v4369_v42 = vshrl.u32 %v4152_v58, 16  ;;  %v4154_v36 = vld [vmem:[#allocation2 + $0x80] sm:$0x1]  ;;  %v8338_v20 = vpop.f32.mrf.mxu1 }
 0x168   : > { %v4372_v23 = vshll.u32 %v4152_v58, 16  ;;  %v4328_v16 = vrot.slane %v4327_v39, 4  ;;  %v4342_v18 = vrot.slane %v4340_v37, 5  ;;  %v4972_v4 = vrot.slane %v8308_v55, 5  ;;  %9422 = vst [vmem:[#allocation29_spill] sm:$0xff] %v8338_v20 }
 0x169   : > { %v9423_v28 = vcombine.low %v8105_v46, %v8109_v0  ;;  %v4338_v41 = vrot.slane %v4337_v5, 4  ;;  %v4971_v30 = vrot.slane %v4969_v53, 4  ;;  %v4351_v58 = vor.u32 %v4350_v60, %v4347_v62  ;;  %v8369_v5 = vpop.f32.mrf.mxu1 }
 0x16a   : > { %v4979_v29 = vrot.slane %v4154_v36, 5  ;;  %v4371_v20 = vrot.slane %v4369_v42, 4  ;;  %v4374_v26 = vrot.slane %v4372_v23, 5  ;;  %v4309_v46 = vsel %vm6793_vm12, %v8312_v27, %v8283_v31  ;;  %9427 = vst [vmem:[#allocation32_spill] sm:$0xff] %v8369_v5 }
 0x16b   : > { %6447 = vmatmul.mubr.msk.bf16.gmra.mxu1 %vm1252_vm9, %v9418_v9  ;;  %v4153_v9 = vld [vmem:[#allocation2 + $0x7c] sm:$0xf]  ;;  %v4319_v0 = vsel %vm6793_vm12, %v4314_v44, %v8306_v63  ;;  %v8359_v60 = vsel %vm7180_vm1, %v4964_v52, %v4965_v22  ;;  %v4333_v31 = vsel %vm6793_vm12, %v4328_v16, %v8296_v19  ;;  %v4343_v63 = vsel %vm6793_vm12, %v4338_v41, %v4342_v18  ;;  %v4863_v22 = vld [vmem:[#allocation2 + $0x84] sm:$0xe] }
 0x16c   : > { %6450 = vmatprep.mubr.msk.bf16.mxu1 %vm1252_vm9, %v9420_v40  ;;  %v4976_v12 = vrot.slane %v4153_v9, 5  ;;  %v6055_v40 = vrot.slane %v4861_v6, 9  ;;  %v6056_v6 = vrot.slane %v4862_v14, 9  ;;  %v4378_v39 = vshll.u32 %v4153_v9, 16 }
 0x16d   : > { %v8334_v1 = vpop.f32.mrf.mxu0  ;;  %6489 = vmatmul.mubr.msk.bf16.gmra.mxu0 %vm1252_vm9, %v6626_v10  ;;  %v4361_v10 = vor.u32 %v4360_v11, %v8332_v49  ;;  %v4382_v37 = vshrl.u32 %v4153_v9, 16  ;;  %v9426_v14 = vcombine.low %v8010_v50, %v8023_v17  ;;  %v8378_v27 = vsel %vm7180_vm1, %v4971_v30, %v4972_v4  ;;  %v4155_v9 = vld [vmem:[#allocation2 + $0x84] sm:$0xf] }
 0x16e   : > { %9421 = vst [vmem:[#allocation28_spill] sm:$0xff] %v8334_v1  ;;  %6528 = vmatprep.mubr.msk.bf16.mxu0 %vm1252_vm9, %v9423_v28  ;;  %v4364_v1 = vshll.u32 %v8308_v55, 16  ;;  %v4978_v38 = vrot.slane %v4976_v12, 4  ;;  %v8363_v55 = vsel %vm7180_vm1, %v6055_v40, %v4969_v53  ;;  %v8380_v53 = vrot.slane %v4351_v58, 4  ;;  %v4156_v40 = vld [vmem:[#allocation2 + $0x88] sm:$0xf] }
 0x16f   : > { %v8345_v47 = vpop.f32.mrf.mxu0  ;;  %v9428_v50 = vcombine.low %v8014_v8, %v8030_v51  ;;  %v8388_v62 = vrot.slane %v4361_v10, 4  ;;  %v8392_v52 = vrot.slane %v4378_v39, 5  ;;  %v4384_v11 = vrot.slane %v4382_v37, 4  ;;  %v4158_v28 = vld [vmem:[#allocation2 + $0x90] sm:$0xf] }
 0x170   : > { %9424 = vst [vmem:[#allocation30_spill] sm:$0xff] %v8345_v47  ;;  %v8390_v19 = vrot.slane %v4364_v1, 5  ;;  %v8396_v44 = vsel %vm7180_vm1, %v6056_v6, %v4976_v12  ;;  %v8400_v42 = vsel %vm7180_vm1, %v4978_v38, %v4979_v29  ;;  %v4375_v8 = vor.u32 %v4374_v26, %v4371_v20  ;;  %v8414_v38 = vpop.f32.mrf.mxu1  ;;  %v8437_v10 = vld [vmem:[#allocation2 + $0x94] sm:$0xf] }
 0x171   : > { %v8348_v43 = vpop.f32.mrf.mxu0  ;;  %v4388_v51 = vshll.u32 %v4154_v36, 16  ;;  %v9431_v1 = vcombine.low %v8113_v34, %v8117_v25  ;;  %v8408_v16 = vcombine.low %v4309_v46, %v4319_v0  ;;  %v6057_v29 = vrot.slane %v4863_v22, 9  ;;  %9432 = vst [vmem:[#allocation35_spill] sm:$0xff] %v8414_v38  ;;  %v8426_v36 = vld [vmem:[#allocation2 + $0x8c] sm:$0x1] }
 0x172   : > { %9425 = vst [vmem:[#allocation31_spill] sm:$0xff] %v8348_v43  ;;  %v9433_v26 = vcombine.low %v8168_v54, %v8177_v33  ;;  %v8420_v34 = vcombine.low %v4333_v31, %v4343_v63  ;;  %v4393_v4 = vshrl.u32 %v4155_v9, 16  ;;  %v4396_v20 = vshll.u32 %v4155_v9, 16  ;;  %v4161_v0 = vld [vmem:[#allocation2 + $0x9c] sm:$0xf] }
 0x173   : > { %6451 = vmatmul.mubr.msk.bf16.gmra.mxu1 %vm1252_vm9, %v9426_v14  ;;  %v8386_v17 = vpop.f32.mrf.mxu0  ;;  %v4385_v30 = vor.u32 %v4384_v11, %v8392_v52  ;;  %v4983_v58 = vrot.slane %v4156_v40, 5  ;;  %v8439_v6 = vrot.slane %v4375_v8, 4  ;;  %v8441_v39 = vrot.slane %v4388_v51, 5  ;;  %v8450_v11 = vld [vmem:[#allocation2 + $0xa0] sm:$0xf] }
 0x174   : > { %6454 = vmatprep.mubr.msk.bf16.mxu1 %vm1252_vm9, %v9428_v50  ;;  %9429 = vst [vmem:[#allocation33_spill] sm:$0xff] %v8386_v17  ;;  %v4402_v37 = vshll.u32 %v4156_v40, 16  ;;  %v4406_v46 = vshrl.u32 %v4156_v40, 16  ;;  %v4986_v63 = vrot.slane %v8426_v36, 5  ;;  %v4417_v22 = vshrl.u32 %v4158_v28, 16 }
 0x175   : > { %v8402_v23 = vpop.f32.mrf.mxu0  ;;  %6529 = vmatmul.mubr.msk.bf16.vlgmr.msra.gmra.mxu0 %vm1252_vm9, %v9431_v1  ;;  %v8447_v31 = vsel %vm7180_vm1, %v6057_v29, %v4983_v58  ;;  %v4420_v50 = vshll.u32 %v4158_v28, 16  ;;  %v9437_v8 = vcombine.low %v8034_v24, %v8052_v13  ;;  %v4395_v51 = vrot.slane %v4393_v4, 4  ;;  %v4864_v25 = vld [vmem:[#allocation2 + $0x90] sm:$0xe] }
 0x176   : > { %9430 = vst [vmem:[#allocation34_spill] sm:$0xff] %v8402_v23  ;;  %6532 = vmatprep.mubr.msk.bf16.mxu0 %vm1252_vm9, %v9433_v26  ;;  %v4398_v1 = vrot.slane %v4396_v20, 5  ;;  %v4426_v40 = vshll.u32 %v8437_v10, 16  ;;  %v4430_v29 = vshrl.u32 %v8437_v10, 16  ;;  %v8464_v28 = vrot.slane %v4385_v30, 4 }
 0x177   : > { %v8428_v41 = vpop.f32.mrf.mxu0  ;;  %v4985_v33 = vrot.slane %v4983_v58, 4  ;;  %v4441_v54 = vshrl.u32 %v4161_v0, 16  ;;  %v4444_v12 = vshll.u32 %v4161_v0, 16  ;;  %v8468_v13 = vrot.slane %v4402_v37, 5 }
 0x178   : > { %9434 = vst [vmem:[#allocation36_spill] sm:$0xff] %v8428_v41  ;;  %v4408_v4 = vrot.slane %v4406_v46, 4  ;;  %v4450_v20 = vshll.u32 %v8450_v11, 16  ;;  %v4412_v58 = vshll.u32 %v8426_v36, 16  ;;  %v4419_v37 = vrot.slane %v4417_v22, 4 }
 0x179   : > { %v8443_v14 = vpop.f32.mrf.mxu0  ;;  %v4422_v46 = vrot.slane %v4420_v50, 5  ;;  %v4432_v38 = vrot.slane %v4430_v29, 4  ;;  %v8501_v22 = vsel %vm7180_vm1, %v4985_v33, %v4986_v63  ;;  %v4446_v50 = vrot.slane %v4444_v12, 5  ;;  %v4865_v12 = vld [vmem:[#allocation2 + $0x9c] sm:$0xe] }
 0x17a   : > { %9435 = vst [vmem:[#allocation37_spill] sm:$0xff] %v8443_v14  ;;  %v8452_v9 = vpop.f32.mrf.mxu1  ;;  %v8513_v36 = vrot.slane %v4412_v58, 5  ;;  %v4165_v58 = vld [vmem:[#allocation2 + $0xac] sm:$0xf] }
 0x17b   : > { %9436 = vst [vmem:[#allocation38_spill] sm:$0xff] %v8452_v9  ;;  %6455 = vmatmul.mubr.msk.bf16.gmra.mxu1 %vm1252_vm9, %v9437_v8  ;;  %v8462_v26 = vpop.f32.mrf.mxu0  ;;  %v4454_v8 = vshrl.u32 %v8450_v11, 16  ;;  %v4399_v9 = vor.u32 %v4398_v1, %v4395_v51  ;;  %v4990_v1 = vrot.slane %v8437_v10, 5  ;;  %v4423_v63 = vor.u32 %v4422_v46, %v4419_v37  ;;  %v8529_v37 = vld [vmem:[#allocation2 + $0xb0] sm:$0x1] }
 0x17c   : > { %6494 = vmatprep.mubr.msk.bf16.mxu1 %vm1252_vm9, %v8140_v57  ;;  %9438 = vst [vmem:[#allocation39_spill] sm:$0xff] %v8462_v26  ;;  %v8466_v24 = vpop.f32.mrf.mxu1  ;;  %v9441_v57 = vcombine.low %v8212_v21, %v8225_v59  ;;  %v8489_v21 = vld [vmem:[#allocation2 + $0x98] sm:$0x1]  ;;  %v6058_v59 = vrot.slane %v4864_v25, 9  ;;  %v4409_v25 = vor.u32 %v4408_v4, %v8468_v13  ;;  %v4474_v14 = vshll.u32 %v4165_v58, 16 }
 0x17d   : > { %9439 = vst [vmem:[#allocation40_spill] sm:$0xff] %v8466_v24  ;;  %v8472_v18 = vpop.f32.mrf.mxu0  ;;  %v9443_v24 = vcombine.low %v8235_v56, %v8239_v45  ;;  %v8503_v56 = vld [vmem:[#allocation2 + $0xa4] sm:$0x1]  ;;  %v4443_v45 = vrot.slane %v4441_v54, 4  ;;  %v4456_v29 = vrot.slane %v4454_v8, 4  ;;  %v4993_v33 = vrot.slane %v8489_v21, 5 }
 0x17e   : > { %9440 = vst [vmem:[#allocation41_spill] sm:$0xff] %v8472_v18  ;;  %6533 = vmatmul.mubr.msk.bf16.gmra.mxu0 %vm1252_vm9, %v9441_v57  ;;  %v8483_v0 = vpop.f32.mrf.mxu1  ;;  %v8491_v57 = vrot.slane %v4426_v40, 5  ;;  %v8509_v40 = vrot.slane %v4450_v20, 5  ;;  %v4436_v54 = vshll.u32 %v8489_v21, 16  ;;  %v8521_v10 = vrot.slane %v4399_v9, 4 }
 0x17f   : > { %9442 = vst [vmem:[#allocation42_spill] sm:$0xff] %v8483_v0  ;;  %6536 = vmatprep.mubr.msk.bf16.mxu0 %vm1252_vm9, %v9443_v24  ;;  %v8493_v5 = vpop.f32.mrf.mxu0  ;;  %v4164_v24 = vld [vmem:[#allocation2 + $0xa8] sm:$0xf]  ;;  %v8525_v4 = vsel %vm7180_vm1, %v6058_v59, %v4990_v1  ;;  %v4997_v8 = vrot.slane %v8450_v11, 5  ;;  %v4447_v21 = vor.u32 %v4446_v50, %v4443_v45  ;;  %v5004_v9 = vrot.slane %v4165_v58, 5 }
 0x180   : > { %9444 = vst [vmem:[#allocation43_spill] sm:$0xff] %v8493_v5  ;;  %v8505_v51 = vpop.f32.mrf.mxu1  ;;  %v4433_v20 = vor.u32 %v4432_v38, %v8491_v57  ;;  %v4468_v17 = vshll.u32 %v4164_v24, 16  ;;  %v4410_v59 = vrot.slane %v4409_v25, 4  ;;  %v4992_v47 = vrot.slane %v4990_v1, 4 }
 0x181   : > { %9445 = vst [vmem:[#allocation44_spill] sm:$0xff] %v8505_v51  ;;  %v8511_v30 = vpop.f32.mrf.mxu0  ;;  %v4465_v51 = vshrl.u32 %v4164_v24, 16  ;;  %v4457_v38 = vor.u32 %v4456_v29, %v8509_v40  ;;  %v4460_v11 = vshll.u32 %v8503_v56, 16  ;;  %v4424_v45 = vrot.slane %v4423_v63, 4 }
 0x182   : > { %9446 = vst [vmem:[#allocation45_spill] sm:$0xff] %v8511_v30  ;;  %v8517_v0 = vpop.f32.mrf.mxu1  ;;  %v4438_v50 = vrot.slane %v4436_v54, 5  ;;  %v5000_v24 = vrot.slane %v8503_v56, 5  ;;  %v9450_v25 = vcombine.low %v8330_v32, %v8359_v60  ;;  %v4434_v1 = vrot.slane %v4433_v20, 4 }
 0x183   : > { %6495 = vmatmul.mubr.msk.bf16.vlgmr.msra.gmra.mxu1 %vm1252_vm9, %v8185_v48  ;;  %v8533_v46 = vpop.f32.mrf.mxu0  ;;  %v4866_v48 = vld [vmem:[#allocation2 + $0xa8] sm:$0xe]  ;;  %v4999_v29 = vrot.slane %v4997_v8, 4  ;;  %v5007_v18 = vrot.slane %v8529_v37, 5  ;;  %v5006_v63 = vrot.slane %v5004_v9, 4  ;;  %v4467_v54 = vrot.slane %v4465_v51, 4 }
 0x184   : > { %6498 = vmatprep.mubr.msk.bf16.mxu1 %vm1252_vm9, %v8256_v15  ;;  %9447 = vst [vmem:[#allocation46_spill] sm:$0xff] %v8533_v46  ;;  %v8535_v43 = vpop.f32.mrf.mxu1  ;;  %v9449_v15 = vcombine.low %v8275_v7, %v8281_v3  ;;  %v6059_v46 = vrot.slane %v4865_v12, 9  ;;  %v4448_v3 = vrot.slane %v4447_v21, 4  ;;  %v4470_v12 = vrot.slane %v4468_v17, 5 }
 0x185   : > { %v8539_v30 = vpop.f32.mrf.mxu0  ;;  %v4458_v56 = vrot.slane %v4457_v38, 4  ;;  %v4462_v26 = vrot.slane %v4460_v11, 5  ;;  %v4478_v41 = vshrl.u32 %v4165_v58, 16  ;;  %v4405_v32 = vsel %vm6793_vm12, %v8521_v10, %v8468_v13 }
 0x186   : > { %9448 = vst [vmem:[#allocation47_spill] sm:$0xff] %v8539_v30  ;;  %6537 = vmatmul.mubr.msk.bf16.gmra.mxu0 %vm1252_vm9, %v9449_v15  ;;  %v8546_v5 = vpop.f32.mrf.mxu1  ;;  %v6060_v30 = vrot.slane %v4866_v48, 9  ;;  %v4415_v60 = vsel %vm6793_vm12, %v4410_v59, %v8513_v36  ;;  %v8566_v51 = vsel %vm7180_vm1, %v4992_v47, %v4993_v33  ;;  %v8570_v17 = vsel %vm7180_vm1, %v6059_v46, %v4997_v8  ;;  %v4867_v33 = vld [vmem:[#allocation2 + $0xb4] sm:$0xe]  ;;  %v8599_v48 = vld [vmem:[#allocation2 + $0xb8] sm:$0xf] }
 0x187   : > { %6540 = vmatprep.mubr.msk.bf16.mxu0 %vm1252_vm9, %v9450_v25  ;;  %v8553_v7 = vpop.f32.mrf.mxu0  ;;  %v4429_v13 = vsel %vm6793_vm12, %v4424_v45, %v8491_v57  ;;  %v4439_v10 = vsel %vm6793_vm12, %v4434_v1, %v4438_v50  ;;  %v8581_v36 = vsel %vm7180_vm1, %v4999_v29, %v5000_v24  ;;  %v9451_v8 = vld [vmem:[#allocation25_spill] sm:$0xff]  ;;  %v4453_v57 = vsel %vm6793_vm12, %v4448_v3, %v8509_v40  ;;  %v9458_v25 = vld [vmem:[#allocation6_spill] sm:$0xff] }
 0x188   : > { %v1634_v15 = vpop.f32.mrf.mxu1  ;;  %v8585_v47 = vsel %vm7180_vm1, %v6060_v30, %v5004_v9  ;;  %v8596_v58 = vsel %vm7180_vm1, %v5006_v63, %v5007_v18  ;;  %v4471_v46 = vor.u32 %v4470_v12, %v4467_v54  ;;  %v4484_v21 = vshll.u32 %v8529_v37, 16  ;;  %v9459_v54 = vld [vmem:[#allocation8_spill] sm:$0xff] }
 0x189   : > { %v8555_v23 = vpop.f32.mrf.mxu0  ;;  %v4463_v9 = vsel %vm6793_vm12, %v4458_v56, %v4462_v26  ;;  %v8603_v59 = vrot.slane %v4474_v14, 5  ;;  %v4480_v38 = vrot.slane %v4478_v41, 4  ;;  %v5011_v11 = vrot.slane %v8599_v48, 5  ;;  %v9460_v56 = vld [vmem:[#allocation7_spill] sm:$0xff] }
 0x18a   : > { %v6296_v20 = vpop.f32.mrf.mxu1  ;;  %v9452_v18 = vcombine.low %v8363_v55, %v8378_v27  ;;  %v9453_v40 = vsel %vm6793_vm12, %v8388_v62, %v8390_v19  ;;  %v9454_v14 = vsel %vm6793_vm12, %v8380_v53, %v8332_v49  ;;  %v9455_v26 = vsel %vm6793_vm12, %v8464_v28, %v8441_v39  ;;  %v8638_v19 = vld [vmem:[#allocation2 + $0xbc] sm:$0x1] }
 0x18b   : > { %6499 = vmatmul.mubr.msk.bf16.gmra.mxu1 %vm1252_vm9, %v8266_v2  ;;  %v8589_v2 = vpop.f32.mrf.mxu0  ;;  %v8622_v41 = vcombine.low %v9454_v14, %v9453_v40  ;;  %v9456_v55 = vsel %vm6793_vm12, %v8439_v6, %v8392_v52  ;;  %v6073_v62 = vcombine.low %v8447_v31, %v8501_v22  ;;  %v6061_v49 = vrot.slane %v4867_v33, 9  ;;  %v8652_v31 = vld [vmem:[#allocation2 + $0xb4] sm:$0xf]  ;;  %v9462_v33 = vld [vmem:[#allocation11_spill] sm:$0xff] }
 0x18c   : > { %6502 = vmatprep.mubr.msk.bf16.mxu1 %vm1252_vm9, %v9451_v8  ;;  %v1647_v30 = vpop.f32.mrf.mxu1  ;;  %v8634_v27 = vcombine.low %v9456_v55, %v9455_v26  ;;  %v9457_v37 = vcombine.low %v8396_v44, %v8400_v42  ;;  %v8644_v39 = vcombine.low %v4405_v32, %v4415_v60  ;;  %v6074_v28 = vcombine.low %v8525_v4, %v8566_v51  ;;  %v4171_v55 = vld [vmem:[#allocation2 + $0xc4] sm:$0xf] }
 0x18d   : > { %v8606_v45 = vpop.f32.mrf.mxu0  ;;  %v8648_v52 = vcombine.low %v4429_v13, %v4439_v10  ;;  %v6075_v6 = vcombine.low %v8570_v17, %v8581_v36  ;;  %v8656_v50 = vcombine.low %v4453_v57, %v4463_v9  ;;  %v6076_v44 = vcombine.low %v8585_v47, %v8596_v58  ;;  %v9461_v13 = vld [vmem:[#allocation10_spill] sm:$0xff]  ;;  %v9463_v57 = vld [vmem:[#allocation15_spill] sm:$0xff]  ;;  %v4173_v58 = vld [vmem:[#allocation2 + $0xcc] sm:$0xf] }
 0x18e   : > { %6541 = vmatmul.mubr.msk.bf16.gmra.mxu0 %vm1252_vm9, %v9452_v18  ;;  %v6297_v53 = vpop.f32.mrf.mxu1  ;;  %v8660_v42 = vrot.slane %v4471_v46, 4  ;;  %v8662_v24 = vrot.slane %v4484_v21, 5  ;;  %v1640_v4 = vadd.f32 %v8517_v0, %v9458_v25  ;;  %v4481_v29 = vor.u32 %v4480_v38, %v8603_v59  ;;  %v9465_v38 = vld [vmem:[#allocation17_spill] sm:$0xff] }
 0x18f   : > { %6544 = vmatprep.mubr.msk.bf16.mxu0 %vm1252_vm9, %v9457_v37  ;;  %v8654_v22 = vpop.f32.mrf.mxu0  ;;  %v5013_v3 = vrot.slane %v5011_v11, 4  ;;  %v5014_v63 = vrot.slane %v8638_v19, 5  ;;  %v1632_v12 = vadd.f32 %v8535_v43, %v9459_v54  ;;  %v1643_v32 = vadd.f32 %v8546_v5, %v9460_v56  ;;  %v9464_v5 = vld [vmem:[#allocation13_spill] sm:$0xff]  ;;  %v4170_v54 = vld [vmem:[#allocation2 + $0xc0] sm:$0xf]  ;;  %v9469_v56 = vld [vmem:[#allocation36_spill] sm:$0xff] }
 0x190   : > { %v1650_v1 = vpop.f32.mrf.mxu1  ;;  %v8676_v51 = vsel %vm7180_vm1, %v6061_v49, %v5011_v11  ;;  %v4489_v0 = vshrl.u32 %v8652_v31, 16  ;;  %v1635_v10 = vadd.f32 %v1634_v15, %v9461_v13  ;;  %v1656_v8 = vadd.f32 %v6296_v20, %v9462_v33  ;;  %v9467_v49 = vld [vmem:[#allocation34_spill] sm:$0xff]  ;;  %v9468_v37 = vld [vmem:[#allocation21_spill] sm:$0xff]  ;;  %v9477_v15 = vld [vmem:[#allocation47_spill] sm:$0xff] }
 0x191   : > { %v8672_v60 = vpop.f32.mrf.mxu0  ;;  %v1648_v46 = vadd.f32 %v1647_v30, %v9463_v57  ;;  %v4492_v43 = vshll.u32 %v8652_v31, 16  ;;  %v1659_v9 = vadd.f32 %v6297_v53, %v9464_v5  ;;  %v1651_v18 = vadd.f32 %v1650_v1, %v9465_v38  ;;  %v9466_v30 = vld [vmem:[#allocation19_spill] sm:$0xff]  ;;  %v9470_v13 = vld [vmem:[#allocation37_spill] sm:$0xff] }
 0x192   : > { %v6300_v21 = vpop.f32.mrf.mxu1  ;;  %v4498_v20 = vshll.u32 %v8599_v48, 16  ;;  %v8697_v14 = vrot.slane %v4481_v29, 4  ;;  %v8701_v26 = vsel %vm7180_vm1, %v5013_v3, %v5014_v63  ;;  %v8704_v53 = vadd.f32 %v9467_v49, %v1640_v4  ;;  %v8718_v63 = vld [vmem:[#allocation2 + $0xc8] sm:$0x1]  ;;  %v9472_v5 = vld [vmem:[#allocation41_spill] sm:$0xff] }
 0x193   : > { %6503 = vmatmul.mubr.msk.bf16.gmra.mxu1 %vm1252_vm9, %v8408_v16  ;;  %v8689_v11 = vpop.f32.mrf.mxu0  ;;  %v1672_v16 = vadd.f32 %v6300_v21, %v9466_v30  ;;  %v5018_v1 = vrot.slane %v4171_v55, 5  ;;  %v8711_v29 = vadd.f32 %v9469_v56, %v1632_v12  ;;  %v8714_v33 = vadd.f32 %v9470_v13, %v1643_v32  ;;  %v9471_v57 = vld [vmem:[#allocation39_spill] sm:$0xff] }
 0x194   : > { %6506 = vmatprep.mubr.msk.bf16.mxu1 %vm1252_vm9, %v8420_v34  ;;  %v1663_v40 = vpop.f32.mrf.mxu1  ;;  %v4868_v34 = vld [vmem:[#allocation2 + $0xc0] sm:$0xe]  ;;  %v4502_v4 = vshrl.u32 %v8599_v48, 16  ;;  %v8721_v21 = vadd.f32 %v9471_v57, %v1635_v10  ;;  %v9473_v38 = vld [vmem:[#allocation43_spill] sm:$0xff]  ;;  %v4513_v10 = vshrl.u32 %v4170_v54, 16  ;;  %v4516_v57 = vshll.u32 %v4170_v54, 16 }
 0x195   : > { %v1664_v31 = vadd.f32 %v1663_v40, %v9468_v37  ;;  %v8707_v25 = vpop.f32.mrf.mxu0  ;;  %v8727_v30 = vadd.f32 %v9473_v38, %v1648_v46  ;;  %v9474_v12 = vld [vmem:[#allocation23_spill] sm:$0xff]  ;;  %v6062_v49 = vrot.slane %v4868_v34, 9  ;;  %v9475_v37 = vld [vmem:[#allocation45_spill] sm:$0xff]  ;;  %v9476_v48 = vld [vmem:[#allocation46_spill] sm:$0xff]  ;;  %v5020_v34 = vrot.slane %v5018_v1, 4 }
 0x196   : > { %6545 = vmatmul.mubr.msk.bf16.gmra.mxu0 %vm1252_vm9, %v6073_v62  ;;  %v6301_v3 = vpop.f32.mrf.mxu1  ;;  %v8724_v62 = vadd.f32 %v9472_v5, %v1656_v8  ;;  %v8736_v56 = vadd.f32 %v9476_v48, %v1651_v18  ;;  %v8739_v8 = vadd.f32 %v9477_v15, %v1672_v16  ;;  %v9478_v5 = vld [vmem:[#allocation26_spill] sm:$0xff]  ;;  %v4491_v54 = vrot.slane %v4489_v0, 4 }
 0x197   : > { %6548 = vmatprep.mubr.msk.bf16.mxu0 %vm1252_vm9, %v6074_v28  ;;  %v1675_v40 = vadd.f32 %v6301_v3, %v9474_v12  ;;  %v8730_v32 = vpop.f32.mrf.mxu0  ;;  %v8733_v28 = vadd.f32 %v9475_v37, %v1659_v9  ;;  %v8742_v46 = vadd.f32 %v8553_v7, %v1664_v31  ;;  %v5021_v9 = vrot.slane %v8718_v63, 5  ;;  %v9479_v7 = vld [vmem:[#allocation28_spill] sm:$0xff] }
 0x198   : > { %v1666_v13 = vpop.f32.mrf.mxu1  ;;  %v4494_v15 = vrot.slane %v4492_v43, 5  ;;  %v4522_v16 = vshll.u32 %v4171_v55, 16  ;;  %v4526_v37 = vshrl.u32 %v4171_v55, 16  ;;  %v6077_v43 = vcombine.low %v8676_v51, %v8701_v26  ;;  %v8780_v51 = vld [vmem:[#allocation2 + $0xd4] sm:$0x1] }
 0x199   : > { %v1667_v3 = vadd.f32 %v1666_v13, %v9478_v5  ;;  %v8745_v38 = vpop.f32.mrf.mxu0  ;;  %v8749_v12 = vadd.f32 %v8555_v23, %v1675_v40  ;;  %v4487_v23 = vsel %vm6793_vm12, %v8697_v14, %v8662_v24  ;;  %v8762_v40 = vrot.slane %v4498_v20, 5  ;;  %v4174_v20 = vld [vmem:[#allocation2 + $0xd0] sm:$0xf] }
 0x19a   : > { %v6304_v18 = vpop.f32.mrf.mxu1  ;;  %v4504_v55 = vrot.slane %v4502_v4, 4  ;;  %v4515_v13 = vrot.slane %v4513_v10, 4  ;;  %v4518_v5 = vrot.slane %v4516_v57, 5  ;;  %v5022_v24 = vsel %vm7180_vm1, %v5020_v34, %v5021_v9 }
 0x19b   : > { %6507 = vmatmul.mubr.msk.bf16.gmra.mxu1 %vm1252_vm9, %v8622_v41  ;;  %v1688_v31 = vadd.f32 %v6304_v18, %v9479_v7  ;;  %v8756_v48 = vpop.f32.mrf.mxu0  ;;  %v8765_v41 = vadd.f32 %v8589_v2, %v1667_v3  ;;  %v5019_v2 = vsel %vm7180_vm1, %v6062_v49, %v5018_v1  ;;  %v4508_v17 = vshll.u32 %v8638_v19, 16  ;;  %v4869_v1 = vld [vmem:[#allocation2 + $0xcc] sm:$0xe]  ;;  %v9481_v49 = vld [vmem:[#allocation31_spill] sm:$0xff] }
 0x19c   : > { %6510 = vmatprep.mubr.msk.bf16.mxu1 %vm1252_vm9, %v8634_v27  ;;  %v1679_v0 = vpop.f32.mrf.mxu1  ;;  %v9480_v27 = vld [vmem:[#allocation30_spill] sm:$0xff]  ;;  %v8790_v36 = vrot.slane %v4522_v16, 5  ;;  %v5025_v4 = vrot.slane %v4174_v20, 5  ;;  %v4495_v47 = vor.u32 %v4494_v15, %v4491_v54  ;;  %v4505_v34 = vor.u32 %v4504_v55, %v8762_v40 }
 0x19d   : > { %v1680_v18 = vadd.f32 %v1679_v0, %v9480_v27  ;;  %v8770_v7 = vpop.f32.mrf.mxu0  ;;  %v8783_v14 = vadd.f32 %v8606_v45, %v1688_v31  ;;  %v9482_v45 = vsel %vm6793_vm12, %v8660_v42, %v8603_v59  ;;  %v6078_v9 = vcombine.low %v5019_v2, %v5022_v24  ;;  %v9483_v31 = vld [vmem:[#allocation33_spill] sm:$0xff] }
 0x19e   : > { %6549 = vmatmul.mubr.msk.bf16.gmra.mxu0 %vm1252_vm9, %v6075_v6  ;;  %v6305_v26 = vpop.f32.mrf.mxu1  ;;  %v4528_v6 = vrot.slane %v4526_v37, 4  ;;  %v6028_v3 = vcombine.low %v9482_v45, %v4487_v23  ;;  %v4519_v16 = vor.u32 %v4518_v5, %v4515_v13  ;;  %v4532_v37 = vshll.u32 %v8718_v63, 16  ;;  %v9484_v63 = vld [vmem:[#allocation9_spill] sm:$0xff] }
 0x19f   : > { %6552 = vmatprep.mubr.msk.bf16.mxu0 %vm1252_vm9, %v6076_v44  ;;  %v1691_v10 = vadd.f32 %v6305_v26, %v9481_v49  ;;  %v8793_v57 = vpop.f32.mrf.mxu0  ;;  %v8801_v44 = vadd.f32 %v8654_v22, %v1680_v18  ;;  %v6063_v26 = vrot.slane %v4869_v1, 9  ;;  %v5028_v59 = vrot.slane %v8780_v51, 5 }
 0x1a0   : > { %v1682_v19 = vpop.f32.mrf.mxu1  ;;  %v4529_v22 = vor.u32 %v4528_v6, %v8790_v36  ;;  %v5027_v15 = vrot.slane %v5025_v4, 4  ;;  %v4537_v23 = vshrl.u32 %v4173_v58, 16  ;;  %v4540_v55 = vshll.u32 %v4173_v58, 16 }
 0x1a1   : > { %v1683_v0 = vadd.f32 %v1682_v19, %v9483_v31  ;;  %v8806_v27 = vpop.f32.mrf.mxu0  ;;  %v8810_v42 = vadd.f32 %v8672_v60, %v1691_v10  ;;  %v4546_v18 = vshll.u32 %v4174_v20, 16  ;;  %v4550_v2 = vshrl.u32 %v4174_v20, 16  ;;  %v9485_v10 = vld [vmem:[#allocation14_spill] sm:$0xff]  ;;  %v9486_v31 = vld [vmem:[#allocation12_spill] sm:$0xff] }
 0x1a2   : > { %v6308_v54 = vpop.f32.mrf.mxu1  ;;  %v4496_v1 = vrot.slane %v4495_v47, 4  ;;  %v4510_v49 = vrot.slane %v4508_v17, 5  ;;  %v4520_v6 = vrot.slane %v4519_v16, 4  ;;  %v4534_v19 = vrot.slane %v4532_v37, 5 }
 0x1a3   : > { %6511 = vmatmul.mubr.msk.bf16.gmra.mxu1 %vm1252_vm9, %v8644_v39  ;;  %v1704_v13 = vadd.f32 %v6308_v54, %v9484_v63  ;;  %v8818_v5 = vpop.f32.mrf.mxu0  ;;  %v8821_v60 = vadd.f32 %v8689_v11, %v1683_v0  ;;  %v4506_v39 = vrot.slane %v4505_v34, 4  ;;  %v4530_v47 = vrot.slane %v4529_v22, 4 }
 0x1a4   : > { %6514 = vmatprep.mubr.msk.bf16.mxu1 %vm1252_vm9, %v8648_v52  ;;  %v1695_v24 = vpop.f32.mrf.mxu1  ;;  %v5026_v52 = vsel %vm7180_vm1, %v6063_v26, %v5025_v4  ;;  %v5029_v17 = vsel %vm7180_vm1, %v5027_v15, %v5028_v59  ;;  %v4539_v34 = vrot.slane %v4537_v23, 4  ;;  %v4542_v16 = vrot.slane %v4540_v55, 5 }
 0x1a5   : > { %v1696_v45 = vadd.f32 %v1695_v24, %v9485_v10  ;;  %v8824_v58 = vpop.f32.mrf.mxu0  ;;  %v8830_v20 = vadd.f32 %v8707_v25, %v1704_v13  ;;  %v4552_v37 = vrot.slane %v4550_v2, 4  ;;  %v9487_v25 = vld [vmem:[#allocation16_spill] sm:$0xff]  ;;  %v6079_v61 = vcombine.low %v5026_v52, %v5029_v17  ;;  %v9488_v13 = vld [vmem:[#allocation18_spill] sm:$0xff] }
 0x1a6   : > { %6553 = vmatmul.mubr.msk.bf16.gmra.mxu0 %vm1252_vm9, %v6077_v43  ;;  %v6309_v11 = vpop.f32.mrf.mxu1  ;;  %v4548_v43 = vrot.slane %v4546_v18, 5  ;;  %v4525_v23 = vsel %vm6793_vm12, %v4520_v6, %v8790_v36  ;;  %v4535_v55 = vsel %vm6793_vm12, %v4530_v47, %v4534_v19  ;;  %v4543_v2 = vor.u32 %v4542_v16, %v4539_v34  ;;  %v9491_v16 = vld [vmem:[#allocation24_spill] sm:$0xff] }
 0x1a7   : > { %6556 = vmatprep.mubr.msk.bf16.mxu0 %vm1252_vm9, %v6078_v9  ;;  %v1707_v0 = vadd.f32 %v6309_v11, %v9486_v31  ;;  %v2152_v54 = vpop.f32.mrf.mxu0  ;;  %v8837_v63 = vadd.f32 %v8730_v32, %v1696_v45  ;;  %v4501_v9 = vsel %vm6793_vm12, %v4496_v1, %v8762_v40  ;;  %v4511_v32 = vsel %vm6793_vm12, %v4506_v39, %v4510_v49  ;;  %v9489_v39 = vld [vmem:[#allocation20_spill] sm:$0xff] }
 0x1a8   : > { %v1698_v4 = vpop.f32.mrf.mxu1  ;;  %v4556_v40 = vshll.u32 %v8780_v51, 16  ;;  %v4553_v24 = vor.u32 %v4552_v37, %v4548_v43  ;;  %v6029_v6 = vcombine.low %v4501_v9, %v4511_v32  ;;  %v6030_v45 = vcombine.low %v4525_v23, %v4535_v55 }
 0x1a9   : > { %v1699_v26 = vadd.f32 %v1698_v4, %v9487_v25  ;;  %v6351_v22 = vpop.f32.mrf.mxu0  ;;  %v8844_v59 = vadd.f32 %v8745_v38, %v1707_v0  ;;  %v4544_v11 = vrot.slane %v4543_v2, 4  ;;  %v9492_v4 = vld [vmem:[#allocation27_spill] sm:$0xff] }
 0x1aa   : > { %v6312_v15 = vpop.f32.mrf.mxu1  ;;  %v4558_v19 = vrot.slane %v4556_v40, 5  ;;  %v4554_v47 = vrot.slane %v4553_v24, 4 }
 0x1ab   : > { %6515 = vmatmul.mubr.msk.bf16.gmra.mxu1 %vm1252_vm9, %v8656_v50  ;;  %v1720_v18 = vadd.f32 %v6312_v15, %v9488_v13  ;;  %v2155_v38 = vpop.f32.mrf.mxu0  ;;  %v8859_v50 = vadd.f32 %v8756_v48, %v1699_v26  ;;  %v4549_v26 = vsel %vm6793_vm12, %v4544_v11, %v4548_v43 }
 0x1ac   : > { %6518 = vmatprep.mubr.msk.bf16.mxu1 %vm1252_vm9, %v6028_v3  ;;  %v1711_v1 = vpop.f32.mrf.mxu1  ;;  %v9490_v3 = vld [vmem:[#allocation22_spill] sm:$0xff] }
 0x1ad   : > { %v1712_v49 = vadd.f32 %v1711_v1, %v9489_v39  ;;  %v6354_v10 = vpop.f32.mrf.mxu0  ;;  %v8864_v36 = vadd.f32 %v8770_v7, %v1720_v18  ;;  %v9494_v18 = vld [vmem:[#allocation32_spill] sm:$0xff]  ;;  %v9495_v1 = vld [vmem:[#allocation35_spill] sm:$0xff] }
 0x1ae   : > { %6557 = vmatmul.mubr.msk.bf16.gmra.mxu0 %vm1252_vm9, %v6079_v61  ;;  %v6313_v51 = vpop.f32.mrf.mxu1 }
 0x1af   : > { %v1723_v52 = vadd.f32 %v6313_v51, %v9490_v3  ;;  %v2168_v17 = vpop.f32.mrf.mxu0  ;;  %v8868_v48 = vadd.f32 %v8793_v57, %v1712_v49  ;;  %v4559_v57 = vsel %vm6793_vm12, %v4554_v47, %v4558_v19 }
 0x1b0   : > { %v1714_v34 = vpop.f32.mrf.mxu1  ;;  %v6031_v13 = vcombine.low %v4549_v26, %v4559_v57 }
 0x1b1   : > { %v1715_v31 = vadd.f32 %v1714_v34, %v9491_v16  ;;  %v6355_v0 = vpop.f32.mrf.mxu0  ;;  %v8872_v37 = vadd.f32 %v8806_v27, %v1723_v52  ;;  %v9493_v27 = vld [vmem:[#allocation29_spill] sm:$0xff]  ;;  %v9497_v52 = vld [vmem:[#allocation40_spill] sm:$0xff]  ;;  %v9498_v16 = vld [vmem:[#allocation42_spill] sm:$0xff] }
 0x1b2   : > { %v6316_v7 = vpop.f32.mrf.mxu1 }
 0x1b3   : > { %6519 = vmatmul.mubr.msk.bf16.gmra.mxu1 %vm1252_vm9, %v6029_v6  ;;  %v1736_v25 = vadd.f32 %v6316_v7, %v9492_v4  ;;  %v2171_v9 = vpop.f32.mrf.mxu0  ;;  %v8882_v61 = vadd.f32 %v8818_v5, %v1715_v31  ;;  %v9496_v6 = vld [vmem:[#allocation38_spill] sm:$0xff] }
 0x1b4   : > { %6522 = vmatprep.mubr.msk.bf16.mxu1 %vm1252_vm9, %v6030_v45  ;;  %v1727_v15 = vpop.f32.mrf.mxu1 }
 0x1b5   : > { %v1728_v32 = vadd.f32 %v1727_v15, %v9493_v27  ;;  %v6394_v23 = vpop.f32.mrf.mxu0  ;;  %v8886_v55 = vadd.f32 %v8824_v58, %v1736_v25  ;;  %v9499_v25 = vld [vmem:[#allocation44_spill] sm:$0xff] }
 0x1b6   : > { %v6317_v40 = vpop.f32.mrf.mxu1 }
 0x1b7   : > { %v1739_v2 = vadd.f32 %v6317_v40, %v9494_v18  ;;  %v3140_v24 = vpop.f32.mrf.mxu0  ;;  %v8889_v43 = vadd.f32 %v2152_v54, %v1728_v32 }
 0x1b8   : > { %v1730_v35 = vpop.f32.mrf.mxu1 }
 0x1b9   : > { %v1731_v39 = vadd.f32 %v1730_v35, %v9495_v1  ;;  %v6395_v49 = vpop.f32.mrf.mxu0  ;;  %v8892_v5 = vadd.f32 %v6351_v22, %v1739_v2 }
 0x1bb   : > { %v6320_v51 = vpop.f32.mrf.mxu1  ;;  %6523 = vmatmul.mubr.msk.bf16.gmra.mxu1 %vm1252_vm9, %v6031_v13  ;;  %v3143_v58 = vpop.f32.mrf.mxu0  ;;  %v8896_v19 = vadd.f32 %v2155_v38, %v1731_v39 }
 0x1bc   : > { %v1752_v45 = vadd.f32 %v6320_v51, %v9496_v6 }
 0x1bd   : > { %v1743_v3 = vpop.f32.mrf.mxu1  ;;  %v6398_v47 = vpop.f32.mrf.mxu0 }
 0x1be   : > { %v1744_v11 = vadd.f32 %v1743_v3, %v9497_v52  ;;  %v8899_v54 = vadd.f32 %v6354_v10, %v1752_v45 }
 0x1bf   : > { %v6321_v34 = vpop.f32.mrf.mxu1  ;;  %v3156_v7 = vpop.f32.mrf.mxu0 }
 0x1c0   : > { %v1755_v31 = vadd.f32 %v6321_v34, %v9498_v16  ;;  %v8902_v22 = vadd.f32 %v2168_v17, %v1744_v11 }
 0x1c1   : > { %v1746_v4 = vpop.f32.mrf.mxu1  ;;  %v6399_v57 = vpop.f32.mrf.mxu0 }
 0x1c2   : > { %v1747_v26 = vadd.f32 %v1746_v4, %v9499_v25  ;;  %v8905_v15 = vadd.f32 %v6355_v0, %v1755_v31 }
 0x1c3   : > { %v6360_v38 = vpop.f32.mrf.mxu1  ;;  %v3159_v32 = vpop.f32.mrf.mxu0 }
 0x1c4   : > { %v2543_v27 = vadd.f32 %v6360_v38, %v8704_v53  ;;  %v8908_v40 = vadd.f32 %v2171_v9, %v1747_v26 }
 0x1c5   : > { %v2414_v10 = vpop.f32.mrf.mxu1  ;;  %v6402_v18 = vpop.f32.mrf.mxu0 }
 0x1c6   : > { %v2541_v13 = vadd.f32 %v2414_v10, %v8711_v29  ;;  %v8911_v2 = vadd.f32 %v6394_v23, %v2543_v27 }
 0x1c7   : > { %v6361_v17 = vpop.f32.mrf.mxu1  ;;  %v3172_v1 = vpop.f32.mrf.mxu0 }
 0x1c8   : > { %v2544_v35 = vadd.f32 %v6361_v17, %v8714_v33  ;;  %v8914_v39 = vadd.f32 %v3140_v24, %v2541_v13 }
 0x1c9   : > { %v2417_v0 = vpop.f32.mrf.mxu1  ;;  %v6403_v6 = vpop.f32.mrf.mxu0 }
 0x1ca   : > { %v2542_v51 = vadd.f32 %v2417_v0, %v8721_v21  ;;  %v8917_v53 = vadd.f32 %v6395_v49, %v2544_v35 }
 0x1cb   : > { %v6364_v9 = vpop.f32.mrf.mxu1  ;;  %v3175_v3 = vpop.f32.mrf.mxu0 }
 0x1cc   : > { %v2547_v45 = vadd.f32 %v6364_v9, %v8724_v62  ;;  %v8920_v29 = vadd.f32 %v3143_v58, %v2542_v51 }
 0x1cd   : > { %v2430_v23 = vpop.f32.mrf.mxu1  ;;  %v6406_v11 = vpop.f32.mrf.mxu0 }
 0x1ce   : > { %v2545_v52 = vadd.f32 %v2430_v23, %v8727_v30  ;;  %v8923_v33 = vadd.f32 %v6398_v47, %v2547_v45 }
 0x1cf   : > { %v6365_v24 = vpop.f32.mrf.mxu1  ;;  %v3188_v16 = vpop.f32.mrf.mxu0 }
 0x1d0   : > { %v2548_v34 = vadd.f32 %v6365_v24, %v8733_v28  ;;  %v8926_v21 = vadd.f32 %v3156_v7, %v2545_v52 }
 0x1d1   : > { %v2433_v49 = vpop.f32.mrf.mxu1  ;;  %v6407_v4 = vpop.f32.mrf.mxu0 }
 0x1d2   : > { %v2546_v31 = vadd.f32 %v2433_v49, %v8736_v56  ;;  %v8929_v62 = vadd.f32 %v6399_v57, %v2548_v34 }
 0x1d3   : > { %v6368_v58 = vpop.f32.mrf.mxu1  ;;  %v3191_v26 = vpop.f32.mrf.mxu0 }
 0x1d4   : > { %v2551_v25 = vadd.f32 %v6368_v58, %v8739_v8  ;;  %v8932_v30 = vadd.f32 %v3159_v32, %v2546_v31 }
 0x1d5   : > { %v2446_v47 = vpop.f32.mrf.mxu1  ;;  %v6410_v27 = vpop.f32.mrf.mxu0 }
 0x1d6   : > { %v2549_v38 = vadd.f32 %v2446_v47, %v8742_v46  ;;  %v8935_v28 = vadd.f32 %v6402_v18, %v2551_v25 }
 0x1d7   : > { %v6369_v7 = vpop.f32.mrf.mxu1  ;;  %v3204_v13 = vpop.f32.mrf.mxu0 }
 0x1d8   : > { %v2552_v10 = vadd.f32 %v6369_v7, %v8749_v12  ;;  %v8938_v56 = vadd.f32 %v3172_v1, %v2549_v38 }
 0x1d9   : > { %v2449_v57 = vpop.f32.mrf.mxu1  ;;  %v6411_v35 = vpop.f32.mrf.mxu0 }
 0x1da   : > { %v2550_v17 = vadd.f32 %v2449_v57, %v8765_v41  ;;  %v8941_v8 = vadd.f32 %v6403_v6, %v2552_v10 }
 0x1db   : > { %v6372_v32 = vpop.f32.mrf.mxu1  ;;  %v3207_v51 = vpop.f32.mrf.mxu0 }
 0x1dc   : > { %v2555_v0 = vadd.f32 %v6372_v32, %v8783_v14  ;;  %v8944_v46 = vadd.f32 %v3175_v3, %v2550_v17 }
 0x1dd   : > { %v2462_v18 = vpop.f32.mrf.mxu1  ;;  %v6414_v45 = vpop.f32.mrf.mxu0 }
 0x1de   : > { %v2553_v9 = vadd.f32 %v2462_v18, %v8801_v44  ;;  %v8947_v12 = vadd.f32 %v6406_v11, %v2555_v0 }
 0x1df   : > { %v6373_v1 = vpop.f32.mrf.mxu1  ;;  %v3220_v52 = vpop.f32.mrf.mxu0 }
 0x1e0   : > { %v2556_v23 = vadd.f32 %v6373_v1, %v8810_v42  ;;  %v8950_v41 = vadd.f32 %v3188_v16, %v2553_v9 }
 0x1e1   : > { %v2465_v6 = vpop.f32.mrf.mxu1  ;;  %v6415_v34 = vpop.f32.mrf.mxu0 }
 0x1e2   : > { %v2554_v24 = vadd.f32 %v2465_v6, %v8821_v60  ;;  %v8953_v14 = vadd.f32 %v6407_v4, %v2556_v23 }
 0x1e3   : > { %v6376_v3 = vpop.f32.mrf.mxu1  ;;  %v3223_v31 = vpop.f32.mrf.mxu0 }
 0x1e4   : > { %v2559_v49 = vadd.f32 %v6376_v3, %v8830_v20  ;;  %v8956_v44 = vadd.f32 %v3191_v26, %v2554_v24 }
 0x1e5   : > { %v2478_v11 = vpop.f32.mrf.mxu1  ;;  %v6418_v25 = vpop.f32.mrf.mxu0 }
 0x1e6   : > { %v2557_v58 = vadd.f32 %v2478_v11, %v8837_v63  ;;  %v8959_v42 = vadd.f32 %v6410_v27, %v2559_v49 }
 0x1e7   : > { %v6377_v16 = vpop.f32.mrf.mxu1  ;;  %v3236_v38 = vpop.f32.mrf.mxu0 }
 0x1e8   : > { %v2560_v47 = vadd.f32 %v6377_v16, %v8844_v59  ;;  %v8962_v60 = vadd.f32 %v3204_v13, %v2557_v58 }
 0x1e9   : > { %v2481_v4 = vpop.f32.mrf.mxu1  ;;  %v6419_v10 = vpop.f32.mrf.mxu0 }
 0x1ea   : > { %v2558_v7 = vadd.f32 %v2481_v4, %v8859_v50  ;;  %v8965_v20 = vadd.f32 %v6411_v35, %v2560_v47 }
 0x1eb   : > { %v6380_v26 = vpop.f32.mrf.mxu1  ;;  %v3239_v17 = vpop.f32.mrf.mxu0 }
 0x1ec   : > { %v2563_v57 = vadd.f32 %v6380_v26, %v8864_v36  ;;  %v8968_v63 = vadd.f32 %v3207_v51, %v2558_v7 }
 0x1ed   : > { %v2494_v27 = vpop.f32.mrf.mxu1  ;;  %v6422_v0 = vpop.f32.mrf.mxu0 }
 0x1ee   : > { %v2561_v32 = vadd.f32 %v2494_v27, %v8868_v48  ;;  %v8971_v59 = vadd.f32 %v6414_v45, %v2563_v57 }
 0x1ef   : > { %v6381_v13 = vpop.f32.mrf.mxu1  ;;  %v3252_v9 = vpop.f32.mrf.mxu0 }
 0x1f0   : > { %v2564_v18 = vadd.f32 %v6381_v13, %v8872_v37  ;;  %v8974_v50 = vadd.f32 %v3220_v52, %v2561_v32 }
 0x1f1   : > { %v2497_v35 = vpop.f32.mrf.mxu1  ;;  %v6423_v23 = vpop.f32.mrf.mxu0 }
 0x1f2   : > { %v2562_v1 = vadd.f32 %v2497_v35, %v8882_v61  ;;  %v8977_v36 = vadd.f32 %v6415_v34, %v2564_v18 }
 0x1f3   : > { %v6384_v51 = vpop.f32.mrf.mxu1  ;;  %v3255_v24 = vpop.f32.mrf.mxu0 }
 0x1f4   : > { %v2567_v6 = vadd.f32 %v6384_v51, %v8886_v55  ;;  %v8980_v48 = vadd.f32 %v3223_v31, %v2562_v1 }
 0x1f5   : > { %v2510_v45 = vpop.f32.mrf.mxu1  ;;  %v8983_v49 = vpop.f32.mrf.mxu0 }
 0x1f6   : > { %v2565_v3 = vadd.f32 %v2510_v45, %v8889_v43  ;;  %v8985_v37 = vadd.f32 %v6418_v25, %v2567_v6 }
 0x1f7   : > { %v6385_v52 = vpop.f32.mrf.mxu1  ;;  %v8988_v61 = vpop.f32.mrf.mxu0 }
 0x1f8   : > { %v2568_v11 = vadd.f32 %v6385_v52, %v8892_v5  ;;  %v8990_v34 = vadd.f32 %v3236_v38, %v2565_v3 }
 0x1f9   : > { %v2513_v58 = vpop.f32.mrf.mxu1  ;;  %v8993_v16 = vpop.f32.mrf.mxu0 }
 0x1fa   : > { %v2566_v55 = vadd.f32 %v2513_v58, %v8896_v19  ;;  %v8995_v31 = vadd.f32 %v6419_v10, %v2568_v11 }
 0x1fb   : > { %v6388_v47 = vpop.f32.mrf.mxu1  ;;  %v8998_v4 = vpop.f32.mrf.mxu0 }
 0x1fc   : > { %v2571_v43 = vadd.f32 %v6388_v47, %v8899_v54  ;;  %v9000_v25 = vadd.f32 %v3239_v17, %v2566_v55 }
 0x1fd   : > { %v2526_v7 = vpop.f32.mrf.mxu1  ;;  %v6466_v26 = vpop.f32.mrf.mxu0 }
 0x1fe   : > { %v2569_v5 = vadd.f32 %v2526_v7, %v8902_v22  ;;  %v9003_v38 = vadd.f32 %v6422_v0, %v2571_v43 }
 0x1ff   : > { %v6389_v57 = vpop.f32.mrf.mxu1  ;;  %v9006_v27 = vpop.f32.mrf.mxu0 }
 0x200   : > { %v2572_v19 = vadd.f32 %v6389_v57, %v8905_v15  ;;  %v9008_v10 = vadd.f32 %v3252_v9, %v2569_v5 }
 0x201   : > { %v2529_v32 = vpop.f32.mrf.mxu1  ;;  %v6467_v13 = vpop.f32.mrf.mxu0 }
 0x202   : > { %v2570_v54 = vadd.f32 %v2529_v32, %v8908_v40  ;;  %v9011_v18 = vadd.f32 %v6423_v23, %v2572_v19 }
 0x203   : > { %v9013_v17 = vpop.f32.mrf.mxu1  ;;  %v9015_v35 = vpop.f32.mrf.mxu0 }
 0x204   : > { %9500 = vst [vmem:[#allocation25_spill] sm:$0xff] %v9015_v35  ;;  %v9017_v22 = vadd.f32 %v3255_v24, %v2570_v54 }
 0x205   : > { %v9019_v0 = vpop.f32.mrf.mxu1  ;;  %v6470_v1 = vpop.f32.mrf.mxu0 }
 0x207   : > { %v9021_v15 = vpop.f32.mrf.mxu1  ;;  %v9023_v51 = vpop.f32.mrf.mxu0 }
 0x208   : > { %9501 = vst [vmem:[#allocation6_spill] sm:$0xff] %v9023_v51 }
 0x209   : > { %v9025_v9 = vpop.f32.mrf.mxu1  ;;  %v6471_v6 = vpop.f32.mrf.mxu0 }
 0x20b   : > { %v6432_v40 = vpop.f32.mrf.mxu1  ;;  %v9028_v45 = vpop.f32.mrf.mxu0 }
 0x20c   : > { %v3743_v23 = vadd.f32 %v6432_v40, %v8923_v33  ;;  %9502 = vst [vmem:[#allocation8_spill] sm:$0xff] %v9028_v45 }
 0x20d   : > { %v9030_v3 = vpop.f32.mrf.mxu1  ;;  %v6474_v52 = vpop.f32.mrf.mxu0 }
 0x20e   : > { %v9032_v24 = vadd.f32 %v6466_v26, %v3743_v23 }
 0x20f   : > { %v6433_v11 = vpop.f32.mrf.mxu1  ;;  %v4017_v55 = vpop.f32.mrf.mxu0 }
 0x210   : > { %v3744_v58 = vadd.f32 %v6433_v11, %v8929_v62 }
 0x211   : > { %v9035_v47 = vpop.f32.mrf.mxu1  ;;  %v6475_v43 = vpop.f32.mrf.mxu0 }
 0x212   : > { %v9037_v7 = vadd.f32 %v6467_v13, %v3744_v58 }
 0x213   : > { %v6436_v5 = vpop.f32.mrf.mxu1  ;;  %v4020_v33 = vpop.f32.mrf.mxu0 }
 0x214   : > { %9503 = vst [vmem:[#allocation7_spill] sm:$0xff] %v9037_v7  ;;  %v3747_v57 = vadd.f32 %v6436_v5, %v8935_v28 }
 0x215   : > { %v9040_v19 = vpop.f32.mrf.mxu1  ;;  %v6478_v32 = vpop.f32.mrf.mxu0 }
 0x216   : > { %v9042_v54 = vadd.f32 %v6470_v1, %v3747_v57 }
 0x217   : > { %v6437_v26 = vpop.f32.mrf.mxu1  ;;  %v4033_v23 = vpop.f32.mrf.mxu0 }
 0x218   : > { %9504 = vst [vmem:[#allocation10_spill] sm:$0xff] %v9042_v54  ;;  %v3748_v40 = vadd.f32 %v6437_v26, %v8941_v8 }
 0x219   : > { %v9045_v62 = vpop.f32.mrf.mxu1  ;;  %v6479_v11 = vpop.f32.mrf.mxu0 }
 0x21a   : > { %9505 = vst [vmem:[#allocation11_spill] sm:$0xff] %v9045_v62  ;;  %v9047_v45 = vadd.f32 %v6471_v6, %v3748_v40 }
 0x21b   : > { %v6440_v13 = vpop.f32.mrf.mxu1  ;;  %v4036_v51 = vpop.f32.mrf.mxu0 }
 0x21c   : > { %9506 = vst [vmem:[#allocation15_spill] sm:$0xff] %v9047_v45  ;;  %v3751_v58 = vadd.f32 %v6440_v13, %v8947_v12 }
 0x21d   : > { %v3658_v28 = vpop.f32.mrf.mxu1  ;;  %v6482_v35 = vpop.f32.mrf.mxu0 }
 0x21e   : > { %v3749_v5 = vadd.f32 %v3658_v28, %v8950_v41  ;;  %v9051_v7 = vadd.f32 %v6474_v52, %v3751_v58 }
 0x21f   : > { %v6441_v1 = vpop.f32.mrf.mxu1  ;;  %v4049_v8 = vpop.f32.mrf.mxu0 }
 0x220   : > { %v3752_v57 = vadd.f32 %v6441_v1, %v8953_v14  ;;  %v9054_v26 = vadd.f32 %v4017_v55, %v3749_v5 }
 0x221   : > { %v3661_v54 = vpop.f32.mrf.mxu1  ;;  %v6483_v40 = vpop.f32.mrf.mxu0 }
 0x222   : > { %v3750_v6 = vadd.f32 %v3661_v54, %v8956_v44  ;;  %v9057_v45 = vadd.f32 %v6475_v43, %v3752_v57 }
 0x223   : > { %v6444_v12 = vpop.f32.mrf.mxu1  ;;  %v4052_v62 = vpop.f32.mrf.mxu0 }
 0x224   : > { %v3755_v13 = vadd.f32 %v6444_v12, %v8959_v42  ;;  %v9060_v41 = vadd.f32 %v4020_v33, %v3750_v6 }
 0x225   : > { %v3674_v52 = vpop.f32.mrf.mxu1  ;;  %v6486_v28 = vpop.f32.mrf.mxu0 }
 0x226   : > { %v3753_v58 = vadd.f32 %v3674_v52, %v8962_v60  ;;  %v9063_v14 = vadd.f32 %v6478_v32, %v3755_v13 }
 0x227   : > { %v6445_v55 = vpop.f32.mrf.mxu1  ;;  %v4065_v1 = vpop.f32.mrf.mxu0 }
 0x228   : > { %v3756_v5 = vadd.f32 %v6445_v55, %v8965_v20  ;;  %v9066_v44 = vadd.f32 %v4033_v23, %v3753_v58 }
 0x229   : > { %v3677_v43 = vpop.f32.mrf.mxu1  ;;  %v6487_v57 = vpop.f32.mrf.mxu0 }
 0x22a   : > { %v3754_v54 = vadd.f32 %v3677_v43, %v8968_v63  ;;  %v9069_v42 = vadd.f32 %v6479_v11, %v3756_v5 }
 0x22b   : > { %v6448_v33 = vpop.f32.mrf.mxu1  ;;  %v4068_v12 = vpop.f32.mrf.mxu0 }
 0x22c   : > { %v3759_v6 = vadd.f32 %v6448_v33, %v8971_v59  ;;  %v9072_v60 = vadd.f32 %v4036_v51, %v3754_v54 }
 0x22d   : > { %v3690_v32 = vpop.f32.mrf.mxu1  ;;  %v6490_v52 = vpop.f32.mrf.mxu0 }
 0x22e   : > { %v3757_v13 = vadd.f32 %v3690_v32, %v8974_v50  ;;  %v9075_v20 = vadd.f32 %v6482_v35, %v3759_v6 }
 0x22f   : > { %v6449_v23 = vpop.f32.mrf.mxu1  ;;  %v4081_v55 = vpop.f32.mrf.mxu0 }
 0x230   : > { %v3760_v58 = vadd.f32 %v6449_v23, %v8977_v36  ;;  %v9078_v63 = vadd.f32 %v4049_v8, %v3757_v13 }
 0x231   : > { %v3693_v11 = vpop.f32.mrf.mxu1  ;;  %v6491_v43 = vpop.f32.mrf.mxu0 }
 0x232   : > { %v3758_v5 = vadd.f32 %v3693_v11, %v8980_v48  ;;  %v9081_v59 = vadd.f32 %v6483_v40, %v3760_v58 }
 0x233   : > { %v6452_v51 = vpop.f32.mrf.mxu1  ;;  %v4084_v33 = vpop.f32.mrf.mxu0 }
 0x234   : > { %v3763_v54 = vadd.f32 %v6452_v51, %v8985_v37  ;;  %v9084_v50 = vadd.f32 %v4052_v62, %v3758_v5 }
 0x235   : > { %v3706_v35 = vpop.f32.mrf.mxu1  ;;  %v6530_v32 = vpop.f32.mrf.mxu0 }
 0x236   : > { %v3761_v6 = vadd.f32 %v3706_v35, %v8990_v34  ;;  %v9087_v36 = vadd.f32 %v6486_v28, %v3763_v54  ;;  %v3739_v54 = vadd.f32 %v9013_v17, %v8911_v2 }
 0x237   : > { %v6453_v8 = vpop.f32.mrf.mxu1  ;;  %v5165_v23 = vpop.f32.mrf.mxu0 }
 0x238   : > { %v3764_v13 = vadd.f32 %v6453_v8, %v8995_v31  ;;  %v9090_v48 = vadd.f32 %v4065_v1, %v3761_v6 }
 0x239   : > { %v3709_v40 = vpop.f32.mrf.mxu1  ;;  %v6531_v11 = vpop.f32.mrf.mxu0 }
 0x23a   : > { %v3762_v58 = vadd.f32 %v3709_v40, %v9000_v25  ;;  %v9093_v37 = vadd.f32 %v6487_v57, %v3764_v13  ;;  %v3737_v25 = vadd.f32 %v9019_v0, %v8914_v39  ;;  %v3740_v13 = vadd.f32 %v9021_v15, %v8917_v53  ;;  %v9124_v53 = vld [vmem:[%s9328_s2] ss:$0 sm:$0xff] }
 0x23b   : > { %v6456_v62 = vpop.f32.mrf.mxu1  ;;  %v5168_v51 = vpop.f32.mrf.mxu0  ;;  %v3738_v39 = vadd.f32 %v9025_v9, %v8920_v29 }
 0x23c   : > { %v3767_v5 = vadd.f32 %v6456_v62, %v9003_v38  ;;  %v9096_v34 = vadd.f32 %v4068_v12, %v3762_v58 }
 0x23d   : > { %v3722_v28 = vpop.f32.mrf.mxu1 }
 0x23e   : > { %v3765_v31 = vadd.f32 %v3722_v28, %v9008_v10  ;;  %v6534_v1 = vpop.f32.mrf.mxu0  ;;  %v9101_v35 = vadd.f32 %v6490_v52, %v3767_v5  ;;  %v4098_v10 = vadd.f32 %v8983_v49, %v3739_v54  ;;  %v3741_v54 = vadd.f32 %v9030_v3, %v8926_v21 }
 0x23f   : > { %v6457_v6 = vpop.f32.mrf.mxu1  ;;  %v3742_v21 = vadd.f32 %v9035_v47, %v8932_v30 }
 0x240   : > { %v3768_v57 = vadd.f32 %v6457_v6, %v9011_v18  ;;  %v5181_v8 = vpop.f32.mrf.mxu0  ;;  %v9106_v38 = vadd.f32 %v4081_v55, %v3765_v31  ;;  %v4096_v18 = vadd.f32 %v8988_v61, %v3737_v25  ;;  %v4100_v3 = vadd.f32 %v9006_v27, %v3741_v54 }
 0x241   : > { %v3725_v12 = vpop.f32.mrf.mxu1 }
 0x242   : > { %v3766_v2 = vadd.f32 %v3725_v12, %v9017_v22  ;;  %v6535_v17 = vpop.f32.mrf.mxu0  ;;  %v9112_v52 = vadd.f32 %v6491_v43, %v3768_v57  ;;  %v4099_v43 = vadd.f32 %v8993_v16, %v3740_v13 }
 0x243   : > { %v6496_v40 = vpop.f32.mrf.mxu1 }
 0x244   : > { %v4824_v0 = vadd.f32 %v6496_v40, %v4098_v10  ;;  %v9117_v55 = vpop.f32.mrf.mxu0  ;;  %v9119_v58 = vadd.f32 %v4084_v33, %v3766_v2  ;;  %v4097_v33 = vadd.f32 %v8998_v4, %v3738_v39 }
 0x245   : > { %v4695_v49 = vpop.f32.mrf.mxu1 }
 0x246   : > { %v5294_v22 = vadd.f32 %v6530_v32, %v4824_v0  ;;  %v4822_v15 = vadd.f32 %v4695_v49, %v4096_v18  ;;  %v9127_v62 = vpop.f32.mrf.mxu0 }
 0x247   : > { %v6497_v29 = vpop.f32.mrf.mxu1 }
 0x248   : > { %v5333_v9 = vadd.f32 %v9124_v53, %v5294_v22  ;;  %v5292_v61 = vadd.f32 %v5165_v23, %v4822_v15  ;;  %v4825_v5 = vadd.f32 %v6497_v29, %v4099_v43  ;;  %v9131_v28 = vpop.f32.mrf.mxu0  ;;  %v9508_v29 = vld [vmem:[#allocation7_spill] sm:$0xff] }
 0x249   : > { %v4698_v31 = vpop.f32.mrf.mxu1 }
 0x24a   : > { %v5331_v32 = vadd.f32 %v9124_v53, %v5292_v61  ;;  %v5295_v6 = vadd.f32 %v6531_v11, %v4825_v5  ;;  %v4823_v25 = vadd.f32 %v4698_v31, %v4097_v33  ;;  %v9136_v16 = vpop.f32.mrf.mxu0  ;;  %v5365_v57 = vmax.f32 %v5333_v9, 0.0  ;;  %v9509_v5 = vld [vmem:[#allocation25_spill] sm:$0xff] }
 0x24b   : > { %v6500_v12 = vpop.f32.mrf.mxu1  ;;  %v4101_v33 = vadd.f32 %v9509_v5, %v3742_v21 }
 0x24c   : > { %v5363_v13 = vmax.f32 %v5331_v32, 0.0  ;;  %v5334_v23 = vadd.f32 %v9124_v53, %v5295_v6  ;;  %v5293_v2 = vadd.f32 %v5168_v51, %v4823_v25  ;;  %v4828_v4 = vadd.f32 %v6500_v12, %v9032_v24  ;;  %v9140_v10 = vpop.f32.mrf.mxu0  ;;  %v9507_v24 = vld [vmem:[#allocation11_spill] sm:$0xff] }
 0x24d   : > { %v4711_v11 = vpop.f32.mrf.mxu1  ;;  %v3745_v51 = vadd.f32 %v9040_v19, %v8938_v56  ;;  %v3746_v49 = vadd.f32 %v9507_v24, %v8944_v46 }
 0x24e   : > { %v5395_v40 = vmax.f32 %v5363_v13, %v5365_v57  ;;  %v5332_v39 = vadd.f32 %v9124_v53, %v5293_v2  ;;  %v5298_v0 = vadd.f32 %v6534_v1, %v4828_v4  ;;  %v9146_v18 = vpop.f32.mrf.mxu0  ;;  %v5366_v22 = vmax.f32 %v5334_v23, 0.0  ;;  %v9510_v57 = vld [vmem:[#allocation6_spill] sm:$0xff]  ;;  %v9511_v13 = vld [vmem:[#allocation8_spill] sm:$0xff] }
 0x24f   : > { %v4826_v15 = vadd.f32 %v4711_v11, %v4100_v3  ;;  %v6501_v30 = vpop.f32.mrf.mxu1  ;;  %v4104_v12 = vadd.f32 %v9510_v57, %v3745_v51  ;;  %v4105_v23 = vadd.f32 %v9511_v13, %v3746_v49 }
 0x250   : > { %v5419_v47 = vrot.slane %v5395_v40, 1  ;;  %v5364_v43 = vmax.f32 %v5332_v39, 0.0  ;;  %v5337_v27 = vadd.f32 %v9124_v53, %v5298_v0  ;;  %v4829_v9 = vadd.f32 %v6501_v30, %v9508_v29  ;;  %v9154_v61 = vpop.f32.mrf.mxu0  ;;  %v9512_v39 = vld [vmem:[#allocation10_spill] sm:$0xff] }
 0x251   : > { %v5296_v1 = vadd.f32 %v5181_v8, %v4826_v15  ;;  %v4714_v56 = vpop.f32.mrf.mxu1 }
 0x252   : > { %v5435_v19 = vmax.f32 %v5395_v40, %v5419_v47  ;;  %v5396_v54 = vmax.f32 %v5364_v43, %v5366_v22  ;;  %v5299_v46 = vadd.f32 %v6535_v17, %v4829_v9  ;;  %v9157_v31 = vpop.f32.mrf.mxu0  ;;  %v4827_v6 = vadd.f32 %v4714_v56, %v4101_v33 }
 0x253   : > { %v5335_v32 = vadd.f32 %v9124_v53, %v5296_v1  ;;  %v6504_v25 = vpop.f32.mrf.mxu1  ;;  %v5369_v3 = vmax.f32 %v5337_v27, 0.0 }
 0x254   : > { %v5483_v2 = vrot.slane %v5435_v19, 1  ;;  %v5499_v4 = vrot.slane %v5435_v19, 2  ;;  %v5451_v8 = vrot.slane %v5396_v54, 1  ;;  %v9162_v21 = vpop.f32.mrf.mxu0  ;;  %v5338_v17 = vadd.f32 %v9124_v53, %v5299_v46 }
 0x255   : > { %v5367_v11 = vmax.f32 %v5335_v32, 0.0  ;;  %v5297_v40 = vadd.f32 %v9117_v55, %v4827_v6  ;;  %v4832_v0 = vadd.f32 %v6504_v25, %v9512_v39  ;;  %v4727_v24 = vpop.f32.mrf.mxu1  ;;  %v5515_v22 = vrot.slane %v5435_v19, 3 }
 0x256   : > { %v5604_v51 = vsel %vm5603_vm0, %v5435_v19, %v5483_v2  ;;  %v5467_v15 = vmax.f32 %v5396_v54, %v5451_v8  ;;  %v4830_v49 = vadd.f32 %v4727_v24, %v4104_v12  ;;  %v9168_v30 = vpop.f32.mrf.mxu0  ;;  %v5370_v27 = vmax.f32 %v5338_v17, 0.0  ;;  %v9513_v12 = vld [vmem:[#allocation15_spill] sm:$0xff] }
 0x257   : > { %v5613_v47 = vsel %vm5612_vm2, %v5604_v51, %v5499_v4  ;;  %v5397_v43 = vmax.f32 %v5367_v11, %v5369_v3  ;;  %v5336_v29 = vadd.f32 %v9124_v53, %v5297_v40  ;;  %v6505_v9 = vpop.f32.mrf.mxu1  ;;  %v5302_v32 = vadd.f32 %v9127_v62, %v4832_v0 }
 0x258   : > { %v5622_v55 = vsel %vm1806_vm14, %v5613_v47, %v5515_v22  ;;  %v5539_v1 = vrot.slane %v5467_v15, 4  ;;  %v5555_v5 = vrot.slane %v5467_v15, 5  ;;  %v5571_v33 = vrot.slane %v5467_v15, 6  ;;  %v9173_v56 = vpop.f32.mrf.mxu0 }
 0x259   : > { %v5587_v19 = vrot.slane %v5467_v15, 7  ;;  %v5420_v54 = vrot.slane %v5397_v43, 1  ;;  %v5368_v46 = vmax.f32 %v5336_v29, 0.0  ;;  %v4730_v6 = vpop.f32.mrf.mxu1  ;;  %v5300_v57 = vadd.f32 %v9131_v28, %v4830_v49 }
 0x25a   : > { %v5630_v25 = vsel %vm1301_vm4, %v5622_v55, %v5539_v1  ;;  %v4833_v13 = vadd.f32 %v6505_v9, %v9513_v12  ;;  %v4831_v2 = vadd.f32 %v4730_v6, %v4105_v23  ;;  %v9180_v4 = vpop.f32.mrf.mxu0  ;;  %v5341_v17 = vadd.f32 %v9124_v53, %v5302_v32 }
 0x25b   : > { %v5639_v8 = vsel %vm5638_vm3, %v5630_v25, %v5555_v5  ;;  %v5436_v3 = vmax.f32 %v5397_v43, %v5420_v54  ;;  %v5398_v11 = vmax.f32 %v5368_v46, %v5370_v27  ;;  %v6508_v40 = vpop.f32.mrf.mxu1  ;;  %v5339_v39 = vadd.f32 %v9124_v53, %v5300_v57 }
 0x25c   : > { %v5648_v62 = vsel %vm5647_vm5, %v5639_v8, %v5571_v33  ;;  %v5303_v0 = vadd.f32 %v9136_v16, %v4833_v13  ;;  %v5301_v28 = vadd.f32 %v9140_v10, %v4831_v2  ;;  %v9188_v24 = vpop.f32.mrf.mxu0  ;;  %v5373_v27 = vmax.f32 %v5341_v17, 0.0 }
 0x25d   : > { %v5657_v23 = vsel %vm5656_vm6, %v5648_v62, %v5587_v19  ;;  %v5484_v22 = vrot.slane %v5436_v3, 1  ;;  %v5500_v51 = vrot.slane %v5436_v3, 2  ;;  %v5516_v15 = vrot.slane %v5436_v3, 3  ;;  %v4743_v49 = vpop.f32.mrf.mxu1 }
 0x25e   : > { %v5665_v47 = vpack.c.bf16 %v5657_v23, %v5657_v23  ;;  %v5452_v43 = vrot.slane %v5398_v11, 1  ;;  %v5371_v16 = vmax.f32 %v5339_v39, 0.0  ;;  %v5342_v29 = vadd.f32 %v9124_v53, %v5303_v0  ;;  %v9204_v46 = vpop.f32.mrf.mxu0 }
 0x25f   : > { %v5605_v10 = vsel %vm5603_vm0, %v5436_v3, %v5484_v22  ;;  %v5340_v9 = vadd.f32 %v9124_v53, %v5301_v28  ;;  %v4836_v55 = vadd.f32 %v6508_v40, %v9051_v7  ;;  %v6509_v1 = vpop.f32.mrf.mxu1  ;;  %v4834_v54 = vadd.f32 %v4743_v49, %v9054_v26 }
 0x260   : > { %5674 = vst.msk [vmem:[%s9193_s4] sm:$0xf] %vm5673_vm7, %v5665_v47  ;;  %v5614_v5 = vsel %vm5612_vm2, %v5605_v10, %v5500_v51  ;;  %v5468_v33 = vmax.f32 %v5398_v11, %v5452_v43  ;;  %v5399_v19 = vmax.f32 %v5371_v16, %v5373_v27  ;;  %v5374_v6 = vmax.f32 %v5342_v29, 0.0  ;;  %v9214_v28 = vpop.f32.mrf.mxu0 }
 0x261   : > { %v5623_v32 = vsel %vm1806_vm14, %v5614_v5, %v5516_v15  ;;  %v5372_v25 = vmax.f32 %v5340_v9, 0.0  ;;  %v5306_v57 = vadd.f32 %v9146_v18, %v4836_v55  ;;  %v4746_v12 = vpop.f32.mrf.mxu1  ;;  %v5304_v40 = vadd.f32 %v9154_v61, %v4834_v54 }
 0x262   : > { %v5540_v13 = vrot.slane %v5468_v33, 4  ;;  %v5556_v7 = vrot.slane %v5468_v33, 5  ;;  %v5572_v2 = vrot.slane %v5468_v33, 6  ;;  %v5588_v8 = vrot.slane %v5468_v33, 7  ;;  %v9223_v5 = vpop.f32.mrf.mxu0 }
 0x263   : > { %v5421_v3 = vrot.slane %v5399_v19, 1  ;;  %v5400_v17 = vmax.f32 %v5372_v25, %v5374_v6  ;;  %v5345_v11 = vadd.f32 %v9124_v53, %v5306_v57  ;;  %v6512_v26 = vpop.f32.mrf.mxu1  ;;  %v4837_v39 = vadd.f32 %v6509_v1, %v9057_v45 }
 0x264   : > { %v5631_v62 = vsel %vm1301_vm4, %v5623_v32, %v5540_v13  ;;  %v4835_v0 = vadd.f32 %v4746_v12, %v9060_v41  ;;  %v4840_v18 = vadd.f32 %v6512_v26, %v9063_v14  ;;  %v5343_v61 = vadd.f32 %v9124_v53, %v5304_v40 }
 0x265   : > { %v5640_v23 = vsel %vm5638_vm3, %v5631_v62, %v5556_v7  ;;  %v5437_v22 = vmax.f32 %v5399_v19, %v5421_v3  ;;  %v5453_v51 = vrot.slane %v5400_v17, 1  ;;  %v5377_v15 = vmax.f32 %v5345_v11, 0.0  ;;  %v4759_v49 = vpop.f32.mrf.mxu1  ;;  %v9236_v11 = vpop.f32.mrf.mxu0 }
 0x266   : > { %v5649_v47 = vsel %vm5647_vm5, %v5640_v23, %v5572_v2  ;;  %v5307_v43 = vadd.f32 %v9157_v31, %v4837_v39  ;;  %v5305_v45 = vadd.f32 %v9162_v21, %v4835_v0  ;;  %v5375_v55 = vmax.f32 %v5343_v61, 0.0 }
 0x267   : > { %v5658_v41 = vsel %vm5656_vm6, %v5649_v47, %v5588_v8  ;;  %v5485_v14 = vrot.slane %v5437_v22, 1  ;;  %v5501_v27 = vrot.slane %v5437_v22, 2  ;;  %v5517_v16 = vrot.slane %v5437_v22, 3  ;;  %v6513_v10 = vpop.f32.mrf.mxu1 }
 0x268   : > { %v5666_v29 = vpack.c.bf16 %v5658_v41, %v5658_v41  ;;  %v5469_v9 = vmax.f32 %v5400_v17, %v5453_v51  ;;  %v5346_v1 = vadd.f32 %v9124_v53, %v5307_v43  ;;  %v5344_v31 = vadd.f32 %v9124_v53, %v5305_v45  ;;  %v6554_v41 = vpop.f32.mrf.mxu0 }
 0x269   : > { %v5606_v33 = vsel %vm5603_vm0, %v5437_v22, %v5485_v14  ;;  %v5310_v21 = vadd.f32 %v9168_v30, %v4840_v18  ;;  %v4838_v19 = vadd.f32 %v4759_v49, %v9066_v44  ;;  %v4762_v54 = vpop.f32.mrf.mxu1  ;;  %v5401_v7 = vmax.f32 %v5375_v55, %v5377_v15 }
 0x26a   : > { %5675 = vst.msk [vmem:[%s9193_s4 + $0x4] sm:$0xf] %vm5673_vm7, %v5666_v29  ;;  %v5615_v32 = vsel %vm5612_vm2, %v5606_v33, %v5501_v27  ;;  %v5541_v6 = vrot.slane %v5469_v9, 4  ;;  %v5557_v25 = vrot.slane %v5469_v9, 5  ;;  %v5573_v57 = vrot.slane %v5469_v9, 6 }
 0x26b   : > { %v5624_v12 = vsel %vm1806_vm14, %v5615_v32, %v5517_v16  ;;  %v5589_v13 = vrot.slane %v5469_v9, 7  ;;  %v5378_v2 = vmax.f32 %v5346_v1, 0.0  ;;  %v6516_v8 = vpop.f32.mrf.mxu1  ;;  %v5376_v17 = vmax.f32 %v5344_v31, 0.0 }
 0x26c   : > { %v5632_v3 = vsel %vm1301_vm4, %v5624_v12, %v5541_v6  ;;  %v5349_v30 = vadd.f32 %v9124_v53, %v5310_v21  ;;  %v5308_v44 = vadd.f32 %v9173_v56, %v4838_v19  ;;  %v5422_v26 = vrot.slane %v5401_v7, 1 }
 0x26d   : > { %v5641_v40 = vsel %vm5638_vm3, %v5632_v3, %v5557_v25  ;;  %v4841_v62 = vadd.f32 %v6513_v10, %v9069_v42  ;;  %v4839_v39 = vadd.f32 %v4762_v54, %v9072_v60  ;;  %v4775_v0 = vpop.f32.mrf.mxu1  ;;  %v5402_v23 = vmax.f32 %v5376_v17, %v5378_v2  ;;  %v5261_v25 = vpop.f32.mrf.mxu0 }
 0x26e   : > { %v5650_v18 = vsel %vm5647_vm5, %v5641_v40, %v5573_v57  ;;  %v5381_v22 = vmax.f32 %v5349_v30, 0.0  ;;  %v5347_v51 = vadd.f32 %v9124_v53, %v5308_v44  ;;  %v5438_v56 = vmax.f32 %v5401_v7, %v5422_v26 }
 0x26f   : > { %v5659_v15 = vsel %vm5656_vm6, %v5650_v18, %v5589_v13  ;;  %v5311_v49 = vadd.f32 %v9180_v4, %v4841_v62  ;;  %v5309_v47 = vadd.f32 %v9188_v24, %v4839_v39  ;;  %v6517_v61 = vpop.f32.mrf.mxu1  ;;  %v5454_v42 = vrot.slane %v5402_v23, 1  ;;  %v6555_v18 = vpop.f32.mrf.mxu0 }
 0x270   : > { %v5667_v43 = vpack.c.bf16 %v5659_v15, %v5659_v15  ;;  %v5379_v45 = vmax.f32 %v5347_v51, 0.0  ;;  %v4844_v60 = vadd.f32 %v6516_v8, %v9075_v20  ;;  %v5486_v14 = vrot.slane %v5438_v56, 1 }
 0x271   : > { %v5502_v27 = vrot.slane %v5438_v56, 2  ;;  %v5518_v16 = vrot.slane %v5438_v56, 3  ;;  %v5350_v10 = vadd.f32 %v9124_v53, %v5311_v49  ;;  %v4778_v29 = vpop.f32.mrf.mxu1  ;;  %v5470_v9 = vmax.f32 %v5402_v23, %v5454_v42 }
 0x272   : > { %5676 = vst.msk [vmem:[%s9193_s4 + $0x8] sm:$0xf] %vm5673_vm7, %v5667_v43  ;;  %v5403_v55 = vmax.f32 %v5379_v45, %v5381_v22  ;;  %v5348_v4 = vadd.f32 %v9124_v53, %v5309_v47  ;;  %v5314_v24 = vadd.f32 %v9204_v46, %v4844_v60  ;;  %v5607_v1 = vsel %vm5603_vm0, %v5438_v56, %v5486_v14 }
 0x273   : > { %v5382_v33 = vmax.f32 %v5350_v10, 0.0  ;;  %v4842_v20 = vadd.f32 %v4775_v0, %v9078_v63  ;;  %v4845_v31 = vadd.f32 %v6517_v61, %v9081_v59  ;;  %v6520_v21 = vpop.f32.mrf.mxu1  ;;  %v5616_v19 = vsel %vm5612_vm2, %v5607_v1, %v5502_v27  ;;  %v5264_v10 = vpop.f32.mrf.mxu0 }
 0x274   : > { %v5542_v54 = vrot.slane %v5470_v9, 4  ;;  %v5558_v32 = vrot.slane %v5470_v9, 5  ;;  %v5574_v6 = vrot.slane %v5470_v9, 6  ;;  %v5625_v57 = vsel %vm1806_vm14, %v5616_v19, %v5518_v16 }
 0x275   : > { %v5590_v12 = vrot.slane %v5470_v9, 7  ;;  %v5423_v13 = vrot.slane %v5403_v55, 1  ;;  %v5380_v7 = vmax.f32 %v5348_v4, 0.0  ;;  %v4791_v46 = vpop.f32.mrf.mxu1  ;;  %v5353_v8 = vadd.f32 %v9124_v53, %v5314_v24 }
 0x276   : > { %v5633_v2 = vsel %vm1301_vm4, %v5625_v57, %v5542_v54  ;;  %v5312_v63 = vadd.f32 %v9214_v28, %v4842_v20  ;;  %v5315_v59 = vadd.f32 %v9223_v5, %v4845_v31  ;;  %v4843_v44 = vadd.f32 %v4778_v29, %v9084_v50 }
 0x277   : > { %v5642_v3 = vsel %vm5638_vm3, %v5633_v2, %v5558_v32  ;;  %v5439_v17 = vmax.f32 %v5403_v55, %v5423_v13  ;;  %v5404_v30 = vmax.f32 %v5380_v7, %v5382_v33  ;;  %v6521_v40 = vpop.f32.mrf.mxu1  ;;  %v5385_v62 = vmax.f32 %v5353_v8, 0.0  ;;  %v6558_v32 = vpop.f32.mrf.mxu0 }
 0x278   : > { %v5651_v26 = vsel %vm5647_vm5, %v5642_v3, %v5574_v6  ;;  %v5351_v39 = vadd.f32 %v9124_v53, %v5312_v63  ;;  %v5354_v0 = vadd.f32 %v9124_v53, %v5315_v59  ;;  %v5313_v61 = vadd.f32 %v9236_v11, %v4843_v44 }
 0x279   : > { %v5660_v28 = vsel %vm5656_vm6, %v5651_v26, %v5590_v12  ;;  %v5487_v23 = vrot.slane %v5439_v17, 1  ;;  %v5503_v5 = vrot.slane %v5439_v17, 2  ;;  %v5519_v22 = vrot.slane %v5439_v17, 3  ;;  %v4794_v51 = vpop.f32.mrf.mxu1 }
 0x27a   : > { %v5668_v15 = vpack.c.bf16 %v5660_v28, %v5660_v28  ;;  %v5455_v56 = vrot.slane %v5404_v30, 1  ;;  %v5383_v49 = vmax.f32 %v5351_v39, 0.0  ;;  %v5386_v50 = vmax.f32 %v5354_v0, 0.0 }
 0x27b   : > { %v5608_v47 = vsel %vm5603_vm0, %v5439_v17, %v5487_v23  ;;  %v4848_v43 = vadd.f32 %v6520_v21, %v9087_v36  ;;  %v4846_v42 = vadd.f32 %v4791_v46, %v9090_v48  ;;  %v6524_v45 = vpop.f32.mrf.mxu1  ;;  %v4849_v16 = vadd.f32 %v6521_v40, %v9093_v37  ;;  %v5277_v40 = vpop.f32.mrf.mxu0 }
 0x27c   : > { %5677 = vst.msk [vmem:[%s9193_s4 + $0xc] sm:$0xf] %vm5673_vm7, %v5668_v15  ;;  %v5617_v60 = vsel %vm5612_vm2, %v5608_v47, %v5503_v5  ;;  %v5471_v14 = vmax.f32 %v5404_v30, %v5455_v56  ;;  %v5405_v27 = vmax.f32 %v5383_v49, %v5385_v62  ;;  %v5352_v9 = vadd.f32 %v9124_v53, %v5313_v61 }
 0x27d   : > { %v5626_v29 = vsel %vm1806_vm14, %v5617_v60, %v5519_v22  ;;  %v5318_v55 = vadd.f32 %v6554_v41, %v4848_v43  ;;  %v5316_v11 = vadd.f32 %v5261_v25, %v4846_v42  ;;  %v4807_v21 = vpop.f32.mrf.mxu1  ;;  %v5319_v19 = vadd.f32 %v6555_v18, %v4849_v16  ;;  %v6559_v61 = vpop.f32.mrf.mxu0 }
 0x27e   : > { %v5543_v4 = vrot.slane %v5471_v14, 4  ;;  %v5559_v36 = vrot.slane %v5471_v14, 5  ;;  %v5575_v24 = vrot.slane %v5471_v14, 6  ;;  %v5591_v48 = vrot.slane %v5471_v14, 7 }
 0x27f   : > { %v5424_v1 = vrot.slane %v5405_v27, 1  ;;  %v5384_v33 = vmax.f32 %v5352_v9, 0.0  ;;  %v5357_v20 = vadd.f32 %v9124_v53, %v5318_v55  ;;  %v5355_v31 = vadd.f32 %v9124_v53, %v5316_v11  ;;  %v6525_v3 = vpop.f32.mrf.mxu1 }
 0x280   : > { %v5634_v37 = vsel %vm1301_vm4, %v5626_v29, %v5543_v4  ;;  %v4847_v54 = vadd.f32 %v4794_v51, %v9096_v34  ;;  %v4852_v41 = vadd.f32 %v6524_v45, %v9101_v35  ;;  %v5358_v46 = vadd.f32 %v9124_v53, %v5319_v19 }
 0x281   : > { %v5643_v6 = vsel %vm5638_vm3, %v5634_v37, %v5559_v36  ;;  %v5440_v25 = vmax.f32 %v5405_v27, %v5424_v1  ;;  %v5406_v57 = vmax.f32 %v5384_v33, %v5386_v50  ;;  %v5389_v12 = vmax.f32 %v5357_v20, 0.0  ;;  %v4810_v49 = vpop.f32.mrf.mxu1 }
 0x282   : > { %v5652_v13 = vsel %vm5647_vm5, %v5643_v6, %v5575_v24  ;;  %v5387_v7 = vmax.f32 %v5355_v31, 0.0  ;;  %v5317_v2 = vadd.f32 %v5264_v10, %v4847_v54  ;;  %v5390_v44 = vmax.f32 %v5358_v46, 0.0  ;;  %v5280_v24 = vpop.f32.mrf.mxu0 }
 0x283   : > { %v5661_v8 = vsel %vm5656_vm6, %v5652_v13, %v5591_v48  ;;  %v5488_v63 = vrot.slane %v5440_v25, 1  ;;  %v5504_v59 = vrot.slane %v5440_v25, 2  ;;  %v5520_v34 = vrot.slane %v5440_v25, 3 }
 0x284   : > { %v5669_v17 = vpack.c.bf16 %v5661_v8, %v5661_v8  ;;  %v5456_v35 = vrot.slane %v5406_v57, 1  ;;  %v5407_v30 = vmax.f32 %v5387_v7, %v5389_v12  ;;  %v5356_v62 = vadd.f32 %v9124_v53, %v5317_v2 }
 0x285   : > { %v5609_v26 = vsel %vm5603_vm0, %v5440_v25, %v5488_v63  ;;  %v5322_v39 = vadd.f32 %v6558_v32, %v4852_v41  ;;  %v4850_v0 = vadd.f32 %v4807_v21, %v9106_v38  ;;  %v4853_v5 = vadd.f32 %v6525_v3, %v9112_v52 }
 0x286   : > { %5678 = vst.msk [vmem:[%s9193_s4 + $0x10] sm:$0xf] %vm5673_vm7, %v5669_v17  ;;  %v5618_v18 = vsel %vm5612_vm2, %v5609_v26, %v5504_v59  ;;  %v5472_v28 = vmax.f32 %v5406_v57, %v5456_v35  ;;  %v5425_v23 = vrot.slane %v5407_v30, 1  ;;  %v5388_v51 = vmax.f32 %v5356_v62, 0.0 }
 0x287   : > { %v5627_v22 = vsel %vm1806_vm14, %v5618_v18, %v5520_v34  ;;  %v5361_v15 = vadd.f32 %v9124_v53, %v5322_v39  ;;  %v5320_v56 = vadd.f32 %v5277_v40, %v4850_v0  ;;  %v5323_v27 = vadd.f32 %v6559_v61, %v4853_v5 }
 0x288   : > { %v5544_v50 = vrot.slane %v5472_v28, 4  ;;  %v5560_v47 = vrot.slane %v5472_v28, 5  ;;  %v5576_v43 = vrot.slane %v5472_v28, 6  ;;  %v5441_v38 = vmax.f32 %v5407_v30, %v5425_v23 }
 0x289   : > { %v5408_v42 = vmax.f32 %v5388_v51, %v5390_v44  ;;  %v5359_v45 = vadd.f32 %v9124_v53, %v5320_v56  ;;  %v5592_v60 = vrot.slane %v5472_v28, 7  ;;  %v4851_v52 = vadd.f32 %v4810_v49, %v9119_v58 }
 0x28a   : > { %v5635_v14 = vsel %vm1301_vm4, %v5627_v22, %v5544_v50  ;;  %v5489_v10 = vrot.slane %v5441_v38, 1  ;;  %v5505_v29 = vrot.slane %v5441_v38, 2  ;;  %v5393_v9 = vmax.f32 %v5361_v15, 0.0 }
 0x28b   : > { %v5644_v16 = vsel %vm5638_vm3, %v5635_v14, %v5560_v47  ;;  %v5521_v11 = vrot.slane %v5441_v38, 3  ;;  %v5457_v4 = vrot.slane %v5408_v42, 1  ;;  %v5391_v36 = vmax.f32 %v5359_v45, 0.0 }
 0x28c   : > { %v5653_v55 = vsel %vm5647_vm5, %v5644_v16, %v5576_v43  ;;  %v5610_v1 = vsel %vm5603_vm0, %v5441_v38, %v5489_v10  ;;  %v5362_v33 = vadd.f32 %v9124_v53, %v5323_v27  ;;  %v5321_v20 = vadd.f32 %v5280_v24, %v4851_v52 }
 0x28d   : > { %v5662_v48 = vsel %vm5656_vm6, %v5653_v55, %v5592_v60  ;;  %v5619_v31 = vsel %vm5612_vm2, %v5610_v1, %v5505_v29  ;;  %v5473_v21 = vmax.f32 %v5408_v42, %v5457_v4  ;;  %v5409_v37 = vmax.f32 %v5391_v36, %v5393_v9 }
 0x28e   : > { %v5670_v58 = vpack.c.bf16 %v5662_v48, %v5662_v48  ;;  %v5628_v19 = vsel %vm1806_vm14, %v5619_v31, %v5521_v11  ;;  %v5360_v54 = vadd.f32 %v9124_v53, %v5321_v20  ;;  %v5394_v25 = vmax.f32 %v5362_v33, 0.0 }
 0x28f   : > { %v5545_v32 = vrot.slane %v5473_v21, 4  ;;  %v5561_v41 = vrot.slane %v5473_v21, 5  ;;  %v5426_v6 = vrot.slane %v5409_v37, 1  ;;  %v5577_v12 = vrot.slane %v5473_v21, 6 }
 0x290   : > { %5679 = vst.msk [vmem:[%s9193_s4 + $0x14] sm:$0xf] %vm5673_vm7, %v5670_v58  ;;  %v5392_v57 = vmax.f32 %v5360_v54, 0.0  ;;  %v5593_v7 = vrot.slane %v5473_v21, 7 }
 0x291   : > { %v5636_v13 = vsel %vm1301_vm4, %v5628_v19, %v5545_v32  ;;  %v5442_v2 = vmax.f32 %v5409_v37, %v5426_v6 }
 0x292   : > { %v5645_v46 = vsel %vm5638_vm3, %v5636_v13, %v5561_v41  ;;  %v5410_v8 = vmax.f32 %v5392_v57, %v5394_v25 }
 0x293   : > { %v5654_v63 = vsel %vm5647_vm5, %v5645_v46, %v5577_v12  ;;  %v5490_v59 = vrot.slane %v5442_v2, 1  ;;  %v5506_v34 = vrot.slane %v5442_v2, 2  ;;  %v5522_v35 = vrot.slane %v5442_v2, 3 }
 0x294   : > { %v5663_v53 = vsel %vm5656_vm6, %v5654_v63, %v5593_v7  ;;  %v5458_v17 = vrot.slane %v5410_v8, 1 }
 0x295   : > { %v5671_v3 = vpack.c.bf16 %v5663_v53, %v5663_v53  ;;  %v5611_v30 = vsel %vm5603_vm0, %v5442_v2, %v5490_v59 }
 0x296   : > { %v5620_v44 = vsel %vm5612_vm2, %v5611_v30, %v5506_v34  ;;  %v5474_v40 = vmax.f32 %v5410_v8, %v5458_v17 }
 0x297   : > { %5680 = vst.msk [vmem:[%s9193_s4 + $0x18] sm:$0xf] %vm5673_vm7, %v5671_v3  ;;  %v5629_v26 = vsel %vm1806_vm14, %v5620_v44, %v5522_v35 }
 0x298   : > { %v5546_v62 = vrot.slane %v5474_v40, 4  ;;  %v5562_v39 = vrot.slane %v5474_v40, 5  ;;  %v5578_v0 = vrot.slane %v5474_v40, 6  ;;  %v5594_v28 = vrot.slane %v5474_v40, 7 }
 0x29a   : > { %v5637_v18 = vsel %vm1301_vm4, %v5629_v26, %v5546_v62 }
 0x29b   : > { %v5646_v23 = vsel %vm5638_vm3, %v5637_v18, %v5562_v39 }
 0x29c   : > { %v5655_v5 = vsel %vm5647_vm5, %v5646_v23, %v5578_v0 }
 0x29d   : > { %v5664_v22 = vsel %vm5656_vm6, %v5655_v5, %v5594_v28 }
 0x29e   : > { %v5672_v51 = vpack.c.bf16 %v5664_v22, %v5664_v22 }
 0x2a0   : > { %5681 = vst.msk [vmem:[%s9193_s4 + $0x1c] sm:$0xf] %vm5673_vm7, %v5672_v51 }
 0x2a1 PF: > { %s14_s12 = sadd.s32 1, %s6684_s12  }
 0x2a2   : > { %p11_p1 = scmp.ge.s32.totalorder %s14_s12, 4  }
 0x2a4   :  { %13 = sbr.rel (!%p11_p1) target bundleno = 1 (0x1), region = 78 }
 0x2a9   :  { %5703 = vsyncpa [#allocation4], 1 }
 0x2aa   :  { %5705 = vsyncpa [#allocation4 + $0x1], 1 }

// kernel: vgg_leaf_forward.3
= control target key start
LH: loop header
LB: loop body
LE: loop exit
PB: predicated region body
PF: predicated region fallthrough
CT: control target
= control target key end

     0   :  { %s6582_s12 = smov 0   ;;  %s9221_s0 = inlined_call_operand.vmem [shape: bf16[2,16,16,4], index: 0, kind: input, shape index: {}]   ;;  %s9222_s1 = inlined_call_operand.vmem [shape: bf16[9,4,8], index: 1, kind: input, shape index: {}]   ;;  %s9223_s2 = inlined_call_operand.vmem [shape: f32[1,8], index: 2, kind: input, shape index: {}]   ;;  %s9224_s3 = inlined_call_operand.vmem [shape: bf16[2,16,16,8], index: 3, kind: output, shape index: {}]  }
   0x1 LB: > { %s5596_s13 = sadd.s32 4294967295, %s6559_s12   ;;  %p5600_p0 = scmp.ge.s32.totalorder %s6559_s12, 1  ;;  %s6559_s12 = sphi %s6582_s12, %s13_s12  }
   0x2   : > { %p137_p1 = scmp.lt.s32.totalorder %s6559_s12, 3 }
   0x4   : > { %p138_p2 = pnand %p5600_p0, %p137_p1 }
   0x6   : > { %141 = sbr.rel (%p138_p2) target bundleno = 637 (0x27d), region = 32 }
   0xb   : > { %v5605_v0 = vld [vmem:[%s9222_s1 + $0x2] sm:$0x3]  ;;  %vm1286_vm0 = vcmask 1041408   ;;  %vm172_vm1 = vcmask 27648   ;;  %vm175_vm2 = vcmask 24576   ;;  %v6561_v2 = vmov 0  }
   0xc   : > { %6479 = vmatprep.subr.msk.bf16.mxu0 %vm1286_vm0, %v5605_v0  ;;  %6480 = vmatprep.subr.msk.bf16.mxu1 %vm1286_vm0, %v5605_v0  ;;  %v1288_v1 = vsel %vm1286_vm0, %v5605_v0, 0  ;;  %173 = vst.msk [vmem:[#allocation2] sm:$0xf] %vm172_vm1, %v6561_v2  ;;  %174 = vst.msk [vmem:[#allocation2 + $0x4] sm:$0xf] %vm172_vm1, %v6561_v2  ;;  %p161_p3 = scmp.lt.s32.totalorder %s5596_s13, 1 }
   0xd   : > { %176 = vst.msk [vmem:[#allocation2 + $0x8] sm:$0x1] %vm175_vm2, %v6561_v2  ;;  %180 = vst.msk [vmem:[#allocation2 + $0xd4] sm:$0x1] %vm175_vm2, %v6561_v2  ;;  %vm183_vm3 = vsmask.f32 256  ;;  %6172 = vmatpush3.bf16.msra.mxu0 %v1288_v1  ;;  %6478 = vmatpush3.bf16.msra.mxu1 %v1288_v1 }
   0xe   : > { %vm233_vm4 = vsmask.f32 7938  ;;  %178 = vst.msk [vmem:[#allocation2 + $0xcc] sm:$0xf] %vm172_vm1, %v6561_v2  ;;  %179 = vst.msk [vmem:[#allocation2 + $0xd0] sm:$0xf] %vm172_vm1, %v6561_v2 }
   0xf   : > { %vm6604_vm5 = vmand %vm175_vm2, %vm183_vm3  ;;  %vm800_vm7 = vsmask.f32 3328  ;;  %vm801_vm8 = vsmask.f32 7440  ;;  %v185_v5 = vld [vmem:[#allocation2 + $0xc] sm:$0x1] }
  0x10   : > { %vm6612_vm6 = vmand %vm175_vm2, %vm233_vm4  ;;  %v235_v6 = vld [vmem:[#allocation2 + $0x14] sm:$0x1]  ;;  %s9459_s13 = smov (!%p161_p3, %s5596_s13), 1  ;;  %v186_v7 = vsel %vm6604_vm5, 0, %v185_v5  ;;  %v206_v9 = vld [vmem:[#allocation2 + $0x60] sm:$0x1] }
  0x11   : > { %v236_v8 = vsel %vm6612_vm6, 0, %v235_v6  ;;  %187 = vst [vmem:[#allocation2 + $0xc] sm:$0x1] %v186_v7  ;;  %v207_v10 = vsel %vm6604_vm5, 0, %v206_v9  ;;  %v256_v11 = vld [vmem:[#allocation2 + $0x68] sm:$0x1]  ;;  %vm6662_vm11 = vmand %vm172_vm1, %vm233_vm4 }
  0x12   : > { %237 = vst [vmem:[#allocation2 + $0x14] sm:$0x1] %v236_v8  ;;  %v6629_v12 = vld [vmem:[%s9222_s1] sm:$0x3]  ;;  %s5984_s18 = sshll.u32 %s9459_s13, 7  ;;  %v257_v13 = vsel %vm6612_vm6, 0, %v256_v11  ;;  %vm6669_vm12 = vmor %vm800_vm7, %vm801_vm8 }
  0x13   : > { %208 = vst [vmem:[#allocation2 + $0x60] sm:$0x1] %v207_v10  ;;  %6481 = vmatprep.subr.msk.bf16.mxu1 %vm1286_vm0, %v6629_v12  ;;  %v209_v14 = vld [vmem:[#allocation2 + $0x6c] sm:$0x1]  ;;  %v259_v15 = vld [vmem:[#allocation2 + $0x74] sm:$0x1]  ;;  %s6641_s21 = scalar_lea.vmem %s9221_s0, %s5984_s18  ;;  %s9002_s15 = scalar_lea.vmem %s9224_s3, %s5984_s18 }
  0x14   : > { %vm315_vm9 = vsmask.f32 4368  ;;  %258 = vst [vmem:[#allocation2 + $0x68] sm:$0x1] %v257_v13  ;;  %v210_v16 = vsel %vm6604_vm5, 0, %v209_v14  ;;  %v260_v17 = vsel %vm6612_vm6, 0, %v259_v15 }
  0x15   : > { %v6650_v18 = vld [vmem:[%s9222_s1 + $0x4] sm:$0x3]  ;;  %v751_v19 = vld [vmem:[#allocation2] sm:$0xf]  ;;  %v6652_v21 = vld [vmem:[#allocation2 + $0x8] sm:$0x1] }
  0x16   : > { %v752_v20 = vld [vmem:[#allocation2 + $0x4] sm:$0xf]  ;;  %211 = vst [vmem:[#allocation2 + $0x6c] sm:$0x1] %v210_v16  ;;  %261 = vst [vmem:[#allocation2 + $0x74] sm:$0x1] %v260_v17  ;;  %6482 = vmatprep.subr.msk.bf16.mxu0 %vm1286_vm0, %v6650_v18 }
  0x17   : > { %v804_v22 = vshrl.u32 %v751_v19, 16  ;;  %v807_v23 = vshll.u32 %v751_v19, 16  ;;  %v813_v24 = vshll.u32 %v752_v20, 16  ;;  %v817_v25 = vshrl.u32 %v752_v20, 16  ;;  %v283_v26 = vld [vmem:[%s6641_s21] sm:$0xf]  ;;  %vm6675_vm13 = vmor %vm183_vm3, %vm315_vm9 }
  0x18   : > { %v823_v27 = vshll.u32 %v6652_v21, 16  ;;  %vm1237_vm10 = vcmask 31744   ;;  %v284_v28 = vld [vmem:[%s6641_s21 + $0x4] sm:$0xf]  ;;  %v318_v29 = vshrl.u32 %v283_v26, 16  ;;  %v321_v30 = vshll.u32 %v283_v26, 16 }
  0x19   : > { %v806_v31 = vrot.slane %v804_v22, 4  ;;  %v809_v32 = vrot.slane %v807_v23, 5  ;;  %v815_v33 = vrot.slane %v813_v24, 5  ;;  %v819_v34 = vrot.slane %v817_v25, 4  ;;  %v297_v35 = vld [vmem:[%s6641_s21 + $0x38] sm:$0xf] }
  0x1a   : > { %v825_v36 = vrot.slane %v823_v27, 5  ;;  %v320_v37 = vrot.slane %v318_v29, 7  ;;  %v326_v38 = vshrl.u32 %v284_v28, 16  ;;  %v329_v39 = vshll.u32 %v284_v28, 16  ;;  %v639_v43 = vld [vmem:[#allocation2 + $0xc] sm:$0xf] }
  0x1b   : > { %v9235_v40 = vmov 0  ;;  %v810_v41 = vor.u32 %v809_v32, %v806_v31  ;;  %v820_v42 = vor.u32 %v819_v34, %v815_v33  ;;  %v298_v44 = vld [vmem:[%s6641_s21 + $0x3c] sm:$0xf]  ;;  %v437_v45 = vshrl.u32 %v297_v35, 16  ;;  %v643_v55 = vld [vmem:[#allocation2 + $0x14] sm:$0x1] }
  0x1c   : > { %v9236_v40 = vsel %vm6662_vm11, 4294967295, %v9235_v40  ;;  %v440_v46 = vshll.u32 %v297_v35, 16  ;;  %v323_v48 = vor.u32 %v321_v30, %v320_v37  ;;  %v324_v49 = vrot.slane %v320_v37, 4  ;;  %v688_v62 = vld [vmem:[#allocation2 + $0x60] sm:$0xf] }
  0x1d   : > { %9237 = vst [vmem:[#allocation3_spill] sm:$0xff] %v9236_v40  ;;  %v328_v50 = vrot.slane %v326_v38, 7  ;;  %v445_v51 = vshrl.u32 %v298_v44, 16  ;;  %v811_v52 = vrot.slane %v810_v41, 4  ;;  %v821_v53 = vrot.slane %v820_v42, 4 }
  0x1e   : > { %v9240_v54 = vmov 0  ;;  %v439_v56 = vrot.slane %v437_v45, 7  ;;  %v448_v57 = vshll.u32 %v298_v44, 16  ;;  %v640_v60 = vsel %vm6662_vm11, %v323_v48, %v639_v43  ;;  %v299_v63 = vld [vmem:[%s6641_s21 + $0x40] sm:$0xf] }
  0x1f   : > { %v9241_v54 = vsel %vm6675_vm13, 4294967295, %v9240_v54  ;;  %v331_v58 = vor.u32 %v329_v39, %v328_v50  ;;  %v333_v59 = vrot.slane %v328_v50, 4  ;;  %v447_v61 = vrot.slane %v445_v51, 7  ;;  %641 = vst [vmem:[#allocation2 + $0xc] sm:$0xf] %v640_v60 }
  0x20   : > { %9242 = vst [vmem:[#allocation4_spill] sm:$0xff] %v9241_v54  ;;  %v816_v0 = vsel %vm6669_vm12, %v811_v52, %v815_v33  ;;  %v826_v1 = vsel %vm6669_vm12, %v821_v53, %v825_v36  ;;  %v442_v2 = vor.u32 %v440_v46, %v439_v56  ;;  %v443_v5 = vrot.slane %v439_v56, 4  ;;  %v692_v6 = vld [vmem:[#allocation2 + $0x68] sm:$0x1]  ;;  %v300_v7 = vld [vmem:[%s6641_s21 + $0x44] sm:$0xf] }
  0x21   : > { %v5606_v8 = vcombine.low %v816_v0, %v826_v1  ;;  %v332_v9 = vsel %vm6675_vm13, %v324_v49, %v331_v58  ;;  %v644_v10 = vsel %vm6604_vm5, %v333_v59, %v643_v55  ;;  %v450_v11 = vor.u32 %v448_v57, %v447_v61  ;;  %v188_v13 = vld [vmem:[#allocation2 + $0x18] sm:$0x1]  ;;  %v238_v14 = vld [vmem:[#allocation2 + $0x20] sm:$0x1]  ;;  %v6692_v15 = vld [vmem:[%s6641_s21 + $0x8] sm:$0xf] }
  0x22   : > { %642 = vst.msk [vmem:[#allocation2 + $0x10] sm:$0xf] %vm172_vm1, %v332_v9  ;;  %645 = vst [vmem:[#allocation2 + $0x14] sm:$0x1] %v644_v10  ;;  %v452_v16 = vrot.slane %v447_v61, 4  ;;  %v689_v17 = vsel %vm6662_vm11, %v442_v2, %v688_v62  ;;  %v454_v19 = vshrl.u32 %v299_v63, 16 }
  0x23   : > { %v457_v20 = vshll.u32 %v299_v63, 16  ;;  %v6698_v22 = vld [vmem:[%s6641_s21 + $0xc] sm:$0xf]  ;;  %6173 = vmatprep.mubr.msk.bf16.mxu0 %vm1237_vm10, %v5606_v8  ;;  %v451_v23 = vsel %vm6675_vm13, %v443_v5, %v450_v11  ;;  %690 = vst [vmem:[#allocation2 + $0x60] sm:$0xf] %v689_v17  ;;  %v462_v24 = vshrl.u32 %v300_v7, 16 }
  0x24   : > { %v465_v25 = vshll.u32 %v300_v7, 16  ;;  %v6705_v26 = vsel %vm1286_vm0, %v6629_v12, 0  ;;  %v191_v27 = vld [vmem:[#allocation2 + $0x24] sm:$0x1]  ;;  %691 = vst.msk [vmem:[#allocation2 + $0x64] sm:$0xf] %vm172_vm1, %v451_v23  ;;  %v693_v28 = vsel %vm6604_vm5, %v452_v16, %v692_v6 }
  0x25   : > { %v456_v29 = vrot.slane %v454_v19, 7  ;;  %v695_v30 = vld [vmem:[#allocation2 + $0x6c] sm:$0xf]  ;;  %v189_v31 = vsel %vm6604_vm5, 0, %v188_v13  ;;  %v239_v32 = vsel %vm6612_vm6, 0, %v238_v14  ;;  %v1799_v33 = vrot.slane %v6652_v21, 5 }
  0x26   : > { %694 = vst [vmem:[#allocation2 + $0x68] sm:$0x1] %v693_v28  ;;  %v464_v34 = vrot.slane %v462_v24, 7  ;;  %190 = vst [vmem:[#allocation2 + $0x18] sm:$0x1] %v189_v31  ;;  %v335_v12 = vshrl.u32 %v6692_v15, 16 }
  0x27   : > { %240 = vst [vmem:[#allocation2 + $0x20] sm:$0x1] %v239_v32  ;;  %v343_v35 = vshrl.u32 %v6698_v22, 16  ;;  %v241_v36 = vld [vmem:[#allocation2 + $0x2c] sm:$0x1]  ;;  %v459_v37 = vor.u32 %v457_v20, %v456_v29  ;;  %v460_v38 = vrot.slane %v456_v29, 4 }
  0x28   : > { %v699_v39 = vld [vmem:[#allocation2 + $0x74] sm:$0x1]  ;;  %v6719_v41 = vsel %vm1286_vm0, %v6650_v18, 0  ;;  %v192_v42 = vsel %vm6604_vm5, 0, %v191_v27  ;;  %v6723_v43 = vld [vmem:[#allocation2 + $0xc] sm:$0xf]  ;;  %v467_v44 = vor.u32 %v465_v25, %v464_v34 }
  0x29   : > { %v469_v45 = vrot.slane %v464_v34, 4  ;;  %v337_v46 = vrot.slane %v335_v12, 7  ;;  %v338_v48 = vshll.u32 %v6692_v15, 16  ;;  %193 = vst [vmem:[#allocation2 + $0x24] sm:$0x1] %v192_v42  ;;  %v828_v49 = vshrl.u32 %v6723_v43, 16 }
  0x2a   : > { %v831_v50 = vshll.u32 %v6723_v43, 16  ;;  %v696_v51 = vsel %vm6662_vm11, %v459_v37, %v695_v30  ;;  %v242_v18 = vsel %vm6612_vm6, 0, %v241_v36  ;;  %v6732_v52 = vld [vmem:[#allocation2 + $0x10] sm:$0xf]  ;;  %v785_v53 = vld [vmem:[#allocation2 + $0x14] sm:$0x1]  ;;  %v468_v55 = vsel %vm6675_vm13, %v460_v38, %v467_v44 }
  0x2b   : > { %697 = vst [vmem:[#allocation2 + $0x6c] sm:$0xf] %v696_v51  ;;  %v700_v56 = vsel %vm6604_vm5, %v469_v45, %v699_v39  ;;  %v6738_v57 = vrot.slane %v343_v35, 7  ;;  %v346_v58 = vshll.u32 %v6698_v22, 16  ;;  %243 = vst [vmem:[#allocation2 + $0x2c] sm:$0x1] %v242_v18  ;;  %v340_v5 = vor.u32 %v338_v48, %v337_v46 }
  0x2c   : > { %v830_v59 = vrot.slane %v828_v49, 4  ;;  %v833_v60 = vrot.slane %v831_v50, 5  ;;  %v837_v61 = vshll.u32 %v6732_v52, 16  ;;  %v841_v62 = vshrl.u32 %v6732_v52, 16  ;;  %v767_v63 = vld [vmem:[#allocation2 + $0x60] sm:$0xf] }
  0x2d   : > { %698 = vst.msk [vmem:[#allocation2 + $0x70] sm:$0xf] %vm172_vm1, %v468_v55  ;;  %701 = vst [vmem:[#allocation2 + $0x74] sm:$0x1] %v700_v56  ;;  %v847_v0 = vshll.u32 %v785_v53, 16  ;;  %v996_v2 = vshrl.u32 %v767_v63, 16  ;;  %v348_v27 = vor.u32 %v346_v58, %v6738_v57 }
  0x2e   : > { %v768_v1 = vld [vmem:[#allocation2 + $0x64] sm:$0xf]  ;;  %v341_v6 = vrot.slane %v337_v46, 4  ;;  %v834_v7 = vor.u32 %v833_v60, %v830_v59  ;;  %v839_v8 = vrot.slane %v837_v61, 5  ;;  %v843_v9 = vrot.slane %v841_v62, 4 }
  0x2f   : > { %v792_v10 = vld [vmem:[#allocation2 + $0x68] sm:$0x1]  ;;  %v999_v11 = vshll.u32 %v767_v63, 16  ;;  %v849_v13 = vrot.slane %v847_v0, 5  ;;  %v998_v14 = vrot.slane %v996_v2, 4  ;;  %v1005_v15 = vshll.u32 %v768_v1, 16 }
  0x30   : > { %v1009_v16 = vshrl.u32 %v768_v1, 16  ;;  %v835_v17 = vrot.slane %v834_v7, 4  ;;  %v844_v19 = vor.u32 %v843_v9, %v839_v8  ;;  %v1015_v22 = vshll.u32 %v792_v10, 16  ;;  %v287_v39 = vld [vmem:[%s6641_s21 + $0x10] sm:$0xf] }
  0x31   : > { %v1001_v20 = vrot.slane %v999_v11, 5  ;;  %v1803_v23 = vrot.slane %v6732_v52, 5  ;;  %v1007_v24 = vrot.slane %v1005_v15, 5  ;;  %v349_v38 = vsel %vm6675_vm13, %v341_v6, %v348_v27  ;;  %v646_v48 = vld [vmem:[#allocation2 + $0x18] sm:$0xf] }
  0x32   : > { %v1011_v25 = vrot.slane %v1009_v16, 4  ;;  %v840_v28 = vsel %vm6669_vm12, %v835_v17, %v839_v8  ;;  %v845_v29 = vrot.slane %v844_v19, 4  ;;  %v1017_v31 = vrot.slane %v1015_v22, 5  ;;  %v769_v32 = vld [vmem:[#allocation2 + $0x6c] sm:$0xf] }
  0x33   : > { %v1002_v30 = vor.u32 %v1001_v20, %v998_v14  ;;  %v1020_v36 = vshrl.u32 %v769_v32, 16  ;;  %v1023_v37 = vshll.u32 %v769_v32, 16  ;;  %649 = vst.msk [vmem:[#allocation2 + $0x1c] sm:$0xf] %vm172_vm1, %v349_v38  ;;  %v288_v53 = vld [vmem:[%s6641_s21 + $0x14] sm:$0xf]  ;;  %v647_v0 = vsel %vm6662_vm11, %v340_v5, %v646_v48 }
  0x34   : > { %v1012_v34 = vor.u32 %v1011_v25, %v1007_v24  ;;  %v770_v12 = vld [vmem:[#allocation2 + $0x70] sm:$0xf]  ;;  %v793_v35 = vld [vmem:[#allocation2 + $0x74] sm:$0x1]  ;;  %v850_v42 = vsel %vm6669_vm12, %v845_v29, %v849_v13  ;;  %v650_v60 = vld [vmem:[#allocation2 + $0x20] sm:$0x1] }
  0x35   : > { %v1003_v44 = vrot.slane %v1002_v30, 4  ;;  %v1029_v45 = vshll.u32 %v770_v12, 16  ;;  %v1033_v46 = vshrl.u32 %v770_v12, 16  ;;  %v5607_v49 = vcombine.low %v840_v28, %v850_v42  ;;  %v212_v1 = vld [vmem:[#allocation2 + $0x78] sm:$0x1] }
  0x36   : > { %v1013_v50 = vrot.slane %v1012_v34, 4  ;;  %v1022_v51 = vrot.slane %v1020_v36, 4  ;;  %v1025_v18 = vrot.slane %v1023_v37, 5  ;;  %v1039_v59 = vshll.u32 %v793_v35, 16  ;;  %648 = vst [vmem:[#allocation2 + $0x18] sm:$0xf] %v647_v0 }
  0x37   : > { %v1008_v55 = vsel %vm6669_vm12, %v1003_v44, %v1007_v24  ;;  %v1031_v56 = vrot.slane %v1029_v45, 5  ;;  %v1035_v58 = vrot.slane %v1033_v46, 4  ;;  %6174 = vmatmul.mubr.msk.bf16.vlgmr.msra.gmra.mxu0 %vm1237_vm10, %v5607_v49  ;;  %v350_v63 = vrot.slane %v6738_v57, 4  ;;  %v262_v9 = vld [vmem:[#allocation2 + $0x80] sm:$0x1] }
  0x38   : > { %v1018_v61 = vsel %vm6669_vm12, %v1013_v50, %v1017_v31  ;;  %v1026_v62 = vor.u32 %v1025_v18, %v1022_v51  ;;  %v1041_v7 = vrot.slane %v1039_v59, 5  ;;  %6240 = vmatpush3.bf16.msra.mxu0 %v6719_v41  ;;  %v352_v8 = vshrl.u32 %v287_v39, 16  ;;  %v301_v10 = vld [vmem:[%s6641_s21 + $0x48] sm:$0xf]  ;;  %v653_v17 = vld [vmem:[#allocation2 + $0x24] sm:$0xf] }
  0x39   : > { %v5614_v2 = vcombine.low %v1008_v55, %v1018_v61  ;;  %v1036_v6 = vor.u32 %v1035_v58, %v1031_v56  ;;  %v651_v13 = vsel %vm6604_vm5, %v350_v63, %v650_v60  ;;  %v355_v14 = vshll.u32 %v287_v39, 16  ;;  %v657_v31 = vld [vmem:[#allocation2 + $0x2c] sm:$0x1]  ;;  %v215_v37 = vld [vmem:[#allocation2 + $0x84] sm:$0x1] }
  0x3a   : > { %v1027_v11 = vrot.slane %v1026_v62, 4  ;;  %v360_v15 = vshrl.u32 %v288_v53, 16  ;;  %652 = vst [vmem:[#allocation2 + $0x20] sm:$0x1] %v651_v13  ;;  %v354_v5 = vrot.slane %v352_v8, 7  ;;  %v363_v16 = vshll.u32 %v288_v53, 16 }
  0x3b   : > { %6189 = vmatprep.mubr.msk.bf16.mxu1 %vm1237_vm10, %v5614_v2  ;;  %v1037_v57 = vrot.slane %v1036_v6, 4  ;;  %v213_v41 = vsel %vm6604_vm5, 0, %v212_v1  ;;  %v756_v20 = vld [vmem:[#allocation2 + $0x1c] sm:$0xf]  ;;  %v263_v24 = vsel %vm6612_vm6, 0, %v262_v9  ;;  %v471_v25 = vshrl.u32 %v301_v10, 16 }
  0x3c   : > { %v1032_v19 = vsel %vm6669_vm12, %v1027_v11, %v1031_v56  ;;  %v362_v22 = vrot.slane %v360_v15, 7  ;;  %214 = vst [vmem:[#allocation2 + $0x78] sm:$0x1] %v213_v41  ;;  %v861_v28 = vshll.u32 %v756_v20, 16  ;;  %v865_v29 = vshrl.u32 %v756_v20, 16 }
  0x3d   : > { %v1042_v27 = vsel %vm6669_vm12, %v1037_v57, %v1041_v7  ;;  %v357_v30 = vor.u32 %v355_v14, %v354_v5  ;;  %264 = vst [vmem:[#allocation2 + $0x80] sm:$0x1] %v263_v24  ;;  %v302_v32 = vld [vmem:[%s6641_s21 + $0x4c] sm:$0xf]  ;;  %v358_v12 = vrot.slane %v354_v5, 4  ;;  %v473_v44 = vrot.slane %v471_v25, 7 }
  0x3e   : > { %v5615_v34 = vcombine.low %v1032_v19, %v1042_v27  ;;  %v365_v35 = vor.u32 %v363_v16, %v362_v22  ;;  %v367_v36 = vrot.slane %v362_v22, 4  ;;  %v6777_v38 = vrot.slane %v861_v28, 5  ;;  %v265_v45 = vld [vmem:[#allocation2 + $0x8c] sm:$0x1]  ;;  %v755_v46 = vld [vmem:[#allocation2 + $0x18] sm:$0xf] }
  0x3f   : > { %v867_v39 = vrot.slane %v865_v29, 4  ;;  %v654_v42 = vsel %vm6662_vm11, %v357_v30, %v653_v17  ;;  %v474_v50 = vshll.u32 %v301_v10, 16  ;;  %v479_v51 = vshrl.u32 %v302_v32, 16  ;;  %v303_v18 = vld [vmem:[%s6641_s21 + $0x50] sm:$0xf] }
  0x40   : > { %6190 = vmatmul.mubr.msk.bf16.vlgmr.msra.gmra.mxu1 %vm1237_vm10, %v5615_v34  ;;  %v366_v48 = vsel %vm6675_vm13, %v358_v12, %v365_v35  ;;  %655 = vst [vmem:[#allocation2 + $0x24] sm:$0xf] %v654_v42  ;;  %v658_v49 = vsel %vm6604_vm5, %v367_v36, %v657_v31  ;;  %v852_v53 = vshrl.u32 %v755_v46, 16  ;;  %v855_v55 = vshll.u32 %v755_v46, 16  ;;  %v6791_v59 = vld [vmem:[%s6641_s21 + $0x54] sm:$0xf] }
  0x41   : > { %6206 = vmatpush3.bf16.msra.mxu1 %v6705_v26  ;;  %v868_v56 = vor.u32 %v867_v39, %v6777_v38  ;;  %656 = vst.msk [vmem:[#allocation2 + $0x28] sm:$0xf] %vm172_vm1, %v366_v48  ;;  %659 = vst [vmem:[#allocation2 + $0x2c] sm:$0x1] %v658_v49  ;;  %v477_v58 = vrot.slane %v473_v44, 4  ;;  %v476_v61 = vor.u32 %v474_v50, %v473_v44  ;;  %v481_v62 = vrot.slane %v479_v51, 7 }
  0x42   : > { %v6793_v60 = vld [vmem:[#allocation2 + $0x20] sm:$0x1]  ;;  %v482_v63 = vshll.u32 %v302_v32, 16  ;;  %v216_v0 = vsel %vm6604_vm5, 0, %v215_v37  ;;  %v854_v1 = vrot.slane %v852_v53, 4  ;;  %v857_v26 = vrot.slane %v855_v55, 5 }
  0x43   : > { %v869_v2 = vrot.slane %v868_v56, 4  ;;  %v871_v6 = vshll.u32 %v6793_v60, 16  ;;  %v702_v7 = vld [vmem:[#allocation2 + $0x78] sm:$0xf]  ;;  %217 = vst [vmem:[#allocation2 + $0x84] sm:$0x1] %v216_v0 }
  0x44   : > { %v484_v8 = vor.u32 %v482_v63, %v481_v62  ;;  %v486_v9 = vrot.slane %v481_v62, 4  ;;  %v703_v10 = vsel %vm6662_vm11, %v476_v61, %v702_v7  ;;  %v706_v11 = vld [vmem:[#allocation2 + $0x80] sm:$0x1]  ;;  %v266_v13 = vsel %vm6612_vm6, 0, %v265_v45  ;;  %v194_v14 = vld [vmem:[#allocation2 + $0x30] sm:$0x1] }
  0x45   : > { %v858_v15 = vor.u32 %v857_v26, %v854_v1  ;;  %v873_v57 = vrot.slane %v871_v6, 5  ;;  %704 = vst [vmem:[#allocation2 + $0x78] sm:$0xf] %v703_v10  ;;  %267 = vst [vmem:[#allocation2 + $0x8c] sm:$0x1] %v266_v13  ;;  %v488_v5 = vshrl.u32 %v303_v18, 16 }
  0x46   : > { %v491_v16 = vshll.u32 %v303_v18, 16  ;;  %v485_v17 = vsel %vm6675_vm13, %v477_v58, %v484_v8  ;;  %v707_v41 = vsel %vm6604_vm5, %v486_v9, %v706_v11  ;;  %v496_v19 = vshrl.u32 %v6791_v59, 16  ;;  %v244_v39 = vld [vmem:[#allocation2 + $0x38] sm:$0x1] }
  0x47   : > { %v499_v20 = vshll.u32 %v6791_v59, 16  ;;  %v859_v22 = vrot.slane %v858_v15, 4  ;;  %v874_v24 = vsel %vm6669_vm12, %v869_v2, %v873_v57  ;;  %v757_v25 = vld [vmem:[#allocation2 + $0x24] sm:$0xf]  ;;  %705 = vst.msk [vmem:[#allocation2 + $0x7c] sm:$0xf] %vm172_vm1, %v485_v17 }
  0x48   : > { %708 = vst [vmem:[#allocation2 + $0x80] sm:$0x1] %v707_v41  ;;  %v490_v27 = vrot.slane %v488_v5, 7  ;;  %v195_v28 = vsel %vm6604_vm5, 0, %v194_v14  ;;  %v6813_v29 = vld [vmem:[#allocation2 + $0x28] sm:$0xf] }
  0x49   : > { %v6815_v30 = vld [vmem:[#allocation2 + $0x2c] sm:$0x1]  ;;  %v876_v31 = vshrl.u32 %v757_v25, 16  ;;  %v879_v32 = vshll.u32 %v757_v25, 16  ;;  %196 = vst [vmem:[#allocation2 + $0x30] sm:$0x1] %v195_v28  ;;  %v864_v12 = vsel %vm6669_vm12, %v859_v22, %v6777_v38 }
  0x4a   : > { %v885_v35 = vshll.u32 %v6813_v29, 16  ;;  %v889_v36 = vshrl.u32 %v6813_v29, 16  ;;  %v895_v37 = vshll.u32 %v6815_v30, 16  ;;  %v5608_v42 = vcombine.low %v864_v12, %v874_v24  ;;  %v709_v48 = vld [vmem:[#allocation2 + $0x84] sm:$0xf] }
  0x4b   : > { %v878_v44 = vrot.slane %v876_v31, 4  ;;  %v881_v45 = vrot.slane %v879_v32, 5  ;;  %v493_v46 = vor.u32 %v491_v16, %v490_v27  ;;  %v289_v49 = vld [vmem:[%s6641_s21 + $0x18] sm:$0xf]  ;;  %v494_v53 = vrot.slane %v490_v27, 4 }
  0x4c   : > { %v887_v50 = vrot.slane %v885_v35, 5  ;;  %v891_v51 = vrot.slane %v889_v36, 4  ;;  %v897_v18 = vrot.slane %v895_v37, 5  ;;  %6177 = vmatprep.mubr.msk.bf16.mxu0 %vm1237_vm10, %v5608_v42  ;;  %v771_v55 = vld [vmem:[#allocation2 + $0x78] sm:$0xf]  ;;  %v498_v56 = vrot.slane %v496_v19, 7 }
  0x4d   : > { %v882_v38 = vor.u32 %v881_v45, %v878_v44  ;;  %v710_v58 = vsel %vm6662_vm11, %v493_v46, %v709_v48  ;;  %v245_v59 = vsel %vm6612_vm6, 0, %v244_v39  ;;  %v1044_v62 = vshrl.u32 %v771_v55, 16  ;;  %v713_v0 = vld [vmem:[#allocation2 + $0x8c] sm:$0x1]  ;;  %v290_v16 = vld [vmem:[%s6641_s21 + $0x1c] sm:$0xf] }
  0x4e   : > { %v892_v61 = vor.u32 %v891_v51, %v887_v50  ;;  %v1047_v63 = vshll.u32 %v771_v55, 16  ;;  %711 = vst [vmem:[#allocation2 + $0x84] sm:$0xf] %v710_v58  ;;  %246 = vst [vmem:[#allocation2 + $0x38] sm:$0x1] %v245_v59  ;;  %v369_v1 = vshrl.u32 %v289_v49, 16  ;;  %v501_v7 = vor.u32 %v499_v20, %v498_v56 }
  0x4f   : > { %v883_v26 = vrot.slane %v882_v38, 4  ;;  %v772_v2 = vld [vmem:[#allocation2 + $0x7c] sm:$0xf]  ;;  %v794_v6 = vld [vmem:[#allocation2 + $0x80] sm:$0x1]  ;;  %v503_v8 = vrot.slane %v498_v56, 4 }
  0x50   : > { %v893_v9 = vrot.slane %v892_v61, 4  ;;  %v1046_v10 = vrot.slane %v1044_v62, 4  ;;  %v1049_v11 = vrot.slane %v1047_v63, 5  ;;  %v1053_v13 = vshll.u32 %v772_v2, 16  ;;  %v197_v22 = vld [vmem:[#allocation2 + $0x3c] sm:$0x1] }
  0x51   : > { %v888_v14 = vsel %vm6669_vm12, %v883_v26, %v887_v50  ;;  %v1057_v15 = vshrl.u32 %v772_v2, 16  ;;  %v1063_v57 = vshll.u32 %v794_v6, 16  ;;  %v502_v5 = vsel %vm6675_vm13, %v494_v53, %v501_v7  ;;  %v247_v28 = vld [vmem:[#allocation2 + $0x44] sm:$0x1]  ;;  %v291_v31 = vld [vmem:[%s6641_s21 + $0x20] sm:$0xf] }
  0x52   : > { %v898_v17 = vsel %vm6669_vm12, %v893_v9, %v897_v18  ;;  %v1050_v41 = vor.u32 %v1049_v11, %v1046_v10  ;;  %v1055_v19 = vrot.slane %v1053_v13, 5  ;;  %712 = vst.msk [vmem:[#allocation2 + $0x88] sm:$0xf] %vm172_vm1, %v502_v5  ;;  %v714_v20 = vsel %vm6604_vm5, %v503_v8, %v713_v0  ;;  %v660_v37 = vld [vmem:[#allocation2 + $0x30] sm:$0xf] }
  0x53   : > { %v5609_v24 = vcombine.low %v888_v14, %v898_v17  ;;  %v1059_v25 = vrot.slane %v1057_v15, 4  ;;  %715 = vst [vmem:[#allocation2 + $0x8c] sm:$0x1] %v714_v20  ;;  %v371_v27 = vrot.slane %v369_v1, 7  ;;  %v1065_v12 = vrot.slane %v1063_v57, 5 }
  0x54   : > { %v1051_v32 = vrot.slane %v1050_v41, 4  ;;  %v372_v35 = vshll.u32 %v289_v49, 16  ;;  %v377_v36 = vshrl.u32 %v290_v16, 16  ;;  %v380_v45 = vshll.u32 %v290_v16, 16  ;;  %v292_v62 = vld [vmem:[%s6641_s21 + $0x24] sm:$0xf] }
  0x55   : > { %6178 = vmatmul.mubr.msk.bf16.gmra.mxu0 %vm1237_vm10, %v5609_v24  ;;  %v1060_v39 = vor.u32 %v1059_v25, %v1055_v19  ;;  %v773_v42 = vld [vmem:[#allocation2 + $0x84] sm:$0xf]  ;;  %v375_v44 = vrot.slane %v371_v27, 4  ;;  %v198_v46 = vsel %vm6604_vm5, 0, %v197_v22  ;;  %v248_v38 = vsel %vm6612_vm6, 0, %v247_v28 }
  0x56   : > { %v1056_v48 = vsel %vm6669_vm12, %v1051_v32, %v1055_v19  ;;  %v1068_v50 = vshrl.u32 %v773_v42, 16  ;;  %v1071_v51 = vshll.u32 %v773_v42, 16  ;;  %v374_v18 = vor.u32 %v372_v35, %v371_v27  ;;  %199 = vst [vmem:[#allocation2 + $0x3c] sm:$0x1] %v198_v46  ;;  %v664_v61 = vld [vmem:[#allocation2 + $0x38] sm:$0x1] }
  0x57   : > { %v1061_v49 = vrot.slane %v1060_v39, 4  ;;  %v379_v53 = vrot.slane %v377_v36, 7  ;;  %v386_v55 = vshrl.u32 %v291_v31, 16  ;;  %249 = vst [vmem:[#allocation2 + $0x44] sm:$0x1] %v248_v38  ;;  %v389_v63 = vshll.u32 %v291_v31, 16 }
  0x58   : > { %v1070_v56 = vrot.slane %v1068_v50, 4  ;;  %v1073_v58 = vrot.slane %v1071_v51, 5  ;;  %v661_v59 = vsel %vm6662_vm11, %v374_v18, %v660_v37  ;;  %v218_v0 = vld [vmem:[#allocation2 + $0x90] sm:$0x1]  ;;  %v268_v8 = vld [vmem:[#allocation2 + $0x98] sm:$0x1] }
  0x59   : > { %v1066_v1 = vsel %vm6669_vm12, %v1061_v49, %v1065_v12  ;;  %v6854_v26 = vld [vmem:[#allocation2 + $0x88] sm:$0xf]  ;;  %v382_v2 = vor.u32 %v380_v45, %v379_v53  ;;  %v384_v6 = vrot.slane %v379_v53, 4  ;;  %662 = vst [vmem:[#allocation2 + $0x30] sm:$0xf] %v661_v59  ;;  %v6856_v7 = vrot.slane %v386_v55, 7 }
  0x5a   : > { %v5616_v9 = vcombine.low %v1056_v48, %v1066_v1  ;;  %v795_v10 = vld [vmem:[#allocation2 + $0x8c] sm:$0x1]  ;;  %v1074_v11 = vor.u32 %v1073_v58, %v1070_v56  ;;  %v1077_v13 = vshll.u32 %v6854_v26, 16  ;;  %v1081_v14 = vshrl.u32 %v6854_v26, 16  ;;  %v6861_v15 = vld [vmem:[%s6641_s21 + $0x58] sm:$0xf] }
  0x5b   : > { %v1087_v57 = vshll.u32 %v795_v10, 16  ;;  %v383_v5 = vsel %vm6675_vm13, %v375_v44, %v382_v2  ;;  %v665_v16 = vsel %vm6604_vm5, %v384_v6, %v664_v61  ;;  %v391_v17 = vor.u32 %v389_v63, %v6856_v7  ;;  %v6869_v41 = vld [vmem:[%s6641_s21 + $0x5c] sm:$0xf]  ;;  %v271_v27 = vld [vmem:[#allocation2 + $0xa4] sm:$0x1] }
  0x5c   : > { %v221_v19 = vld [vmem:[#allocation2 + $0x9c] sm:$0x1]  ;;  %6193 = vmatprep.mubr.msk.bf16.mxu1 %vm1237_vm10, %v5616_v9  ;;  %v1075_v20 = vrot.slane %v1074_v11, 4  ;;  %v1079_v22 = vrot.slane %v1077_v13, 5  ;;  %v1083_v24 = vrot.slane %v1081_v14, 4  ;;  %v392_v25 = vrot.slane %v6856_v7, 4 }
  0x5d   : > { %663 = vst.msk [vmem:[#allocation2 + $0x34] sm:$0xf] %vm172_vm1, %v383_v5  ;;  %666 = vst [vmem:[#allocation2 + $0x38] sm:$0x1] %v665_v16  ;;  %v1089_v28 = vrot.slane %v1087_v57, 5  ;;  %v394_v31 = vshrl.u32 %v292_v62, 16 }
  0x5e   : > { %v397_v32 = vshll.u32 %v292_v62, 16  ;;  %v667_v12 = vld [vmem:[#allocation2 + $0x3c] sm:$0xf]  ;;  %v219_v35 = vsel %vm6604_vm5, 0, %v218_v0  ;;  %v1080_v36 = vsel %vm6669_vm12, %v1075_v20, %v1079_v22  ;;  %v1084_v37 = vor.u32 %v1083_v24, %v1079_v22  ;;  %v6883_v44 = vld [vmem:[%s6641_s21 + $0x60] sm:$0xf] }
  0x5f   : > { %v668_v39 = vsel %vm6662_vm11, %v391_v17, %v667_v12  ;;  %220 = vst [vmem:[#allocation2 + $0x90] sm:$0x1] %v219_v35  ;;  %v269_v42 = vsel %vm6612_vm6, 0, %v268_v8  ;;  %v396_v45 = vrot.slane %v394_v31, 7  ;;  %v671_v46 = vld [vmem:[#allocation2 + $0x44] sm:$0x1] }
  0x60   : > { %669 = vst [vmem:[#allocation2 + $0x3c] sm:$0xf] %v668_v39  ;;  %270 = vst [vmem:[#allocation2 + $0x98] sm:$0x1] %v269_v42  ;;  %v505_v48 = vshrl.u32 %v6861_v15, 16  ;;  %v508_v50 = vshll.u32 %v6861_v15, 16 }
  0x61   : > { %v513_v51 = vshrl.u32 %v6869_v41, 16  ;;  %v1085_v18 = vrot.slane %v1084_v37, 4  ;;  %v6888_v49 = vld [vmem:[#allocation2 + $0x30] sm:$0xf]  ;;  %v516_v53 = vshll.u32 %v6869_v41, 16  ;;  %v222_v38 = vsel %vm6604_vm5, 0, %v221_v19 }
  0x62   : > { %v272_v55 = vsel %vm6612_vm6, 0, %v271_v27  ;;  %v900_v56 = vshrl.u32 %v6888_v49, 16  ;;  %v903_v58 = vshll.u32 %v6888_v49, 16  ;;  %v399_v59 = vor.u32 %v397_v32, %v396_v45  ;;  %223 = vst [vmem:[#allocation2 + $0x9c] sm:$0x1] %v222_v38 }
  0x63   : > { %v401_v61 = vrot.slane %v396_v45, 4  ;;  %273 = vst [vmem:[#allocation2 + $0xa4] sm:$0x1] %v272_v55  ;;  %v6900_v62 = vld [vmem:[%s9222_s1 + $0x6] sm:$0x3]  ;;  %v1090_v63 = vsel %vm6669_vm12, %v1085_v18, %v1089_v28  ;;  %v507_v0 = vrot.slane %v505_v48, 7 }
  0x64   : > { %v515_v1 = vrot.slane %v513_v51, 7  ;;  %v522_v2 = vshrl.u32 %v6883_v44, 16  ;;  %6483 = vmatprep.subr.msk.bf16.mxu1 %vm1286_vm0, %v6900_v62  ;;  %v6910_v6 = vld [vmem:[%s9222_s1 + $0x8] sm:$0x3]  ;;  %v5617_v7 = vcombine.low %v1080_v36, %v1090_v63  ;;  %v6912_v8 = vld [vmem:[#allocation2 + $0x34] sm:$0xf]  ;;  %v400_v13 = vsel %vm6675_vm13, %v392_v25, %v399_v59 }
  0x65   : > { %v6914_v9 = vld [vmem:[#allocation2 + $0x38] sm:$0x1]  ;;  %v902_v10 = vrot.slane %v900_v56, 4  ;;  %v905_v11 = vrot.slane %v903_v58, 5  ;;  %6484 = vmatprep.subr.msk.bf16.mxu0 %vm1286_vm0, %v6910_v6  ;;  %v909_v14 = vshll.u32 %v6912_v8, 16  ;;  %v913_v15 = vshrl.u32 %v6912_v8, 16 }
  0x66   : > { %v919_v57 = vshll.u32 %v6914_v9, 16  ;;  %670 = vst.msk [vmem:[#allocation2 + $0x40] sm:$0xf] %vm172_vm1, %v400_v13  ;;  %v672_v5 = vsel %vm6604_vm5, %v401_v61, %v671_v46  ;;  %6194 = vmatmul.mubr.msk.bf16.gmra.mxu1 %vm1237_vm10, %v5617_v7  ;;  %v510_v17 = vor.u32 %v508_v50, %v507_v0  ;;  %v511_v41 = vrot.slane %v507_v0, 4  ;;  %v716_v20 = vld [vmem:[#allocation2 + $0x90] sm:$0xf] }
  0x67   : > { %v906_v16 = vor.u32 %v905_v11, %v902_v10  ;;  %673 = vst [vmem:[#allocation2 + $0x44] sm:$0x1] %v672_v5  ;;  %v518_v19 = vor.u32 %v516_v53, %v515_v1  ;;  %v308_v22 = vld [vmem:[%s6641_s21 + $0x64] sm:$0xf]  ;;  %v911_v24 = vrot.slane %v909_v14, 5  ;;  %v915_v25 = vrot.slane %v913_v15, 4 }
  0x68   : > { %v921_v27 = vrot.slane %v919_v57, 5  ;;  %v6928_v28 = vld [vmem:[#allocation2 + $0x3c] sm:$0xf]  ;;  %v520_v31 = vrot.slane %v515_v1, 4  ;;  %v720_v37 = vld [vmem:[#allocation2 + $0x98] sm:$0x1]  ;;  %v717_v42 = vsel %vm6662_vm11, %v510_v17, %v716_v20 }
  0x69   : > { %v907_v32 = vrot.slane %v906_v16, 4  ;;  %v924_v12 = vshrl.u32 %v6928_v28, 16  ;;  %v927_v35 = vshll.u32 %v6928_v28, 16  ;;  %v519_v36 = vsel %vm6675_vm13, %v511_v41, %v518_v19  ;;  %v200_v48 = vld [vmem:[#allocation2 + $0x48] sm:$0x1] }
  0x6a   : > { %v916_v39 = vor.u32 %v915_v25, %v911_v24  ;;  %719 = vst.msk [vmem:[#allocation2 + $0x94] sm:$0xf] %vm172_vm1, %v519_v36  ;;  %v721_v45 = vsel %vm6604_vm5, %v520_v31, %v720_v37  ;;  %v524_v46 = vrot.slane %v522_v2, 7  ;;  %v250_v50 = vld [vmem:[#allocation2 + $0x50] sm:$0x1]  ;;  %v525_v38 = vshll.u32 %v6883_v44, 16 }
  0x6b   : > { %v912_v51 = vsel %vm6669_vm12, %v907_v32, %v911_v24  ;;  %v926_v18 = vrot.slane %v924_v12, 4  ;;  %v929_v53 = vrot.slane %v927_v35, 5  ;;  %718 = vst [vmem:[#allocation2 + $0x90] sm:$0xf] %v717_v42  ;;  %722 = vst [vmem:[#allocation2 + $0x98] sm:$0x1] %v721_v45 }
  0x6c   : > { %v917_v55 = vrot.slane %v916_v39, 4  ;;  %v528_v56 = vrot.slane %v524_v46, 4  ;;  %v530_v58 = vshrl.u32 %v308_v22, 16  ;;  %v533_v59 = vshll.u32 %v308_v22, 16  ;;  %v723_v61 = vld [vmem:[#allocation2 + $0x9c] sm:$0xf] }
  0x6d   : > { %v293_v63 = vld [vmem:[%s6641_s21 + $0x28] sm:$0xf]  ;;  %v6943_v0 = vld [vmem:[#allocation2 + $0x40] sm:$0xf]  ;;  %v930_v1 = vor.u32 %v929_v53, %v926_v18  ;;  %v527_v2 = vor.u32 %v525_v38, %v524_v46  ;;  %v201_v7 = vsel %vm6604_vm5, 0, %v200_v48  ;;  %v251_v10 = vsel %vm6612_vm6, 0, %v250_v50 }
  0x6e   : > { %v294_v11 = vld [vmem:[%s6641_s21 + $0x2c] sm:$0xf]  ;;  %v922_v44 = vsel %vm6669_vm12, %v917_v55, %v921_v27  ;;  %v6952_v13 = vld [vmem:[#allocation2 + $0x44] sm:$0x1]  ;;  %v933_v14 = vshll.u32 %v6943_v0, 16  ;;  %v937_v15 = vshrl.u32 %v6943_v0, 16 }
  0x6f   : > { %v532_v57 = vrot.slane %v530_v58, 7  ;;  %202 = vst [vmem:[#allocation2 + $0x48] sm:$0x1] %v201_v7  ;;  %252 = vst [vmem:[#allocation2 + $0x50] sm:$0x1] %v251_v10  ;;  %v5610_v5 = vcombine.low %v912_v51, %v922_v44  ;;  %v931_v16 = vrot.slane %v930_v1, 4  ;;  %v724_v41 = vsel %vm6662_vm11, %v527_v2, %v723_v61 }
  0x70   : > { %v943_v17 = vshll.u32 %v6952_v13, 16  ;;  %v935_v19 = vrot.slane %v933_v14, 5  ;;  %v939_v20 = vrot.slane %v937_v15, 4  ;;  %725 = vst [vmem:[#allocation2 + $0x9c] sm:$0xf] %v724_v41  ;;  %v403_v32 = vshrl.u32 %v293_v63, 16 }
  0x71   : > { %v535_v22 = vor.u32 %v533_v59, %v532_v57  ;;  %v537_v24 = vrot.slane %v532_v57, 4  ;;  %v727_v25 = vld [vmem:[#allocation2 + $0xa4] sm:$0x1]  ;;  %6181 = vmatprep.mubr.msk.bf16.mxu0 %vm1237_vm10, %v5610_v5  ;;  %v6960_v31 = vld [vmem:[#allocation2 + $0x94] sm:$0xf]  ;;  %v406_v12 = vshll.u32 %v293_v63, 16 }
  0x72   : > { %v945_v27 = vrot.slane %v943_v17, 5  ;;  %v411_v35 = vshrl.u32 %v294_v11, 16  ;;  %v936_v36 = vsel %vm6669_vm12, %v931_v16, %v935_v19  ;;  %v940_v37 = vor.u32 %v939_v20, %v935_v19  ;;  %v6964_v39 = vld [vmem:[#allocation2 + $0x90] sm:$0xf]  ;;  %v6966_v42 = vld [vmem:[#allocation2 + $0x98] sm:$0x1] }
  0x73   : > { %v1101_v45 = vshll.u32 %v6960_v31, 16  ;;  %v1105_v46 = vshrl.u32 %v6960_v31, 16  ;;  %v1092_v48 = vshrl.u32 %v6964_v39, 16  ;;  %v1095_v50 = vshll.u32 %v6964_v39, 16  ;;  %v203_v2 = vld [vmem:[#allocation2 + $0x54] sm:$0x1] }
  0x74   : > { %v1111_v51 = vshll.u32 %v6966_v42, 16  ;;  %v536_v18 = vsel %vm6675_vm13, %v528_v56, %v535_v22  ;;  %v941_v53 = vrot.slane %v940_v37, 4  ;;  %v728_v58 = vsel %vm6604_vm5, %v537_v24, %v727_v25  ;;  %v253_v15 = vld [vmem:[#allocation2 + $0x5c] sm:$0x1]  ;;  %v295_v19 = vld [vmem:[%s6641_s21 + $0x30] sm:$0xf] }
  0x75   : > { %v1103_v38 = vrot.slane %v1101_v45, 5  ;;  %v1107_v55 = vrot.slane %v1105_v46, 4  ;;  %726 = vst.msk [vmem:[#allocation2 + $0xa0] sm:$0xf] %vm172_vm1, %v536_v18  ;;  %v1094_v59 = vrot.slane %v1092_v48, 4  ;;  %v1097_v61 = vrot.slane %v1095_v50, 5 }
  0x76   : > { %v1113_v63 = vrot.slane %v1111_v51, 5  ;;  %729 = vst [vmem:[#allocation2 + $0xa4] sm:$0x1] %v728_v58  ;;  %v405_v1 = vrot.slane %v403_v32, 7  ;;  %v946_v7 = vsel %vm6669_vm12, %v941_v53, %v945_v27  ;;  %v413_v56 = vrot.slane %v411_v35, 7 }
  0x77   : > { %v1108_v10 = vor.u32 %v1107_v55, %v1103_v38  ;;  %v414_v44 = vshll.u32 %v294_v11, 16  ;;  %v674_v14 = vld [vmem:[#allocation2 + $0x48] sm:$0xf]  ;;  %v5611_v57 = vcombine.low %v936_v36, %v946_v7  ;;  %v1098_v5 = vor.u32 %v1097_v61, %v1094_v59  ;;  %v6980_v16 = vld [vmem:[#allocation2 + $0x9c] sm:$0xf] }
  0x78   : > { %v408_v17 = vor.u32 %v406_v12, %v405_v1  ;;  %v409_v41 = vrot.slane %v405_v1, 4  ;;  %v1116_v22 = vshrl.u32 %v6980_v16, 16  ;;  %v1119_v24 = vshll.u32 %v6980_v16, 16  ;;  %v678_v27 = vld [vmem:[#allocation2 + $0x50] sm:$0x1] }
  0x79   : > { %v1109_v20 = vrot.slane %v1108_v10, 4  ;;  %v416_v25 = vor.u32 %v414_v44, %v413_v56  ;;  %6182 = vmatmul.mubr.msk.bf16.gmra.mxu0 %vm1237_vm10, %v5611_v57  ;;  %v1099_v11 = vrot.slane %v1098_v5, 4  ;;  %v418_v32 = vrot.slane %v413_v56, 4  ;;  %v296_v48 = vld [vmem:[%s6641_s21 + $0x34] sm:$0xf] }
  0x7a   : > { %v675_v35 = vsel %vm6662_vm11, %v408_v17, %v674_v14  ;;  %v204_v12 = vsel %vm6604_vm5, 0, %v203_v2  ;;  %v1118_v37 = vrot.slane %v1116_v22, 4  ;;  %v1121_v45 = vrot.slane %v1119_v24, 5  ;;  %v224_v58 = vld [vmem:[#allocation2 + $0xa8] sm:$0x1] }
  0x7b   : > { %v1114_v36 = vsel %vm6669_vm12, %v1109_v20, %v1113_v63  ;;  %v417_v46 = vsel %vm6675_vm13, %v409_v41, %v416_v25  ;;  %676 = vst [vmem:[#allocation2 + $0x48] sm:$0xf] %v675_v35  ;;  %205 = vst [vmem:[#allocation2 + $0x54] sm:$0x1] %v204_v12  ;;  %v1104_v50 = vsel %vm6669_vm12, %v1099_v11, %v1103_v38  ;;  %v254_v53 = vsel %vm6612_vm6, 0, %v253_v15 }
  0x7c   : > { %v6997_v51 = vld [vmem:[#allocation2 + $0xa0] sm:$0xf]  ;;  %677 = vst.msk [vmem:[#allocation2 + $0x4c] sm:$0xf] %vm172_vm1, %v417_v46  ;;  %v679_v18 = vsel %vm6604_vm5, %v418_v32, %v678_v27  ;;  %v420_v55 = vshrl.u32 %v295_v19, 16  ;;  %v5618_v59 = vcombine.low %v1104_v50, %v1114_v36  ;;  %v1122_v63 = vor.u32 %v1121_v45, %v1118_v37 }
  0x7d   : > { %v7004_v61 = vld [vmem:[#allocation2 + $0xa4] sm:$0x1]  ;;  %v1125_v1 = vshll.u32 %v6997_v51, 16  ;;  %v1129_v38 = vshrl.u32 %v6997_v51, 16  ;;  %680 = vst [vmem:[#allocation2 + $0x50] sm:$0x1] %v679_v18 }
  0x7e   : > { %255 = vst [vmem:[#allocation2 + $0x5c] sm:$0x1] %v254_v53  ;;  %v274_v2 = vld [vmem:[#allocation2 + $0xb0] sm:$0x1]  ;;  %v1135_v7 = vshll.u32 %v7004_v61, 16  ;;  %v422_v10 = vrot.slane %v420_v55, 7  ;;  %6197 = vmatprep.mubr.msk.bf16.mxu1 %vm1237_vm10, %v5618_v59 }
  0x7f   : > { %v423_v56 = vshll.u32 %v295_v19, 16  ;;  %v428_v44 = vshrl.u32 %v296_v48, 16  ;;  %v309_v14 = vld [vmem:[%s6641_s21 + $0x68] sm:$0xf]  ;;  %v1123_v15 = vrot.slane %v1122_v63, 4  ;;  %v1127_v57 = vrot.slane %v1125_v1, 5 }
  0x80   : > { %v1131_v5 = vrot.slane %v1129_v38, 4  ;;  %v431_v17 = vshll.u32 %v296_v48, 16  ;;  %v1137_v41 = vrot.slane %v1135_v7, 5  ;;  %v426_v22 = vrot.slane %v422_v10, 4  ;;  %v310_v55 = vld [vmem:[%s6641_s21 + $0x6c] sm:$0xf] }
  0x81   : > { %v425_v20 = vor.u32 %v423_v56, %v422_v10  ;;  %v430_v24 = vrot.slane %v428_v44, 7  ;;  %v1128_v25 = vsel %vm6669_vm12, %v1123_v15, %v1127_v57  ;;  %v225_v19 = vsel %vm6604_vm5, 0, %v224_v58  ;;  %v227_v58 = vld [vmem:[#allocation2 + $0xb4] sm:$0x1] }
  0x82   : > { %v1132_v27 = vor.u32 %v1131_v5, %v1127_v57  ;;  %v275_v11 = vsel %vm6612_vm6, 0, %v274_v2  ;;  %v7017_v32 = vld [vmem:[#allocation2 + $0x48] sm:$0xf]  ;;  %v681_v36 = vld [vmem:[#allocation2 + $0x54] sm:$0xf]  ;;  %v539_v37 = vshrl.u32 %v309_v14, 16 }
  0x83   : > { %v433_v35 = vor.u32 %v431_v17, %v430_v24  ;;  %v435_v12 = vrot.slane %v430_v24, 4  ;;  %226 = vst [vmem:[#allocation2 + $0xa8] sm:$0x1] %v225_v19  ;;  %276 = vst [vmem:[#allocation2 + $0xb0] sm:$0x1] %v275_v11  ;;  %v948_v50 = vshrl.u32 %v7017_v32, 16  ;;  %v682_v53 = vsel %vm6662_vm11, %v425_v20, %v681_v36 }
  0x84   : > { %v1133_v46 = vrot.slane %v1132_v27, 4  ;;  %v7021_v48 = vld [vmem:[#allocation2 + $0x4c] sm:$0xf]  ;;  %v951_v18 = vshll.u32 %v7017_v32, 16  ;;  %v7028_v59 = vld [vmem:[#allocation2 + $0x50] sm:$0x1] }
  0x85   : > { %v957_v63 = vshll.u32 %v7021_v48, 16  ;;  %v961_v1 = vshrl.u32 %v7021_v48, 16  ;;  %v434_v38 = vsel %vm6675_vm13, %v426_v22, %v433_v35  ;;  %683 = vst [vmem:[#allocation2 + $0x54] sm:$0xf] %v682_v53  ;;  %v685_v2 = vld [vmem:[#allocation2 + $0x5c] sm:$0x1] }
  0x86   : > { %v1138_v10 = vsel %vm6669_vm12, %v1133_v46, %v1137_v41  ;;  %v950_v56 = vrot.slane %v948_v50, 4  ;;  %v953_v44 = vrot.slane %v951_v18, 5  ;;  %v967_v15 = vshll.u32 %v7028_v59, 16  ;;  %684 = vst.msk [vmem:[#allocation2 + $0x58] sm:$0xf] %vm172_vm1, %v434_v38 }
  0x87   : > { %v277_v57 = vld [vmem:[#allocation2 + $0xbc] sm:$0x1]  ;;  %v5619_v5 = vcombine.low %v1128_v25, %v1138_v10  ;;  %v959_v17 = vrot.slane %v957_v63, 5  ;;  %v963_v20 = vrot.slane %v961_v1, 4  ;;  %v686_v22 = vsel %vm6604_vm5, %v435_v12, %v685_v2  ;;  %v311_v24 = vld [vmem:[%s6641_s21 + $0x70] sm:$0xf] }
  0x88   : > { %v7044_v27 = vld [vmem:[%s6641_s21 + $0x74] sm:$0xf]  ;;  %v954_v19 = vor.u32 %v953_v44, %v950_v56  ;;  %v969_v11 = vrot.slane %v967_v15, 5  ;;  %687 = vst [vmem:[#allocation2 + $0x5c] sm:$0x1] %v686_v22  ;;  %v541_v41 = vrot.slane %v539_v37, 7 }
  0x89   : > { %v542_v35 = vshll.u32 %v309_v14, 16  ;;  %6198 = vmatmul.mubr.msk.bf16.gmra.mxu1 %vm1237_vm10, %v5619_v5  ;;  %v964_v36 = vor.u32 %v963_v20, %v959_v17  ;;  %v547_v46 = vshrl.u32 %v310_v55, 16  ;;  %v550_v50 = vshll.u32 %v310_v55, 16  ;;  %v7049_v18 = vld [vmem:[#allocation2 + $0x14] sm:$0x1] }
  0x8a   : > { %v228_v25 = vsel %vm6604_vm5, 0, %v227_v58  ;;  %v1806_v12 = vrot.slane %v7049_v18, 5  ;;  %v955_v53 = vrot.slane %v954_v19, 4  ;;  %v545_v1 = vrot.slane %v541_v41, 4  ;;  %v730_v38 = vld [vmem:[#allocation2 + $0xa8] sm:$0xf] }
  0x8b   : > { %v544_v63 = vor.u32 %v542_v35, %v541_v41  ;;  %229 = vst [vmem:[#allocation2 + $0xb4] sm:$0x1] %v228_v25  ;;  %v965_v2 = vrot.slane %v964_v36, 4  ;;  %v549_v37 = vrot.slane %v547_v46, 7  ;;  %v278_v14 = vsel %vm6612_vm6, 0, %v277_v57 }
  0x8c   : > { %v556_v10 = vshrl.u32 %v311_v24, 16  ;;  %v960_v55 = vsel %vm6669_vm12, %v955_v53, %v959_v17  ;;  %v7056_v56 = vld [vmem:[#allocation2 + $0x54] sm:$0xf]  ;;  %279 = vst [vmem:[#allocation2 + $0xbc] sm:$0x1] %v278_v14  ;;  %v559_v44 = vshll.u32 %v311_v24, 16 }
  0x8d   : > { %v731_v58 = vsel %vm6662_vm11, %v544_v63, %v730_v38  ;;  %v564_v15 = vshrl.u32 %v7044_v27, 16  ;;  %v970_v5 = vsel %vm6669_vm12, %v965_v2, %v969_v11  ;;  %v7063_v20 = vld [vmem:[#allocation2 + $0x58] sm:$0xf]  ;;  %v972_v57 = vshrl.u32 %v7056_v56, 16  ;;  %v734_v17 = vld [vmem:[#allocation2 + $0xb0] sm:$0x1] }
  0x8e   : > { %v975_v22 = vshll.u32 %v7056_v56, 16  ;;  %v552_v19 = vor.u32 %v550_v50, %v549_v37  ;;  %732 = vst [vmem:[#allocation2 + $0xa8] sm:$0xf] %v731_v58  ;;  %v5612_v41 = vcombine.low %v960_v55, %v970_v5  ;;  %v981_v35 = vshll.u32 %v7063_v20, 16  ;;  %v1743_v38 = vld [vmem:[#allocation2] sm:$0xe] }
  0x8f   : > { %v985_v36 = vshrl.u32 %v7063_v20, 16  ;;  %v554_v24 = vrot.slane %v549_v37, 4  ;;  %v7069_v46 = vld [vmem:[#allocation2 + $0x5c] sm:$0x1]  ;;  %v974_v25 = vrot.slane %v972_v57, 4  ;;  %v558_v63 = vrot.slane %v556_v10, 7 }
  0x90   : > { %v977_v53 = vrot.slane %v975_v22, 5  ;;  %v553_v11 = vsel %vm6675_vm13, %v545_v1, %v552_v19  ;;  %6185 = vmatprep.mubr.msk.bf16.mxu0 %vm1237_vm10, %v5612_v41  ;;  %v983_v50 = vrot.slane %v981_v35, 5  ;;  %v991_v14 = vshll.u32 %v7069_v46, 16  ;;  %v1744_v41 = vld [vmem:[#allocation2 + $0xc] sm:$0xe] }
  0x91   : > { %v987_v2 = vrot.slane %v985_v36, 4  ;;  %733 = vst.msk [vmem:[#allocation2 + $0xac] sm:$0xf] %vm172_vm1, %v553_v11  ;;  %v735_v37 = vsel %vm6604_vm5, %v554_v24, %v734_v17  ;;  %v561_v58 = vor.u32 %v559_v44, %v558_v63  ;;  %v562_v5 = vrot.slane %v558_v63, 4 }
  0x92   : > { %v978_v55 = vor.u32 %v977_v53, %v974_v25  ;;  %736 = vst [vmem:[#allocation2 + $0xb0] sm:$0x1] %v735_v37  ;;  %v566_v57 = vrot.slane %v564_v15, 7  ;;  %v737_v22 = vld [vmem:[#allocation2 + $0xb4] sm:$0xf]  ;;  %v993_v10 = vrot.slane %v991_v14, 5 }
  0x93   : > { %v988_v1 = vor.u32 %v987_v2, %v983_v50  ;;  %v567_v19 = vshll.u32 %v7044_v27, 16  ;;  %vm1791_vm14 = vcmask 1042432   ;;  %v738_v11 = vsel %vm6662_vm11, %v561_v58, %v737_v22  ;;  %v741_v7 = vld [vmem:[#allocation2 + $0xbc] sm:$0x1]  ;;  %v7087_v27 = vld [vmem:[#allocation2 + $0x4] sm:$0xf] }
  0x94   : > { %v979_v35 = vrot.slane %v978_v55, 4  ;;  %v571_v36 = vrot.slane %v566_v57, 4  ;;  %vm1792_vm15 = vcmask 1046532   ;;  %739 = vst [vmem:[#allocation2 + $0xb4] sm:$0xf] %v738_v11  ;;  %v5670_v25 = vrot.slane %v1743_v38, 9 }
  0x95   : > { %v989_v17 = vrot.slane %v988_v1, 4  ;;  %v7081_v24 = vld [vmem:[#allocation2 + $0xa8] sm:$0xf]  ;;  %v569_v44 = vor.u32 %v567_v19, %v566_v57  ;;  %vm7083_vm2 = vmor %vm1791_vm14, %vm1792_vm15  ;;  %v1796_v53 = vrot.slane %v7087_v27, 5  ;;  %v1805_v11 = vrot.slane %v1803_v23, 4 }
  0x96   : > { %v984_v63 = vsel %vm6669_vm12, %v979_v35, %v983_v50  ;;  %v1140_v2 = vshrl.u32 %v7081_v24, 16  ;;  %v1143_v14 = vshll.u32 %v7081_v24, 16  ;;  %v742_v37 = vsel %vm6604_vm5, %v571_v36, %v741_v7 }
  0x97   : > { %v994_v55 = vsel %vm6669_vm12, %v989_v17, %v993_v10  ;;  %v570_v38 = vsel %vm6675_vm13, %v562_v5, %v569_v44  ;;  %743 = vst [vmem:[#allocation2 + $0xbc] sm:$0x1] %v742_v37  ;;  %v1797_v58 = vsel %vm7083_vm2, %v5670_v25, %v1796_v53  ;;  %v1798_v57 = vrot.slane %v1796_v53, 4  ;;  %v1745_v53 = vld [vmem:[#allocation2 + $0x18] sm:$0xe] }
  0x98   : > { %v5613_v22 = vcombine.low %v984_v63, %v994_v55  ;;  %v7102_v50 = vld [vmem:[#allocation2 + $0xac] sm:$0xf]  ;;  %v1142_v1 = vrot.slane %v1140_v2, 4  ;;  %v1145_v19 = vrot.slane %v1143_v14, 5  ;;  %740 = vst.msk [vmem:[#allocation2 + $0xb8] sm:$0xf] %vm172_vm1, %v570_v38 }
  0x99   : > { %v5671_v35 = vrot.slane %v1744_v41, 9  ;;  %v7105_v7 = vld [vmem:[#allocation2 + $0xb0] sm:$0x1]  ;;  %v1149_v10 = vshll.u32 %v7102_v50, 16  ;;  %v1153_v36 = vshrl.u32 %v7102_v50, 16  ;;  %v1800_v5 = vsel %vm7083_vm2, %v1798_v57, %v1799_v33 }
  0x9a   : > { %6186 = vmatmul.mubr.msk.bf16.gmra.mxu0 %vm1237_vm10, %v5613_v22  ;;  %v1146_v17 = vor.u32 %v1145_v19, %v1142_v1  ;;  %v1159_v44 = vshll.u32 %v7105_v7, 16  ;;  %v5687_v41 = vcombine.low %v1797_v58, %v1800_v5  ;;  %v1807_v33 = vsel %vm7083_vm2, %v1805_v11, %v1806_v12  ;;  %v1746_v2 = vld [vmem:[#allocation2 + $0x24] sm:$0xe]  ;;  %v7136_v19 = vld [vmem:[#allocation2 + $0x1c] sm:$0xf] }
  0x9b   : > { %v1804_v25 = vsel %vm7083_vm2, %v5671_v35, %v1803_v23  ;;  %v1151_v63 = vrot.slane %v1149_v10, 5  ;;  %v1155_v21 = vrot.slane %v1153_v36, 4  ;;  %v7125_v55 = vld [vmem:[#allocation2 + $0xb4] sm:$0xf]  ;;  %v3089_v58 = vsel %vm1286_vm0, %v6910_v6, 0 }
  0x9c   : > { %v1147_v14 = vrot.slane %v1146_v17, 4  ;;  %v1161_v37 = vrot.slane %v1159_v44, 5  ;;  %6241 = vmatprep.mubr.msk.bf16.mxu0 %vm1237_vm10, %v5687_v41  ;;  %v5688_v38 = vcombine.low %v1804_v25, %v1807_v33  ;;  %v1164_v57 = vshrl.u32 %v7125_v55, 16  ;;  %v1747_v41 = vld [vmem:[#allocation2 + $0x30] sm:$0xe] }
  0x9d   : > { %v1156_v23 = vor.u32 %v1155_v21, %v1151_v63  ;;  %v1167_v22 = vshll.u32 %v7125_v55, 16  ;;  %v5672_v18 = vrot.slane %v1745_v53, 9  ;;  %v1810_v35 = vrot.slane %v7136_v19, 5 }
  0x9e   : > { %v1152_v12 = vsel %vm6669_vm12, %v1147_v14, %v1151_v63  ;;  %v7134_v1 = vld [vmem:[#allocation2 + $0xbc] sm:$0x1]  ;;  %v1813_v10 = vrot.slane %v6793_v60, 5  ;;  %v5673_v36 = vrot.slane %v1746_v2, 9  ;;  %v1166_v11 = vrot.slane %v1164_v57, 4 }
  0x9f   : > { %v1157_v5 = vrot.slane %v1156_v23, 4  ;;  %v7140_v6 = vld [vmem:[#allocation2 + $0xb8] sm:$0xf]  ;;  %v1169_v17 = vrot.slane %v1167_v22, 5  ;;  %v1183_v44 = vshll.u32 %v7134_v1, 16  ;;  %v1811_v63 = vsel %vm7083_vm2, %v5672_v18, %v1810_v35 }
  0xa0   : > { %v1173_v25 = vshll.u32 %v7140_v6, 16  ;;  %v1177_v53 = vshrl.u32 %v7140_v6, 16  ;;  %v1812_v21 = vrot.slane %v1810_v35, 4  ;;  %v7150_v60 = vld [vmem:[%s9222_s1 + $0xc] sm:$0x3]  ;;  %v1817_v23 = vrot.slane %v6813_v29, 5 }
  0xa1   : > { %v1162_v33 = vsel %vm6669_vm12, %v1157_v5, %v1161_v37  ;;  %v1170_v2 = vor.u32 %v1169_v17, %v1166_v11  ;;  %v1185_v14 = vrot.slane %v1183_v44, 5  ;;  %v1748_v35 = vld [vmem:[#allocation2 + $0x3c] sm:$0xe]  ;;  %v1820_v29 = vrot.slane %v6815_v30, 5  ;;  %v1749_v17 = vld [vmem:[#allocation2 + $0x48] sm:$0xe] }
  0xa2   : > { %v5620_v57 = vcombine.low %v1152_v12, %v1162_v33  ;;  %v1175_v22 = vrot.slane %v1173_v25, 5  ;;  %v1179_v45 = vrot.slane %v1177_v53, 4  ;;  %6242 = vmatmul.mubr.msk.bf16.vlgmr.msra.gmra.mxu0 %vm1237_vm10, %v5688_v38  ;;  %v1814_v18 = vsel %vm7083_vm2, %v1812_v21, %v1813_v10  ;;  %v6534_v25 = vld [vmem:[#allocation2] sm:$0xf] }
  0xa3   : > { %v1171_v34 = vrot.slane %v1170_v2, 4  ;;  %6308 = vmatpush3.bf16.msra.mxu0 %v3089_v58  ;;  %v5689_v40 = vcombine.low %v1811_v63, %v1814_v18  ;;  %v1818_v54 = vsel %vm7083_vm2, %v5673_v36, %v1817_v23  ;;  %v1819_v37 = vrot.slane %v1817_v23, 4  ;;  %v1750_v18 = vld [vmem:[#allocation2 + $0x54] sm:$0xe] }
  0xa4   : > { %6201 = vmatprep.mubr.msk.bf16.mxu1 %vm1237_vm10, %v5620_v57  ;;  %v1180_v5 = vor.u32 %v1179_v45, %v1175_v22  ;;  %v5674_v12 = vrot.slane %v1747_v41, 9  ;;  %v1824_v11 = vrot.slane %v6912_v8, 5  ;;  %6486 = vmatprep.subr.msk.bf16.mxu0 %vm1286_vm0, %v7150_v60  ;;  %v1827_v58 = vrot.slane %v6914_v9, 5 }
  0xa5   : > { %v1176_v38 = vsel %vm6669_vm12, %v1171_v34, %v1175_v22  ;;  %6245 = vmatprep.mubr.msk.bf16.mxu0 %vm1237_vm10, %v5689_v40  ;;  %v5675_v10 = vrot.slane %v1748_v35, 9  ;;  %v1831_v36 = vrot.slane %v6943_v0, 5  ;;  %v1821_v30 = vsel %vm7083_vm2, %v1819_v37, %v1820_v29  ;;  %v1752_v37 = vld [vmem:[#allocation2 + $0x6c] sm:$0xe] }
  0xa6   : > { %v1181_v45 = vrot.slane %v1180_v5, 4  ;;  %v1825_v44 = vsel %vm7083_vm2, %v5674_v12, %v1824_v11  ;;  %v1826_v41 = vrot.slane %v1824_v11, 4  ;;  %v5638_v53 = vcombine.low %v6534_v25, %v7087_v27  ;;  %v1751_v27 = vld [vmem:[#allocation2 + $0x60] sm:$0xe]  ;;  %v7196_v11 = vld [vmem:[#allocation2 + $0x64] sm:$0xf] }
  0xa7   : > { %v5690_v34 = vcombine.low %v1818_v54, %v1821_v30  ;;  %v1833_v63 = vrot.slane %v1831_v36, 4  ;;  %v1834_v40 = vrot.slane %v6952_v13, 5  ;;  %v5676_v33 = vrot.slane %v1749_v17, 9 }
  0xa8   : > { %v1186_v9 = vsel %vm6669_vm12, %v1181_v45, %v1185_v14  ;;  %v1828_v21 = vsel %vm7083_vm2, %v1826_v41, %v1827_v58  ;;  %v1838_v2 = vrot.slane %v7021_v48, 5  ;;  %v1841_v22 = vrot.slane %v7028_v59, 5  ;;  %v6536_v58 = vld [vmem:[#allocation2 + $0x68] sm:$0x1]  ;;  %v7199_v41 = vld [vmem:[#allocation2 + $0x70] sm:$0xf] }
  0xa9   : > { %v5621_v23 = vcombine.low %v1176_v38, %v1186_v9  ;;  %v5691_v57 = vcombine.low %v1825_v44, %v1828_v21  ;;  %v1832_v13 = vsel %vm7083_vm2, %v5675_v10, %v1831_v36  ;;  %v1835_v14 = vsel %vm7083_vm2, %v1833_v63, %v1834_v40  ;;  %v7203_v63 = vld [vmem:[#allocation2 + $0x24] sm:$0xf] }
  0xaa   : > { %6246 = vmatmul.mubr.msk.bf16.gmra.mxu0 %vm1237_vm10, %v5690_v34  ;;  %v1840_v54 = vrot.slane %v1838_v2, 4  ;;  %v1839_v35 = vsel %vm7083_vm2, %v5676_v33, %v1838_v2  ;;  %v1845_v59 = vrot.slane %v7063_v20, 5  ;;  %v5677_v29 = vrot.slane %v1750_v18, 9 }
  0xab   : > { %6202 = vmatmul.mubr.msk.bf16.gmra.mxu1 %vm1237_vm10, %v5621_v23  ;;  %6249 = vmatprep.mubr.msk.bf16.mxu0 %vm1237_vm10, %v5691_v57  ;;  %v1848_v12 = vrot.slane %v7069_v46, 5  ;;  %v1852_v38 = vrot.slane %v7196_v11, 5  ;;  %v1855_v10 = vrot.slane %v6536_v58, 5  ;;  %v5678_v17 = vrot.slane %v1751_v27, 9  ;;  %v7205_v46 = vld [vmem:[#allocation2 + $0x28] sm:$0xf] }
  0xac   : > { %6207 = vmatprep.mubr.msk.bf16.mxu1 %vm1237_vm10, %v5638_v53  ;;  %v1842_v5 = vsel %vm7083_vm2, %v1840_v54, %v1841_v22  ;;  %v1847_v36 = vrot.slane %v1845_v59, 4  ;;  %v5692_v45 = vcombine.low %v1832_v13, %v1835_v14  ;;  %v5679_v44 = vrot.slane %v1752_v37, 9  ;;  %v6538_v53 = vld [vmem:[#allocation2 + $0x18] sm:$0xf]  ;;  %v7215_v57 = vld [vmem:[#allocation2 + $0x7c] sm:$0xf] }
  0xad   : > { %v1854_v30 = vrot.slane %v1852_v38, 4  ;;  %v1859_v25 = vrot.slane %v7199_v41, 5  ;;  %v5640_v34 = vcombine.low %v6538_v53, %v7136_v19  ;;  %v5641_v40 = vcombine.low %v7203_v63, %v7205_v46  ;;  %v1753_v23 = vld [vmem:[#allocation2 + $0x78] sm:$0xe]  ;;  %v1755_v22 = vld [vmem:[#allocation2 + $0x90] sm:$0xe] }
  0xae   : > { %v5693_v9 = vcombine.low %v1839_v35, %v1842_v5  ;;  %v5644_v21 = vcombine.low %v7017_v32, %v7021_v48  ;;  %v1846_v33 = vsel %vm7083_vm2, %v5677_v29, %v1845_v59  ;;  %v1849_v2 = vsel %vm7083_vm2, %v1847_v36, %v1848_v12  ;;  %v7227_v14 = vld [vmem:[#allocation2 + $0x60] sm:$0xf]  ;;  %v6543_v37 = vld [vmem:[#allocation2 + $0x74] sm:$0x1]  ;;  %v1754_v29 = vld [vmem:[#allocation2 + $0x84] sm:$0xe] }
  0xaf   : > { %v1866_v19 = vrot.slane %v7215_v57, 5  ;;  %v2363_v18 = vsel %vm1286_vm0, %v6900_v62, 0  ;;  %v1853_v27 = vsel %vm7083_vm2, %v5678_v17, %v1852_v38  ;;  %v1856_v13 = vsel %vm7083_vm2, %v1854_v30, %v1855_v10  ;;  %v7238_v12 = vld [vmem:[%s9222_s1 + $0xa] sm:$0x3]  ;;  %v2570_v54 = vld [vmem:[#allocation2 + $0x3c] sm:$0xf] }
  0xb0   : > { %v7233_v59 = vsel %vm7083_vm2, %v5679_v44, %v1859_v25  ;;  %v1861_v62 = vrot.slane %v1859_v25, 4  ;;  %v1862_v5 = vrot.slane %v6543_v37, 5  ;;  %v9245_v38 = vcombine.low %v6723_v43, %v6732_v52  ;;  %v6544_v25 = vld [vmem:[#allocation2 + $0x80] sm:$0x1] }
  0xb1   : > { %v5694_v58 = vcombine.low %v1846_v33, %v1849_v2  ;;  %v5680_v10 = vrot.slane %v1753_v23, 9  ;;  %v5682_v36 = vrot.slane %v1755_v22, 9  ;;  %v1880_v17 = vrot.slane %v6960_v31, 5  ;;  %v7335_v33 = vld [vmem:[#allocation2 + $0x84] sm:$0xf] }
  0xb2   : > { %6250 = vmatmul.mubr.msk.bf16.gmra.mxu0 %vm1237_vm10, %v5692_v45  ;;  %v1756_v45 = vld [vmem:[#allocation2 + $0x9c] sm:$0xe]  ;;  %v5695_v30 = vcombine.low %v1853_v27, %v1856_v13  ;;  %v1868_v44 = vrot.slane %v1866_v19, 4  ;;  %v1869_v53 = vrot.slane %v6544_v25, 5  ;;  %v1883_v37 = vrot.slane %v6966_v42, 5 }
  0xb3   : > { %6208 = vmatmul.mubr.msk.bf16.vlgmr.msra.gmra.mxu1 %vm1237_vm10, %v9245_v38  ;;  %6253 = vmatprep.mubr.msk.bf16.mxu0 %vm1237_vm10, %v5693_v9  ;;  %v1873_v43 = vrot.slane %v6854_v26, 5  ;;  %v7251_v52 = vsel %vm7083_vm2, %v5682_v36, %v1880_v17  ;;  %v1882_v9 = vrot.slane %v1880_v17, 4  ;;  %v5683_v2 = vrot.slane %v1756_v45, 9  ;;  %v1757_v13 = vld [vmem:[#allocation2 + $0xa8] sm:$0xe] }
  0xb4   : > { %6274 = vmatpush3.bf16.msra.mxu1 %v2363_v18  ;;  %6211 = vmatprep.mubr.msk.bf16.mxu1 %vm1237_vm10, %v5640_v34  ;;  %v7259_v34 = vsel %vm7083_vm2, %v1861_v62, %v1862_v5  ;;  %v1887_v42 = vrot.slane %v6997_v51, 5  ;;  %v1890_v26 = vrot.slane %v7004_v61, 5  ;;  %v7265_v23 = vsel %vm7083_vm2, %v5680_v10, %v1866_v19  ;;  %v6545_v10 = vld [vmem:[#allocation2 + $0x8c] sm:$0x1]  ;;  %v7284_v25 = vld [vmem:[#allocation2 + $0x10] sm:$0xf] }
  0xb5   : > { %6485 = vmatprep.subr.msk.bf16.mxu1 %vm1286_vm0, %v7238_v12  ;;  %v5681_v22 = vrot.slane %v1754_v29, 9  ;;  %v7269_v18 = vsel %vm7083_vm2, %v1882_v9, %v1883_v37  ;;  %v1894_v19 = vrot.slane %v7102_v50, 5  ;;  %v1870_v29 = vsel %vm7083_vm2, %v1868_v44, %v1869_v53  ;;  %v2558_v45 = vld [vmem:[#allocation2 + $0xc] sm:$0xf]  ;;  %v7331_v17 = vld [vmem:[#allocation2 + $0x78] sm:$0xf] }
  0xb6   : > { %v7277_v5 = vsel %vm7083_vm2, %v5683_v2, %v1887_v42  ;;  %v1889_v61 = vrot.slane %v1887_v42, 4  ;;  %v1875_v38 = vrot.slane %v1873_v43, 4  ;;  %v1876_v36 = vrot.slane %v6545_v10, 5  ;;  %v7297_v44 = vld [vmem:[#allocation2 + $0x6c] sm:$0xf] }
  0xb7   : > { %v5684_v9 = vrot.slane %v1757_v13, 9  ;;  %v1896_v2 = vrot.slane %v1894_v19, 4  ;;  %v1897_v42 = vrot.slane %v7105_v7, 5  ;;  %v9246_v7 = vcombine.low %v6888_v49, %v6912_v8  ;;  %v2563_v62 = vld [vmem:[#allocation2 + $0x20] sm:$0x1] }
  0xb8   : > { %v7289_v37 = vsel %vm7083_vm2, %v1889_v61, %v1890_v26  ;;  %v1758_v26 = vld [vmem:[#allocation2 + $0xb4] sm:$0xe]  ;;  %v5696_v63 = vcombine.low %v7233_v59, %v7259_v34  ;;  %v7313_v46 = vsel %vm7083_vm2, %v5681_v22, %v1873_v43  ;;  %v2561_v61 = vld [vmem:[#allocation2 + $0x18] sm:$0xf]  ;;  %v5697_v10 = vcombine.low %v7265_v23, %v1870_v29  ;;  %v2560_v22 = vld [vmem:[#allocation2 + $0x14] sm:$0x1] }
  0xb9   : > { %v7318_v13 = vsel %vm7083_vm2, %v1875_v38, %v1876_v36  ;;  %v2616_v49 = vshll.u32 %v7284_v25, 16  ;;  %v2620_v8 = vshrl.u32 %v7284_v25, 16  ;;  %v7324_v59 = vsel %vm7083_vm2, %v5684_v9, %v1894_v19  ;;  %v7337_v19 = vld [vmem:[#allocation2 + $0x88] sm:$0xf] }
  0xba   : > { %6254 = vmatmul.mubr.msk.bf16.gmra.mxu0 %vm1237_vm10, %v5694_v58  ;;  %v7328_v43 = vsel %vm7083_vm2, %v1896_v2, %v1897_v42  ;;  %v5685_v34 = vrot.slane %v1758_v26, 9  ;;  %v1901_v23 = vrot.slane %v7140_v6, 5  ;;  %v2631_v36 = vshrl.u32 %v2561_v61, 16  ;;  %v2564_v26 = vld [vmem:[#allocation2 + $0x24] sm:$0xf] }
  0xbb   : > { %6212 = vmatmul.mubr.msk.bf16.gmra.mxu1 %vm1237_vm10, %v5641_v40  ;;  %6257 = vmatprep.mubr.msk.bf16.mxu0 %vm1237_vm10, %v5695_v30  ;;  %v2607_v40 = vshrl.u32 %v2558_v45, 16  ;;  %v2610_v30 = vshll.u32 %v2558_v45, 16  ;;  %v2634_v45 = vshll.u32 %v2561_v61, 16  ;;  %v7341_v58 = vld [vmem:[#allocation2 + $0x28] sm:$0xf]  ;;  %v2622_v61 = vrot.slane %v2620_v8, 4 }
  0xbc   : > { %6215 = vmatprep.mubr.msk.bf16.mxu1 %vm1237_vm10, %v9246_v7  ;;  %v2562_v7 = vld [vmem:[#allocation2 + $0x1c] sm:$0xf]  ;;  %v2626_v53 = vshll.u32 %v2560_v22, 16  ;;  %v7352_v9 = vsel %vm7083_vm2, %v5685_v34, %v1901_v23  ;;  %v1904_v35 = vrot.slane %v7134_v1, 5  ;;  %v2655_v8 = vshrl.u32 %v2564_v26, 16 }
  0xbd   : > { %v2609_v29 = vrot.slane %v2607_v40, 4  ;;  %v2612_v38 = vrot.slane %v2610_v30, 5  ;;  %v2640_v2 = vshll.u32 %v2562_v7, 16  ;;  %v2644_v42 = vshrl.u32 %v2562_v7, 16  ;;  %v2567_v22 = vld [vmem:[#allocation2 + $0x30] sm:$0xf] }
  0xbe   : > { %v5698_v40 = vcombine.low %v7313_v46, %v7318_v13  ;;  %v7345_v30 = vrot.slane %v2616_v49, 5  ;;  %v1903_v7 = vrot.slane %v1901_v23, 4  ;;  %v9247_v13 = vcombine.low %v6928_v28, %v6943_v0  ;;  %v7366_v23 = vld [vmem:[#allocation2 + $0x2c] sm:$0x1] }
  0xbf   : > { %v2613_v46 = vor.u32 %v2612_v38, %v2609_v29  ;;  %v2636_v49 = vrot.slane %v2634_v45, 5  ;;  %v7364_v34 = vrot.slane %v2640_v2, 5  ;;  %v2646_v1 = vrot.slane %v2644_v42, 4 }
  0xc0   : > { %v2658_v28 = vshll.u32 %v2564_v26, 16  ;;  %v2664_v0 = vshll.u32 %v7341_v58, 16  ;;  %v7372_v29 = vrot.slane %v2626_v53, 5  ;;  %v2657_v38 = vrot.slane %v2655_v8, 4 }
  0xc1   : > { %v2650_v32 = vshll.u32 %v2563_v62, 16  ;;  %v7377_v48 = vsel %vm1286_vm0, %v7238_v12, 0  ;;  %v7381_v2 = vrot.slane %v2613_v46, 4  ;;  %v2679_v27 = vshrl.u32 %v2567_v22, 16  ;;  %v7388_v62 = vld [vmem:[#allocation2 + $0x38] sm:$0x1] }
  0xc2   : > { %6258 = vmatmul.mubr.msk.bf16.gmra.mxu0 %vm1237_vm10, %v5696_v63  ;;  %v2633_v63 = vrot.slane %v2631_v36, 4  ;;  %v2668_v36 = vshrl.u32 %v7341_v58, 16  ;;  %v7379_v45 = vrot.slane %v2664_v0, 5  ;;  %v7385_v53 = vsel %vm7083_vm2, %v1903_v7, %v1904_v35 }
  0xc3   : > { %6216 = vmatmul.mubr.msk.bf16.gmra.mxu1 %vm1237_vm10, %v9247_v13  ;;  %6261 = vmatprep.mubr.msk.bf16.mxu0 %vm1237_vm10, %v5697_v10  ;;  %v7369_v13 = vld [vmem:[#allocation2 + $0x34] sm:$0xf]  ;;  %v2623_v10 = vor.u32 %v2622_v61, %v7345_v30  ;;  %v2647_v61 = vor.u32 %v2646_v1, %v7364_v34  ;;  %v2682_v8 = vshll.u32 %v2567_v22, 16  ;;  %v2681_v35 = vrot.slane %v2679_v27, 4  ;;  %v2573_v27 = vld [vmem:[#allocation2 + $0x48] sm:$0xf] }
  0xc4   : > { %6219 = vmatprep.mubr.msk.bf16.mxu1 %vm1237_vm10, %v5644_v21  ;;  %v2660_v21 = vrot.slane %v2658_v28, 5  ;;  %v2637_v42 = vor.u32 %v2636_v49, %v2633_v63  ;;  %v2670_v26 = vrot.slane %v2668_v36, 4  ;;  %v2688_v12 = vshll.u32 %v7369_v13, 16  ;;  %v7395_v49 = vld [vmem:[#allocation2 + $0x40] sm:$0xf] }
  0xc5   : > { %v7391_v28 = vrot.slane %v2623_v10, 4  ;;  %v2674_v63 = vshll.u32 %v7366_v23, 16  ;;  %v2684_v7 = vrot.slane %v2682_v8, 5  ;;  %v2692_v1 = vshrl.u32 %v7369_v13, 16 }
  0xc6   : > { %v2661_v0 = vor.u32 %v2660_v21, %v2657_v38  ;;  %v2671_v46 = vor.u32 %v2670_v26, %v7379_v45  ;;  %v7398_v36 = vrot.slane %v2688_v12, 5  ;;  %v9248_v22 = vcombine.low %v7056_v56, %v7063_v20 }
  0xc7   : > { %v9249_v10 = vcombine.low %v7251_v52, %v7269_v18  ;;  %v2638_v38 = vrot.slane %v2637_v42, 4  ;;  %v2652_v21 = vrot.slane %v2650_v32, 5  ;;  %v2703_v26 = vshrl.u32 %v2570_v54, 16  ;;  %v7425_v42 = vld [vmem:[#allocation2 + $0x4c] sm:$0xf] }
  0xc8   : > { %v9250_v8 = vcombine.low %v7227_v14, %v7196_v11  ;;  %v2619_v20 = vsel %vm6669_vm12, %v7381_v2, %v7345_v30  ;;  %v2648_v52 = vrot.slane %v2647_v61, 4  ;;  %v2694_v18 = vrot.slane %v2692_v1, 4  ;;  %v7428_v30 = vld [vmem:[#allocation2 + $0x44] sm:$0x1] }
  0xc9   : > { %v2662_v32 = vrot.slane %v2661_v0, 4  ;;  %v2698_v11 = vshll.u32 %v7388_v62, 16  ;;  %v2712_v14 = vshll.u32 %v7395_v49, 16  ;;  %v2672_v12 = vrot.slane %v2671_v46, 4 }
  0xca   : > { %6262 = vmatmul.mubr.msk.bf16.gmra.mxu0 %vm1237_vm10, %v5698_v40  ;;  %v2706_v40 = vshll.u32 %v2570_v54, 16  ;;  %v2629_v54 = vsel %vm6669_vm12, %v7391_v28, %v7372_v29  ;;  %v2705_v2 = vrot.slane %v2703_v26, 4  ;;  %v2716_v1 = vshrl.u32 %v7395_v49, 16 }
  0xcb   : > { %6220 = vmatmul.mubr.msk.bf16.gmra.mxu1 %vm1237_vm10, %v9248_v22  ;;  %6265 = vmatprep.mubr.msk.bf16.mxu0 %vm1237_vm10, %v9249_v10  ;;  %v2676_v22 = vrot.slane %v2674_v63, 5  ;;  %v2685_v10 = vor.u32 %v2684_v7, %v2681_v35  ;;  %v2727_v56 = vshrl.u32 %v2573_v27, 16  ;;  %v2643_v29 = vsel %vm6669_vm12, %v2638_v38, %v7364_v34  ;;  %v2576_v63 = vld [vmem:[#allocation2 + $0x54] sm:$0xf] }
  0xcc   : > { %6223 = vmatprep.mubr.msk.bf16.mxu1 %vm1237_vm10, %v9250_v8  ;;  %v2695_v8 = vor.u32 %v2694_v18, %v7398_v36  ;;  %v2708_v61 = vrot.slane %v2706_v40, 5  ;;  %v2653_v28 = vsel %vm6669_vm12, %v2648_v52, %v2652_v21  ;;  %v2730_v0 = vshll.u32 %v2573_v27, 16  ;;  %v7454_v52 = vld [vmem:[#allocation2 + $0x58] sm:$0xf] }
  0xcd   : > { %v2736_v46 = vshll.u32 %v7425_v42, 16  ;;  %v2667_v35 = vsel %vm6669_vm12, %v2662_v32, %v7379_v45  ;;  %v7440_v7 = vrot.slane %v2698_v11, 5  ;;  %v7442_v26 = vrot.slane %v2712_v14, 5 }
  0xce   : > { %v2718_v40 = vrot.slane %v2716_v1, 4  ;;  %v9251_v18 = vcombine.low %v7277_v5, %v7289_v37  ;;  %v7448_v34 = vrot.slane %v2685_v10, 4  ;;  %v7450_v38 = vrot.slane %v2695_v8, 4  ;;  %v7470_v8 = vld [vmem:[#allocation2 + $0x50] sm:$0x1] }
  0xcf   : > { %v2722_v21 = vshll.u32 %v7428_v30, 16  ;;  %v2740_v27 = vshrl.u32 %v7425_v42, 16  ;;  %v9252_v45 = vcombine.low %v7297_v44, %v7199_v41  ;;  %v9253_v5 = vcombine.low %v7324_v59, %v7328_v43 }
  0xd0   : > { %v2677_v37 = vsel %vm6669_vm12, %v2672_v12, %v2676_v22  ;;  %v2709_v32 = vor.u32 %v2708_v61, %v2705_v2  ;;  %v2729_v11 = vrot.slane %v2727_v56, 4  ;;  %v2732_v14 = vrot.slane %v2730_v0, 5  ;;  %v2579_v22 = vld [vmem:[#allocation2 + $0x60] sm:$0xf] }
  0xd1   : > { %v9254_v10 = vcombine.low %v7331_v17, %v7215_v57  ;;  %v7472_v41 = vrot.slane %v2736_v46, 5  ;;  %v2742_v44 = vrot.slane %v2740_v27, 4  ;;  %v2751_v1 = vshrl.u32 %v2576_v63, 16  ;;  %v7488_v46 = vld [vmem:[#allocation2 + $0x5c] sm:$0x1] }
  0xd2   : > { %6266 = vmatmul.mubr.msk.bf16.gmra.mxu0 %vm1237_vm10, %v9251_v18  ;;  %v2754_v59 = vshll.u32 %v2576_v63, 16  ;;  %v5753_v43 = vcombine.low %v2619_v20, %v2629_v54  ;;  %v7476_v18 = vsel %vm1286_vm0, %v7150_v60, 0  ;;  %v2719_v56 = vor.u32 %v2718_v40, %v7442_v26  ;;  %v7490_v63 = vld [vmem:[#allocation2 + $0x64] sm:$0xf]  ;;  %v2582_v27 = vld [vmem:[#allocation2 + $0x6c] sm:$0xf] }
  0xd3   : > { %6224 = vmatmul.mubr.msk.bf16.gmra.mxu1 %vm1237_vm10, %v9252_v45  ;;  %6269 = vmatprep.mubr.msk.bf16.mxu0 %vm1237_vm10, %v9253_v5  ;;  %v2760_v12 = vshll.u32 %v7454_v52, 16  ;;  %v5754_v57 = vcombine.low %v2643_v29, %v2653_v28  ;;  %v2753_v17 = vrot.slane %v2751_v1, 4  ;;  %v2764_v61 = vshrl.u32 %v7454_v52, 16 }
  0xd4   : > { %6227 = vmatprep.mubr.msk.bf16.mxu1 %vm1237_vm10, %v9254_v10  ;;  %v2756_v2 = vrot.slane %v2754_v59, 5  ;;  %v7481_v0 = vcombine.low %v2667_v35, %v2677_v37  ;;  %v2691_v20 = vsel %vm6669_vm12, %v7448_v34, %v7398_v36  ;;  %v2733_v54 = vor.u32 %v2732_v14, %v2729_v11  ;;  %v7499_v37 = vld [vmem:[#allocation2 + $0x70] sm:$0xf] }
  0xd5   : > { %v2746_v60 = vshll.u32 %v7470_v8, 16  ;;  %v2701_v29 = vsel %vm6669_vm12, %v7450_v38, %v7440_v7  ;;  %v2710_v28 = vrot.slane %v2709_v32, 4  ;;  %v2724_v35 = vrot.slane %v2722_v21, 5 }
  0xd6   : > { %v2743_v40 = vor.u32 %v2742_v44, %v7472_v41  ;;  %v2720_v45 = vrot.slane %v2719_v56, 4  ;;  %v7497_v5 = vrot.slane %v2760_v12, 5  ;;  %v2775_v36 = vshrl.u32 %v2579_v22, 16 }
  0xd7   : > { %v2778_v34 = vshll.u32 %v2579_v22, 16  ;;  %v9255_v11 = vcombine.low %v7352_v9, %v7385_v53  ;;  %v2757_v14 = vor.u32 %v2756_v2, %v2753_v17  ;;  %v2766_v10 = vrot.slane %v2764_v61, 4 }
  0xd8   : > { %v2784_v7 = vshll.u32 %v7490_v63, 16  ;;  %v2788_v38 = vshrl.u32 %v7490_v63, 16  ;;  %v9256_v21 = vcombine.low %v7335_v33, %v7337_v19  ;;  %v7512_v32 = vrot.slane %v2733_v54, 4  ;;  %v7523_v33 = vld [vmem:[#allocation2 + $0x68] sm:$0x1] }
  0xd9   : > { %v7514_v44 = vrot.slane %v2746_v60, 5  ;;  %v2777_v9 = vrot.slane %v2775_v36, 4  ;;  %v2780_v53 = vrot.slane %v2778_v34, 5  ;;  %v9257_v1 = vcombine.low %v6964_v39, %v6960_v31  ;;  %v2585_v60 = vld [vmem:[#allocation2 + $0x78] sm:$0xf] }
  0xda   : > { %6270 = vmatmul.mubr.msk.bf16.gmra.mxu0 %vm1237_vm10, %v9255_v11  ;;  %v7520_v59 = vrot.slane %v2743_v40, 4  ;;  %v2770_v56 = vshll.u32 %v7488_v46, 16  ;;  %v7525_v19 = vrot.slane %v2784_v7, 5  ;;  %v2715_v12 = vsel %vm6669_vm12, %v2710_v28, %v7442_v26  ;;  %v7540_v26 = vld [vmem:[#allocation2 + $0x74] sm:$0x1] }
  0xdb   : > { %6228 = vmatmul.mubr.msk.bf16.gmra.mxu1 %vm1237_vm10, %v9256_v21  ;;  %6309 = vmatprep.mubr.msk.bf16.mxu0 %vm1237_vm10, %v5753_v43  ;;  %v2790_v43 = vrot.slane %v2788_v38, 4  ;;  %v2725_v22 = vsel %vm6669_vm12, %v2720_v45, %v2724_v35  ;;  %v2799_v17 = vshrl.u32 %v2582_v27, 16  ;;  %v2802_v31 = vshll.u32 %v2582_v27, 16  ;;  %v7543_v35 = vld [vmem:[#allocation2 + $0x7c] sm:$0xf] }
  0xdc   : > { %6231 = vmatprep.mubr.msk.bf16.mxu1 %vm1237_vm10, %v9257_v1  ;;  %v7532_v39 = vcombine.low %v2691_v20, %v2701_v29  ;;  %v7534_v2 = vrot.slane %v2757_v14, 4  ;;  %v2767_v61 = vor.u32 %v2766_v10, %v7497_v5  ;;  %v2808_v54 = vshll.u32 %v7499_v37, 16  ;;  %v2588_v11 = vld [vmem:[#allocation2 + $0x84] sm:$0xf] }
  0xdd   : > { %v2781_v40 = vor.u32 %v2780_v53, %v2777_v9  ;;  %v2791_v36 = vor.u32 %v2790_v43, %v7525_v19  ;;  %v2794_v34 = vshll.u32 %v7523_v33, 16  ;;  %v2812_v28 = vshrl.u32 %v7499_v37, 16  ;;  %v7571_v43 = vld [vmem:[#allocation2 + $0x88] sm:$0xf] }
  0xde   : > { %v5757_v20 = vcombine.low %v2715_v12, %v2725_v22  ;;  %v2772_v29 = vrot.slane %v2770_v56, 5  ;;  %v2801_v27 = vrot.slane %v2799_v17, 4  ;;  %v2804_v45 = vrot.slane %v2802_v31, 5  ;;  %v7560_v56 = vld [vmem:[%s9222_s1 + $0x10] sm:$0x3] }
  0xdf   : > { %v2739_v14 = vsel %vm6669_vm12, %v7512_v32, %v7472_v41  ;;  %v2749_v10 = vsel %vm6669_vm12, %v7520_v59, %v7514_v44  ;;  %v2823_v7 = vshrl.u32 %v2585_v60, 16  ;;  %v2826_v38 = vshll.u32 %v2585_v60, 16  ;;  %9258 = vst [vmem:[#allocation5_spill] sm:$0xff] %v7560_v56 }
  0xe0   : > { %v2768_v21 = vrot.slane %v2767_v61, 4  ;;  %v7554_v9 = vrot.slane %v2808_v54, 5  ;;  %v2814_v53 = vrot.slane %v2812_v28, 4  ;;  %v2832_v1 = vshll.u32 %v7543_v35, 16 }
  0xe1   : > { %v9259_v41 = vcombine.low %v6980_v16, %v6997_v51  ;;  %v2782_v32 = vrot.slane %v2781_v40, 4  ;;  %v2792_v44 = vrot.slane %v2791_v36, 4  ;;  %v2796_v59 = vrot.slane %v2794_v34, 5  ;;  %v7594_v36 = vld [vmem:[#allocation2 + $0x8c] sm:$0x1] }
  0xe2   : > { %6310 = vmatmul.mubr.msk.bf16.vlgmr.msra.gmra.mxu0 %vm1237_vm10, %v5754_v57  ;;  %v2763_v57 = vsel %vm6669_vm12, %v7534_v2, %v7497_v5  ;;  %v9260_v12 = vcombine.low %v7081_v24, %v7102_v50  ;;  %v2805_v16 = vor.u32 %v2804_v45, %v2801_v27  ;;  %v2818_v51 = vshll.u32 %v7540_v26, 16  ;;  %v7581_v5 = vld [vmem:[#allocation2 + $0x80] sm:$0x1]  ;;  %v6499_v27 = vld [vmem:[#allocation2 + $0xc] sm:$0xff]  }
  0xe3   : > { %6232 = vmatmul.mubr.msk.bf16.gmra.mxu1 %vm1237_vm10, %v9259_v41  ;;  %6376 = vmatpush3.bf16.msra.mxu0 %v7476_v18  ;;  %v2836_v18 = vshrl.u32 %v7543_v35, 16  ;;  %v2847_v22 = vshrl.u32 %v2588_v11, 16  ;;  %v2825_v17 = vrot.slane %v2823_v7, 4  ;;  %v2828_v31 = vrot.slane %v2826_v38, 5  ;;  %v7603_v41 = vld [vmem:[#allocation2 + $0x94] sm:$0xf] }
  0xe4   : > { %6235 = vmatprep.mubr.msk.bf16.mxu1 %vm1237_vm10, %v9260_v12  ;;  %6313 = vmatprep.mubr.msk.bf16.mxu0 %vm1237_vm10, %v7481_v0  ;;  %v7583_v2 = vrot.slane %v2832_v1, 5  ;;  %v2850_v61 = vshll.u32 %v2588_v11, 16  ;;  %v2815_v24 = vor.u32 %v2814_v53, %v7554_v9  ;;  %v2856_v54 = vshll.u32 %v7571_v43, 16  ;;  %v2591_v53 = vld [vmem:[#allocation2 + $0x90] sm:$0xf] }
  0xe5   : > { %6488 = vmatprep.subr.msk.bf16.mxu0 %vm1286_vm0, %v7560_v56  ;;  %v2838_v50 = vrot.slane %v2836_v18, 4  ;;  %v2849_v0 = vrot.slane %v2847_v22, 4  ;;  %v2773_v60 = vsel %vm6669_vm12, %v2768_v21, %v2772_v29  ;;  %v2787_v40 = vsel %vm6669_vm12, %v2782_v32, %v7525_v19 }
  0xe6   : > { %v2852_v34 = vrot.slane %v2850_v61, 5  ;;  %v2860_v28 = vshrl.u32 %v7571_v43, 16  ;;  %v2797_v45 = vsel %vm6669_vm12, %v2792_v44, %v2796_v59  ;;  %v2806_v11 = vrot.slane %v2805_v16, 4  ;;  %v2594_v61 = vld [vmem:[#allocation2 + $0x9c] sm:$0xf] }
  0xe7   : > { %v2842_v7 = vshll.u32 %v7581_v5, 16  ;;  %v7600_v38 = vrot.slane %v2856_v54, 5  ;;  %v2829_v29 = vor.u32 %v2828_v31, %v2825_v17  ;;  %v2839_v21 = vor.u32 %v2838_v50, %v7583_v2  ;;  %v7624_v50 = vld [vmem:[#allocation2 + $0x98] sm:$0x1]  ;;  %v6501_v54 = vld [vmem:[#allocation2 + $0x24] sm:$0xff]  }
  0xe8   : > { %v2853_v1 = vor.u32 %v2852_v34, %v2849_v0  ;;  %v2862_v19 = vrot.slane %v2860_v28, 4  ;;  %v5758_v32 = vcombine.low %v2739_v14, %v2749_v10  ;;  %v2816_v12 = vrot.slane %v2815_v24, 4  ;;  %v7622_v10 = vld [vmem:[#allocation2 + $0xa0] sm:$0xf]  ;;  %v6500_v0 = vld [vmem:[#allocation2 + $0x18] sm:$0xff]  }
  0xe9   : > { %v2820_v18 = vrot.slane %v2818_v51, 5  ;;  %v2866_v44 = vshll.u32 %v7594_v36, 16  ;;  %v9261_v59 = vcombine.low %v7125_v55, %v7140_v6  ;;  %v5759_v16 = vcombine.low %v2763_v57, %v2773_v60 }
  0xea   : > { %6314 = vmatmul.mubr.msk.bf16.gmra.mxu0 %vm1237_vm10, %v7532_v39  ;;  %v7613_v22 = vcombine.low %v2787_v40, %v2797_v45  ;;  %v2863_v17 = vor.u32 %v2862_v19, %v7600_v38  ;;  %v2871_v31 = vshrl.u32 %v2591_v53, 16  ;;  %v2811_v39 = vsel %vm6669_vm12, %v2806_v11, %v7554_v9  ;;  %v7633_v19 = vld [vmem:[#allocation2 + $0xac] sm:$0xf] }
  0xeb   : > { %6236 = vmatmul.mubr.msk.bf16.gmra.mxu1 %vm1237_vm10, %v9261_v59  ;;  %6317 = vmatprep.mubr.msk.bf16.mxu0 %vm1237_vm10, %v5757_v20  ;;  %v2874_v14 = vshll.u32 %v2591_v53, 16  ;;  %v2880_v55 = vshll.u32 %v7603_v41, 16  ;;  %v2884_v6 = vshrl.u32 %v7603_v41, 16  ;;  %v2830_v20 = vrot.slane %v2829_v29, 4  ;;  %v2597_v53 = vld [vmem:[#allocation2 + $0xa8] sm:$0xf] }
  0xec   : > { %6275 = vmatprep.mubr.msk.bf16.mxu1 %vm1237_vm10, %v6499_v27  ;;  %v2840_v57 = vrot.slane %v2839_v21, 4  ;;  %v2844_v51 = vrot.slane %v2842_v7, 5  ;;  %v2854_v24 = vrot.slane %v2853_v1, 4  ;;  %v2821_v60 = vsel %vm6669_vm12, %v2816_v12, %v2820_v18  ;;  %9262 = vst [vmem:[#allocation6_spill] sm:$0xff] %v7633_v19 }
  0xed   : > { %v2864_v40 = vrot.slane %v2863_v17, 4  ;;  %v2868_v9 = vrot.slane %v2866_v44, 5  ;;  %v2895_v34 = vshrl.u32 %v2594_v61, 16  ;;  %v2873_v28 = vrot.slane %v2871_v31, 4  ;;  %v7643_v17 = vld [vmem:[#allocation2 + $0xa4] sm:$0x1] }
  0xee   : > { %v2898_v27 = vshll.u32 %v2594_v61, 16  ;;  %v2904_v45 = vshll.u32 %v7622_v10, 16  ;;  %v2908_v11 = vshrl.u32 %v7622_v10, 16  ;;  %v2876_v29 = vrot.slane %v2874_v14, 5  ;;  %9263 = vst [vmem:[#allocation7_spill] sm:$0xff] %v7643_v17 }
  0xef   : > { %v7630_v7 = vrot.slane %v2880_v55, 5  ;;  %v2886_v21 = vrot.slane %v2884_v6, 4  ;;  %v2890_v1 = vshll.u32 %v7624_v50, 16  ;;  %v5761_v59 = vcombine.low %v2811_v39, %v2821_v60 }
  0xf0   : > { %v2835_v12 = vsel %vm6669_vm12, %v2830_v20, %v7583_v2  ;;  %v2845_v18 = vsel %vm6669_vm12, %v2840_v57, %v2844_v51  ;;  %v2859_v44 = vsel %vm6669_vm12, %v2854_v24, %v7600_v38  ;;  %v2869_v31 = vsel %vm6669_vm12, %v2864_v40, %v2868_v9  ;;  %v7651_v2 = vld [vmem:[%s9222_s1 + $0xe] sm:$0x3]  ;;  %v2600_v20 = vld [vmem:[#allocation2 + $0xb4] sm:$0xf] }
  0xf1   : > { %v2897_v61 = vrot.slane %v2895_v34, 4  ;;  %v2919_v39 = vshrl.u32 %v2597_v53, 16  ;;  %v2922_v14 = vshll.u32 %v2597_v53, 16  ;;  %9264 = vst [vmem:[#allocation8_spill] sm:$0xff] %v7651_v2  ;;  %v2900_v38 = vrot.slane %v2898_v27, 5 }
  0xf2   : > { %6318 = vmatmul.mubr.msk.bf16.gmra.mxu0 %vm1237_vm10, %v5758_v32  ;;  %v7655_v55 = vrot.slane %v2904_v45, 5  ;;  %v2910_v6 = vrot.slane %v2908_v11, 4  ;;  %v2928_v32 = vshll.u32 %v7633_v19, 16  ;;  %v7660_v57 = vcombine.low %v2835_v12, %v2845_v18  ;;  %v7675_v45 = vld [vmem:[#allocation2 + $0xb0] sm:$0x1] }
  0xf3   : > { %6276 = vmatmul.mubr.msk.bf16.vlgmr.msra.gmra.mxu1 %vm1237_vm10, %v6500_v0  ;;  %6321 = vmatprep.mubr.msk.bf16.mxu0 %vm1237_vm10, %v5759_v16  ;;  %v2877_v51 = vor.u32 %v2876_v29, %v2873_v28  ;;  %v2887_v24 = vor.u32 %v2886_v21, %v7630_v7  ;;  %v7663_v60 = vrot.slane %v2890_v1, 5  ;;  %v7665_v0 = vld [vmem:[#allocation2 + $0xb8] sm:$0xf]  ;;  %v6502_v16 = vld [vmem:[#allocation2 + $0x30] sm:$0xff]   ;;  %v2921_v40 = vrot.slane %v2919_v39, 4 }
  0xf4   : > { %6342 = vmatpush3.bf16.msra.mxu1 %v7377_v48  ;;  %6279 = vmatprep.mubr.msk.bf16.mxu1 %vm1237_vm10, %v6501_v54  ;;  %v2924_v9 = vrot.slane %v2922_v14, 5  ;;  %v7667_v34 = vrot.slane %v2928_v32, 5  ;;  %v2932_v27 = vshrl.u32 %v7633_v19, 16  ;;  %v6503_v48 = vld [vmem:[#allocation2 + $0x3c] sm:$0xff]   ;;  %v7672_v54 = vcombine.low %v2859_v44, %v2869_v31  ;;  %v280_v39 = vld [vmem:[#allocation2 + $0xc8] sm:$0x1] }
  0xf5   : > { %6487 = vmatprep.subr.msk.bf16.mxu1 %vm1286_vm0, %v7651_v2  ;;  %v2914_v28 = vshll.u32 %v7643_v17, 16  ;;  %v2943_v11 = vshrl.u32 %v2600_v20, 16  ;;  %v2946_v53 = vshll.u32 %v2600_v20, 16  ;;  %v2901_v29 = vor.u32 %v2900_v38, %v2897_v61  ;;  %v230_v18 = vld [vmem:[#allocation2 + $0xc0] sm:$0x1] }
  0xf6   : > { %v2911_v21 = vor.u32 %v2910_v6, %v7655_v55  ;;  %v2934_v1 = vrot.slane %v2932_v27, 4  ;;  %v2952_v12 = vshll.u32 %v7665_v0, 16  ;;  %v2878_v14 = vrot.slane %v2877_v51, 4  ;;  %v313_v31 = vld [vmem:[%s6641_s21 + $0x78] sm:$0xf] }
  0xf7   : > { %v2888_v32 = vrot.slane %v2887_v24, 4  ;;  %v2945_v2 = vrot.slane %v2943_v11, 4  ;;  %v2948_v44 = vrot.slane %v2946_v53, 5  ;;  %v2925_v56 = vor.u32 %v2924_v9, %v2921_v40  ;;  %v314_v61 = vld [vmem:[%s6641_s21 + $0x7c] sm:$0xf] }
  0xf8   : > { %v2935_v19 = vor.u32 %v2934_v1, %v7667_v34  ;;  %v2938_v17 = vshll.u32 %v7675_v45, 16  ;;  %v2956_v20 = vshrl.u32 %v7665_v0, 16  ;;  %v2916_v38 = vrot.slane %v2914_v28, 5  ;;  %v7694_v27 = vld [vmem:[#allocation2 + $0xbc] sm:$0x1] }
  0xf9   : > { %v7686_v6 = vrot.slane %v2952_v12, 5  ;;  %v231_v51 = vsel %vm6604_vm5, 0, %v230_v18  ;;  %v281_v24 = vsel %vm6612_vm6, 0, %v280_v39  ;;  %v2902_v40 = vrot.slane %v2901_v29, 4 }
  0xfa   : > { %6322 = vmatmul.mubr.msk.bf16.gmra.mxu0 %vm1237_vm10, %v7613_v22  ;;  %v2912_v9 = vrot.slane %v2911_v21, 4  ;;  %v2958_v11 = vrot.slane %v2956_v20, 4  ;;  %232 = vst [vmem:[#allocation2 + $0xc0] sm:$0x1] %v231_v51  ;;  %282 = vst [vmem:[#allocation2 + $0xc8] sm:$0x1] %v281_v24  ;;  %v2949_v28 = vor.u32 %v2948_v44, %v2945_v2  ;;  %v2893_v2 = vsel %vm6669_vm12, %v2888_v32, %v7663_v60 }
  0xfb   : > { %6280 = vmatmul.mubr.msk.bf16.gmra.mxu1 %vm1237_vm10, %v6502_v16  ;;  %6325 = vmatprep.mubr.msk.bf16.mxu0 %vm1237_vm10, %v5761_v59  ;;  %v573_v22 = vshrl.u32 %v313_v31, 16  ;;  %v576_v53 = vshll.u32 %v313_v31, 16  ;;  %v581_v1 = vshrl.u32 %v314_v61, 16  ;;  %v584_v12 = vshll.u32 %v314_v61, 16  ;;  %v6504_v51 = vld [vmem:[#allocation2 + $0x48] sm:$0xff]  }
  0xfc   : > { %6283 = vmatprep.mubr.msk.bf16.mxu1 %vm1237_vm10, %v6503_v48  ;;  %v2926_v4 = vrot.slane %v2925_v56, 4  ;;  %v2936_v18 = vrot.slane %v2935_v19, 4  ;;  %v2940_v39 = vrot.slane %v2938_v17, 5  ;;  %v2883_v59 = vsel %vm6669_vm12, %v2878_v14, %v7630_v7  ;;  %v6505_v48 = vld [vmem:[#allocation2 + $0x54] sm:$0xff]   ;;  %v7710_v61 = vld [vmem:[#allocation2 + $0xc] sm:$0xe] }
  0xfd   : > { %v575_v16 = vrot.slane %v573_v22, 7  ;;  %v2959_v29 = vor.u32 %v2958_v11, %v7686_v6  ;;  %v2962_v21 = vshll.u32 %v7694_v27, 16  ;;  %v583_v20 = vrot.slane %v581_v1, 7  ;;  %v3286_v32 = vld [vmem:[#allocation2 + $0x24] sm:$0xe] }
  0xfe   : > { %v2907_v56 = vsel %vm6669_vm12, %v2902_v40, %v7655_v55  ;;  %v2917_v7 = vsel %vm6669_vm12, %v2912_v9, %v2916_v38  ;;  %v2950_v14 = vrot.slane %v2949_v28, 4  ;;  %v2931_v24 = vsel %vm6669_vm12, %v2926_v4, %v7667_v34  ;;  %v3287_v55 = vld [vmem:[#allocation2 + $0x30] sm:$0xe] }
  0xff   : > { %v578_v19 = vor.u32 %v576_v53, %v575_v16  ;;  %v579_v17 = vrot.slane %v575_v16, 4  ;;  %v586_v44 = vor.u32 %v584_v12, %v583_v20  ;;  %v588_v31 = vrot.slane %v583_v20, 4 }
 0x100   : > { %v2941_v60 = vsel %vm6669_vm12, %v2936_v18, %v2940_v39  ;;  %v5764_v40 = vcombine.low %v2883_v59, %v2893_v2  ;;  %v2960_v11 = vrot.slane %v2959_v29, 4  ;;  %v2964_v38 = vrot.slane %v2962_v21, 5  ;;  %v3288_v59 = vld [vmem:[#allocation2 + $0x3c] sm:$0xe] }
 0x101   : > { %v587_v22 = vsel %vm6675_vm13, %v579_v17, %v586_v44  ;;  %v744_v28 = vld [vmem:[#allocation2 + $0xc0] sm:$0xf]  ;;  %v748_v53 = vld [vmem:[#allocation2 + $0xc8] sm:$0x1]  ;;  %v5765_v34 = vcombine.low %v2907_v56, %v2917_v7  ;;  %v5785_v4 = vrot.slane %v7710_v61, 9  ;;  %v7731_v18 = vcombine.low %v2931_v24, %v2941_v60  ;;  %v6507_v7 = vld [vmem:[#allocation2 + $0x6c] sm:$0xff]  }
 0x102   : > { %6326 = vmatmul.mubr.msk.bf16.gmra.mxu0 %vm1237_vm10, %v7660_v57  ;;  %v745_v12 = vsel %vm6662_vm11, %v578_v19, %v744_v28  ;;  %747 = vst.msk [vmem:[#allocation2 + $0xc4] sm:$0xf] %vm172_vm1, %v587_v22  ;;  %v749_v57 = vsel %vm6604_vm5, %v588_v31, %v748_v53  ;;  %v2955_v39 = vsel %vm6669_vm12, %v2950_v14, %v7686_v6  ;;  %v3364_v16 = vrot.slane %v7341_v58, 5  ;;  %v6506_v58 = vld [vmem:[#allocation2 + $0x60] sm:$0xff]   ;;  %v7950_v61 = vld [vmem:[#allocation2 + $0x1c] sm:$0xf] }
 0x103   : > { %6284 = vmatmul.mubr.msk.bf16.gmra.mxu1 %vm1237_vm10, %v6504_v51  ;;  %6329 = vmatprep.mubr.msk.bf16.mxu0 %vm1237_vm10, %v7672_v54  ;;  %746 = vst [vmem:[#allocation2 + $0xc0] sm:$0xf] %v745_v12  ;;  %750 = vst [vmem:[#allocation2 + $0xc8] sm:$0x1] %v749_v57  ;;  %v5787_v54 = vrot.slane %v3286_v32, 9  ;;  %v3350_v29 = vrot.slane %v7284_v25, 5  ;;  %v2965_v2 = vsel %vm6669_vm12, %v2960_v11, %v2964_v38  ;;  %v7948_v25 = vpop.f32.mrf.mxu0 }
 0x104   : > { %6287 = vmatprep.mubr.msk.bf16.mxu1 %vm1237_vm10, %v6505_v48  ;;  %v3367_v3 = vrot.slane %v7366_v23, 5  ;;  %v5788_v21 = vrot.slane %v3287_v55, 9  ;;  %v3371_v20 = vrot.slane %v7369_v13, 5  ;;  %v3289_v51 = vld [vmem:[#allocation2 + $0x48] sm:$0xe]  ;;  %v3366_v56 = vrot.slane %v3364_v16, 4 }
 0x105   : > { %v7744_v6 = vsel %vm7083_vm2, %v5787_v54, %v3364_v16  ;;  %v3374_v19 = vrot.slane %v7388_v62, 5  ;;  %v5789_v48 = vrot.slane %v3288_v59, 9  ;;  %v3378_v13 = vrot.slane %v7395_v49, 5  ;;  %v3290_v55 = vld [vmem:[#allocation2 + $0x54] sm:$0xe] }
 0x106   : > { %v7749_v17 = vsel %vm7083_vm2, %v5788_v21, %v3371_v20  ;;  %v3373_v23 = vrot.slane %v3371_v20, 4  ;;  %v7754_v14 = vsel %vm7083_vm2, %v3366_v56, %v3367_v3  ;;  %v3381_v44 = vrot.slane %v7428_v30, 5  ;;  %v3291_v22 = vld [vmem:[#allocation2 + $0x60] sm:$0xe] }
 0x107   : > { %v5790_v31 = vrot.slane %v3289_v51, 9  ;;  %v3385_v24 = vrot.slane %v7425_v42, 5  ;;  %v5804_v62 = vcombine.low %v7744_v6, %v7754_v14  ;;  %v7766_v49 = vsel %vm7083_vm2, %v5789_v48, %v3378_v13 }
 0x108   : > { %v7762_v60 = vsel %vm7083_vm2, %v3373_v23, %v3374_v19  ;;  %v3380_v32 = vrot.slane %v3378_v13, 4  ;;  %v5767_v11 = vcombine.low %v2955_v39, %v2965_v2  ;;  %v3388_v9 = vrot.slane %v7470_v8, 5  ;;  %v3292_v8 = vld [vmem:[#allocation2 + $0x6c] sm:$0xe] }
 0x109   : > { %v7769_v30 = vld [vmem:[#allocation2 + $0xc4] sm:$0xf]  ;;  %v3387_v38 = vrot.slane %v3385_v24, 4  ;;  %v7786_v57 = vsel %vm7083_vm2, %v5790_v31, %v3385_v24  ;;  %v5791_v20 = vrot.slane %v3290_v55, 9  ;;  %v3392_v48 = vrot.slane %v7454_v52, 5 }
 0x10a   : > { %6330 = vmatmul.mubr.msk.bf16.gmra.mxu0 %vm1237_vm10, %v5764_v40  ;;  %v2603_v28 = vld [vmem:[#allocation2 + $0xc0] sm:$0xf]  ;;  %v7776_v53 = vld [vmem:[#allocation2 + $0xc8] sm:$0x1]  ;;  %v2976_v1 = vshll.u32 %v7769_v30, 16  ;;  %v2980_v40 = vshrl.u32 %v7769_v30, 16  ;;  %v7782_v12 = vsel %vm7083_vm2, %v3380_v32, %v3381_v44 }
 0x10b   : > { %6288 = vmatmul.mubr.msk.bf16.gmra.mxu1 %vm1237_vm10, %v6506_v58  ;;  %6333 = vmatprep.mubr.msk.bf16.mxu0 %vm1237_vm10, %v5765_v34  ;;  %v2967_v39 = vshrl.u32 %v2603_v28, 16  ;;  %v2970_v34 = vshll.u32 %v2603_v28, 16  ;;  %v2986_v54 = vshll.u32 %v7776_v53, 16  ;;  %v7794_v21 = vsel %vm7083_vm2, %v3387_v38, %v3388_v9  ;;  %v6508_v58 = vld [vmem:[#allocation2 + $0x78] sm:$0xff]   ;;  %v6509_v44 = vld [vmem:[#allocation2 + $0x84] sm:$0xff]  }
 0x10c   : > { %6291 = vmatprep.mubr.msk.bf16.mxu1 %vm1237_vm10, %v6507_v7  ;;  %v2978_v59 = vrot.slane %v2976_v1, 5  ;;  %v2982_v3 = vrot.slane %v2980_v40, 4  ;;  %v3395_v13 = vrot.slane %v7488_v46, 5  ;;  %v5792_v7 = vrot.slane %v3291_v22, 9  ;;  %v3293_v40 = vld [vmem:[#allocation2 + $0x78] sm:$0xe] }
 0x10d   : > { %v2969_v51 = vrot.slane %v2967_v39, 4  ;;  %v2972_v2 = vrot.slane %v2970_v34, 5  ;;  %v2988_v56 = vrot.slane %v2986_v54, 5  ;;  %v3399_v24 = vrot.slane %v7490_v63, 5  ;;  %v3294_v39 = vld [vmem:[#allocation2 + $0x84] sm:$0xe] }
 0x10e   : > { %v2983_v23 = vor.u32 %v2982_v3, %v2978_v59  ;;  %v3402_v32 = vrot.slane %v7523_v33, 5  ;;  %v5793_v55 = vrot.slane %v3292_v8, 9  ;;  %v7804_v9 = vsel %vm7083_vm2, %v5791_v20, %v3392_v48  ;;  %v3295_v3 = vld [vmem:[#allocation2 + $0x90] sm:$0xe] }
 0x10f   : > { %v2973_v31 = vor.u32 %v2972_v2, %v2969_v51  ;;  %v3394_v28 = vrot.slane %v3392_v48, 4  ;;  %v3406_v1 = vrot.slane %v7499_v37, 5  ;;  %v7811_v46 = vsel %vm7083_vm2, %v5792_v7, %v3399_v24  ;;  %v6510_v7 = vld [vmem:[#allocation2 + $0x90] sm:$0xff]  }
 0x110   : > { %v2984_v38 = vrot.slane %v2983_v23, 4  ;;  %v3401_v63 = vrot.slane %v3399_v24, 4  ;;  %v3409_v33 = vrot.slane %v7540_v26, 5  ;;  %v5794_v54 = vrot.slane %v3293_v40, 9 }
 0x111   : > { %v2974_v52 = vrot.slane %v2973_v31, 4  ;;  %v7820_v37 = vsel %vm7083_vm2, %v3394_v28, %v3395_v13  ;;  %v3408_v8 = vrot.slane %v3406_v1, 4  ;;  %v5795_v23 = vrot.slane %v3294_v39, 9  ;;  %v3296_v13 = vld [vmem:[#allocation2 + $0x9c] sm:$0xe] }
 0x112   : > { %6334 = vmatmul.mubr.msk.bf16.gmra.mxu0 %vm1237_vm10, %v7731_v18  ;;  %v2989_v22 = vsel %vm6669_vm12, %v2984_v38, %v2988_v56  ;;  %v7824_v18 = vsel %vm7083_vm2, %v5793_v55, %v3406_v1  ;;  %v7833_v34 = vsel %vm7083_vm2, %v3401_v63, %v3402_v32  ;;  %v3413_v56 = vrot.slane %v7543_v35, 5  ;;  %v6511_v35 = vld [vmem:[#allocation2 + $0x9c] sm:$0xff]   ;;  %v3297_v1 = vld [vmem:[#allocation2 + $0xa8] sm:$0xe] }
 0x113   : > { %6292 = vmatmul.mubr.msk.bf16.gmra.mxu1 %vm1237_vm10, %v6508_v58  ;;  %6337 = vmatprep.mubr.msk.bf16.mxu0 %vm1237_vm10, %v5767_v11  ;;  %v2979_v26 = vsel %vm6669_vm12, %v2974_v52, %v2978_v59  ;;  %v7839_v2 = vsel %vm7083_vm2, %v3408_v8, %v3409_v33  ;;  %v3416_v58 = vrot.slane %v7581_v5, 5  ;;  %v3420_v48 = vrot.slane %v7571_v43, 5 }
 0x114   : > { %6295 = vmatprep.mubr.msk.bf16.mxu1 %vm1237_vm10, %v6509_v44  ;;  %v5768_v20 = vcombine.low %v2979_v26, %v2989_v22  ;;  %v6515_v44 = vld [vmem:[#allocation2 + $0x18] sm:$0xff]   ;;  %v7848_v31 = vsel %vm7083_vm2, %v5794_v54, %v3413_v56  ;;  %v3415_v24 = vrot.slane %v3413_v56, 4  ;;  %v3423_v32 = vrot.slane %v7594_v36, 5  ;;  %v3298_v22 = vld [vmem:[#allocation2 + $0xb4] sm:$0xe] }
 0x115   : > { %v5796_v55 = vrot.slane %v3295_v3, 9  ;;  %v7853_v38 = vsel %vm7083_vm2, %v5795_v23, %v3420_v48  ;;  %v3422_v5 = vrot.slane %v3420_v48, 4  ;;  %v3427_v28 = vrot.slane %v7603_v41, 5  ;;  %v9267_v36 = vld [vmem:[#allocation7_spill] sm:$0xff] }
 0x116   : > { %v3430_v43 = vrot.slane %v7624_v50, 5  ;;  %v7859_v40 = vsel %vm7083_vm2, %v3415_v24, %v3416_v58  ;;  %v5797_v52 = vrot.slane %v3296_v13, 9  ;;  %v3434_v63 = vrot.slane %v7622_v10, 5  ;;  %v9268_v58 = vld [vmem:[#allocation6_spill] sm:$0xff]  ;;  %v6523_v10 = vld [vmem:[#allocation2 + $0x78] sm:$0xff]  }
 0x117   : > { %v3437_v33 = vrot.slane %v9267_v36, 5  ;;  %v7868_v41 = vsel %vm7083_vm2, %v3422_v5, %v3423_v32  ;;  %v7872_v50 = vsel %vm7083_vm2, %v5796_v55, %v3427_v28  ;;  %v3429_v39 = vrot.slane %v3427_v28, 4  ;;  %v6516_v55 = vld [vmem:[#allocation2 + $0x24] sm:$0xff]  }
 0x118   : > { %v7880_v26 = vsel %vm7083_vm2, %v5797_v52, %v3434_v63  ;;  %v3436_v54 = vrot.slane %v3434_v63, 4  ;;  %v5798_v3 = vrot.slane %v3297_v1, 9  ;;  %v3441_v23 = vrot.slane %v9268_v58, 5  ;;  %v6513_v63 = vld [vmem:[#allocation2 + $0xb4] sm:$0xff]  }
 0x119   : > { %v7885_v56 = vsel %vm7083_vm2, %v3429_v39, %v3430_v43  ;;  %v3444_v48 = vrot.slane %v7675_v45, 5  ;;  %v5799_v13 = vrot.slane %v3298_v22, 9  ;;  %v3448_v24 = vrot.slane %v7665_v0, 5  ;;  %v6512_v43 = vld [vmem:[#allocation2 + $0xa8] sm:$0xff]  }
 0x11a   : > { %6338 = vmatmul.mubr.msk.bf16.gmra.mxu0 %vm1237_vm10, %v5768_v20  ;;  %v3299_v20 = vld [vmem:[#allocation2 + $0xc0] sm:$0xe]  ;;  %v3451_v32 = vrot.slane %v7694_v27, 5  ;;  %v7901_v5 = vsel %vm7083_vm2, %v5798_v3, %v3441_v23  ;;  %v3443_v45 = vrot.slane %v3441_v23, 4  ;;  %v3455_v0 = vrot.slane %v7769_v30, 5  ;;  %v9269_v39 = vld [vmem:[#allocation5_spill] sm:$0xff] }
 0x11b   : > { %6296 = vmatmul.mubr.msk.bf16.gmra.mxu1 %vm1237_vm10, %v6510_v7  ;;  %6377 = vmatprep.mubr.msk.bf16.mxu0 %vm1237_vm10, %v6515_v44  ;;  %v7893_v44 = vsel %vm7083_vm2, %v3436_v54, %v3437_v33  ;;  %v5800_v28 = vrot.slane %v3299_v20, 9  ;;  %v7905_v1 = vsel %vm7083_vm2, %v5799_v13, %v3448_v24  ;;  %v3450_v52 = vrot.slane %v3448_v24, 4  ;;  %v6550_v33 = vld [vmem:[#allocation2 + $0x14] sm:$0x1]  ;;  %v6551_v24 = vld [vmem:[#allocation2 + $0x1c] sm:$0xf] }
 0x11c   : > { %6299 = vmatprep.mubr.msk.bf16.mxu1 %vm1237_vm10, %v6511_v35  ;;  %v3458_v27 = vrot.slane %v7776_v53, 5  ;;  %v3352_v36 = vrot.slane %v3350_v29, 4  ;;  %v3353_v22 = vrot.slane %v6550_v33, 5  ;;  %v5114_v54 = vsel %vm1286_vm0, %v9269_v39, 0  ;;  %v6517_v3 = vld [vmem:[#allocation2 + $0x30] sm:$0xff]  }
 0x11d   : > { %v7915_v20 = vsel %vm7083_vm2, %v3443_v45, %v3444_v48  ;;  %v7921_v30 = vsel %vm7083_vm2, %v3450_v52, %v3451_v32  ;;  %v7925_v53 = vsel %vm7083_vm2, %v5800_v28, %v3455_v0  ;;  %v3457_v23 = vrot.slane %v3455_v0, 4  ;;  %v6518_v52 = vld [vmem:[#allocation2 + $0x3c] sm:$0xff]   ;;  %v4116_v45 = vld [vmem:[#allocation2 + $0x24] sm:$0xf]  ;;  %v6522_v7 = vld [vmem:[#allocation2 + $0x6c] sm:$0xff]  }
 0x11e   : > { %v3357_v32 = vrot.slane %v6551_v24, 5  ;;  %v3354_v28 = vsel %vm7083_vm2, %v3352_v36, %v3353_v22  ;;  %v6514_v0 = vld [vmem:[#allocation2 + $0xc0] sm:$0xff]   ;;  %v4171_v24 = vshll.u32 %v7950_v61, 16  ;;  %v4189_v58 = vshll.u32 %v4116_v45, 16 }
 0x11f   : > { %v7933_v48 = vsel %vm7083_vm2, %v3457_v23, %v3458_v27  ;;  %v6519_v27 = vld [vmem:[#allocation2 + $0x48] sm:$0xff]   ;;  %v4113_v23 = vld [vmem:[#allocation2 + $0x18] sm:$0xf] }
 0x120   : > { %v3359_v39 = vrot.slane %v3357_v32, 4  ;;  %v4162_v36 = vshrl.u32 %v4113_v23, 16  ;;  %v4165_v22 = vshll.u32 %v4113_v23, 16  ;;  %v7965_v13 = vrot.slane %v4171_v24, 5  ;;  %v4115_v23 = vld [vmem:[#allocation2 + $0x20] sm:$0x1] }
 0x121   : > { %v4191_v51 = vrot.slane %v4189_v58, 5 }
 0x122   : > { %6378 = vmatmul.mubr.msk.bf16.vlgmr.msra.gmra.mxu0 %vm1237_vm10, %v6516_v55  ;;  %v3351_v55 = vsel %vm7083_vm2, %v5785_v4, %v3350_v29 }
 0x123   : > { %6300 = vmatmul.mubr.msk.bf16.gmra.mxu1 %vm1237_vm10, %v6512_v43  ;;  %6444 = vmatpush3.bf16.msra.mxu0 %v5114_v54  ;;  %v3285_v43 = vld [vmem:[#allocation2 + $0x18] sm:$0xe]  ;;  %v6552_v54 = vld [vmem:[#allocation2 + $0x20] sm:$0x1] }
 0x124   : > { %6303 = vmatprep.mubr.msk.bf16.mxu1 %vm1237_vm10, %v6513_v63  ;;  %6381 = vmatprep.mubr.msk.bf16.mxu0 %vm1237_vm10, %v6517_v3  ;;  %v5802_v63 = vcombine.low %v3351_v55, %v3354_v28  ;;  %v5786_v33 = vrot.slane %v3285_v43, 9  ;;  %v3360_v3 = vrot.slane %v6552_v54, 5  ;;  %v4175_v55 = vshrl.u32 %v7950_v61, 16  ;;  %v6520_v28 = vld [vmem:[#allocation2 + $0x54] sm:$0xff]   ;;  %v7961_v43 = vpop.f32.mrf.mxu0  ;;  %v4117_v54 = vld [vmem:[#allocation2 + $0x28] sm:$0xf] }
 0x125   : > { %v4199_v35 = vshrl.u32 %v4117_v54, 16 }
 0x126   : > { %v3358_v4 = vsel %vm7083_vm2, %v5786_v33, %v3357_v32  ;;  %v3361_v29 = vsel %vm7083_vm2, %v3359_v39, %v3360_v3  ;;  %v4164_v32 = vrot.slane %v4162_v36, 4  ;;  %v4167_v33 = vrot.slane %v4165_v22, 5  ;;  %v7968_v3 = vpop.f32.mrf.mxu0 }
 0x127   : > { %v4177_v39 = vrot.slane %v4175_v55, 4  ;;  %v4905_v36 = vrot.slane %v7950_v61, 5  ;;  %v4912_v22 = vrot.slane %v4117_v54, 5  ;;  %v4201_v14 = vrot.slane %v4199_v35, 4 }
 0x128   : > { %v4168_v24 = vor.u32 %v4167_v33, %v4164_v32  ;;  %v9273_v35 = vcombine.low %v7749_v17, %v7762_v60 }
 0x129   : > { %v4178_v55 = vor.u32 %v4177_v39, %v7965_v13  ;;  %v4907_v61 = vrot.slane %v4905_v36, 4  ;;  %v4914_v32 = vrot.slane %v4912_v22, 4 }
 0x12a   : > { %6382 = vmatmul.mubr.msk.bf16.gmra.mxu0 %vm1237_vm10, %v6518_v52  ;;  %v5803_v52 = vcombine.low %v3358_v4, %v3361_v29  ;;  %v4839_v4 = vld [vmem:[#allocation2 + $0x18] sm:$0xe]  ;;  %v4186_v29 = vshrl.u32 %v4116_v45, 16  ;;  %v7978_v45 = vpop.f32.mrf.mxu0  ;;  %v4169_v39 = vrot.slane %v4168_v24, 4 }
 0x12b   : > { %6304 = vmatmul.mubr.msk.bf16.gmra.mxu1 %vm1237_vm10, %v6514_v0  ;;  %6385 = vmatprep.mubr.msk.bf16.mxu0 %vm1237_vm10, %v6519_v27  ;;  %v6521_v0 = vld [vmem:[#allocation2 + $0x60] sm:$0xff]   ;;  %9271 = vst [vmem:[#allocation4_spill] sm:$0xff] %v7978_v45  ;;  %v5900_v8 = vrot.slane %v4839_v4, 9  ;;  %v4179_v11 = vrot.slane %v4178_v55, 4  ;;  %v4120_v4 = vld [vmem:[#allocation2 + $0x34] sm:$0xf] }
 0x12c   : > { %6343 = vmatprep.mubr.msk.bf16.mxu1 %vm1237_vm10, %v5802_v63  ;;  %v9270_v27 = vld [vmem:[#allocation8_spill] sm:$0xff]  ;;  %v4188_v59 = vrot.slane %v4186_v29, 4  ;;  %v7983_v42 = vpop.f32.mrf.mxu0 }
 0x12d   : > { %v4644_v63 = vsel %vm1286_vm0, %v9270_v27, 0  ;;  %v4195_v27 = vshll.u32 %v4117_v54, 16  ;;  %9272 = vst [vmem:[#allocation3_spill] sm:$0xff] %v7983_v42  ;;  %vm5508_vm0 = vcmask 60416  }
 0x12e   : > { %v4192_v24 = vor.u32 %v4191_v51, %v4188_v59  ;;  %v4121_v59 = vld [vmem:[#allocation2 + $0x38] sm:$0x1] }
 0x12f   : > { %v7980_v6 = vrot.slane %v4195_v27, 5  ;;  %v7990_v27 = vpop.f32.mrf.mxu1 }
 0x130   : > { %9274 = vst [vmem:[#allocation7_spill] sm:$0xff] %v7990_v27 }
 0x131   : > { %v4202_v55 = vor.u32 %v4201_v14, %v7980_v6 }
 0x132   : > { %6386 = vmatmul.mubr.msk.bf16.gmra.mxu0 %vm1237_vm10, %v6520_v28  ;;  %v4181_v28 = vshll.u32 %v4115_v23, 16 }
 0x133   : > { %6344 = vmatmul.mubr.msk.bf16.vlgmr.msra.gmra.mxu1 %vm1237_vm10, %v5803_v52  ;;  %6389 = vmatprep.mubr.msk.bf16.mxu0 %vm1237_vm10, %v6521_v0  ;;  %v4118_v52 = vld [vmem:[#allocation2 + $0x2c] sm:$0x1]  ;;  %v4840_v0 = vld [vmem:[#allocation2 + $0x24] sm:$0xe] }
 0x134   : > { %6410 = vmatpush3.bf16.msra.mxu1 %v4644_v63  ;;  %6347 = vmatprep.mubr.msk.bf16.mxu1 %vm1237_vm10, %v5804_v62  ;;  %v4908_v63 = vrot.slane %v4115_v23, 5  ;;  %v4119_v62 = vld [vmem:[#allocation2 + $0x30] sm:$0xf]  ;;  %v5901_v54 = vrot.slane %v4840_v0, 9  ;;  %v4915_v33 = vrot.slane %v4118_v52, 5  ;;  %v4183_v19 = vrot.slane %v4181_v28, 5 }
 0x135   : > { %v4205_v16 = vshll.u32 %v4118_v52, 16  ;;  %v4841_v23 = vld [vmem:[#allocation2 + $0x30] sm:$0xe]  ;;  %v4210_v29 = vshrl.u32 %v4119_v62, 16  ;;  %v4213_v58 = vshll.u32 %v4119_v62, 16  ;;  %v4919_v28 = vrot.slane %v4120_v4, 5 }
 0x136   : > { %v7999_v52 = vsel %vm7083_vm2, %v5900_v8, %v4905_v36  ;;  %v8003_v17 = vsel %vm7083_vm2, %v4907_v61, %v4908_v63  ;;  %v8007_v60 = vsel %vm7083_vm2, %v5901_v54, %v4912_v22  ;;  %v8011_v51 = vsel %vm7083_vm2, %v4914_v32, %v4915_v33  ;;  %v4122_v0 = vld [vmem:[#allocation2 + $0x3c] sm:$0xf]  ;;  %v8018_v63 = vpop.f32.mrf.mxu0  ;;  %v8020_v54 = vld [vmem:[#allocation2 + $0x40] sm:$0xf]  ;;  %v8022_v32 = vpop.f32.mrf.mxu1  ;;  %v6525_v33 = vld [vmem:[#allocation2 + $0x90] sm:$0xff]  }
 0x137   : > { %v4184_v8 = vsel %vm6669_vm12, %v4179_v11, %v4183_v19  ;;  %v5902_v36 = vrot.slane %v4841_v23, 9  ;;  %9276 = vst [vmem:[#allocation6_spill] sm:$0xff] %v8018_v63  ;;  %v4212_v22 = vrot.slane %v4210_v29, 4  ;;  %v4215_v14 = vrot.slane %v4213_v58, 5  ;;  %9277 = vst [vmem:[#allocation5_spill] sm:$0xff] %v8022_v32 }
 0x138   : > { %v4219_v62 = vshll.u32 %v4120_v4, 16  ;;  %v4223_v61 = vshrl.u32 %v4120_v4, 16  ;;  %v4234_v19 = vshrl.u32 %v4122_v0, 16  ;;  %v4237_v11 = vshll.u32 %v4122_v0, 16  ;;  %v4125_v32 = vld [vmem:[#allocation2 + $0x48] sm:$0xf]  ;;  %v8047_v27 = vpop.f32.mrf.mxu1 }
 0x139   : > { %v4243_v4 = vshll.u32 %v8020_v54, 16  ;;  %v4247_v58 = vshrl.u32 %v8020_v54, 16  ;;  %v9279_v29 = vcombine.low %v7786_v57, %v7794_v21  ;;  %9280 = vst [vmem:[#allocation9_spill] sm:$0xff] %v8047_v27  ;;  %v9281_v57 = vcombine.low %v7804_v9, %v7820_v37  ;;  %v4124_v21 = vld [vmem:[#allocation2 + $0x44] sm:$0x1] }
 0x13a   : > { %6390 = vmatmul.mubr.msk.bf16.gmra.mxu0 %vm1237_vm10, %v6522_v7  ;;  %v9275_v7 = vcombine.low %v7766_v49, %v7782_v12  ;;  %v6524_v49 = vld [vmem:[#allocation2 + $0x84] sm:$0xff]   ;;  %v4174_v12 = vsel %vm6669_vm12, %v4169_v39, %v7965_v13  ;;  %v4921_v13 = vrot.slane %v4919_v28, 4  ;;  %v4922_v39 = vrot.slane %v4121_v59, 5 }
 0x13b   : > { %6348 = vmatmul.mubr.msk.bf16.gmra.mxu1 %vm1237_vm10, %v9273_v35  ;;  %6393 = vmatprep.mubr.msk.bf16.mxu0 %vm1237_vm10, %v6523_v10  ;;  %v4207_v10 = vrot.slane %v4205_v16, 5  ;;  %v4193_v35 = vrot.slane %v4192_v24, 4  ;;  %v8026_v23 = vcombine.low %v4174_v12, %v4184_v8  ;;  %v8033_v24 = vpop.f32.mrf.mxu0  ;;  %v4216_v16 = vor.u32 %v4215_v14, %v4212_v22  ;;  %v8041_v8 = vld [vmem:[#allocation2 + $0x4c] sm:$0xf]  ;;  %v4842_v14 = vld [vmem:[#allocation2 + $0x3c] sm:$0xe] }
 0x13c   : > { %6351 = vmatprep.mubr.msk.bf16.mxu1 %vm1237_vm10, %v9275_v7  ;;  %v4203_v7 = vrot.slane %v4202_v55, 4  ;;  %9278 = vst [vmem:[#allocation8_spill] sm:$0xff] %v8033_v24  ;;  %v8037_v55 = vsel %vm7083_vm2, %v5902_v36, %v4919_v28  ;;  %v8039_v0 = vrot.slane %v4219_v62, 5  ;;  %v4225_v12 = vrot.slane %v4223_v61, 4  ;;  %v4127_v24 = vld [vmem:[#allocation2 + $0x50] sm:$0x1] }
 0x13d   : > { %v4198_v28 = vsel %vm6669_vm12, %v4193_v35, %v7980_v6  ;;  %v8057_v36 = vsel %vm7083_vm2, %v4921_v13, %v4922_v39  ;;  %v4229_v22 = vshll.u32 %v4121_v59, 16  ;;  %v4236_v62 = vrot.slane %v4234_v19, 4  ;;  %v6526_v13 = vld [vmem:[#allocation2 + $0x9c] sm:$0xff]   ;;  %v8067_v59 = vpop.f32.mrf.mxu0 }
 0x13e   : > { %v4239_v61 = vrot.slane %v4237_v11, 5  ;;  %v8063_v6 = vrot.slane %v4243_v4, 5  ;;  %v4249_v35 = vrot.slane %v4247_v58, 4  ;;  %9282 = vst [vmem:[#allocation10_spill] sm:$0xff] %v8067_v59  ;;  %v8069_v39 = vrot.slane %v4216_v16, 4  ;;  %v8073_v11 = vpop.f32.mrf.mxu1 }
 0x13f   : > { %v4226_v9 = vor.u32 %v4225_v12, %v8039_v0  ;;  %v5903_v37 = vrot.slane %v4842_v14, 9  ;;  %v4926_v19 = vrot.slane %v8020_v54, 5  ;;  %9283 = vst [vmem:[#allocation11_spill] sm:$0xff] %v8073_v11  ;;  %v4253_v27 = vshll.u32 %v4124_v21, 16  ;;  %v4843_v59 = vld [vmem:[#allocation2 + $0x48] sm:$0xe] }
 0x140   : > { %v4929_v63 = vrot.slane %v4124_v21, 5  ;;  %v4933_v16 = vrot.slane %v8041_v8, 5  ;;  %v4240_v14 = vor.u32 %v4239_v61, %v4236_v62  ;;  %v4250_v54 = vor.u32 %v4249_v35, %v8063_v6  ;;  %v4129_v61 = vld [vmem:[#allocation2 + $0x58] sm:$0xf] }
 0x141   : > { %v4227_v21 = vrot.slane %v4226_v9, 4  ;;  %v4928_v62 = vrot.slane %v4926_v19, 4  ;;  %v4255_v35 = vrot.slane %v4253_v27, 5  ;;  %v4277_v27 = vshll.u32 %v4127_v24, 16 }
 0x142   : > { %6394 = vmatmul.mubr.msk.bf16.gmra.mxu0 %vm1237_vm10, %v6524_v49  ;;  %v4208_v49 = vsel %vm6669_vm12, %v4203_v7, %v4207_v10  ;;  %v4267_v10 = vshll.u32 %v8041_v8, 16  ;;  %v4271_v7 = vshrl.u32 %v8041_v8, 16  ;;  %v8092_v8 = vsel %vm7083_vm2, %v5903_v37, %v4926_v19 }
 0x143   : > { %6352 = vmatmul.mubr.msk.bf16.gmra.mxu1 %vm1237_vm10, %v9279_v29  ;;  %6397 = vmatprep.mubr.msk.bf16.mxu0 %vm1237_vm10, %v6525_v33  ;;  %v4258_v33 = vshrl.u32 %v4125_v32, 16  ;;  %v4261_v29 = vshll.u32 %v4125_v32, 16  ;;  %v6527_v32 = vld [vmem:[#allocation2 + $0xa8] sm:$0xff]   ;;  %v8075_v4 = vcombine.low %v4198_v28, %v4208_v49  ;;  %v4128_v28 = vld [vmem:[#allocation2 + $0x54] sm:$0xf]  ;;  %v8084_v49 = vpop.f32.mrf.mxu0  ;;  %v4935_v9 = vrot.slane %v4933_v16, 4 }
 0x144   : > { %6355 = vmatprep.mubr.msk.bf16.mxu1 %vm1237_vm10, %v9281_v57  ;;  %v4231_v57 = vrot.slane %v4229_v22, 5  ;;  %v8081_v45 = vrot.slane %v4267_v10, 5  ;;  %v4273_v11 = vrot.slane %v4271_v7, 4  ;;  %9284 = vst [vmem:[#allocation12_spill] sm:$0xff] %v8084_v49  ;;  %v4222_v22 = vsel %vm6669_vm12, %v8069_v39, %v8039_v0  ;;  %v8101_v0 = vld [vmem:[#allocation2 + $0x5c] sm:$0x1] }
 0x145   : > { %v4260_v42 = vrot.slane %v4258_v33, 4  ;;  %v4263_v12 = vrot.slane %v4261_v29, 5  ;;  %v9285_v33 = vcombine.low %v7811_v46, %v7833_v34  ;;  %v8098_v29 = vpop.f32.mrf.mxu1  ;;  %v5904_v10 = vrot.slane %v4843_v59, 9  ;;  %v4844_v46 = vld [vmem:[#allocation2 + $0x54] sm:$0xe] }
 0x146   : > { %9286 = vst [vmem:[#allocation13_spill] sm:$0xff] %v8098_v29  ;;  %v4936_v7 = vrot.slane %v4127_v24, 5  ;;  %v9287_v39 = vcombine.low %v7824_v18, %v7839_v2  ;;  %v4282_v34 = vshrl.u32 %v4128_v28, 16  ;;  %v4285_v19 = vshll.u32 %v4128_v28, 16  ;;  %v6528_v59 = vld [vmem:[#allocation2 + $0xb4] sm:$0xff]   ;;  %v8108_v29 = vpop.f32.mrf.mxu0  ;;  %v6529_v28 = vld [vmem:[#allocation2 + $0xc0] sm:$0xff]  }
 0x147   : > { %v4264_v37 = vor.u32 %v4263_v12, %v4260_v42  ;;  %v4251_v58 = vrot.slane %v4250_v54, 4  ;;  %v4232_v49 = vsel %vm6669_vm12, %v4227_v21, %v4231_v57  ;;  %v8114_v18 = vsel %vm7083_vm2, %v4928_v62, %v4929_v63  ;;  %v8116_v12 = vpop.f32.mrf.mxu1 }
 0x148   : > { %v4291_v2 = vshll.u32 %v4129_v61, 16  ;;  %v4295_v42 = vshrl.u32 %v4129_v61, 16  ;;  %9288 = vst [vmem:[#allocation14_spill] sm:$0xff] %v8116_v12  ;;  %v5905_v24 = vrot.slane %v4844_v46, 9  ;;  %v4943_v54 = vrot.slane %v8101_v0, 5  ;;  %v8133_v46 = vpop.f32.mrf.mxu0 }
 0x149   : > { %v8125_v57 = vsel %vm7083_vm2, %v4935_v9, %v4936_v7  ;;  %v4265_v21 = vrot.slane %v4264_v37, 4  ;;  %v4284_v63 = vrot.slane %v4282_v34, 4  ;;  %v4287_v62 = vrot.slane %v4285_v19, 5  ;;  %9289 = vst [vmem:[#allocation15_spill] sm:$0xff] %v8133_v46  ;;  %v4131_v34 = vld [vmem:[#allocation2 + $0x60] sm:$0xf] }
 0x14a   : > { %6398 = vmatmul.mubr.msk.bf16.gmra.mxu0 %vm1237_vm10, %v6526_v13  ;;  %v4940_v13 = vrot.slane %v4129_v61, 5  ;;  %v8135_v12 = vcombine.low %v4222_v22, %v4232_v49  ;;  %v8139_v9 = vrot.slane %v4291_v2, 5  ;;  %v4297_v37 = vrot.slane %v4295_v42, 4  ;;  %v4132_v19 = vld [vmem:[#allocation2 + $0x64] sm:$0xf] }
 0x14b   : > { %6356 = vmatmul.mubr.msk.bf16.gmra.mxu1 %vm1237_vm10, %v9285_v33  ;;  %6401 = vmatprep.mubr.msk.bf16.mxu0 %vm1237_vm10, %v6527_v32  ;;  %v4241_v33 = vrot.slane %v4240_v14, 4  ;;  %v4274_v32 = vor.u32 %v4273_v11, %v8081_v45  ;;  %v8120_v14 = vsel %vm7083_vm2, %v5904_v10, %v4933_v16  ;;  %v4279_v10 = vrot.slane %v4277_v27, 5  ;;  %v8168_v27 = vld [vmem:[#allocation2 + $0x70] sm:$0xf]  ;;  %v4845_v42 = vld [vmem:[#allocation2 + $0x60] sm:$0xe] }
 0x14c   : > { %6359 = vmatprep.mubr.msk.bf16.mxu1 %vm1237_vm10, %v9287_v39  ;;  %v4942_v11 = vrot.slane %v4940_v13, 4  ;;  %v4256_v39 = vsel %vm6669_vm12, %v4251_v58, %v4255_v35  ;;  %v8145_v58 = vpop.f32.mrf.mxu1  ;;  %v8152_v22 = vsel %vm7083_vm2, %v5905_v24, %v4940_v13  ;;  %v4301_v13 = vshll.u32 %v8101_v0, 16  ;;  %v8172_v24 = vpop.f32.mrf.mxu0 }
 0x14d   : > { %v4246_v61 = vsel %vm6669_vm12, %v4241_v33, %v8063_v6  ;;  %v4275_v16 = vrot.slane %v4274_v32, 4  ;;  %v9290_v6 = vcombine.low %v7848_v31, %v7859_v40  ;;  %9291 = vst [vmem:[#allocation16_spill] sm:$0xff] %v8145_v58  ;;  %v9292_v31 = vcombine.low %v7853_v38, %v7868_v41  ;;  %9293 = vst [vmem:[#allocation17_spill] sm:$0xff] %v8172_v24 }
 0x14e   : > { %v8156_v35 = vsel %vm7083_vm2, %v4942_v11, %v4943_v54  ;;  %v8162_v40 = vcombine.low %v4246_v61, %v4256_v39  ;;  %v4270_v33 = vsel %vm6669_vm12, %v4265_v21, %v8081_v45  ;;  %v4288_v32 = vor.u32 %v4287_v62, %v4284_v63  ;;  %v6530_v11 = vld [vmem:[#allocation2 + $0xcc] sm:$0xff]   ;;  %v4133_v21 = vld [vmem:[#allocation2 + $0x68] sm:$0x1]  ;;  %v8177_v62 = vpop.f32.mrf.mxu1 }
 0x14f   : > { %v4280_v2 = vsel %vm6669_vm12, %v4275_v16, %v4279_v10  ;;  %v4306_v38 = vshrl.u32 %v4131_v34, 16  ;;  %v4309_v41 = vshll.u32 %v4131_v34, 16  ;;  %v4298_v45 = vor.u32 %v4297_v37, %v8139_v9  ;;  %9294 = vst [vmem:[#allocation18_spill] sm:$0xff] %v8177_v62 }
 0x150   : > { %v4315_v0 = vshll.u32 %v4132_v19, 16  ;;  %v4319_v63 = vshrl.u32 %v4132_v19, 16  ;;  %v4339_v16 = vshll.u32 %v8168_v27, 16  ;;  %v4343_v10 = vshrl.u32 %v8168_v27, 16 }
 0x151   : > { %v8181_v34 = vcombine.low %v4270_v33, %v4280_v2  ;;  %v5906_v54 = vrot.slane %v4845_v42, 9  ;;  %v4950_v37 = vrot.slane %v4133_v21, 5  ;;  %v4308_v7 = vrot.slane %v4306_v38, 4  ;;  %v4846_v33 = vld [vmem:[#allocation2 + $0x6c] sm:$0xe]  ;;  %v8197_v2 = vpop.f32.mrf.mxu1 }
 0x152   : > { %6402 = vmatmul.mubr.msk.bf16.gmra.mxu0 %vm1237_vm10, %v6528_v59  ;;  %v4134_v59 = vld [vmem:[#allocation2 + $0x6c] sm:$0xf]  ;;  %v4311_v58 = vrot.slane %v4309_v41, 5  ;;  %v8190_v62 = vrot.slane %v4315_v0, 5  ;;  %v4321_v46 = vrot.slane %v4319_v63, 4  ;;  %9297 = vst [vmem:[#allocation20_spill] sm:$0xff] %v8197_v2  ;;  %v9298_v42 = vcombine.low %v7999_v52, %v8003_v17 }
 0x153   : > { %6360 = vmatmul.mubr.msk.bf16.gmra.mxu1 %vm1237_vm10, %v9290_v6  ;;  %6405 = vmatprep.mubr.msk.bf16.mxu0 %vm1237_vm10, %v6529_v28  ;;  %v4947_v28 = vrot.slane %v4132_v19, 5  ;;  %v4330_v61 = vshrl.u32 %v4134_v59, 16  ;;  %v4333_v39 = vshll.u32 %v4134_v59, 16  ;;  %v8183_v6 = vrot.slane %v4288_v32, 4  ;;  %v4137_v19 = vld [vmem:[#allocation2 + $0x78] sm:$0xf] }
 0x154   : > { %6363 = vmatprep.mubr.msk.bf16.mxu1 %vm1237_vm10, %v9292_v31  ;;  %v8185_v31 = vrot.slane %v4301_v13, 5  ;;  %v4299_v59 = vrot.slane %v4298_v45, 4  ;;  %v4954_v32 = vrot.slane %v8168_v27, 5  ;;  %v9296_v13 = vcombine.low %v7872_v50, %v7885_v56  ;;  %v4136_v38 = vld [vmem:[#allocation2 + $0x74] sm:$0x1] }
 0x155   : > { %v4949_v49 = vrot.slane %v4947_v28, 4  ;;  %v4332_v41 = vrot.slane %v4330_v61, 4  ;;  %v8203_v45 = vrot.slane %v4339_v16, 5  ;;  %v4345_v0 = vrot.slane %v4343_v10, 4  ;;  %v4138_v16 = vld [vmem:[#allocation2 + $0x7c] sm:$0xf] }
 0x156   : > { %v9299_v27 = vcombine.low %v7880_v26, %v7893_v44  ;;  %v4294_v56 = vsel %vm6669_vm12, %v8183_v6, %v8139_v9  ;;  %v8217_v52 = vsel %vm7083_vm2, %v5906_v54, %v4947_v28  ;;  %v4354_v17 = vshrl.u32 %v4137_v19, 16 }
 0x157   : > { %v4357_v63 = vshll.u32 %v4137_v19, 16  ;;  %v8221_v61 = vsel %vm7083_vm2, %v4949_v49, %v4950_v37  ;;  %v4312_v26 = vor.u32 %v4311_v58, %v4308_v7  ;;  %v4325_v44 = vshll.u32 %v4133_v21, 16  ;;  %v4847_v7 = vld [vmem:[#allocation2 + $0x78] sm:$0xe]  ;;  %v4139_v37 = vld [vmem:[#allocation2 + $0x80] sm:$0x1] }
 0x158   : > { %v4957_v9 = vrot.slane %v4136_v38, 5  ;;  %v4349_v6 = vshll.u32 %v4136_v38, 16  ;;  %v4304_v28 = vsel %vm6669_vm12, %v4299_v59, %v8185_v31  ;;  %v4346_v49 = vor.u32 %v4345_v0, %v8203_v45 }
 0x159   : > { %v4961_v58 = vrot.slane %v4138_v16, 5  ;;  %v4356_v19 = vrot.slane %v4354_v17, 4  ;;  %v4367_v2 = vshrl.u32 %v4138_v16, 16 }
 0x15a   : > { %v8187_v24 = vpop.f32.mrf.mxu0  ;;  %6406 = vmatmul.mubr.msk.bf16.gmra.mxu0 %vm1237_vm10, %v6530_v11  ;;  %v4335_v11 = vrot.slane %v4333_v39, 5  ;;  %v5907_v39 = vrot.slane %v4846_v33, 9  ;;  %v4359_v33 = vrot.slane %v4357_v63, 5  ;;  %v4351_v17 = vrot.slane %v4349_v6, 5 }
 0x15b   : > { %9295 = vst [vmem:[#allocation19_spill] sm:$0xff] %v8187_v24  ;;  %6364 = vmatmul.mubr.msk.bf16.gmra.mxu1 %vm1237_vm10, %v9296_v13  ;;  %6445 = vmatprep.mubr.msk.bf16.mxu0 %vm1237_vm10, %v9298_v42  ;;  %v4322_v13 = vor.u32 %v4321_v46, %v8190_v62  ;;  %v4956_v42 = vrot.slane %v4954_v32, 4  ;;  %v4363_v46 = vshll.u32 %v4138_v16, 16  ;;  %v5908_v63 = vrot.slane %v4847_v7, 9 }
 0x15c   : > { %6367 = vmatprep.mubr.msk.bf16.mxu1 %vm1237_vm10, %v9299_v27  ;;  %v8209_v50 = vpop.f32.mrf.mxu0  ;;  %v8226_v27 = vpop.f32.mrf.mxu1  ;;  %v4336_v54 = vor.u32 %v4335_v11, %v4332_v41  ;;  %v8238_v31 = vsel %vm7083_vm2, %v5907_v39, %v4954_v32  ;;  %v9304_v41 = vcombine.low %v8007_v60, %v8011_v51  ;;  %v9307_v60 = vcombine.low %v8037_v55, %v8057_v36  ;;  %v4141_v55 = vld [vmem:[#allocation2 + $0x88] sm:$0xf]  ;;  %v4848_v36 = vld [vmem:[#allocation2 + $0x84] sm:$0xe] }
 0x15d   : > { %9300 = vst [vmem:[#allocation21_spill] sm:$0xff] %v8209_v50  ;;  %9302 = vst [vmem:[#allocation23_spill] sm:$0xff] %v8226_v27  ;;  %v4313_v27 = vrot.slane %v4312_v26, 4  ;;  %v4323_v11 = vrot.slane %v4322_v13, 4  ;;  %v8248_v0 = vsel %vm7083_vm2, %v4956_v42, %v4957_v9  ;;  %v4140_v26 = vld [vmem:[#allocation2 + $0x84] sm:$0xf]  ;;  %v9308_v42 = vcombine.low %v7905_v1, %v7921_v30 }
 0x15e   : > { %v8223_v10 = vpop.f32.mrf.mxu0  ;;  %v8254_v32 = vpop.f32.mrf.mxu1  ;;  %v4337_v51 = vrot.slane %v4336_v54, 4  ;;  %v4347_v39 = vrot.slane %v4346_v49, 4  ;;  %v4963_v16 = vrot.slane %v4961_v58, 4  ;;  %v4964_v13 = vrot.slane %v4139_v37, 5 }
 0x15f   : > { %9301 = vst [vmem:[#allocation22_spill] sm:$0xff] %v8223_v10  ;;  %v4327_v10 = vrot.slane %v4325_v44, 5  ;;  %v9305_v44 = vcombine.low %v7901_v5, %v7915_v20  ;;  %9306 = vst [vmem:[#allocation25_spill] sm:$0xff] %v8254_v32  ;;  %v8266_v5 = vcombine.low %v4294_v56, %v4304_v28  ;;  %v4360_v20 = vor.u32 %v4359_v33, %v4356_v19  ;;  %v8283_v19 = vld [vmem:[#allocation2 + $0x8c] sm:$0x1] }
 0x160   : > { %v8232_v21 = vpop.f32.mrf.mxu0  ;;  %v8268_v6 = vrot.slane %v4363_v46, 5  ;;  %v4369_v7 = vrot.slane %v4367_v2, 4  ;;  %v4318_v54 = vsel %vm6669_vm12, %v4313_v27, %v8190_v62  ;;  %v4968_v49 = vrot.slane %v4141_v55, 5  ;;  %v8285_v33 = vpop.f32.mrf.mxu1 }
 0x161   : > { %9303 = vst [vmem:[#allocation24_spill] sm:$0xff] %v8232_v21  ;;  %v4328_v30 = vsel %vm6669_vm12, %v4323_v11, %v4327_v10  ;;  %v8281_v2 = vsel %vm7083_vm2, %v5908_v63, %v4961_v58  ;;  %v4373_v28 = vshll.u32 %v4139_v37, 16  ;;  %9309 = vst [vmem:[#allocation26_spill] sm:$0xff] %v8285_v33  ;;  %v4342_v62 = vsel %vm6669_vm12, %v4337_v51, %v8203_v45  ;;  %v8296_v11 = vld [vmem:[#allocation2 + $0x94] sm:$0xf] }
 0x162   : > { %v8240_v59 = vpop.f32.mrf.mxu0  ;;  %6446 = vmatmul.mubr.msk.bf16.vlgmr.msra.gmra.mxu0 %vm1237_vm10, %v9304_v41  ;;  %v4378_v41 = vshrl.u32 %v4140_v26, 16  ;;  %v4352_v27 = vsel %vm6669_vm12, %v4347_v39, %v4351_v17  ;;  %v8294_v10 = vsel %vm7083_vm2, %v4963_v16, %v4964_v13  ;;  %v5909_v46 = vrot.slane %v4848_v36, 9  ;;  %v8316_v36 = vld [vmem:[#allocation2 + $0xa0] sm:$0xf] }
 0x163   : > { %6368 = vmatmul.mubr.msk.bf16.gmra.mxu1 %vm1237_vm10, %v9305_v44  ;;  %6449 = vmatprep.mubr.msk.bf16.mxu0 %vm1237_vm10, %v9307_v60  ;;  %v4381_v44 = vshll.u32 %v4140_v26, 16  ;;  %v8300_v37 = vrot.slane %v4360_v20, 4  ;;  %v4370_v63 = vor.u32 %v4369_v7, %v8268_v6  ;;  %v4387_v26 = vshll.u32 %v4141_v55, 16 }
 0x164   : > { %6371 = vmatprep.mubr.msk.bf16.mxu1 %vm1237_vm10, %v9308_v42  ;;  %v8264_v9 = vpop.f32.mrf.mxu0  ;;  %v4391_v60 = vshrl.u32 %v4141_v55, 16  ;;  %v4143_v42 = vld [vmem:[#allocation2 + $0x90] sm:$0xf]  ;;  %v4970_v45 = vrot.slane %v4968_v49, 4  ;;  %v4971_v51 = vrot.slane %v8283_v19, 5  ;;  %v4380_v17 = vrot.slane %v4378_v41, 4 }
 0x165   : > { %v4383_v39 = vrot.slane %v4381_v44, 5  ;;  %v9310_v16 = vcombine.low %v8092_v8, %v8114_v18  ;;  %v8310_v13 = vcombine.low %v4318_v54, %v4328_v30  ;;  %v8312_v20 = vcombine.low %v4342_v62, %v4352_v27 }
 0x166   : > { %v8273_v1 = vpop.f32.mrf.mxu0  ;;  %v4375_v55 = vrot.slane %v4373_v28, 5  ;;  %v9313_v41 = vcombine.low %v7925_v53, %v7933_v48  ;;  %v9314_v8 = vcombine.low %v8120_v14, %v8125_v57  ;;  %v4402_v18 = vshrl.u32 %v4143_v42, 16  ;;  %v4146_v28 = vld [vmem:[#allocation2 + $0x9c] sm:$0xf] }
 0x167   : > { %9311 = vst [vmem:[#allocation27_spill] sm:$0xff] %v8312_v20  ;;  %v4405_v54 = vshll.u32 %v4143_v42, 16  ;;  %v4411_v44 = vshll.u32 %v8296_v11, 16  ;;  %v4415_v30 = vshrl.u32 %v8296_v11, 16  ;;  %v4371_v53 = vrot.slane %v4370_v63, 4 }
 0x168   : > { %v8298_v58 = vpop.f32.mrf.mxu0  ;;  %v8336_v48 = vsel %vm7083_vm2, %v5909_v46, %v4968_v49  ;;  %v8338_v14 = vrot.slane %v4387_v26, 5  ;;  %v4393_v57 = vrot.slane %v4391_v60, 4  ;;  %v4366_v42 = vsel %vm6669_vm12, %v8300_v37, %v8268_v6  ;;  %v4145_v63 = vld [vmem:[#allocation2 + $0x98] sm:$0x1]  ;;  %v4849_v46 = vld [vmem:[#allocation2 + $0x90] sm:$0xe] }
 0x169   : > { %v4426_v26 = vshrl.u32 %v4146_v28, 16  ;;  %v4429_v60 = vshll.u32 %v4146_v28, 16  ;;  %v4439_v7 = vshrl.u32 %v8316_v36, 16  ;;  %v4404_v6 = vrot.slane %v4402_v18, 4 }
 0x16a   : > { %v8304_v56 = vpop.f32.mrf.mxu0  ;;  %6450 = vmatmul.mubr.msk.bf16.gmra.mxu0 %vm1237_vm10, %v9310_v16  ;;  %v4384_v16 = vor.u32 %v4383_v39, %v4380_v17  ;;  %v4407_v37 = vrot.slane %v4405_v54, 5  ;;  %v4394_v39 = vor.u32 %v4393_v57, %v8338_v14  ;;  %v4397_v28 = vshll.u32 %v8283_v19, 16 }
 0x16b   : > { %v8318_v38 = vpop.f32.mrf.mxu1  ;;  %6372 = vmatmul.mubr.msk.bf16.gmra.mxu1 %vm1237_vm10, %v9313_v41  ;;  %6453 = vmatprep.mubr.msk.bf16.mxu0 %vm1237_vm10, %v9314_v8  ;;  %v4975_v41 = vrot.slane %v8296_v11, 5  ;;  %v4435_v8 = vshll.u32 %v8316_v36, 16  ;;  %v4376_v11 = vsel %vm6669_vm12, %v4371_v53, %v4375_v55  ;;  %v5910_v18 = vrot.slane %v4849_v46, 9  ;;  %v4148_v53 = vld [vmem:[#allocation2 + $0xa4] sm:$0x1] }
 0x16c   : > { %9312 = vst [vmem:[#allocation28_spill] sm:$0xff] %v8318_v38  ;;  %6411 = vmatprep.mubr.msk.bf16.mxu1 %vm1237_vm10, %v8026_v23  ;;  %v8332_v62 = vpop.f32.mrf.mxu0  ;;  %v8348_v23 = vsel %vm7083_vm2, %v4970_v45, %v4971_v51  ;;  %v8357_v38 = vrot.slane %v4411_v44, 5  ;;  %v4417_v45 = vrot.slane %v4415_v30, 4  ;;  %v4978_v54 = vrot.slane %v4145_v63, 5  ;;  %v4850_v44 = vld [vmem:[#allocation2 + $0x9c] sm:$0xe] }
 0x16d   : > { %v8340_v27 = vpop.f32.mrf.mxu1  ;;  %v4982_v30 = vrot.slane %v8316_v36, 5  ;;  %v9318_v55 = vcombine.low %v8152_v22, %v8156_v35  ;;  %v4428_v57 = vrot.slane %v4426_v26, 4  ;;  %v4431_v17 = vrot.slane %v4429_v60, 5 }
 0x16e   : > { %9315 = vst [vmem:[#allocation29_spill] sm:$0xff] %v8340_v27  ;;  %v8351_v49 = vpop.f32.mrf.mxu0  ;;  %v8378_v19 = vrot.slane %v4435_v8, 5  ;;  %v9319_v36 = vcombine.low %v8217_v52, %v8221_v61  ;;  %v4977_v46 = vrot.slane %v4975_v41, 4  ;;  %v4408_v21 = vor.u32 %v4407_v37, %v4404_v6  ;;  %v4149_v52 = vld [vmem:[#allocation2 + $0xa8] sm:$0xf] }
 0x16f   : > { %v8355_v27 = vpop.f32.mrf.mxu1  ;;  %v4418_v22 = vor.u32 %v4417_v45, %v8357_v38  ;;  %v4421_v35 = vshll.u32 %v4145_v63, 16  ;;  %v8393_v26 = vcombine.low %v4366_v42, %v4376_v11  ;;  %v4399_v60 = vrot.slane %v4397_v28, 5  ;;  %v4851_v45 = vld [vmem:[#allocation2 + $0xa8] sm:$0xe]  ;;  %v4151_v28 = vld [vmem:[#allocation2 + $0xb0] sm:$0x1] }
 0x170   : > { %9316 = vst [vmem:[#allocation30_spill] sm:$0xff] %v8355_v27  ;;  %v8359_v51 = vpop.f32.mrf.mxu0  ;;  %v8369_v27 = vrot.slane %v4384_v16, 4  ;;  %v5911_v8 = vrot.slane %v4850_v44, 9  ;;  %v8397_v6 = vsel %vm7083_vm2, %v5910_v18, %v4975_v41  ;;  %v4984_v37 = vrot.slane %v4982_v30, 4 }
 0x171   : > { %v8367_v33 = vpop.f32.mrf.mxu1  ;;  %9320 = vst [vmem:[#allocation32_spill] sm:$0xff] %v8393_v26  ;;  %v4985_v63 = vrot.slane %v4148_v53, 5  ;;  %v4432_v42 = vor.u32 %v4431_v17, %v4428_v57  ;;  %v8409_v41 = vsel %vm7083_vm2, %v4977_v46, %v4978_v54  ;;  %v4409_v18 = vrot.slane %v4408_v21, 4 }
 0x172   : > { %9317 = vst [vmem:[#allocation31_spill] sm:$0xff] %v8367_v33  ;;  %v8372_v32 = vpop.f32.mrf.mxu0  ;;  %6454 = vmatmul.mubr.msk.bf16.gmra.mxu0 %vm1237_vm10, %v9318_v55  ;;  %v4441_v33 = vrot.slane %v4439_v7, 4  ;;  %v8387_v55 = vld [vmem:[#allocation2 + $0xac] sm:$0xf]  ;;  %v4419_v26 = vrot.slane %v4418_v22, 4  ;;  %v4423_v24 = vrot.slane %v4421_v35, 5  ;;  %v9322_v22 = vcombine.low %v8238_v31, %v8248_v0 }
 0x173   : > { %v6209_v16 = vpop.f32.mrf.mxu1  ;;  %6412 = vmatmul.mubr.msk.bf16.vlgmr.msra.gmra.mxu1 %vm1237_vm10, %v8075_v4  ;;  %6457 = vmatprep.mubr.msk.bf16.mxu0 %vm1237_vm10, %v9319_v36  ;;  %v4395_v4 = vrot.slane %v4394_v39, 4  ;;  %v4989_v36 = vrot.slane %v8387_v55, 5  ;;  %v4445_v39 = vshll.u32 %v4148_v53, 16  ;;  %v8421_v53 = vsel %vm7083_vm2, %v4984_v37, %v4985_v63 }
 0x174   : > { %6415 = vmatprep.mubr.msk.bf16.mxu1 %vm1237_vm10, %v8135_v12  ;;  %v8391_v7 = vpop.f32.mrf.mxu0  ;;  %v4390_v12 = vsel %vm6669_vm12, %v8369_v27, %v8338_v14  ;;  %v4442_v11 = vor.u32 %v4441_v33, %v8378_v19  ;;  %v8417_v14 = vsel %vm7083_vm2, %v5911_v8, %v4982_v30  ;;  %v5912_v33 = vrot.slane %v4851_v45, 9 }
 0x175   : > { %v1616_v61 = vpop.f32.mrf.mxu1  ;;  %v4450_v27 = vshrl.u32 %v4149_v52, 16  ;;  %v4991_v54 = vrot.slane %v4989_v36, 4  ;;  %v4992_v21 = vrot.slane %v4151_v28, 5  ;;  %v4453_v57 = vshll.u32 %v4149_v52, 16 }
 0x176   : > { %v8400_v50 = vpop.f32.mrf.mxu0  ;;  %v5927_v30 = vcombine.low %v8397_v6, %v8409_v41  ;;  %v4433_v35 = vrot.slane %v4432_v42, 4  ;;  %v9323_v52 = vcombine.low %v8281_v2, %v8294_v10  ;;  %v4414_v31 = vsel %vm6669_vm12, %v4409_v18, %v8357_v38 }
 0x177   : > { %9321 = vst [vmem:[#allocation33_spill] sm:$0xff] %v8400_v50  ;;  %v6210_v44 = vpop.f32.mrf.mxu1  ;;  %v4400_v50 = vsel %vm6669_vm12, %v4395_v4, %v4399_v60  ;;  %v4443_v4 = vrot.slane %v4442_v11, 4  ;;  %v4447_v60 = vrot.slane %v4445_v39, 5  ;;  %v4424_v0 = vsel %vm6669_vm12, %v4419_v26, %v4423_v24  ;;  %v9324_v11 = vld [vmem:[#allocation4_spill] sm:$0xff] }
 0x178   : > { %v8411_v20 = vpop.f32.mrf.mxu0  ;;  %v4459_v6 = vshll.u32 %v8387_v55, 16  ;;  %v4463_v37 = vshrl.u32 %v8387_v55, 16  ;;  %v8448_v63 = vcombine.low %v4390_v12, %v4400_v50  ;;  %v5928_v2 = vcombine.low %v8417_v14, %v8421_v53 }
 0x179   : > { %v1619_v17 = vpop.f32.mrf.mxu1  ;;  %v8454_v38 = vsel %vm7083_vm2, %v5912_v33, %v4989_v36  ;;  %v4452_v10 = vrot.slane %v4450_v27, 4  ;;  %v1625_v24 = vadd.f32 %v6209_v16, %v7948_v25  ;;  %v8459_v55 = vsel %vm7083_vm2, %v4991_v54, %v4992_v21  ;;  %v9326_v27 = vld [vmem:[#allocation6_spill] sm:$0xff]  ;;  %v9327_v21 = vld [vmem:[#allocation8_spill] sm:$0xff] }
 0x17a   : > { %v8423_v46 = vpop.f32.mrf.mxu0  ;;  %6458 = vmatmul.mubr.msk.bf16.gmra.mxu0 %vm1237_vm10, %v9322_v22  ;;  %v4469_v45 = vshll.u32 %v4151_v28, 16  ;;  %v1617_v50 = vadd.f32 %v1616_v61, %v7961_v43  ;;  %v8464_v42 = vcombine.low %v4414_v31, %v4424_v0  ;;  %v4438_v36 = vsel %vm6669_vm12, %v4433_v35, %v8378_v19  ;;  %v4852_v43 = vld [vmem:[#allocation2 + $0xb4] sm:$0xe]  ;;  %v9325_v61 = vld [vmem:[#allocation3_spill] sm:$0xff] }
 0x17b   : > { %v6213_v8 = vpop.f32.mrf.mxu1  ;;  %6416 = vmatmul.mubr.msk.bf16.gmra.mxu1 %vm1237_vm10, %v8162_v40  ;;  %6461 = vmatprep.mubr.msk.bf16.mxu0 %vm1237_vm10, %v9323_v52  ;;  %v4448_v25 = vsel %vm6669_vm12, %v4443_v4, %v4447_v60  ;;  %v1628_v16 = vadd.f32 %v6210_v44, %v7968_v3  ;;  %v1620_v39 = vadd.f32 %v1619_v17, %v9324_v11  ;;  %v8473_v18 = vrot.slane %v4459_v6, 5  ;;  %v8486_v4 = vld [vmem:[#allocation2 + $0xb8] sm:$0xf]  ;;  %v8488_v60 = vld [vmem:[#allocation2 + $0xbc] sm:$0x1]  ;;  %v9328_v52 = vld [vmem:[#allocation10_spill] sm:$0xff] }
 0x17c   : > { %6419 = vmatprep.mubr.msk.bf16.mxu1 %vm1237_vm10, %v8181_v34  ;;  %v8446_v40 = vpop.f32.mrf.mxu0  ;;  %v4455_v34 = vrot.slane %v4453_v57, 5  ;;  %v4465_v28 = vrot.slane %v4463_v37, 4  ;;  %v1641_v33 = vadd.f32 %v6213_v8, %v9325_v61  ;;  %v5929_v19 = vcombine.low %v8454_v38, %v8459_v55 }
 0x17d   : > { %v1632_v26 = vpop.f32.mrf.mxu1  ;;  %v8482_v3 = vcombine.low %v4438_v36, %v4448_v25  ;;  %v8484_v17 = vrot.slane %v4469_v45, 5  ;;  %v8491_v8 = vadd.f32 %v8240_v59, %v1625_v24  ;;  %v9329_v6 = vcombine.low %v8336_v48, %v8348_v23  ;;  %v9330_v25 = vld [vmem:[#allocation12_spill] sm:$0xff] }
 0x17e   : > { %v8462_v12 = vpop.f32.mrf.mxu0  ;;  %v1633_v54 = vadd.f32 %v1632_v26, %v9326_v27  ;;  %v4456_v44 = vor.u32 %v4455_v34, %v4452_v10  ;;  %v5913_v37 = vrot.slane %v4852_v43, 9  ;;  %v4996_v10 = vrot.slane %v8486_v4, 5  ;;  %v4152_v26 = vld [vmem:[#allocation2 + $0xb4] sm:$0xf]  ;;  %v8501_v34 = vld [vmem:[#allocation2 + $0xc4] sm:$0xf] }
 0x17f   : > { %v6214_v41 = vpop.f32.mrf.mxu1  ;;  %v8504_v45 = vadd.f32 %v8264_v9, %v1617_v50  ;;  %v4466_v24 = vor.u32 %v4465_v28, %v8473_v18  ;;  %v5003_v48 = vrot.slane %v8501_v34, 5  ;;  %v8512_v23 = vadd.f32 %v8273_v1, %v1628_v16 }
 0x180   : > { %v1644_v57 = vadd.f32 %v6214_v41, %v9327_v21  ;;  %v8478_v22 = vpop.f32.mrf.mxu0  ;;  %v8515_v36 = vadd.f32 %v8298_v58, %v1620_v39  ;;  %v8525_v50 = vadd.f32 %v8304_v56, %v1641_v33  ;;  %v8528_v41 = vadd.f32 %v8332_v62, %v1633_v54 }
 0x181   : > { %v1635_v35 = vpop.f32.mrf.mxu1  ;;  %v8533_v16 = vrot.slane %v4456_v44, 4  ;;  %v4999_v39 = vrot.slane %v8488_v60, 5  ;;  %v8544_v56 = vsel %vm7083_vm2, %v5913_v37, %v4996_v10  ;;  %v4998_v62 = vrot.slane %v4996_v10, 4 }
 0x182   : > { %v1636_v31 = vadd.f32 %v1635_v35, %v9328_v52  ;;  %v8494_v0 = vpop.f32.mrf.mxu0  ;;  %6462 = vmatmul.mubr.msk.bf16.gmra.mxu0 %vm1237_vm10, %v9329_v6  ;;  %v8531_v1 = vadd.f32 %v8351_v49, %v1644_v57  ;;  %v4155_v49 = vld [vmem:[#allocation2 + $0xc0] sm:$0xf]  ;;  %v4477_v54 = vshll.u32 %v4152_v26, 16  ;;  %v5005_v57 = vrot.slane %v5003_v48, 4  ;;  %v9331_v35 = vld [vmem:[#allocation15_spill] sm:$0xff] }
 0x183   : > { %v6217_v59 = vpop.f32.mrf.mxu1  ;;  %6420 = vmatmul.mubr.msk.bf16.gmra.mxu1 %vm1237_vm10, %v8266_v5  ;;  %6465 = vmatprep.mubr.msk.bf16.mxu0 %vm1237_vm10, %v5927_v30  ;;  %v8522_v5 = vld [vmem:[#allocation2 + $0xc8] sm:$0x1]  ;;  %v4853_v30 = vld [vmem:[#allocation2 + $0xc0] sm:$0xe]  ;;  %v8553_v52 = vrot.slane %v4466_v24, 4  ;;  %v4487_v10 = vshrl.u32 %v8486_v4, 16 }
 0x184   : > { %v1657_v11 = vadd.f32 %v6217_v59, %v9330_v25  ;;  %6423 = vmatprep.mubr.msk.bf16.mxu1 %vm1237_vm10, %v8310_v13  ;;  %v8520_v9 = vpop.f32.mrf.mxu0  ;;  %v4474_v13 = vshrl.u32 %v4152_v26, 16  ;;  %v8537_v28 = vadd.f32 %v8359_v51, %v1636_v31  ;;  %v5914_v21 = vrot.slane %v4853_v30, 9  ;;  %v9332_v25 = vld [vmem:[#allocation17_spill] sm:$0xff] }
 0x185   : > { %v1648_v58 = vpop.f32.mrf.mxu1  ;;  %v5006_v51 = vrot.slane %v8522_v5, 5  ;;  %v4483_v31 = vshll.u32 %v8486_v4, 16  ;;  %v4498_v26 = vshrl.u32 %v4155_v49, 16  ;;  %v4501_v59 = vshll.u32 %v4155_v49, 16  ;;  %v9335_v49 = vld [vmem:[#allocation27_spill] sm:$0xff] }
 0x186   : > { %v1649_v43 = vadd.f32 %v1648_v58, %v8108_v29  ;;  %v8540_v61 = vpop.f32.mrf.mxu0  ;;  %v8547_v33 = vadd.f32 %v8372_v32, %v1657_v11  ;;  %v8559_v32 = vrot.slane %v4474_v13, 4  ;;  %v4507_v24 = vshll.u32 %v8501_v34, 16  ;;  %v8572_v58 = vld [vmem:[#allocation2 + $0xd0] sm:$0xf]  ;;  %v9333_v13 = vld [vmem:[#allocation33_spill] sm:$0xff] }
 0x187   : > { %v6218_v27 = vpop.f32.mrf.mxu1  ;;  %v5004_v14 = vsel %vm7083_vm2, %v5914_v21, %v5003_v48  ;;  %v5007_v53 = vsel %vm7083_vm2, %v5005_v57, %v5006_v51  ;;  %v4479_v38 = vrot.slane %v4477_v54, 5  ;;  %v8594_v55 = vrot.slane %v4483_v31, 5  ;;  %v4854_v48 = vld [vmem:[#allocation2 + $0xcc] sm:$0xe] }
 0x188   : > { %v1660_v44 = vadd.f32 %v6218_v27, %v9331_v35  ;;  %v8551_v29 = vpop.f32.mrf.mxu0  ;;  %v8557_v6 = vadd.f32 %v8391_v7, %v1649_v43  ;;  %v5000_v7 = vsel %vm7083_vm2, %v4998_v62, %v4999_v39  ;;  %v5010_v39 = vrot.slane %v8572_v58, 5  ;;  %v9336_v62 = vld [vmem:[#allocation19_spill] sm:$0xff]  ;;  %v9337_v35 = vld [vmem:[#allocation32_spill] sm:$0xff] }
 0x189   : > { %v1651_v37 = vpop.f32.mrf.mxu1  ;;  %v4489_v51 = vrot.slane %v4487_v10, 4  ;;  %v8605_v54 = vrot.slane %v4507_v24, 5  ;;  %v9340_v10 = vld [vmem:[#allocation22_spill] sm:$0xff]  ;;  %v4493_v24 = vshll.u32 %v8488_v60, 16 }
 0x18a   : > { %v1652_v11 = vadd.f32 %v1651_v37, %v9332_v25  ;;  %v8563_v30 = vpop.f32.mrf.mxu0  ;;  %6466 = vmatmul.mubr.msk.bf16.gmra.mxu0 %vm1237_vm10, %v5928_v2  ;;  %v8575_v4 = vadd.f32 %v9333_v13, %v1660_v44  ;;  %v4511_v2 = vshrl.u32 %v8501_v34, 16  ;;  %v5930_v34 = vcombine.low %v8544_v56, %v5000_v7  ;;  %v9339_v13 = vld [vmem:[#allocation21_spill] sm:$0xff] }
 0x18b   : > { %v6221_v43 = vpop.f32.mrf.mxu1  ;;  %6424 = vmatmul.mubr.msk.bf16.gmra.mxu1 %vm1237_vm10, %v9335_v49  ;;  %6469 = vmatprep.mubr.msk.bf16.mxu0 %vm1237_vm10, %v5929_v19  ;;  %v8596_v19 = vld [vmem:[#allocation2 + $0xd4] sm:$0x1]  ;;  %v4500_v37 = vrot.slane %v4498_v26, 4  ;;  %v4503_v25 = vrot.slane %v4501_v59, 5  ;;  %v4158_v56 = vld [vmem:[#allocation2 + $0xcc] sm:$0xf]  ;;  %v4462_v7 = vsel %vm6669_vm12, %v8533_v16, %v8473_v18 }
 0x18c   : > { %9334 = vst [vmem:[#allocation4_spill] sm:$0xff] %v8575_v4  ;;  %v1673_v27 = vadd.f32 %v6221_v43, %v9336_v62  ;;  %6427 = vmatprep.mubr.msk.bf16.mxu1 %vm1237_vm10, %v9337_v35  ;;  %v8592_v44 = vpop.f32.mrf.mxu0  ;;  %v8599_v21 = vadd.f32 %v8411_v20, %v1652_v11  ;;  %v5931_v62 = vcombine.low %v5004_v14, %v5007_v53  ;;  %v4513_v4 = vrot.slane %v4511_v2, 4 }
 0x18d   : > { %v1664_v57 = vpop.f32.mrf.mxu1  ;;  %v5915_v20 = vrot.slane %v4854_v48, 9  ;;  %v5012_v11 = vrot.slane %v5010_v39, 4  ;;  %v4472_v53 = vsel %vm6669_vm12, %v8553_v52, %v8484_v17  ;;  %v4480_v2 = vor.u32 %v4479_v38, %v8559_v32  ;;  %v9342_v38 = vld [vmem:[#allocation7_spill] sm:$0xff] }
 0x18e   : > { %9338 = vst [vmem:[#allocation3_spill] sm:$0xff] %v8599_v21  ;;  %v1665_v43 = vadd.f32 %v1664_v57, %v9339_v13  ;;  %v8603_v49 = vpop.f32.mrf.mxu0  ;;  %v8608_v31 = vadd.f32 %v8423_v46, %v1673_v27  ;;  %v5013_v21 = vrot.slane %v8596_v19, 5  ;;  %v4490_v27 = vor.u32 %v4489_v51, %v8594_v55  ;;  %v9341_v57 = vld [vmem:[#allocation24_spill] sm:$0xff] }
 0x18f   : > { %v6222_v35 = vpop.f32.mrf.mxu1  ;;  %v4517_v48 = vshll.u32 %v8522_v5, 16  ;;  %v4522_v60 = vshrl.u32 %v4158_v56, 16  ;;  %v4514_v17 = vor.u32 %v4513_v4, %v8605_v54  ;;  %v5011_v5 = vsel %vm7083_vm2, %v5915_v20, %v5010_v39 }
 0x190   : > { %v1676_v26 = vadd.f32 %v6222_v35, %v9340_v10  ;;  %v8612_v59 = vpop.f32.mrf.mxu0  ;;  %v8620_v46 = vadd.f32 %v8446_v40, %v1665_v43  ;;  %v4504_v40 = vor.u32 %v4503_v25, %v4500_v37  ;;  %v5014_v52 = vsel %vm7083_vm2, %v5012_v11, %v5013_v21 }
 0x191   : > { %v1667_v14 = vpop.f32.mrf.mxu1  ;;  %v4525_v32 = vshll.u32 %v4158_v56, 16  ;;  %v4535_v51 = vshrl.u32 %v8572_v58, 16  ;;  %v5880_v39 = vcombine.low %v4462_v7, %v4472_v53  ;;  %v4481_v25 = vrot.slane %v4480_v2, 4 }
 0x192   : > { %v1668_v13 = vadd.f32 %v1667_v14, %v9341_v57  ;;  %v8630_v18 = vpop.f32.mrf.mxu0  ;;  %6470 = vmatmul.mubr.msk.bf16.gmra.mxu0 %vm1237_vm10, %v5930_v34  ;;  %v8634_v16 = vadd.f32 %v8462_v12, %v1676_v26  ;;  %v4491_v15 = vrot.slane %v4490_v27, 4  ;;  %v4495_v21 = vrot.slane %v4493_v24, 5  ;;  %v9344_v57 = vld [vmem:[#allocation9_spill] sm:$0xff] }
 0x193   : > { %v6225_v43 = vpop.f32.mrf.mxu1  ;;  %6428 = vmatmul.mubr.msk.bf16.gmra.mxu1 %vm1237_vm10, %v8448_v63  ;;  %6473 = vmatprep.mubr.msk.bf16.mxu0 %vm1237_vm10, %v5931_v62  ;;  %v4531_v63 = vshll.u32 %v8572_v58, 16  ;;  %v9343_v62 = vld [vmem:[#allocation5_spill] sm:$0xff]  ;;  %v4519_v11 = vrot.slane %v4517_v48, 5  ;;  %v4505_v26 = vrot.slane %v4504_v40, 4  ;;  %v4515_v58 = vrot.slane %v4514_v17, 4  ;;  %v9345_v48 = vld [vmem:[#allocation11_spill] sm:$0xff] }
 0x194   : > { %v1689_v34 = vadd.f32 %v6225_v43, %v9342_v38  ;;  %6431 = vmatprep.mubr.msk.bf16.mxu1 %vm1237_vm10, %v8464_v42  ;;  %v8647_v12 = vpop.f32.mrf.mxu0  ;;  %v8652_v4 = vadd.f32 %v8478_v22, %v1668_v13  ;;  %v5932_v42 = vcombine.low %v5011_v5, %v5014_v52  ;;  %v4524_v14 = vrot.slane %v4522_v60, 4 }
 0x195   : > { %v1680_v37 = vpop.f32.mrf.mxu1  ;;  %v4527_v22 = vrot.slane %v4525_v32, 5  ;;  %v4533_v53 = vrot.slane %v4531_v63, 5  ;;  %v4537_v24 = vrot.slane %v4535_v51, 4  ;;  %v4510_v5 = vsel %vm6669_vm12, %v4505_v26, %v8605_v54  ;;  %v9346_v32 = vld [vmem:[#allocation13_spill] sm:$0xff] }
 0x196   : > { %v1681_v35 = vadd.f32 %v1680_v37, %v9343_v62  ;;  %v8655_v20 = vpop.f32.mrf.mxu0  ;;  %v8658_v56 = vadd.f32 %v8494_v0, %v1689_v34  ;;  %v4486_v0 = vsel %vm6669_vm12, %v4481_v25, %v8594_v55  ;;  %v4520_v55 = vsel %vm6669_vm12, %v4515_v58, %v4519_v11  ;;  %v9347_v37 = vld [vmem:[#allocation14_spill] sm:$0xff]  ;;  %v9348_v11 = vld [vmem:[#allocation16_spill] sm:$0xff] }
 0x197   : > { %v6226_v10 = vpop.f32.mrf.mxu1  ;;  %v4541_v52 = vshll.u32 %v8596_v19, 16  ;;  %v4538_v34 = vor.u32 %v4537_v24, %v4533_v53  ;;  %v5882_v19 = vcombine.low %v4510_v5, %v4520_v55  ;;  %v9350_v24 = vld [vmem:[#allocation20_spill] sm:$0xff] }
 0x198   : > { %v1692_v13 = vadd.f32 %v6226_v10, %v9344_v57  ;;  %v8661_v7 = vpop.f32.mrf.mxu0  ;;  %v8664_v2 = vadd.f32 %v8520_v9, %v1681_v35  ;;  %v4496_v9 = vsel %vm6669_vm12, %v4491_v15, %v4495_v21 }
 0x199   : > { %v1683_v27 = vpop.f32.mrf.mxu1  ;;  %v5881_v62 = vcombine.low %v4486_v0, %v4496_v9  ;;  %v4543_v35 = vrot.slane %v4541_v52, 5  ;;  %v4539_v10 = vrot.slane %v4538_v34, 4 }
 0x19a   : > { %v1684_v43 = vadd.f32 %v1683_v27, %v9345_v48  ;;  %v6271_v40 = vpop.f32.mrf.mxu0  ;;  %6474 = vmatmul.mubr.msk.bf16.gmra.mxu0 %vm1237_vm10, %v5932_v42  ;;  %v8672_v60 = vadd.f32 %v8540_v61, %v1692_v13  ;;  %v4528_v61 = vor.u32 %v4527_v22, %v4524_v14  ;;  %v9349_v14 = vld [vmem:[#allocation18_spill] sm:$0xff] }
 0x19b   : > { %v6229_v17 = vpop.f32.mrf.mxu1  ;;  %6432 = vmatmul.mubr.msk.bf16.gmra.mxu1 %vm1237_vm10, %v8482_v3 }
 0x19c   : > { %v1705_v38 = vadd.f32 %v6229_v17, %v9346_v32  ;;  %6435 = vmatprep.mubr.msk.bf16.mxu1 %vm1237_vm10, %v5880_v39  ;;  %v2153_v63 = vpop.f32.mrf.mxu0  ;;  %v8687_v3 = vadd.f32 %v8551_v29, %v1684_v43  ;;  %v4529_v39 = vrot.slane %v4528_v61, 4 }
 0x19d   : > { %v1696_v51 = vpop.f32.mrf.mxu1 }
 0x19e   : > { %v1697_v25 = vadd.f32 %v1696_v51, %v9347_v37  ;;  %v6272_v15 = vpop.f32.mrf.mxu0  ;;  %v8691_v54 = vadd.f32 %v8563_v30, %v1705_v38  ;;  %v4534_v48 = vsel %vm6669_vm12, %v4529_v39, %v4533_v53  ;;  %v9352_v38 = vld [vmem:[#allocation25_spill] sm:$0xff]  ;;  %v9353_v51 = vld [vmem:[#allocation26_spill] sm:$0xff] }
 0x19f   : > { %v6230_v21 = vpop.f32.mrf.mxu1 }
 0x1a0   : > { %v1708_v42 = vadd.f32 %v6230_v21, %v9348_v11  ;;  %v2156_v26 = vpop.f32.mrf.mxu0  ;;  %v8695_v58 = vadd.f32 %v8592_v44, %v1697_v25  ;;  %v4544_v44 = vsel %vm6669_vm12, %v4539_v10, %v4543_v35 }
 0x1a1   : > { %v1699_v29 = vpop.f32.mrf.mxu1  ;;  %v5883_v32 = vcombine.low %v4534_v48, %v4544_v44 }
 0x1a2   : > { %v1700_v22 = vadd.f32 %v1699_v29, %v9349_v14  ;;  %v6311_v57 = vpop.f32.mrf.mxu0  ;;  %v8699_v13 = vadd.f32 %v8603_v49, %v1708_v42  ;;  %v9351_v49 = vld [vmem:[#allocation23_spill] sm:$0xff]  ;;  %v9355_v42 = vld [vmem:[#allocation29_spill] sm:$0xff]  ;;  %v9356_v14 = vld [vmem:[#allocation30_spill] sm:$0xff] }
 0x1a3   : > { %v6233_v30 = vpop.f32.mrf.mxu1  ;;  %6436 = vmatmul.mubr.msk.bf16.gmra.mxu1 %vm1237_vm10, %v5881_v62 }
 0x1a4   : > { %v1721_v27 = vadd.f32 %v6233_v30, %v9350_v24  ;;  %6439 = vmatprep.mubr.msk.bf16.mxu1 %vm1237_vm10, %v5882_v19  ;;  %v3125_v43 = vpop.f32.mrf.mxu0  ;;  %v8709_v0 = vadd.f32 %v8612_v59, %v1700_v22 }
 0x1a5   : > { %v1712_v17 = vpop.f32.mrf.mxu1 }
 0x1a6   : > { %v1713_v9 = vadd.f32 %v1712_v17, %v9351_v49  ;;  %v6312_v5 = vpop.f32.mrf.mxu0  ;;  %v8713_v55 = vadd.f32 %v8630_v18, %v1721_v27  ;;  %v9354_v18 = vld [vmem:[#allocation28_spill] sm:$0xff]  ;;  %v9357_v27 = vld [vmem:[#allocation31_spill] sm:$0xff] }
 0x1a7   : > { %v6234_v52 = vpop.f32.mrf.mxu1 }
 0x1a8   : > { %v1724_v61 = vadd.f32 %v6234_v52, %v9352_v38  ;;  %v3128_v34 = vpop.f32.mrf.mxu0  ;;  %v8717_v53 = vadd.f32 %v8647_v12, %v1713_v9 }
 0x1a9   : > { %v1715_v47 = vpop.f32.mrf.mxu1 }
 0x1aa   : > { %v1716_v37 = vadd.f32 %v1715_v47, %v9353_v51  ;;  %v6315_v59 = vpop.f32.mrf.mxu0  ;;  %v8721_v25 = vadd.f32 %v8655_v20, %v1724_v61 }
 0x1ab   : > { %v6237_v21 = vpop.f32.mrf.mxu1  ;;  %6440 = vmatmul.mubr.msk.bf16.gmra.mxu1 %vm1237_vm10, %v5883_v32 }
 0x1ac   : > { %v1737_v62 = vadd.f32 %v6237_v21, %v9354_v18  ;;  %v3141_v19 = vpop.f32.mrf.mxu0  ;;  %v8726_v35 = vadd.f32 %v8661_v7, %v1716_v37 }
 0x1ad   : > { %v1728_v11 = vpop.f32.mrf.mxu1 }
 0x1ae   : > { %v1729_v12 = vadd.f32 %v1728_v11, %v9355_v42  ;;  %v6316_v39 = vpop.f32.mrf.mxu0  ;;  %v8729_v10 = vadd.f32 %v6271_v40, %v1737_v62 }
 0x1af   : > { %v6238_v29 = vpop.f32.mrf.mxu1 }
 0x1b0   : > { %v1740_v22 = vadd.f32 %v6238_v29, %v9356_v14  ;;  %v3144_v20 = vpop.f32.mrf.mxu0  ;;  %v8732_v30 = vadd.f32 %v2153_v63, %v1729_v12 }
 0x1b1   : > { %v1731_v24 = vpop.f32.mrf.mxu1 }
 0x1b2   : > { %v1732_v48 = vadd.f32 %v1731_v24, %v9357_v27  ;;  %v6319_v44 = vpop.f32.mrf.mxu0  ;;  %v8735_v17 = vadd.f32 %v6272_v15, %v1740_v22 }
 0x1b3   : > { %v6277_v7 = vpop.f32.mrf.mxu1 }
 0x1b4   : > { %v2528_v49 = vadd.f32 %v6277_v7, %v8491_v8  ;;  %v3157_v9 = vpop.f32.mrf.mxu0  ;;  %v8738_v52 = vadd.f32 %v2156_v26, %v1732_v48 }
 0x1b5   : > { %v2399_v40 = vpop.f32.mrf.mxu1 }
 0x1b6   : > { %v2526_v32 = vadd.f32 %v2399_v40, %v8504_v45  ;;  %v6320_v38 = vpop.f32.mrf.mxu0  ;;  %v8741_v61 = vadd.f32 %v6311_v57, %v2528_v49  ;;  %v9358_v40 = vld [vmem:[#allocation4_spill] sm:$0xff] }
 0x1b7   : > { %v6278_v63 = vpop.f32.mrf.mxu1 }
 0x1b8   : > { %v2529_v47 = vadd.f32 %v6278_v63, %v8512_v23  ;;  %v3160_v51 = vpop.f32.mrf.mxu0  ;;  %v8744_v37 = vadd.f32 %v3125_v43, %v2526_v32 }
 0x1b9   : > { %v2402_v15 = vpop.f32.mrf.mxu1 }
 0x1ba   : > { %v2527_v21 = vadd.f32 %v2402_v15, %v8515_v36  ;;  %v6323_v18 = vpop.f32.mrf.mxu0  ;;  %v8747_v8 = vadd.f32 %v6312_v5, %v2529_v47  ;;  %v9359_v47 = vld [vmem:[#allocation3_spill] sm:$0xff] }
 0x1bb   : > { %v6281_v26 = vpop.f32.mrf.mxu1 }
 0x1bc   : > { %v2532_v62 = vadd.f32 %v6281_v26, %v8525_v50  ;;  %v3173_v11 = vpop.f32.mrf.mxu0  ;;  %v8750_v45 = vadd.f32 %v3128_v34, %v2527_v21 }
 0x1bd   : > { %v2415_v57 = vpop.f32.mrf.mxu1 }
 0x1be   : > { %v2530_v42 = vadd.f32 %v2415_v57, %v8528_v41  ;;  %v6324_v12 = vpop.f32.mrf.mxu0  ;;  %v8753_v23 = vadd.f32 %v6315_v59, %v2532_v62 }
 0x1bf   : > { %v6282_v43 = vpop.f32.mrf.mxu1 }
 0x1c0   : > { %v2533_v29 = vadd.f32 %v6282_v43, %v8531_v1  ;;  %v3176_v14 = vpop.f32.mrf.mxu0  ;;  %v8756_v36 = vadd.f32 %v3141_v19, %v2530_v42 }
 0x1c1   : > { %v2418_v5 = vpop.f32.mrf.mxu1 }
 0x1c2   : > { %v2531_v22 = vadd.f32 %v2418_v5, %v8537_v28  ;;  %v6327_v24 = vpop.f32.mrf.mxu0  ;;  %v8759_v50 = vadd.f32 %v6316_v39, %v2533_v29 }
 0x1c3   : > { %v6285_v34 = vpop.f32.mrf.mxu1 }
 0x1c4   : > { %v2536_v27 = vadd.f32 %v6285_v34, %v8547_v33  ;;  %v3189_v48 = vpop.f32.mrf.mxu0  ;;  %v8762_v41 = vadd.f32 %v3144_v20, %v2531_v22 }
 0x1c5   : > { %v2431_v59 = vpop.f32.mrf.mxu1 }
 0x1c6   : > { %v2534_v7 = vadd.f32 %v2431_v59, %v8557_v6  ;;  %v6328_v49 = vpop.f32.mrf.mxu0  ;;  %v8765_v1 = vadd.f32 %v6319_v44, %v2536_v27 }
 0x1c7   : > { %v6286_v19 = vpop.f32.mrf.mxu1 }
 0x1c8   : > { %v2537_v32 = vadd.f32 %v6286_v19, %v9358_v40  ;;  %v3192_v63 = vpop.f32.mrf.mxu0  ;;  %v8768_v28 = vadd.f32 %v3157_v9, %v2534_v7 }
 0x1c9   : > { %v2434_v39 = vpop.f32.mrf.mxu1 }
 0x1ca   : > { %v2535_v15 = vadd.f32 %v2434_v39, %v9359_v47  ;;  %v6331_v21 = vpop.f32.mrf.mxu0  ;;  %v8771_v33 = vadd.f32 %v6320_v38, %v2537_v32 }
 0x1cb   : > { %v6289_v20 = vpop.f32.mrf.mxu1 }
 0x1cc   : > { %v2540_v26 = vadd.f32 %v6289_v20, %v8608_v31  ;;  %v3205_v62 = vpop.f32.mrf.mxu0  ;;  %v8774_v6 = vadd.f32 %v3160_v51, %v2535_v15 }
 0x1cd   : > { %v2447_v44 = vpop.f32.mrf.mxu1 }
 0x1ce   : > { %v2538_v57 = vadd.f32 %v2447_v44, %v8620_v46  ;;  %v6332_v42 = vpop.f32.mrf.mxu0  ;;  %v8777_v43 = vadd.f32 %v6323_v18, %v2540_v26 }
 0x1cf   : > { %v6290_v9 = vpop.f32.mrf.mxu1 }
 0x1d0   : > { %v2541_v29 = vadd.f32 %v6290_v9, %v8634_v16  ;;  %v3208_v5 = vpop.f32.mrf.mxu0  ;;  %v8780_v22 = vadd.f32 %v3173_v11, %v2538_v57 }
 0x1d1   : > { %v2450_v38 = vpop.f32.mrf.mxu1 }
 0x1d2   : > { %v2539_v34 = vadd.f32 %v2450_v38, %v8652_v4  ;;  %v6335_v27 = vpop.f32.mrf.mxu0  ;;  %v8783_v31 = vadd.f32 %v6324_v12, %v2541_v29 }
 0x1d3   : > { %v6293_v51 = vpop.f32.mrf.mxu1 }
 0x1d4   : > { %v2544_v59 = vadd.f32 %v6293_v51, %v8658_v56  ;;  %v3221_v7 = vpop.f32.mrf.mxu0  ;;  %v8786_v46 = vadd.f32 %v3176_v14, %v2539_v34 }
 0x1d5   : > { %v2463_v18 = vpop.f32.mrf.mxu1 }
 0x1d6   : > { %v2542_v19 = vadd.f32 %v2463_v18, %v8664_v2  ;;  %v6336_v40 = vpop.f32.mrf.mxu0  ;;  %v8789_v16 = vadd.f32 %v6327_v24, %v2544_v59 }
 0x1d7   : > { %v6294_v11 = vpop.f32.mrf.mxu1 }
 0x1d8   : > { %v2545_v32 = vadd.f32 %v6294_v11, %v8672_v60  ;;  %v3224_v39 = vpop.f32.mrf.mxu0  ;;  %v8792_v4 = vadd.f32 %v3189_v48, %v2542_v19 }
 0x1d9   : > { %v2466_v12 = vpop.f32.mrf.mxu1 }
 0x1da   : > { %9360 = vst [vmem:[#allocation6_spill] sm:$0xff] %v8792_v4  ;;  %v2543_v47 = vadd.f32 %v2466_v12, %v8687_v3  ;;  %v6339_v15 = vpop.f32.mrf.mxu0  ;;  %v8795_v56 = vadd.f32 %v6328_v49, %v2545_v32 }
 0x1db   : > { %v6297_v14 = vpop.f32.mrf.mxu1 }
 0x1dc   : > { %9361 = vst [vmem:[#allocation8_spill] sm:$0xff] %v8795_v56  ;;  %v2548_v20 = vadd.f32 %v6297_v14, %v8691_v54  ;;  %v3237_v26 = vpop.f32.mrf.mxu0  ;;  %v8798_v2 = vadd.f32 %v3192_v63, %v2543_v47 }
 0x1dd   : > { %v2479_v24 = vpop.f32.mrf.mxu1 }
 0x1de   : > { %9362 = vst [vmem:[#allocation10_spill] sm:$0xff] %v8798_v2  ;;  %v2546_v44 = vadd.f32 %v2479_v24, %v8695_v58  ;;  %v6340_v57 = vpop.f32.mrf.mxu0  ;;  %v8801_v60 = vadd.f32 %v6331_v21, %v2548_v20 }
 0x1df   : > { %v6298_v48 = vpop.f32.mrf.mxu1 }
 0x1e0   : > { %9363 = vst [vmem:[#allocation12_spill] sm:$0xff] %v8801_v60  ;;  %v2549_v9 = vadd.f32 %v6298_v48, %v8699_v13  ;;  %v3240_v29 = vpop.f32.mrf.mxu0  ;;  %v8804_v3 = vadd.f32 %v3205_v62, %v2546_v44 }
 0x1e1   : > { %v2482_v49 = vpop.f32.mrf.mxu1 }
 0x1e2   : > { %9364 = vst [vmem:[#allocation15_spill] sm:$0xff] %v8804_v3  ;;  %v2547_v38 = vadd.f32 %v2482_v49, %v8709_v0  ;;  %v8807_v34 = vpop.f32.mrf.mxu0  ;;  %v8809_v54 = vadd.f32 %v6332_v42, %v2549_v9 }
 0x1e3   : > { %v6301_v63 = vpop.f32.mrf.mxu1 }
 0x1e4   : > { %9365 = vst [vmem:[#allocation17_spill] sm:$0xff] %v8809_v54  ;;  %v2552_v51 = vadd.f32 %v6301_v63, %v8713_v55  ;;  %v8812_v58 = vpop.f32.mrf.mxu0  ;;  %v8814_v21 = vadd.f32 %v3208_v5, %v2547_v38 }
 0x1e5   : > { %v2495_v59 = vpop.f32.mrf.mxu1 }
 0x1e6   : > { %9366 = vst [vmem:[#allocation33_spill] sm:$0xff] %v8814_v21  ;;  %v2550_v13 = vadd.f32 %v2495_v59, %v8717_v53  ;;  %v8817_v18 = vpop.f32.mrf.mxu0  ;;  %v8819_v62 = vadd.f32 %v6335_v27, %v2552_v51 }
 0x1e7   : > { %v6302_v19 = vpop.f32.mrf.mxu1 }
 0x1e8   : > { %9367 = vst [vmem:[#allocation27_spill] sm:$0xff] %v8819_v62  ;;  %v2553_v0 = vadd.f32 %v6302_v19, %v8721_v25  ;;  %v8822_v11 = vpop.f32.mrf.mxu0  ;;  %v8824_v42 = vadd.f32 %v3221_v7, %v2550_v13 }
 0x1e9   : > { %v2498_v32 = vpop.f32.mrf.mxu1 }
 0x1ea   : > { %9368 = vst [vmem:[#allocation19_spill] sm:$0xff] %v8824_v42  ;;  %v2551_v55 = vadd.f32 %v2498_v32, %v8726_v35  ;;  %v8827_v12 = vpop.f32.mrf.mxu0  ;;  %v8829_v5 = vadd.f32 %v6336_v40, %v2553_v0 }
 0x1eb   : > { %v6305_v47 = vpop.f32.mrf.mxu1 }
 0x1ec   : > { %9369 = vst [vmem:[#allocation32_spill] sm:$0xff] %v8829_v5  ;;  %v2556_v53 = vadd.f32 %v6305_v47, %v8729_v10  ;;  %v8832_v14 = vpop.f32.mrf.mxu0  ;;  %v8834_v27 = vadd.f32 %v3224_v39, %v2551_v55 }
 0x1ed   : > { %v2511_v20 = vpop.f32.mrf.mxu1 }
 0x1ee   : > { %9370 = vst [vmem:[#allocation21_spill] sm:$0xff] %v8834_v27  ;;  %v2554_v25 = vadd.f32 %v2511_v20, %v8732_v30  ;;  %v8837_v24 = vpop.f32.mrf.mxu0  ;;  %v8839_v7 = vadd.f32 %v6339_v15, %v2556_v53 }
 0x1ef   : > { %v6306_v44 = vpop.f32.mrf.mxu1 }
 0x1f0   : > { %9371 = vst [vmem:[#allocation22_spill] sm:$0xff] %v8839_v7  ;;  %v2557_v35 = vadd.f32 %v6306_v44, %v8735_v17  ;;  %v8842_v48 = vpop.f32.mrf.mxu0  ;;  %v8844_v40 = vadd.f32 %v3237_v26, %v2554_v25 }
 0x1f1   : > { %v2514_v9 = vpop.f32.mrf.mxu1 }
 0x1f2   : > { %9372 = vst [vmem:[#allocation24_spill] sm:$0xff] %v8844_v40  ;;  %v2555_v10 = vadd.f32 %v2514_v9, %v8738_v52  ;;  %v8847_v49 = vpop.f32.mrf.mxu0  ;;  %v8849_v39 = vadd.f32 %v6340_v57, %v2557_v35 }
 0x1f3   : > { %v6345_v38 = vpop.f32.mrf.mxu1 }
 0x1f4   : > { %9373 = vst [vmem:[#allocation7_spill] sm:$0xff] %v8849_v39  ;;  %v8851_v30 = vpop.f32.mrf.mxu0  ;;  %v8853_v63 = vadd.f32 %v3240_v29, %v2555_v10 }
 0x1f5   : > { %v3595_v15 = vpop.f32.mrf.mxu1 }
 0x1f6   : > { %9374 = vst [vmem:[#allocation5_spill] sm:$0xff] %v8853_v63  ;;  %v8855_v51 = vpop.f32.mrf.mxu0 }
 0x1f7   : > { %v6346_v17 = vpop.f32.mrf.mxu1 }
 0x1f8   : > { %v8857_v59 = vpop.f32.mrf.mxu0 }
 0x1f9   : > { %v8859_v26 = vpop.f32.mrf.mxu1 }
 0x1fa   : > { %v8861_v13 = vpop.f32.mrf.mxu0 }
 0x1fb   : > { %v8863_v52 = vpop.f32.mrf.mxu1 }
 0x1fc   : > { %v8865_v19 = vpop.f32.mrf.mxu0 }
 0x1fd   : > { %v8867_v57 = vpop.f32.mrf.mxu1 }
 0x1fe   : > { %v8869_v0 = vpop.f32.mrf.mxu0 }
 0x1ff   : > { %9375 = vst [vmem:[#allocation9_spill] sm:$0xff] %v8869_v0  ;;  %v8871_v29 = vpop.f32.mrf.mxu1 }
 0x200   : > { %v8873_v32 = vpop.f32.mrf.mxu0 }
 0x201   : > { %9376 = vst [vmem:[#allocation11_spill] sm:$0xff] %v8873_v32  ;;  %v8875_v55 = vpop.f32.mrf.mxu1 }
 0x202   : > { %v8877_v47 = vpop.f32.mrf.mxu0 }
 0x203   : > { %9377 = vst [vmem:[#allocation13_spill] sm:$0xff] %v8877_v47  ;;  %v8879_v53 = vpop.f32.mrf.mxu1 }
 0x204   : > { %v8881_v20 = vpop.f32.mrf.mxu0 }
 0x205   : > { %9378 = vst [vmem:[#allocation14_spill] sm:$0xff] %v8881_v20  ;;  %v8883_v25 = vpop.f32.mrf.mxu1 }
 0x206   : > { %v8885_v44 = vpop.f32.mrf.mxu0 }
 0x207   : > { %9379 = vst [vmem:[#allocation16_spill] sm:$0xff] %v8885_v44  ;;  %v8887_v35 = vpop.f32.mrf.mxu1 }
 0x208   : > { %v8889_v9 = vpop.f32.mrf.mxu0 }
 0x209   : > { %9380 = vst [vmem:[#allocation18_spill] sm:$0xff] %v8889_v9  ;;  %v8891_v10 = vpop.f32.mrf.mxu1 }
 0x20a   : > { %v8893_v63 = vpop.f32.mrf.mxu0 }
 0x20b   : > { %9381 = vst [vmem:[#allocation20_spill] sm:$0xff] %v8893_v63  ;;  %v8895_v39 = vpop.f32.mrf.mxu1 }
 0x20c   : > { %v8897_v40 = vpop.f32.mrf.mxu0 }
 0x20d   : > { %9382 = vst [vmem:[#allocation23_spill] sm:$0xff] %v8897_v40  ;;  %v8899_v7 = vpop.f32.mrf.mxu1 }
 0x20e   : > { %v8901_v27 = vpop.f32.mrf.mxu0 }
 0x20f   : > { %9383 = vst [vmem:[#allocation25_spill] sm:$0xff] %v8901_v27  ;;  %v8903_v5 = vpop.f32.mrf.mxu1 }
 0x210   : > { %v8905_v42 = vpop.f32.mrf.mxu0 }
 0x211   : > { %9384 = vst [vmem:[#allocation26_spill] sm:$0xff] %v8905_v42  ;;  %v8907_v62 = vpop.f32.mrf.mxu1 }
 0x212   : > { %v8909_v21 = vpop.f32.mrf.mxu0 }
 0x213   : > { %9385 = vst [vmem:[#allocation28_spill] sm:$0xff] %v8909_v21  ;;  %v8911_v9 = vpop.f32.mrf.mxu1 }
 0x214   : > { %9386 = vst [vmem:[#allocation29_spill] sm:$0xff] %v8911_v9  ;;  %v8913_v54 = vpop.f32.mrf.mxu0 }
 0x215   : > { %9387 = vst [vmem:[#allocation30_spill] sm:$0xff] %v8913_v54  ;;  %v8915_v63 = vpop.f32.mrf.mxu1 }
 0x216   : > { %9388 = vst [vmem:[#allocation31_spill] sm:$0xff] %v8915_v63  ;;  %v8917_v3 = vpop.f32.mrf.mxu0 }
 0x217   : > { %9389 = vst [vmem:[#allocation4_spill] sm:$0xff] %v8917_v3  ;;  %v8919_v40 = vpop.f32.mrf.mxu1 }
 0x218   : > { %9390 = vst [vmem:[#allocation3_spill] sm:$0xff] %v8919_v40  ;;  %v8921_v44 = vpop.f32.mrf.mxu0 }
 0x219   : > { %9391 = vst [vmem:[#allocation34_spill] sm:$0xff] %v8921_v44  ;;  %v8923_v27 = vpop.f32.mrf.mxu1 }
 0x21a   : > { %9392 = vst [vmem:[#allocation35_spill] sm:$0xff] %v8923_v27  ;;  %v8925_v60 = vpop.f32.mrf.mxu0 }
 0x21b   : > { %9393 = vst [vmem:[#allocation36_spill] sm:$0xff] %v8925_v60  ;;  %v8927_v42 = vpop.f32.mrf.mxu1 }
 0x21c   : > { %9394 = vst [vmem:[#allocation37_spill] sm:$0xff] %v8927_v42  ;;  %v8929_v2 = vpop.f32.mrf.mxu0 }
 0x21d   : > { %9395 = vst [vmem:[#allocation38_spill] sm:$0xff] %v8929_v2  ;;  %v8931_v21 = vpop.f32.mrf.mxu1 }
 0x21e   : > { %9396 = vst [vmem:[#allocation39_spill] sm:$0xff] %v8931_v21  ;;  %v8933_v20 = vpop.f32.mrf.mxu0 }
 0x21f   : > { %9397 = vst [vmem:[#allocation40_spill] sm:$0xff] %v8933_v20  ;;  %v8935_v54 = vpop.f32.mrf.mxu1 }
 0x220   : > { %9398 = vst [vmem:[#allocation41_spill] sm:$0xff] %v8935_v54  ;;  %v8937_v47 = vpop.f32.mrf.mxu0 }
 0x221   : > { %9399 = vst [vmem:[#allocation42_spill] sm:$0xff] %v8937_v47  ;;  %v8939_v3 = vpop.f32.mrf.mxu1 }
 0x222   : > { %9400 = vst [vmem:[#allocation43_spill] sm:$0xff] %v8939_v3  ;;  %v6447_v40 = vpop.f32.mrf.mxu0  ;;  %v3724_v3 = vadd.f32 %v6345_v38, %v8741_v61  ;;  %v3723_v61 = vadd.f32 %v8859_v26, %v8750_v45  ;;  %v3728_v45 = vadd.f32 %v8863_v52, %v8753_v23 }
 0x223   : > { %v8941_v44 = vpop.f32.mrf.mxu1 }
 0x224   : > { %9401 = vst [vmem:[#allocation44_spill] sm:$0xff] %v8941_v44  ;;  %v5150_v27 = vpop.f32.mrf.mxu0 }
 0x225   : > { %v8943_v56 = vpop.f32.mrf.mxu1 }
 0x226   : > { %9402 = vst [vmem:[#allocation45_spill] sm:$0xff] %v8943_v56  ;;  %v6448_v60 = vpop.f32.mrf.mxu0  ;;  %v3722_v56 = vadd.f32 %v3595_v15, %v8744_v37  ;;  %v8977_v37 = vld [vmem:[%s9223_s2] ss:$0 sm:$0xff] }
 0x227   : > { %v8945_v42 = vpop.f32.mrf.mxu1 }
 0x228   : > { %9403 = vst [vmem:[#allocation46_spill] sm:$0xff] %v8945_v42  ;;  %v5153_v2 = vpop.f32.mrf.mxu0 }
 0x229   : > { %v8947_v32 = vpop.f32.mrf.mxu1 }
 0x22a   : > { %9404 = vst [vmem:[#allocation47_spill] sm:$0xff] %v8947_v32  ;;  %v6451_v21 = vpop.f32.mrf.mxu0  ;;  %v3725_v32 = vadd.f32 %v6346_v17, %v8747_v8 }
 0x22b   : > { %v8949_v20 = vpop.f32.mrf.mxu1 }
 0x22c   : > { %9405 = vst [vmem:[#allocation48_spill] sm:$0xff] %v8949_v20  ;;  %v8951_v54 = vpop.f32.mrf.mxu0  ;;  %v4083_v20 = vadd.f32 %v8807_v34, %v3724_v3  ;;  %v4084_v3 = vadd.f32 %v8817_v18, %v3725_v32  ;;  %v3729_v18 = vadd.f32 %v8871_v29, %v8759_v50  ;;  %v4087_v50 = vadd.f32 %v8827_v12, %v3728_v45 }
 0x22d   : > { %v8953_v47 = vpop.f32.mrf.mxu1 }
 0x22e   : > { %9406 = vst [vmem:[#allocation49_spill] sm:$0xff] %v8953_v47  ;;  %v8956_v0 = vpop.f32.mrf.mxu0  ;;  %v4081_v47 = vadd.f32 %v8812_v58, %v3722_v56  ;;  %v3726_v56 = vadd.f32 %v8867_v57, %v8756_v36  ;;  %v3727_v36 = vadd.f32 %v8875_v55, %v8762_v41  ;;  %v3732_v55 = vadd.f32 %v8879_v53, %v8765_v1 }
 0x22f   : > { %v8958_v44 = vpop.f32.mrf.mxu1 }
 0x230   : > { %9407 = vst [vmem:[#allocation50_spill] sm:$0xff] %v8958_v44  ;;  %v8961_v63 = vpop.f32.mrf.mxu0 }
 0x231   : > { %v8963_v42 = vpop.f32.mrf.mxu1 }
 0x232   : > { %9408 = vst [vmem:[#allocation51_spill] sm:$0xff] %v8963_v42  ;;  %v8967_v4 = vpop.f32.mrf.mxu0  ;;  %v4082_v42 = vadd.f32 %v8822_v11, %v3723_v61 }
 0x233   : > { %v6413_v9 = vpop.f32.mrf.mxu1 }
 0x234   : > { %v4809_v38 = vadd.f32 %v6413_v9, %v4083_v20  ;;  %v8972_v44 = vpop.f32.mrf.mxu0 }
 0x235   : > { %v4680_v15 = vpop.f32.mrf.mxu1 }
 0x236   : > { %v5279_v8 = vadd.f32 %v6447_v40, %v4809_v38  ;;  %v4807_v17 = vadd.f32 %v4680_v15, %v4081_v47  ;;  %v8980_v34 = vpop.f32.mrf.mxu0 }
 0x237   : > { %v6414_v58 = vpop.f32.mrf.mxu1 }
 0x238   : > { %v5318_v26 = vadd.f32 %v8977_v37, %v5279_v8  ;;  %v5277_v20 = vadd.f32 %v5150_v27, %v4807_v17  ;;  %v4810_v9 = vadd.f32 %v6414_v58, %v4084_v3  ;;  %v8988_v40 = vpop.f32.mrf.mxu0  ;;  %v4085_v27 = vadd.f32 %v8832_v14, %v3726_v56 }
 0x239   : > { %v4683_v32 = vpop.f32.mrf.mxu1  ;;  %v4088_v17 = vadd.f32 %v8837_v24, %v3729_v18  ;;  %v3730_v18 = vadd.f32 %v8883_v25, %v8768_v28  ;;  %v3731_v28 = vadd.f32 %v8891_v10, %v8774_v6 }
 0x23a   : > { %v5350_v47 = vmax.f32 %v5318_v26, 0.0  ;;  %v5316_v23 = vadd.f32 %v8977_v37, %v5277_v20  ;;  %v5280_v52 = vadd.f32 %v6448_v60, %v4810_v9  ;;  %v4808_v38 = vadd.f32 %v4683_v32, %v4082_v42  ;;  %v8993_v15 = vpop.f32.mrf.mxu0 }
 0x23b   : > { %v6417_v11 = vpop.f32.mrf.mxu1  ;;  %v4086_v26 = vadd.f32 %v8842_v48, %v3727_v36  ;;  %v3733_v32 = vadd.f32 %v8887_v35, %v8771_v33  ;;  %v4091_v48 = vadd.f32 %v8847_v49, %v3732_v55  ;;  %v4089_v6 = vadd.f32 %v8851_v30, %v3730_v18 }
 0x23c   : > { %v5988_v60 = vpack.c.bf16 %v5350_v47, %v5350_v47  ;;  %v5348_v42 = vmax.f32 %v5316_v23, 0.0  ;;  %v5319_v57 = vadd.f32 %v8977_v37, %v5280_v52  ;;  %v5278_v29 = vadd.f32 %v5153_v2, %v4808_v38  ;;  %v9007_v41 = vpop.f32.mrf.mxu0 }
 0x23d   : > { %v4813_v61 = vadd.f32 %v6417_v11, %v4087_v50  ;;  %v4696_v8 = vpop.f32.mrf.mxu1  ;;  %v4090_v30 = vadd.f32 %v8857_v59, %v3731_v28  ;;  %v9412_v28 = vld [vmem:[#allocation9_spill] sm:$0xff] }
 0x23e   : > { %5511 = vst.msk [vmem:[%s9002_s15 + $0x8] sm:$0xf] %vm5508_vm0, %v5988_v60  ;;  %v5986_v12 = vpack.c.bf16 %v5348_v42, %v5348_v42  ;;  %v5351_v3 = vmax.f32 %v5319_v57, 0.0  ;;  %v5317_v14 = vadd.f32 %v8977_v37, %v5278_v29  ;;  %v4811_v45 = vadd.f32 %v4696_v8, %v4085_v27  ;;  %v9015_v56 = vpop.f32.mrf.mxu0 }
 0x23f   : > { %v5283_v2 = vadd.f32 %v6451_v21, %v4813_v61  ;;  %v6418_v58 = vpop.f32.mrf.mxu1  ;;  %v4092_v42 = vadd.f32 %v8855_v51, %v3733_v32  ;;  %v3734_v8 = vadd.f32 %v8899_v7, %v8780_v22 }
 0x240   : > { %5509 = vst.msk [vmem:[%s9002_s15] sm:$0xf] %vm5508_vm0, %v5986_v12  ;;  %v5989_v1 = vpack.c.bf16 %v5351_v3, %v5351_v3  ;;  %v5349_v53 = vmax.f32 %v5317_v14, 0.0  ;;  %v5281_v24 = vadd.f32 %v8951_v54, %v4811_v45  ;;  %v4814_v20 = vadd.f32 %v6418_v58, %v4088_v17  ;;  %v9021_v9 = vpop.f32.mrf.mxu0 }
 0x241   : > { %v5322_v21 = vadd.f32 %v8977_v37, %v5283_v2  ;;  %v4699_v47 = vpop.f32.mrf.mxu1 }
 0x242   : > { %5512 = vst.msk [vmem:[%s9002_s15 + $0xc] sm:$0xf] %vm5508_vm0, %v5989_v1  ;;  %v5987_v23 = vpack.c.bf16 %v5349_v53, %v5349_v53  ;;  %v5320_v54 = vadd.f32 %v8977_v37, %v5281_v24  ;;  %v5284_v52 = vadd.f32 %v8956_v0, %v4814_v20  ;;  %v4812_v38 = vadd.f32 %v4699_v47, %v4086_v26  ;;  %v9033_v36 = vpop.f32.mrf.mxu0 }
 0x243   : > { %v5354_v25 = vmax.f32 %v5322_v21, 0.0  ;;  %v6421_v33 = vpop.f32.mrf.mxu1  ;;  %v3736_v0 = vadd.f32 %v8895_v39, %v8777_v43  ;;  %v3737_v1 = vadd.f32 %v8903_v5, %v8783_v31  ;;  %v3735_v53 = vadd.f32 %v8907_v62, %v8786_v46  ;;  %v9409_v31 = vld [vmem:[#allocation29_spill] sm:$0xff] }
 0x244   : > { %5510 = vst.msk [vmem:[%s9002_s15 + $0x4] sm:$0xf] %vm5508_vm0, %v5987_v23  ;;  %v5352_v35 = vmax.f32 %v5320_v54, 0.0  ;;  %v5323_v49 = vadd.f32 %v8977_v37, %v5284_v52  ;;  %v5282_v50 = vadd.f32 %v8961_v63, %v4812_v38  ;;  %v4817_v11 = vadd.f32 %v6421_v33, %v4091_v48  ;;  %v9041_v27 = vpop.f32.mrf.mxu0  ;;  %v9410_v54 = vld [vmem:[#allocation6_spill] sm:$0xff]  ;;  %v9411_v52 = vld [vmem:[#allocation31_spill] sm:$0xff] }
 0x245   : > { %v5992_v60 = vpack.c.bf16 %v5354_v25, %v5354_v25  ;;  %v4712_v10 = vpop.f32.mrf.mxu1  ;;  %v4095_v22 = vadd.f32 %v8861_v13, %v3736_v0  ;;  %v4093_v13 = vadd.f32 %v8865_v19, %v3734_v8  ;;  %v3740_v5 = vadd.f32 %v9409_v31, %v8789_v16  ;;  %v9413_v16 = vld [vmem:[#allocation11_spill] sm:$0xff] }
 0x246   : > { %v5990_v57 = vpack.c.bf16 %v5352_v35, %v5352_v35  ;;  %v5355_v29 = vmax.f32 %v5323_v49, 0.0  ;;  %v5321_v55 = vadd.f32 %v8977_v37, %v5282_v50  ;;  %v5287_v61 = vadd.f32 %v8967_v4, %v4817_v11  ;;  %v9049_v63 = vpop.f32.mrf.mxu0  ;;  %v9424_v31 = vld [vmem:[#allocation39_spill] sm:$0xff] }
 0x247   : > { %5515 = vst.msk [vmem:[%s9002_s15 + $0x18] sm:$0xf] %vm5508_vm0, %v5992_v60  ;;  %v4815_v43 = vadd.f32 %v4712_v10, %v4089_v6  ;;  %v6422_v39 = vpop.f32.mrf.mxu1  ;;  %v4096_v25 = vadd.f32 %v9412_v28, %v3737_v1  ;;  %v4094_v35 = vadd.f32 %v9413_v16, %v3735_v53  ;;  %v9414_v60 = vld [vmem:[#allocation8_spill] sm:$0xff]  ;;  %v9415_v6 = vld [vmem:[#allocation3_spill] sm:$0xff]  ;;  %v9421_v1 = vld [vmem:[#allocation37_spill] sm:$0xff] }
 0x248   : > { %5513 = vst.msk [vmem:[%s9002_s15 + $0x10] sm:$0xf] %vm5508_vm0, %v5990_v57  ;;  %v5993_v51 = vpack.c.bf16 %v5355_v29, %v5355_v29  ;;  %v5353_v17 = vmax.f32 %v5321_v55, 0.0  ;;  %v5326_v12 = vadd.f32 %v8977_v37, %v5287_v61  ;;  %v4818_v3 = vadd.f32 %v6422_v39, %v4092_v42  ;;  %v9059_v4 = vpop.f32.mrf.mxu0  ;;  %v9416_v29 = vld [vmem:[#allocation13_spill] sm:$0xff]  ;;  %v9427_v28 = vld [vmem:[#allocation18_spill] sm:$0xff]  ;;  %v9428_v16 = vld [vmem:[#allocation20_spill] sm:$0xff] }
 0x249   : > { %v5285_v14 = vadd.f32 %v8972_v44, %v4815_v43  ;;  %v4715_v45 = vpop.f32.mrf.mxu1  ;;  %v3741_v10 = vadd.f32 %v9415_v6, %v9414_v60  ;;  %v4099_v55 = vadd.f32 %v9416_v29, %v3740_v5  ;;  %v9429_v60 = vld [vmem:[#allocation33_spill] sm:$0xff] }
 0x24a   : > { %5516 = vst.msk [vmem:[%s9002_s15 + $0x1c] sm:$0xf] %vm5508_vm0, %v5993_v51  ;;  %v5991_v7 = vpack.c.bf16 %v5353_v17, %v5353_v17  ;;  %v5358_v2 = vmax.f32 %v5326_v12, 0.0  ;;  %v5288_v59 = vadd.f32 %v8980_v34, %v4818_v3  ;;  %v4816_v58 = vadd.f32 %v4715_v45, %v4090_v30  ;;  %v9066_v26 = vpop.f32.mrf.mxu0  ;;  %v9417_v51 = vld [vmem:[#allocation14_spill] sm:$0xff] }
 0x24b   : > { %v5324_v44 = vadd.f32 %v8977_v37, %v5285_v14  ;;  %v6425_v24 = vpop.f32.mrf.mxu1 }
 0x24c   : > { %5514 = vst.msk [vmem:[%s9002_s15 + $0x14] sm:$0xf] %vm5508_vm0, %v5991_v7  ;;  %v5996_v20 = vpack.c.bf16 %v5358_v2, %v5358_v2  ;;  %v5327_v34 = vadd.f32 %v8977_v37, %v5288_v59  ;;  %v5286_v18 = vadd.f32 %v8988_v40, %v4816_v58  ;;  %v4821_v32 = vadd.f32 %v6425_v24, %v4095_v22  ;;  %v9078_v21 = vpop.f32.mrf.mxu0  ;;  %v9418_v7 = vld [vmem:[#allocation10_spill] sm:$0xff]  ;;  %v9419_v2 = vld [vmem:[#allocation35_spill] sm:$0xff]  ;;  %v9420_v58 = vld [vmem:[#allocation12_spill] sm:$0xff] }
 0x24d   : > { %v5356_v47 = vmax.f32 %v5324_v44, 0.0  ;;  %v4728_v46 = vpop.f32.mrf.mxu1  ;;  %v3738_v40 = vadd.f32 %v9411_v52, %v9410_v54  ;;  %v3739_v59 = vadd.f32 %v9419_v2, %v9418_v7  ;;  %v3744_v53 = vadd.f32 %v9421_v1, %v9420_v58  ;;  %v9422_v24 = vld [vmem:[#allocation16_spill] sm:$0xff]  ;;  %v9425_v52 = vld [vmem:[#allocation17_spill] sm:$0xff] }
 0x24e   : > { %5519 = vst.msk [vmem:[%s9002_s15 + $0x28] sm:$0xf] %vm5508_vm0, %v5996_v20  ;;  %v5359_v62 = vmax.f32 %v5327_v34, 0.0  ;;  %v5325_v19 = vadd.f32 %v8977_v37, %v5286_v18  ;;  %v5291_v48 = vadd.f32 %v8993_v15, %v4821_v32  ;;  %v4819_v23 = vadd.f32 %v4728_v46, %v4093_v13  ;;  %v9090_v49 = vpop.f32.mrf.mxu0  ;;  %v9423_v32 = vld [vmem:[#allocation15_spill] sm:$0xff]  ;;  %v9434_v7 = vld [vmem:[#allocation44_spill] sm:$0xff]  ;;  %v9436_v58 = vld [vmem:[#allocation45_spill] sm:$0xff] }
 0x24f   : > { %v5994_v38 = vpack.c.bf16 %v5356_v47, %v5356_v47  ;;  %v6426_v33 = vpop.f32.mrf.mxu1  ;;  %v4097_v17 = vadd.f32 %v9417_v51, %v3738_v40  ;;  %v4100_v13 = vadd.f32 %v9422_v24, %v3741_v10  ;;  %v3742_v5 = vadd.f32 %v9424_v31, %v9423_v32  ;;  %v9426_v40 = vld [vmem:[#allocation41_spill] sm:$0xff] }
 0x250   : > { %v5997_v50 = vpack.c.bf16 %v5359_v62, %v5359_v62  ;;  %v5357_v11 = vmax.f32 %v5325_v19, 0.0  ;;  %v5330_v0 = vadd.f32 %v8977_v37, %v5291_v48  ;;  %v5289_v15 = vadd.f32 %v9007_v41, %v4819_v23  ;;  %v9104_v12 = vpop.f32.mrf.mxu0 }
 0x251   : > { %5517 = vst.msk [vmem:[%s9002_s15 + $0x20] sm:$0xf] %vm5508_vm0, %v5994_v38  ;;  %v4822_v42 = vadd.f32 %v6426_v33, %v4096_v25  ;;  %v4731_v57 = vpop.f32.mrf.mxu1  ;;  %v4098_v25 = vadd.f32 %v9427_v28, %v3739_v59  ;;  %v9435_v59 = vld [vmem:[#allocation19_spill] sm:$0xff]  ;;  %v9443_v28 = vld [vmem:[#allocation30_spill] sm:$0xff] }
 0x252   : > { %5520 = vst.msk [vmem:[%s9002_s15 + $0x2c] sm:$0xf] %vm5508_vm0, %v5997_v50  ;;  %v5995_v61 = vpack.c.bf16 %v5357_v11, %v5357_v11  ;;  %v5362_v8 = vmax.f32 %v5330_v0, 0.0  ;;  %v5328_v43 = vadd.f32 %v8977_v37, %v5289_v15  ;;  %v4820_v39 = vadd.f32 %v4731_v57, %v4094_v35  ;;  %v9121_v62 = vpop.f32.mrf.mxu0  ;;  %v9431_v57 = vld [vmem:[#allocation23_spill] sm:$0xff] }
 0x253   : > { %v5292_v30 = vadd.f32 %v9015_v56, %v4822_v42  ;;  %v6429_v41 = vpop.f32.mrf.mxu1  ;;  %v4103_v35 = vadd.f32 %v9428_v16, %v3744_v53  ;;  %v4101_v29 = vadd.f32 %v9431_v57, %v3742_v5  ;;  %v3746_v1 = vadd.f32 %v9436_v58, %v9435_v59  ;;  %v9452_v58 = vld [vmem:[#allocation36_spill] sm:$0xff] }
 0x254   : > { %5518 = vst.msk [vmem:[%s9002_s15 + $0x24] sm:$0xf] %vm5508_vm0, %v5995_v61  ;;  %v6000_v3 = vpack.c.bf16 %v5362_v8, %v5362_v8  ;;  %v5360_v14 = vmax.f32 %v5328_v43, 0.0  ;;  %v5290_v45 = vadd.f32 %v9021_v9, %v4820_v39  ;;  %v4825_v22 = vadd.f32 %v6429_v41, %v4099_v55  ;;  %v5246_v55 = vpop.f32.mrf.mxu0  ;;  %v9432_v41 = vld [vmem:[#allocation25_spill] sm:$0xff] }
 0x255   : > { %v5331_v56 = vadd.f32 %v8977_v37, %v5292_v30  ;;  %v4744_v44 = vpop.f32.mrf.mxu1 }
 0x256   : > { %5523 = vst.msk [vmem:[%s9002_s15 + $0x38] sm:$0xf] %vm5508_vm0, %v6000_v3  ;;  %v5998_v20 = vpack.c.bf16 %v5360_v14, %v5360_v14  ;;  %v5329_v34 = vadd.f32 %v8977_v37, %v5290_v45  ;;  %v5295_v9 = vadd.f32 %v9033_v36, %v4825_v22  ;;  %v4823_v18 = vadd.f32 %v4744_v44, %v4097_v17  ;;  %v9433_v22 = vld [vmem:[#allocation27_spill] sm:$0xff]  ;;  %v6472_v24 = vpop.f32.mrf.mxu0 }
 0x257   : > { %v5363_v47 = vmax.f32 %v5331_v56, 0.0  ;;  %v6430_v46 = vpop.f32.mrf.mxu1  ;;  %v3745_v36 = vadd.f32 %v9426_v40, %v9425_v52  ;;  %v3748_v2 = vadd.f32 %v9434_v7, %v9433_v22  ;;  %v9437_v56 = vld [vmem:[#allocation26_spill] sm:$0xff]  ;;  %v9442_v40 = vld [vmem:[#allocation28_spill] sm:$0xff]  ;;  %v9450_v22 = vld [vmem:[#allocation7_spill] sm:$0xff] }
 0x258   : > { %5521 = vst.msk [vmem:[%s9002_s15 + $0x30] sm:$0xf] %vm5508_vm0, %v5998_v20  ;;  %v5361_v19 = vmax.f32 %v5329_v34, 0.0  ;;  %v5334_v48 = vadd.f32 %v8977_v37, %v5295_v9  ;;  %v5293_v23 = vadd.f32 %v9041_v27, %v4823_v18  ;;  %v4826_v54 = vadd.f32 %v6430_v46, %v4100_v13  ;;  %v9430_v27 = vld [vmem:[#allocation43_spill] sm:$0xff]  ;;  %v9438_v9 = vld [vmem:[#allocation32_spill] sm:$0xff]  ;;  %v9439_v18 = vld [vmem:[#allocation46_spill] sm:$0xff] }
 0x259   : > { %v6001_v38 = vpack.c.bf16 %v5363_v47, %v5363_v47  ;;  %v4747_v33 = vpop.f32.mrf.mxu1  ;;  %v3743_v6 = vadd.f32 %v9430_v27, %v9429_v60  ;;  %v4104_v51 = vadd.f32 %v9432_v41, %v3745_v36  ;;  %v3749_v32 = vadd.f32 %v9439_v18, %v9438_v9  ;;  %v9451_v7 = vld [vmem:[#allocation50_spill] sm:$0xff] }
 0x25a   : > { %v5999_v50 = vpack.c.bf16 %v5361_v19, %v5361_v19  ;;  %v5366_v11 = vmax.f32 %v5334_v48, 0.0  ;;  %v5332_v0 = vadd.f32 %v8977_v37, %v5293_v23  ;;  %v5296_v15 = vadd.f32 %v9049_v63, %v4826_v54  ;;  %v9440_v23 = vld [vmem:[#allocation21_spill] sm:$0xff]  ;;  %v9441_v54 = vld [vmem:[#allocation47_spill] sm:$0xff] }
 0x25b   : > { %5524 = vst.msk [vmem:[%s9002_s15 + $0x3c] sm:$0xf] %vm5508_vm0, %v6001_v38  ;;  %v4824_v10 = vadd.f32 %v4747_v33, %v4098_v25  ;;  %v6433_v42 = vpop.f32.mrf.mxu1  ;;  %v4102_v44 = vadd.f32 %v9437_v56, %v3743_v6  ;;  %v3747_v52 = vadd.f32 %v9441_v54, %v9440_v23  ;;  %v4107_v36 = vadd.f32 %v9442_v40, %v3748_v2  ;;  %v5249_v33 = vpop.f32.mrf.mxu0  ;;  %v9446_v6 = vld [vmem:[#allocation4_spill] sm:$0xff] }
 0x25c   : > { %5522 = vst.msk [vmem:[%s9002_s15 + $0x34] sm:$0xf] %vm5508_vm0, %v5999_v50  ;;  %v6004_v61 = vpack.c.bf16 %v5366_v11, %v5366_v11  ;;  %v5364_v8 = vmax.f32 %v5332_v0, 0.0  ;;  %v5335_v43 = vadd.f32 %v8977_v37, %v5296_v15  ;;  %v4829_v39 = vadd.f32 %v6433_v42, %v4103_v35  ;;  %v9445_v0 = vld [vmem:[#allocation48_spill] sm:$0xff] }
 0x25d   : > { %v5294_v63 = vadd.f32 %v9059_v4, %v4824_v10  ;;  %v4760_v30 = vpop.f32.mrf.mxu1  ;;  %v4105_v25 = vadd.f32 %v9443_v28, %v3746_v1  ;;  %v4108_v10 = vadd.f32 %v9446_v6, %v3749_v32  ;;  %v3753_v2 = vadd.f32 %v9451_v7, %v9450_v22 }
 0x25e   : > { %5527 = vst.msk [vmem:[%s9002_s15 + $0x48] sm:$0xf] %vm5508_vm0, %v6004_v61  ;;  %v6002_v17 = vpack.c.bf16 %v5364_v8, %v5364_v8  ;;  %v5367_v3 = vmax.f32 %v5335_v43, 0.0  ;;  %v5299_v14 = vadd.f32 %v9066_v26, %v4829_v39  ;;  %v4827_v45 = vadd.f32 %v4760_v30, %v4101_v29  ;;  %v9447_v43 = vld [vmem:[#allocation34_spill] sm:$0xff] }
 0x25f   : > { %v5333_v53 = vadd.f32 %v8977_v37, %v5294_v63  ;;  %v6434_v4 = vpop.f32.mrf.mxu1  ;;  %v4106_v39 = vadd.f32 %v9447_v43, %v3747_v52  ;;  %v6475_v63 = vpop.f32.mrf.mxu0 }
 0x260   : > { %5525 = vst.msk [vmem:[%s9002_s15 + $0x40] sm:$0xf] %vm5508_vm0, %v6002_v17  ;;  %v6005_v13 = vpack.c.bf16 %v5367_v3, %v5367_v3  ;;  %v5338_v20 = vadd.f32 %v8977_v37, %v5299_v14  ;;  %v5297_v26 = vadd.f32 %v9078_v21, %v4827_v45  ;;  %v4830_v34 = vadd.f32 %v6434_v4, %v4104_v51  ;;  %v9448_v3 = vld [vmem:[#allocation24_spill] sm:$0xff]  ;;  %v9449_v14 = vld [vmem:[#allocation49_spill] sm:$0xff] }
 0x261   : > { %v5365_v31 = vmax.f32 %v5333_v53, 0.0  ;;  %v4763_v5 = vpop.f32.mrf.mxu1  ;;  %v3750_v45 = vadd.f32 %v9449_v14, %v9448_v3  ;;  %v5262_v9 = vpop.f32.mrf.mxu0 }
 0x262   : > { %5528 = vst.msk [vmem:[%s9002_s15 + $0x4c] sm:$0xf] %vm5508_vm0, %v6005_v13  ;;  %v5370_v47 = vmax.f32 %v5338_v20, 0.0  ;;  %v5336_v46 = vadd.f32 %v8977_v37, %v5297_v26  ;;  %v5300_v19 = vadd.f32 %v9090_v49, %v4830_v34  ;;  %v4828_v48 = vadd.f32 %v4763_v5, %v4102_v44  ;;  %v9444_v49 = vld [vmem:[#allocation22_spill] sm:$0xff]  ;;  %v9453_v44 = vld [vmem:[#allocation5_spill] sm:$0xff]  ;;  %v9454_v13 = vld [vmem:[#allocation51_spill] sm:$0xff] }
 0x263   : > { %v6003_v21 = vpack.c.bf16 %v5365_v31, %v5365_v31  ;;  %v6437_v38 = vpop.f32.mrf.mxu1  ;;  %v3752_v15 = vadd.f32 %v9445_v0, %v9444_v49  ;;  %v3751_v20 = vadd.f32 %v9454_v13, %v9453_v44 }
 0x264   : > { %v6008_v16 = vpack.c.bf16 %v5370_v47, %v5370_v47  ;;  %v5368_v35 = vmax.f32 %v5336_v46, 0.0  ;;  %v5339_v50 = vadd.f32 %v8977_v37, %v5300_v19  ;;  %v5298_v11 = vadd.f32 %v9104_v12, %v4828_v48  ;;  %v9455_v46 = vld [vmem:[#allocation38_spill] sm:$0xff]  ;;  %v9456_v48 = vld [vmem:[#allocation40_spill] sm:$0xff] }
 0x265   : > { %5526 = vst.msk [vmem:[%s9002_s15 + $0x44] sm:$0xf] %vm5508_vm0, %v6003_v21  ;;  %v4833_v60 = vadd.f32 %v6437_v38, %v4107_v36  ;;  %v4776_v27 = vpop.f32.mrf.mxu1  ;;  %v4111_v1 = vadd.f32 %v9452_v58, %v3752_v15  ;;  %v4109_v19 = vadd.f32 %v9455_v46, %v3750_v45  ;;  %v4112_v23 = vadd.f32 %v9456_v48, %v3753_v2  ;;  %v6476_v38 = vpop.f32.mrf.mxu0 }
 0x266   : > { %5531 = vst.msk [vmem:[%s9002_s15 + $0x58] sm:$0xf] %vm5508_vm0, %v6008_v16  ;;  %v6006_v42 = vpack.c.bf16 %v5368_v35, %v5368_v35  ;;  %v5371_v57 = vmax.f32 %v5339_v50, 0.0  ;;  %v5337_v29 = vadd.f32 %v8977_v37, %v5298_v11  ;;  %v4831_v61 = vadd.f32 %v4776_v27, %v4105_v25  ;;  %v9457_v25 = vld [vmem:[#allocation42_spill] sm:$0xff] }
 0x267   : > { %v5303_v8 = vadd.f32 %v9121_v62, %v4833_v60  ;;  %v6438_v12 = vpop.f32.mrf.mxu1 }
 0x268   : > { %5529 = vst.msk [vmem:[%s9002_s15 + $0x50] sm:$0xf] %vm5508_vm0, %v6006_v42  ;;  %v6009_v30 = vpack.c.bf16 %v5371_v57, %v5371_v57  ;;  %v5369_v41 = vmax.f32 %v5337_v29, 0.0  ;;  %v5301_v51 = vadd.f32 %v5246_v55, %v4831_v61  ;;  %v4834_v17 = vadd.f32 %v6438_v12, %v4108_v10  ;;  %v5265_v42 = vpop.f32.mrf.mxu0 }
 0x269   : > { %v5342_v59 = vadd.f32 %v8977_v37, %v5303_v8  ;;  %v4779_v62 = vpop.f32.mrf.mxu1 }
 0x26a   : > { %5532 = vst.msk [vmem:[%s9002_s15 + $0x5c] sm:$0xf] %vm5508_vm0, %v6009_v30  ;;  %v6007_v53 = vpack.c.bf16 %v5369_v41, %v5369_v41  ;;  %v5340_v4 = vadd.f32 %v8977_v37, %v5301_v51  ;;  %v5304_v56 = vadd.f32 %v6472_v24, %v4834_v17  ;;  %v4832_v55 = vadd.f32 %v4779_v62, %v4106_v39 }
 0x26b   : > { %v5374_v26 = vmax.f32 %v5342_v59, 0.0  ;;  %v6441_v34 = vpop.f32.mrf.mxu1 }
 0x26c   : > { %5530 = vst.msk [vmem:[%s9002_s15 + $0x54] sm:$0xf] %vm5508_vm0, %v6007_v53  ;;  %v5372_v18 = vmax.f32 %v5340_v4, 0.0  ;;  %v5343_v32 = vadd.f32 %v8977_v37, %v5304_v56  ;;  %v5302_v31 = vadd.f32 %v5249_v33, %v4832_v55  ;;  %v4837_v5 = vadd.f32 %v6441_v34, %v4111_v1 }
 0x26d   : > { %v6012_v47 = vpack.c.bf16 %v5374_v26, %v5374_v26  ;;  %v4792_v24 = vpop.f32.mrf.mxu1  ;;  %v4110_v33 = vadd.f32 %v9457_v25, %v3751_v20 }
 0x26e   : > { %v6010_v54 = vpack.c.bf16 %v5372_v18, %v5372_v18  ;;  %v5375_v52 = vmax.f32 %v5343_v32, 0.0  ;;  %v5341_v21 = vadd.f32 %v8977_v37, %v5302_v31  ;;  %v5307_v40 = vadd.f32 %v6475_v63, %v4837_v5 }
 0x26f   : > { %5535 = vst.msk [vmem:[%s9002_s15 + $0x68] sm:$0xf] %vm5508_vm0, %v6012_v47  ;;  %v4835_v36 = vadd.f32 %v4792_v24, %v4109_v19  ;;  %v6442_v28 = vpop.f32.mrf.mxu1 }
 0x270   : > { %5533 = vst.msk [vmem:[%s9002_s15 + $0x60] sm:$0xf] %vm5508_vm0, %v6010_v54  ;;  %v6013_v16 = vpack.c.bf16 %v5375_v52, %v5375_v52  ;;  %v5373_v35 = vmax.f32 %v5341_v21, 0.0  ;;  %v5346_v50 = vadd.f32 %v8977_v37, %v5307_v40  ;;  %v4838_v11 = vadd.f32 %v6442_v28, %v4112_v23 }
 0x271   : > { %v5305_v49 = vadd.f32 %v5262_v9, %v4835_v36  ;;  %v4795_v0 = vpop.f32.mrf.mxu1 }
 0x272   : > { %5536 = vst.msk [vmem:[%s9002_s15 + $0x6c] sm:$0xf] %vm5508_vm0, %v6013_v16  ;;  %v6011_v15 = vpack.c.bf16 %v5373_v35, %v5373_v35  ;;  %v5378_v60 = vmax.f32 %v5346_v50, 0.0  ;;  %v5308_v27 = vadd.f32 %v6476_v38, %v4838_v11  ;;  %v4836_v6 = vadd.f32 %v4795_v0, %v4110_v33 }
 0x273   : > { %v5344_v10 = vadd.f32 %v8977_v37, %v5305_v49 }
 0x274   : > { %5534 = vst.msk [vmem:[%s9002_s15 + $0x64] sm:$0xf] %vm5508_vm0, %v6011_v15  ;;  %v6016_v57 = vpack.c.bf16 %v5378_v60, %v5378_v60  ;;  %v5347_v29 = vadd.f32 %v8977_v37, %v5308_v27  ;;  %v5306_v61 = vadd.f32 %v5265_v42, %v4836_v6 }
 0x275   : > { %v5376_v8 = vmax.f32 %v5344_v10, 0.0 }
 0x276   : > { %5539 = vst.msk [vmem:[%s9002_s15 + $0x78] sm:$0xf] %vm5508_vm0, %v6016_v57  ;;  %v5379_v12 = vmax.f32 %v5347_v29, 0.0  ;;  %v5345_v43 = vadd.f32 %v8977_v37, %v5306_v61 }
 0x277   : > { %v6014_v39 = vpack.c.bf16 %v5376_v8, %v5376_v8 }
 0x278   : > { %v6017_v63 = vpack.c.bf16 %v5379_v12, %v5379_v12  ;;  %v5377_v30 = vmax.f32 %v5345_v43, 0.0 }
 0x279   : > { %5537 = vst.msk [vmem:[%s9002_s15 + $0x70] sm:$0xf] %vm5508_vm0, %v6014_v39 }
 0x27a   : > { %5540 = vst.msk [vmem:[%s9002_s15 + $0x7c] sm:$0xf] %vm5508_vm0, %v6017_v63  ;;  %v6015_v41 = vpack.c.bf16 %v5377_v30, %v5377_v30 }
 0x27c   : > { %5538 = vst.msk [vmem:[%s9002_s15 + $0x74] sm:$0xf] %vm5508_vm0, %v6015_v41 }
 0x27d PF: > { %s13_s12 = sadd.s32 1, %s6559_s12  }
 0x27e   : > { %p10_p4 = scmp.ge.s32.totalorder %s13_s12, 4  }
 0x280   :  { %12 = sbr.rel (!%p10_p4) target bundleno = 1 (0x1), region = 73 }

</bundles_post_ra>
